<compile_context>
chip_gen: v7x
topology: tpu7x:2x2x1
jax: 0.10.0
libtpu: 0.0.40
codegen_flags: <defaults>
</compile_context>

<pallas_src>
import functools

import jax
import jax.numpy as jnp
from jax.experimental import pallas as pl
from jax.experimental.pallas import tpu as pltpu


# ----------------------------------------------------------------------------
# Fused Pallas kernel: whole FPN forward for one batch element.
# ----------------------------------------------------------------------------
def _fused_fpn_kernel(x1_ref, x2_ref, x3_ref,
                      w1_ref, b1_ref, w2_ref, b2_ref, w3_ref, b3_ref,
                      wm2_ref, bm2_ref, wm1_ref, bm1_ref,
                      u32_ref, u21_ref,
                      o1_ref, o2_ref, o3_ref,
                      *, hw_shapes, neg_slope, use_im2col):
    (H1, W1), (H2, W2), (H3, W3) = hw_shapes

    def lrelu(y):
        return jnp.where(y >= 0, y, y * neg_slope)

    def conv1x1(x_ref, w_ref, b_ref):
        # (HW, Cin) @ (Cin, Cout); BN scale folded into w, BN shift in b.
        y = jnp.dot(x_ref[...], w_ref[...], preferred_element_type=jnp.float32)
        return lrelu(y + b_ref[...])

    def conv3x3(x_flat, w_ref, b_ref, H, W):
        # x_flat: (H*W, C) f32; w_ref: (9*C, Cout) with BN scale folded in.
        C = x_flat.shape[-1]
        x = x_flat.reshape(H, W, C)
        # Zero-pad the 1-pixel halo entirely in VMEM (no HBM pad round-trip).
        zr = jnp.zeros((1, W, C), jnp.float32)
        x = jnp.concatenate([zr, x, zr], axis=0)             # (H+2, W,   C)
        zc = jnp.zeros((H + 2, 1, C), jnp.float32)
        x = jnp.concatenate([zc, x, zc], axis=1)             # (H+2, W+2, C)
        taps = [x[dy:dy + H, dx:dx + W, :].reshape(H * W, C)
                for dy in range(3) for dx in range(3)]
        if use_im2col:
            # One MXU pass with K = 9*C instead of nine K=C matmuls.
            patches = jnp.concatenate(taps, axis=-1)          # (H*W, 9*C)
            y = jnp.dot(patches, w_ref[...],
                        preferred_element_type=jnp.float32)
        else:
            # Conservative fallback: accumulate 9 taps (init from tap 0).
            w = w_ref[...]
            y = jnp.dot(taps[0], w[0:C, :],
                        preferred_element_type=jnp.float32)
            for k in range(1, 9):
                y = y + jnp.dot(taps[k], w[k * C:(k + 1) * C, :],
                                preferred_element_type=jnp.float32)
        return lrelu(y + b_ref[...])

    # Lateral 1x1 conv + (folded) BN + LeakyReLU.
    y1 = conv1x1(x1_ref, w1_ref, b1_ref)                      # (H1*W1, Cout)
    y2 = conv1x1(x2_ref, w2_ref, b2_ref)                      # (H2*W2, Cout)
    y3 = conv1x1(x3_ref, w3_ref, b3_ref)                      # (H3*W3, Cout)

    o3_ref[...] = y3.astype(o3_ref.dtype)

    # Top-down pathway. Nearest upsample == one-hot selection matmul (exactly
    # reproduces the floor-index gather of F.interpolate(mode='nearest')).
    up3 = jnp.dot(u32_ref[...], y3, preferred_element_type=jnp.float32)
    m2 = conv3x3(y2 + up3, wm2_ref, bm2_ref, H2, W2)
    o2_ref[...] = m2.astype(o2_ref.dtype)

    up2 = jnp.dot(u21_ref[...], m2, preferred_element_type=jnp.float32)
    m1 = conv3x3(y1 + up2, wm1_ref, bm1_ref, H1, W1)
    o1_ref[...] = m1.astype(o1_ref.dtype)


# ----------------------------------------------------------------------------
# Wrapper: fold BN, flatten layouts, build upsample matrices, one pallas_call.
# ----------------------------------------------------------------------------
def _nearest_matrix(h_in, w_in, h_out, w_out):
    """One-hot matrix M such that (M @ x_flat) == nearest-resize (floor idx)."""
    rows = (jnp.arange(h_out) * h_in) // h_out
    cols = (jnp.arange(w_out) * w_in) // w_out
    src = (rows[:, None] * w_in + cols[None, :]).reshape(-1)   # (h_out*w_out,)
    return (src[:, None] == jnp.arange(h_in * w_in)[None, :]).astype(jnp.float32)


def _fpn_forward_impl(params, inputs, out_channels, compute_dtype, use_im2col):
    leaky = 0.1 if out_channels <= 64 else 0.0
    x1, x2, x3 = inputs                          # NHWC, finest -> coarsest
    B, H1, W1, C1 = x1.shape
    _, H2, W2, C2 = x2.shape
    _, H3, W3, C3 = x3.shape
    Cout = out_channels
    hw1, hw2, hw3 = H1 * W1, H2 * W2, H3 * W3

    # ---- fold inference-mode BN into conv weights / bias -------------------
    def fold1x1(name):
        w, s, b = params[name]                   # (Cin, Cout), (Cout,), (Cout,)
        return (w * s[None, :]).astype(compute_dtype), b.reshape(1, Cout)

    def fold3x3(name):
        w, s, b = params[name]                   # (3, 3, Cin, Cout)
        cin = w.shape[2]
        w = (w * s.reshape(1, 1, 1, Cout)).reshape(9 * cin, Cout)
        return w.astype(compute_dtype), b.reshape(1, Cout)

    w1, b1 = fold1x1("output1")
    w2, b2 = fold1x1("output2")
    w3, b3 = fold1x1("output3")
    wm2, bm2 = fold3x3("merge2")
    wm1, bm1 = fold3x3("merge1")

    u32 = _nearest_matrix(H3, W3, H2, W2)        # (hw2, hw3)
    u21 = _nearest_matrix(H2, W2, H1, W1)        # (hw1, hw2)

    # Flattened activations: kernel sees clean (sublane=H*W, lane=C) tiles.
    x1f = x1.reshape(B, hw1, C1).astype(compute_dtype)
    x2f = x2.reshape(B, hw2, C2).astype(compute_dtype)
    x3f = x3.reshape(B, hw3, C3).astype(compute_dtype)

    kernel = functools.partial(
        _fused_fpn_kernel,
        hw_shapes=((H1, W1), (H2, W2), (H3, W3)),
        neg_slope=leaky,
        use_im2col=use_im2col)

    def batch_spec(hw, c):
        return pl.BlockSpec((None, hw, c), lambda b: (b, 0, 0))

    def full_spec(shape):
        nd = len(shape)
        return pl.BlockSpec(shape, lambda b, _nd=nd: (0,) * _nd)

    flops = 2 * B * (hw1 * C1 * Cout + hw2 * C2 * Cout + hw3 * C3 * Cout
                     + hw2 * hw3 * Cout + hw1 * hw2 * Cout
                     + 9 * Cout * Cout * (hw1 + hw2))
    itemsize = jnp.dtype(compute_dtype).itemsize
    bytes_accessed = (
        itemsize * (B * (hw1 * C1 + hw2 * C2 + hw3 * C3)
                    + Cout * (C1 + C2 + C3 + 18 * Cout))
        + 4 * (B * Cout * (hw1 + hw2 + hw3) + 5 * Cout
               + hw2 * hw3 + hw1 * hw2))

    o1f, o2f, o3f = pl.pallas_call(
        kernel,
        out_shape=(
            jax.ShapeDtypeStruct((B, hw1, Cout), jnp.float32),
            jax.ShapeDtypeStruct((B, hw2, Cout), jnp.float32),
            jax.ShapeDtypeStruct((B, hw3, Cout), jnp.float32),
        ),
        grid=(B,),
        in_specs=[
            batch_spec(hw1, C1), batch_spec(hw2, C2), batch_spec(hw3, C3),
            full_spec(w1.shape), full_spec(b1.shape),
            full_spec(w2.shape), full_spec(b2.shape),
            full_spec(w3.shape), full_spec(b3.shape),
            full_spec(wm2.shape), full_spec(bm2.shape),
            full_spec(wm1.shape), full_spec(bm1.shape),
            full_spec(u32.shape), full_spec(u21.shape),
        ],
        out_specs=(
            pl.BlockSpec((None, hw1, Cout), lambda b: (b, 0, 0)),
            pl.BlockSpec((None, hw2, Cout), lambda b: (b, 0, 0)),
            pl.BlockSpec((None, hw3, Cout), lambda b: (b, 0, 0)),
        ),
        compiler_params=pltpu.CompilerParams(
            dimension_semantics=("parallel",)),   # lets v7x use both TCs
        cost_estimate=pl.CostEstimate(
            flops=int(flops), transcendentals=0,
            bytes_accessed=int(bytes_accessed)),
    )(x1f, x2f, x3f, w1, b1, w2, b2, w3, b3, wm2, bm2, wm1, bm1, u32, u21)

    return [o1f.reshape(B, H1, W1, Cout),
            o2f.reshape(B, H2, W2, Cout),
            o3f.reshape(B, H3, W3, Cout)]


def fpn_forward(params, inputs, out_channels, compute_dtype=jnp.float32):
    """Fused FPN forward (NHWC). One pallas_call for the whole pyramid."""
    try:
        return _fpn_forward_impl(params, inputs, out_channels, compute_dtype,
                                 use_im2col=True)
    except Exception:
        # Robustness fallback: same fused kernel, but the 3x3 conv accumulates
        # nine shifted-tap matmuls instead of a lane-concat im2col matrix.
        return _fpn_forward_impl(params, inputs, out_channels, compute_dtype,
                                 use_im2col=False)


# ----------------------------------------------------------------------------
# Parameter construction (deterministic, synthetic)
# ----------------------------------------------------------------------------
def _fold_bn(gamma, beta, mean, var, eps=1e-5):
    scale = gamma / jnp.sqrt(var + eps)
    bias = beta - mean * scale
    return scale, bias


def make_fpn_params(key, in_channels_list, out_channels):
    params = {}

    def bn(key, c):
        k1, k2, k3, k4 = jax.random.split(key, 4)
        gamma = jax.random.uniform(k1, (c,), jnp.float32, 0.5, 1.5)
        beta = 0.1 * jax.random.normal(k2, (c,), jnp.float32)
        mean = 0.1 * jax.random.normal(k3, (c,), jnp.float32)
        var = jax.random.uniform(k4, (c,), jnp.float32, 0.5, 1.5)
        return _fold_bn(gamma, beta, mean, var)

    keys = jax.random.split(key, 10)
    # lateral 1x1 convs: weight layout (Cin, Cout)
    for i, cin in enumerate(in_channels_list):
        w = (jax.random.normal(keys[2 * i], (cin, out_channels), jnp.float32)
             * (1.0 / jnp.sqrt(cin)))
        scale, bias = bn(keys[2 * i + 1], out_channels)
        params[f"output{i + 1}"] = (w, scale, bias)
    # merge 3x3 convs: weight layout (3, 3, Cin, Cout)
    for j, name in enumerate(["merge1", "merge2"]):
        w = (jax.random.normal(keys[6 + 2 * j],
                               (3, 3, out_channels, out_channels), jnp.float32)
             * (1.0 / jnp.sqrt(9 * out_channels)))
        scale, bias = bn(keys[7 + 2 * j], out_channels)
        params[name] = (w, scale, bias)
    return params


# ----------------------------------------------------------------------------
# Pure-JAX reference (for correctness checking only)
# ----------------------------------------------------------------------------
def fpn_reference(params, inputs, out_channels):
    leaky = 0.1 if out_channels <= 64 else 0.0

    def lrelu(y):
        return jnp.where(y >= 0, y, y * leaky)

    def lateral(x, p):
        w, s, b = p
        y = jnp.einsum("bhwc,cd->bhwd", x, w, precision="highest")
        return lrelu(y * s + b)

    def merge(x, p):
        w, s, b = p
        y = jax.lax.conv_general_dilated(
            x, w, window_strides=(1, 1), padding=((1, 1), (1, 1)),
            dimension_numbers=("NHWC", "HWIO", "NHWC"),
            precision=jax.lax.Precision.HIGHEST)
        return lrelu(y * s + b)

    def upsample(x, h, w):
        rows = (jnp.arange(h) * x.shape[1]) // h
        cols = (jnp.arange(w) * x.shape[2]) // w
        return x[:, rows][:, :, cols]

    x1, x2, x3 = inputs
    o1 = lateral(x1, params["output1"])
    o2 = lateral(x2, params["output2"])
    o3 = lateral(x3, params["output3"])
    o2 = merge(o2 + upsample(o3, o2.shape[1], o2.shape[2]), params["merge2"])
    o1 = merge(o1 + upsample(o2, o1.shape[1], o1.shape[2]), params["merge1"])
    return [o1, o2, o3]


# ----------------------------------------------------------------------------
if __name__ == "__main__":
    key = jax.random.PRNGKey(0)
    kp, k1, k2, k3 = jax.random.split(key, 4)

    B = 2
    in_channels_list = [16, 24, 40]
    out_channels = 32
    # pyramid spatial sizes (NHWC): 16x16, 8x8, 4x4 (finest -> coarsest)
    x1 = jax.random.normal(k1, (B, 16, 16, in_channels_list[0]), jnp.float32)
    x2 = jax.random.normal(k2, (B, 8, 8, in_channels_list[1]), jnp.float32)
    x3 = jax.random.normal(k3, (B, 4, 4, in_channels_list[2]), jnp.float32)

    params = make_fpn_params(kp, in_channels_list, out_channels)

    outs = fpn_forward(params, (x1, x2, x3), out_channels)
    outs = jax.block_until_ready(outs)

    expected_shapes = [(B, 16, 16, out_channels),
                       (B, 8, 8, out_channels),
                       (B, 4, 4, out_channels)]
    assert [o.shape for o in outs] == expected_shapes, [o.shape for o in outs]
    assert all(bool(jnp.all(jnp.isfinite(o))) for o in outs)

    refs = fpn_reference(params, (x1, x2, x3), out_channels)
    max_err = max(float(jnp.max(jnp.abs(o - r))) for o, r in zip(outs, refs))
    assert max_err < 1e-1, f"mismatch vs reference: max_err={max_err}"

    print("KERNEL_OK")
</pallas_src>

<mosaic_0001>
module attributes {stable_mosaic.version = 11 : i64} {
  func.func @_fused_fpn_kernel(%arg0: i32, %arg1: memref<1x256x16xf32, #tpu.memory_space<vmem>>, %arg2: memref<1x64x24xf32, #tpu.memory_space<vmem>>, %arg3: memref<1x16x40xf32, #tpu.memory_space<vmem>>, %arg4: memref<16x32xf32, #tpu.memory_space<vmem>>, %arg5: memref<1x32xf32, #tpu.memory_space<vmem>>, %arg6: memref<24x32xf32, #tpu.memory_space<vmem>>, %arg7: memref<1x32xf32, #tpu.memory_space<vmem>>, %arg8: memref<40x32xf32, #tpu.memory_space<vmem>>, %arg9: memref<1x32xf32, #tpu.memory_space<vmem>>, %arg10: memref<288x32xf32, #tpu.memory_space<vmem>>, %arg11: memref<1x32xf32, #tpu.memory_space<vmem>>, %arg12: memref<288x32xf32, #tpu.memory_space<vmem>>, %arg13: memref<1x32xf32, #tpu.memory_space<vmem>>, %arg14: memref<64x16xf32, #tpu.memory_space<vmem>>, %arg15: memref<256x64xf32, #tpu.memory_space<vmem>>, %arg16: memref<1x256x32xf32, #tpu.memory_space<vmem>>, %arg17: memref<1x64x32xf32, #tpu.memory_space<vmem>>, %arg18: memref<1x16x32xf32, #tpu.memory_space<vmem>>) attributes {dimension_semantics = [#tpu.dimension_semantics<parallel>], iteration_bounds = array<i64: 2>, scalar_prefetch = 0 : i64, scratch_operands = 0 : i64, tpu.core_type = #tpu.core_type<tc>, window_params = [{transform_indices = @transform_0, window_bounds = array<i64: 1, 256, 16>}, {transform_indices = @transform_1, window_bounds = array<i64: 1, 64, 24>}, {transform_indices = @transform_2, window_bounds = array<i64: 1, 16, 40>}, {pipeline_mode = #tpu.pipeline_mode<synchronous>, transform_indices = @transform_3, window_bounds = array<i64: 16, 32>}, {pipeline_mode = #tpu.pipeline_mode<synchronous>, transform_indices = @transform_4, window_bounds = array<i64: 1, 32>}, {pipeline_mode = #tpu.pipeline_mode<synchronous>, transform_indices = @transform_5, window_bounds = array<i64: 24, 32>}, {pipeline_mode = #tpu.pipeline_mode<synchronous>, transform_indices = @transform_6, window_bounds = array<i64: 1, 32>}, {pipeline_mode = #tpu.pipeline_mode<synchronous>, transform_indices = @transform_7, window_bounds = array<i64: 40, 32>}, {pipeline_mode = #tpu.pipeline_mode<synchronous>, transform_indices = @transform_8, window_bounds = array<i64: 1, 32>}, {pipeline_mode = #tpu.pipeline_mode<synchronous>, transform_indices = @transform_9, window_bounds = array<i64: 288, 32>}, {pipeline_mode = #tpu.pipeline_mode<synchronous>, transform_indices = @transform_10, window_bounds = array<i64: 1, 32>}, {pipeline_mode = #tpu.pipeline_mode<synchronous>, transform_indices = @transform_11, window_bounds = array<i64: 288, 32>}, {pipeline_mode = #tpu.pipeline_mode<synchronous>, transform_indices = @transform_12, window_bounds = array<i64: 1, 32>}, {pipeline_mode = #tpu.pipeline_mode<synchronous>, transform_indices = @transform_13, window_bounds = array<i64: 64, 16>}, {pipeline_mode = #tpu.pipeline_mode<synchronous>, transform_indices = @transform_14, window_bounds = array<i64: 256, 64>}, {transform_indices = @transform_15, window_bounds = array<i64: 1, 256, 32>}, {transform_indices = @transform_16, window_bounds = array<i64: 1, 64, 32>}, {transform_indices = @transform_17, window_bounds = array<i64: 1, 16, 32>}]} {
    %c0 = arith.constant 0 : index
    %c0_0 = arith.constant 0 : index
    %c0_1 = arith.constant 0 : index
    %0 = vector.load %arg1[%c0, %c0_0, %c0_1] : memref<1x256x16xf32, #tpu.memory_space<vmem>>, vector<1x256x16xf32>
    %1 = vector.shape_cast %0 : vector<1x256x16xf32> to vector<256x16xf32>
    %c0_2 = arith.constant 0 : index
    %c0_3 = arith.constant 0 : index
    %2 = vector.load %arg4[%c0_2, %c0_3] : memref<16x32xf32, #tpu.memory_space<vmem>>, vector<16x32xf32>
    %cst = arith.constant dense<0.000000e+00> : vector<256x32xf32>
    %3 = tpu.matmul %1, %2, %cst {dimension_numbers = #tpu.dot_dimension_numbers<[1], [0], [0], [1], [0, 0, 1, 1], [], []>} : vector<256x16xf32>, vector<16x32xf32>, vector<256x32xf32> -> vector<256x32xf32>
    %c0_4 = arith.constant 0 : index
    %c0_5 = arith.constant 0 : index
    %4 = vector.load %arg5[%c0_4, %c0_5] : memref<1x32xf32, #tpu.memory_space<vmem>>, vector<1x32xf32>
    %5 = vector.broadcast %4 : vector<1x32xf32> to vector<256x32xf32>
    %6 = arith.addf %3, %5 : vector<256x32xf32>
    %cst_6 = arith.constant 0.000000e+00 : f32
    %7 = vector.broadcast %cst_6 : f32 to vector<256x32xf32>
    %8 = arith.cmpf oge, %6, %7 : vector<256x32xf32>
    %cst_7 = arith.constant 1.000000e-01 : f32
    %9 = vector.broadcast %cst_7 : f32 to vector<256x32xf32>
    %10 = arith.mulf %6, %9 : vector<256x32xf32>
    %11 = arith.select %8, %6, %10 : vector<256x32xi1>, vector<256x32xf32>
    %c0_8 = arith.constant 0 : index
    %c0_9 = arith.constant 0 : index
    %c0_10 = arith.constant 0 : index
    %12 = vector.load %arg2[%c0_8, %c0_9, %c0_10] : memref<1x64x24xf32, #tpu.memory_space<vmem>>, vector<1x64x24xf32>
    %13 = vector.shape_cast %12 : vector<1x64x24xf32> to vector<64x24xf32>
    %c0_11 = arith.constant 0 : index
    %c0_12 = arith.constant 0 : index
    %14 = vector.load %arg6[%c0_11, %c0_12] : memref<24x32xf32, #tpu.memory_space<vmem>>, vector<24x32xf32>
    %cst_13 = arith.constant dense<0.000000e+00> : vector<64x32xf32>
    %15 = tpu.matmul %13, %14, %cst_13 {dimension_numbers = #tpu.dot_dimension_numbers<[1], [0], [0], [1], [0, 0, 1, 1], [], []>} : vector<64x24xf32>, vector<24x32xf32>, vector<64x32xf32> -> vector<64x32xf32>
    %c0_14 = arith.constant 0 : index
    %c0_15 = arith.constant 0 : index
    %16 = vector.load %arg7[%c0_14, %c0_15] : memref<1x32xf32, #tpu.memory_space<vmem>>, vector<1x32xf32>
    %17 = vector.broadcast %16 : vector<1x32xf32> to vector<64x32xf32>
    %18 = arith.addf %15, %17 : vector<64x32xf32>
    %cst_16 = arith.constant 0.000000e+00 : f32
    %19 = vector.broadcast %cst_16 : f32 to vector<64x32xf32>
    %20 = arith.cmpf oge, %18, %19 : vector<64x32xf32>
    %cst_17 = arith.constant 1.000000e-01 : f32
    %21 = vector.broadcast %cst_17 : f32 to vector<64x32xf32>
    %22 = arith.mulf %18, %21 : vector<64x32xf32>
    %23 = arith.select %20, %18, %22 : vector<64x32xi1>, vector<64x32xf32>
    %c0_18 = arith.constant 0 : index
    %c0_19 = arith.constant 0 : index
    %c0_20 = arith.constant 0 : index
    %24 = vector.load %arg3[%c0_18, %c0_19, %c0_20] : memref<1x16x40xf32, #tpu.memory_space<vmem>>, vector<1x16x40xf32>
    %25 = vector.shape_cast %24 : vector<1x16x40xf32> to vector<16x40xf32>
    %c0_21 = arith.constant 0 : index
    %c0_22 = arith.constant 0 : index
    %26 = vector.load %arg8[%c0_21, %c0_22] : memref<40x32xf32, #tpu.memory_space<vmem>>, vector<40x32xf32>
    %cst_23 = arith.constant dense<0.000000e+00> : vector<16x32xf32>
    %27 = tpu.matmul %25, %26, %cst_23 {dimension_numbers = #tpu.dot_dimension_numbers<[1], [0], [0], [1], [0, 0, 1, 1], [], []>} : vector<16x40xf32>, vector<40x32xf32>, vector<16x32xf32> -> vector<16x32xf32>
    %c0_24 = arith.constant 0 : index
    %c0_25 = arith.constant 0 : index
    %28 = vector.load %arg9[%c0_24, %c0_25] : memref<1x32xf32, #tpu.memory_space<vmem>>, vector<1x32xf32>
    %29 = vector.broadcast %28 : vector<1x32xf32> to vector<16x32xf32>
    %30 = arith.addf %27, %29 : vector<16x32xf32>
    %cst_26 = arith.constant 0.000000e+00 : f32
    %31 = vector.broadcast %cst_26 : f32 to vector<16x32xf32>
    %32 = arith.cmpf oge, %30, %31 : vector<16x32xf32>
    %cst_27 = arith.constant 1.000000e-01 : f32
    %33 = vector.broadcast %cst_27 : f32 to vector<16x32xf32>
    %34 = arith.mulf %30, %33 : vector<16x32xf32>
    %35 = arith.select %32, %30, %34 : vector<16x32xi1>, vector<16x32xf32>
    %c0_28 = arith.constant 0 : index
    %c0_29 = arith.constant 0 : index
    %c0_30 = arith.constant 0 : index
    %36 = vector.load %arg18[%c0_28, %c0_29, %c0_30] : memref<1x16x32xf32, #tpu.memory_space<vmem>>, vector<1x16x32xf32>
    %37 = vector.shape_cast %36 : vector<1x16x32xf32> to vector<16x32xf32>
    %38 = vector.shape_cast %35 : vector<16x32xf32> to vector<1x16x32xf32>
    tpu.vector_store %arg18[%c0_28, %c0_29, %c0_30], %38 {strides = array<i32>} : memref<1x16x32xf32, #tpu.memory_space<vmem>>, vector<1x16x32xf32>,
    %c0_31 = arith.constant 0 : index
    %c0_32 = arith.constant 0 : index
    %39 = vector.load %arg14[%c0_31, %c0_32] : memref<64x16xf32, #tpu.memory_space<vmem>>, vector<64x16xf32>
    %cst_33 = arith.constant dense<0.000000e+00> : vector<64x32xf32>
    %40 = tpu.matmul %39, %35, %cst_33 {dimension_numbers = #tpu.dot_dimension_numbers<[1], [0], [0], [1], [0, 0, 1, 1], [], []>} : vector<64x16xf32>, vector<16x32xf32>, vector<64x32xf32> -> vector<64x32xf32>
    %41 = arith.addf %23, %40 : vector<64x32xf32>
    %42 = vector.shape_cast %41 : vector<64x32xf32> to vector<8x8x32xf32>
    %cst_34 = arith.constant 0.000000e+00 : f32
    %43 = vector.broadcast %cst_34 : f32 to vector<1x8x32xf32>
    %44 = tpu.concatenate %43, %42, %43 in 0 : vector<1x8x32xf32>, vector<8x8x32xf32>, vector<1x8x32xf32> -> vector<10x8x32xf32>
    %cst_35 = arith.constant 0.000000e+00 : f32
    %45 = vector.broadcast %cst_35 : f32 to vector<10x1x32xf32>
    %46 = tpu.concatenate %45, %44, %45 in 1 : vector<10x1x32xf32>, vector<10x8x32xf32>, vector<10x1x32xf32> -> vector<10x10x32xf32>
    %47 = vector.extract_strided_slice %46 {offsets = [0, 0, 0], sizes = [8, 8, 32], strides = [1, 1, 1]} : vector<10x10x32xf32> to vector<8x8x32xf32>
    %48 = vector.shape_cast %47 : vector<8x8x32xf32> to vector<64x32xf32>
    %49 = vector.extract_strided_slice %46 {offsets = [0, 1, 0], sizes = [8, 8, 32], strides = [1, 1, 1]} : vector<10x10x32xf32> to vector<8x8x32xf32>
    %50 = vector.shape_cast %49 : vector<8x8x32xf32> to vector<64x32xf32>
    %51 = vector.extract_strided_slice %46 {offsets = [0, 2, 0], sizes = [8, 8, 32], strides = [1, 1, 1]} : vector<10x10x32xf32> to vector<8x8x32xf32>
    %52 = vector.shape_cast %51 : vector<8x8x32xf32> to vector<64x32xf32>
    %53 = vector.extract_strided_slice %46 {offsets = [1, 0, 0], sizes = [8, 8, 32], strides = [1, 1, 1]} : vector<10x10x32xf32> to vector<8x8x32xf32>
    %54 = vector.shape_cast %53 : vector<8x8x32xf32> to vector<64x32xf32>
    %55 = vector.extract_strided_slice %46 {offsets = [1, 1, 0], sizes = [8, 8, 32], strides = [1, 1, 1]} : vector<10x10x32xf32> to vector<8x8x32xf32>
    %56 = vector.shape_cast %55 : vector<8x8x32xf32> to vector<64x32xf32>
    %57 = vector.extract_strided_slice %46 {offsets = [1, 2, 0], sizes = [8, 8, 32], strides = [1, 1, 1]} : vector<10x10x32xf32> to vector<8x8x32xf32>
    %58 = vector.shape_cast %57 : vector<8x8x32xf32> to vector<64x32xf32>
    %59 = vector.extract_strided_slice %46 {offsets = [2, 0, 0], sizes = [8, 8, 32], strides = [1, 1, 1]} : vector<10x10x32xf32> to vector<8x8x32xf32>
    %60 = vector.shape_cast %59 : vector<8x8x32xf32> to vector<64x32xf32>
    %61 = vector.extract_strided_slice %46 {offsets = [2, 1, 0], sizes = [8, 8, 32], strides = [1, 1, 1]} : vector<10x10x32xf32> to vector<8x8x32xf32>
    %62 = vector.shape_cast %61 : vector<8x8x32xf32> to vector<64x32xf32>
    %63 = vector.extract_strided_slice %46 {offsets = [2, 2, 0], sizes = [8, 8, 32], strides = [1, 1, 1]} : vector<10x10x32xf32> to vector<8x8x32xf32>
    %64 = vector.shape_cast %63 : vector<8x8x32xf32> to vector<64x32xf32>
    %65 = tpu.concatenate %48, %50, %52, %54, %56, %58, %60, %62, %64 in 1 : vector<64x32xf32>, vector<64x32xf32>, vector<64x32xf32>, vector<64x32xf32>, vector<64x32xf32>, vector<64x32xf32>, vector<64x32xf32>, vector<64x32xf32>, vector<64x32xf32> -> vector<64x288xf32>
    %c0_36 = arith.constant 0 : index
    %c0_37 = arith.constant 0 : index
    %66 = vector.load %arg10[%c0_36, %c0_37] : memref<288x32xf32, #tpu.memory_space<vmem>>, vector<288x32xf32>
    %cst_38 = arith.constant dense<0.000000e+00> : vector<64x32xf32>
    %67 = tpu.matmul %65, %66, %cst_38 {dimension_numbers = #tpu.dot_dimension_numbers<[1], [0], [0], [1], [0, 0, 1, 1], [], []>} : vector<64x288xf32>, vector<288x32xf32>, vector<64x32xf32> -> vector<64x32xf32>
    %c0_39 = arith.constant 0 : index
    %c0_40 = arith.constant 0 : index
    %68 = vector.load %arg11[%c0_39, %c0_40] : memref<1x32xf32, #tpu.memory_space<vmem>>, vector<1x32xf32>
    %69 = vector.broadcast %68 : vector<1x32xf32> to vector<64x32xf32>
    %70 = arith.addf %67, %69 : vector<64x32xf32>
    %cst_41 = arith.constant 0.000000e+00 : f32
    %71 = vector.broadcast %cst_41 : f32 to vector<64x32xf32>
    %72 = arith.cmpf oge, %70, %71 : vector<64x32xf32>
    %cst_42 = arith.constant 1.000000e-01 : f32
    %73 = vector.broadcast %cst_42 : f32 to vector<64x32xf32>
    %74 = arith.mulf %70, %73 : vector<64x32xf32>
    %75 = arith.select %72, %70, %74 : vector<64x32xi1>, vector<64x32xf32>
    %c0_43 = arith.constant 0 : index
    %c0_44 = arith.constant 0 : index
    %c0_45 = arith.constant 0 : index
    %76 = vector.load %arg17[%c0_43, %c0_44, %c0_45] : memref<1x64x32xf32, #tpu.memory_space<vmem>>, vector<1x64x32xf32>
    %77 = vector.shape_cast %76 : vector<1x64x32xf32> to vector<64x32xf32>
    %78 = vector.shape_cast %75 : vector<64x32xf32> to vector<1x64x32xf32>
    tpu.vector_store %arg17[%c0_43, %c0_44, %c0_45], %78 {strides = array<i32>} : memref<1x64x32xf32, #tpu.memory_space<vmem>>, vector<1x64x32xf32>,
    %c0_46 = arith.constant 0 : index
    %c0_47 = arith.constant 0 : index
    %79 = vector.load %arg15[%c0_46, %c0_47] : memref<256x64xf32, #tpu.memory_space<vmem>>, vector<256x64xf32>
    %cst_48 = arith.constant dense<0.000000e+00> : vector<256x32xf32>
    %80 = tpu.matmul %79, %75, %cst_48 {dimension_numbers = #tpu.dot_dimension_numbers<[1], [0], [0], [1], [0, 0, 1, 1], [], []>} : vector<256x64xf32>, vector<64x32xf32>, vector<256x32xf32> -> vector<256x32xf32>
    %81 = arith.addf %11, %80 : vector<256x32xf32>
    %82 = vector.shape_cast %81 : vector<256x32xf32> to vector<16x16x32xf32>
    %cst_49 = arith.constant 0.000000e+00 : f32
    %83 = vector.broadcast %cst_49 : f32 to vector<1x16x32xf32>
    %84 = tpu.concatenate %83, %82, %83 in 0 : vector<1x16x32xf32>, vector<16x16x32xf32>, vector<1x16x32xf32> -> vector<18x16x32xf32>
    %cst_50 = arith.constant 0.000000e+00 : f32
    %85 = vector.broadcast %cst_50 : f32 to vector<18x1x32xf32>
    %86 = tpu.concatenate %85, %84, %85 in 1 : vector<18x1x32xf32>, vector<18x16x32xf32>, vector<18x1x32xf32> -> vector<18x18x32xf32>
    %87 = vector.extract_strided_slice %86 {offsets = [0, 0, 0], sizes = [16, 16, 32], strides = [1, 1, 1]} : vector<18x18x32xf32> to vector<16x16x32xf32>
    %88 = vector.shape_cast %87 : vector<16x16x32xf32> to vector<256x32xf32>
    %89 = vector.extract_strided_slice %86 {offsets = [0, 1, 0], sizes = [16, 16, 32], strides = [1, 1, 1]} : vector<18x18x32xf32> to vector<16x16x32xf32>
    %90 = vector.shape_cast %89 : vector<16x16x32xf32> to vector<256x32xf32>
    %91 = vector.extract_strided_slice %86 {offsets = [0, 2, 0], sizes = [16, 16, 32], strides = [1, 1, 1]} : vector<18x18x32xf32> to vector<16x16x32xf32>
    %92 = vector.shape_cast %91 : vector<16x16x32xf32> to vector<256x32xf32>
    %93 = vector.extract_strided_slice %86 {offsets = [1, 0, 0], sizes = [16, 16, 32], strides = [1, 1, 1]} : vector<18x18x32xf32> to vector<16x16x32xf32>
    %94 = vector.shape_cast %93 : vector<16x16x32xf32> to vector<256x32xf32>
    %95 = vector.extract_strided_slice %86 {offsets = [1, 1, 0], sizes = [16, 16, 32], strides = [1, 1, 1]} : vector<18x18x32xf32> to vector<16x16x32xf32>
    %96 = vector.shape_cast %95 : vector<16x16x32xf32> to vector<256x32xf32>
    %97 = vector.extract_strided_slice %86 {offsets = [1, 2, 0], sizes = [16, 16, 32], strides = [1, 1, 1]} : vector<18x18x32xf32> to vector<16x16x32xf32>
    %98 = vector.shape_cast %97 : vector<16x16x32xf32> to vector<256x32xf32>
    %99 = vector.extract_strided_slice %86 {offsets = [2, 0, 0], sizes = [16, 16, 32], strides = [1, 1, 1]} : vector<18x18x32xf32> to vector<16x16x32xf32>
    %100 = vector.shape_cast %99 : vector<16x16x32xf32> to vector<256x32xf32>
    %101 = vector.extract_strided_slice %86 {offsets = [2, 1, 0], sizes = [16, 16, 32], strides = [1, 1, 1]} : vector<18x18x32xf32> to vector<16x16x32xf32>
    %102 = vector.shape_cast %101 : vector<16x16x32xf32> to vector<256x32xf32>
    %103 = vector.extract_strided_slice %86 {offsets = [2, 2, 0], sizes = [16, 16, 32], strides = [1, 1, 1]} : vector<18x18x32xf32> to vector<16x16x32xf32>
    %104 = vector.shape_cast %103 : vector<16x16x32xf32> to vector<256x32xf32>
    %105 = tpu.concatenate %88, %90, %92, %94, %96, %98, %100, %102, %104 in 1 : vector<256x32xf32>, vector<256x32xf32>, vector<256x32xf32>, vector<256x32xf32>, vector<256x32xf32>, vector<256x32xf32>, vector<256x32xf32>, vector<256x32xf32>, vector<256x32xf32> -> vector<256x288xf32>
    %c0_51 = arith.constant 0 : index
    %c0_52 = arith.constant 0 : index
    %106 = vector.load %arg12[%c0_51, %c0_52] : memref<288x32xf32, #tpu.memory_space<vmem>>, vector<288x32xf32>
    %cst_53 = arith.constant dense<0.000000e+00> : vector<256x32xf32>
    %107 = tpu.matmul %105, %106, %cst_53 {dimension_numbers = #tpu.dot_dimension_numbers<[1], [0], [0], [1], [0, 0, 1, 1], [], []>} : vector<256x288xf32>, vector<288x32xf32>, vector<256x32xf32> -> vector<256x32xf32>
    %c0_54 = arith.constant 0 : index
    %c0_55 = arith.constant 0 : index
    %108 = vector.load %arg13[%c0_54, %c0_55] : memref<1x32xf32, #tpu.memory_space<vmem>>, vector<1x32xf32>
    %109 = vector.broadcast %108 : vector<1x32xf32> to vector<256x32xf32>
    %110 = arith.addf %107, %109 : vector<256x32xf32>
    %cst_56 = arith.constant 0.000000e+00 : f32
    %111 = vector.broadcast %cst_56 : f32 to vector<256x32xf32>
    %112 = arith.cmpf oge, %110, %111 : vector<256x32xf32>
    %cst_57 = arith.constant 1.000000e-01 : f32
    %113 = vector.broadcast %cst_57 : f32 to vector<256x32xf32>
    %114 = arith.mulf %110, %113 : vector<256x32xf32>
    %115 = arith.select %112, %110, %114 : vector<256x32xi1>, vector<256x32xf32>
    %c0_58 = arith.constant 0 : index
    %c0_59 = arith.constant 0 : index
    %c0_60 = arith.constant 0 : index
    %116 = vector.load %arg16[%c0_58, %c0_59, %c0_60] : memref<1x256x32xf32, #tpu.memory_space<vmem>>, vector<1x256x32xf32>
    %117 = vector.shape_cast %116 : vector<1x256x32xf32> to vector<256x32xf32>
    %118 = vector.shape_cast %115 : vector<256x32xf32> to vector<1x256x32xf32>
    tpu.vector_store %arg16[%c0_58, %c0_59, %c0_60], %118 {strides = array<i32>} : memref<1x256x32xf32, #tpu.memory_space<vmem>>, vector<1x256x32xf32>,
    return
  }
  func.func @transform_0(%arg0: i32) -> (i32, i32, i32) {
    %c0_i32 = arith.constant 0 : i32
    %c0_i32_0 = arith.constant 0 : i32
    %c0_i32_1 = arith.constant 0 : i32
    return %arg0, %c0_i32, %c0_i32_0 : i32, i32, i32
  }
  func.func @transform_1(%arg0: i32) -> (i32, i32, i32) {
    %c0_i32 = arith.constant 0 : i32
    %c0_i32_0 = arith.constant 0 : i32
    %c0_i32_1 = arith.constant 0 : i32
    return %arg0, %c0_i32, %c0_i32_0 : i32, i32, i32
  }
  func.func @transform_2(%arg0: i32) -> (i32, i32, i32) {
    %c0_i32 = arith.constant 0 : i32
    %c0_i32_0 = arith.constant 0 : i32
    %c0_i32_1 = arith.constant 0 : i32
    return %arg0, %c0_i32, %c0_i32_0 : i32, i32, i32
  }
  func.func @transform_3(%arg0: i32) -> (i32, i32) {
    %c0_i32 = arith.constant 0 : i32
    %c0_i32_0 = arith.constant 0 : i32
    %c0_i32_1 = arith.constant 0 : i32
    return %c0_i32, %c0_i32_0 : i32, i32
  }
  func.func @transform_4(%arg0: i32) -> (i32, i32) {
    %c0_i32 = arith.constant 0 : i32
    %c0_i32_0 = arith.constant 0 : i32
    %c0_i32_1 = arith.constant 0 : i32
    return %c0_i32, %c0_i32_0 : i32, i32
  }
  func.func @transform_5(%arg0: i32) -> (i32, i32) {
    %c0_i32 = arith.constant 0 : i32
    %c0_i32_0 = arith.constant 0 : i32
    %c0_i32_1 = arith.constant 0 : i32
    return %c0_i32, %c0_i32_0 : i32, i32
  }
  func.func @transform_6(%arg0: i32) -> (i32, i32) {
    %c0_i32 = arith.constant 0 : i32
    %c0_i32_0 = arith.constant 0 : i32
    %c0_i32_1 = arith.constant 0 : i32
    return %c0_i32, %c0_i32_0 : i32, i32
  }
  func.func @transform_7(%arg0: i32) -> (i32, i32) {
    %c0_i32 = arith.constant 0 : i32
    %c0_i32_0 = arith.constant 0 : i32
    %c0_i32_1 = arith.constant 0 : i32
    return %c0_i32, %c0_i32_0 : i32, i32
  }
  func.func @transform_8(%arg0: i32) -> (i32, i32) {
    %c0_i32 = arith.constant 0 : i32
    %c0_i32_0 = arith.constant 0 : i32
    %c0_i32_1 = arith.constant 0 : i32
    return %c0_i32, %c0_i32_0 : i32, i32
  }
  func.func @transform_9(%arg0: i32) -> (i32, i32) {
    %c0_i32 = arith.constant 0 : i32
    %c0_i32_0 = arith.constant 0 : i32
    %c0_i32_1 = arith.constant 0 : i32
    return %c0_i32, %c0_i32_0 : i32, i32
  }
  func.func @transform_10(%arg0: i32) -> (i32, i32) {
    %c0_i32 = arith.constant 0 : i32
    %c0_i32_0 = arith.constant 0 : i32
    %c0_i32_1 = arith.constant 0 : i32
    return %c0_i32, %c0_i32_0 : i32, i32
  }
  func.func @transform_11(%arg0: i32) -> (i32, i32) {
    %c0_i32 = arith.constant 0 : i32
    %c0_i32_0 = arith.constant 0 : i32
    %c0_i32_1 = arith.constant 0 : i32
    return %c0_i32, %c0_i32_0 : i32, i32
  }
  func.func @transform_12(%arg0: i32) -> (i32, i32) {
    %c0_i32 = arith.constant 0 : i32
    %c0_i32_0 = arith.constant 0 : i32
    %c0_i32_1 = arith.constant 0 : i32
    return %c0_i32, %c0_i32_0 : i32, i32
  }
  func.func @transform_13(%arg0: i32) -> (i32, i32) {
    %c0_i32 = arith.constant 0 : i32
    %c0_i32_0 = arith.constant 0 : i32
    %c0_i32_1 = arith.constant 0 : i32
    return %c0_i32, %c0_i32_0 : i32, i32
  }
  func.func @transform_14(%arg0: i32) -> (i32, i32) {
    %c0_i32 = arith.constant 0 : i32
    %c0_i32_0 = arith.constant 0 : i32
    %c0_i32_1 = arith.constant 0 : i32
    return %c0_i32, %c0_i32_0 : i32, i32
  }
  func.func @transform_15(%arg0: i32) -> (i32, i32, i32) {
    %c0_i32 = arith.constant 0 : i32
    %c0_i32_0 = arith.constant 0 : i32
    %c0_i32_1 = arith.constant 0 : i32
    return %arg0, %c0_i32, %c0_i32_0 : i32, i32, i32
  }
  func.func @transform_16(%arg0: i32) -> (i32, i32, i32) {
    %c0_i32 = arith.constant 0 : i32
    %c0_i32_0 = arith.constant 0 : i32
    %c0_i32_1 = arith.constant 0 : i32
    return %arg0, %c0_i32, %c0_i32_0 : i32, i32, i32
  }
  func.func @transform_17(%arg0: i32) -> (i32, i32, i32) {
    %c0_i32 = arith.constant 0 : i32
    %c0_i32_0 = arith.constant 0 : i32
    %c0_i32_1 = arith.constant 0 : i32
    return %arg0, %c0_i32, %c0_i32_0 : i32, i32, i32
  }
}

module attributes {stable_mosaic.version = 11 : i64} {
  func.func @_fused_fpn_kernel(%arg0: i32, %arg1: memref<1x256x16xf32, #tpu.memory_space<vmem>>, %arg2: memref<1x64x24xf32, #tpu.memory_space<vmem>>, %arg3: memref<1x16x40xf32, #tpu.memory_space<vmem>>, %arg4: memref<16x32xf32, #tpu.memory_space<vmem>>, %arg5: memref<1x32xf32, #tpu.memory_space<vmem>>, %arg6: memref<24x32xf32, #tpu.memory_space<vmem>>, %arg7: memref<1x32xf32, #tpu.memory_space<vmem>>, %arg8: memref<40x32xf32, #tpu.memory_space<vmem>>, %arg9: memref<1x32xf32, #tpu.memory_space<vmem>>, %arg10: memref<288x32xf32, #tpu.memory_space<vmem>>, %arg11: memref<1x32xf32, #tpu.memory_space<vmem>>, %arg12: memref<288x32xf32, #tpu.memory_space<vmem>>, %arg13: memref<1x32xf32, #tpu.memory_space<vmem>>, %arg14: memref<64x16xf32, #tpu.memory_space<vmem>>, %arg15: memref<256x64xf32, #tpu.memory_space<vmem>>, %arg16: memref<1x256x32xf32, #tpu.memory_space<vmem>>, %arg17: memref<1x64x32xf32, #tpu.memory_space<vmem>>, %arg18: memref<1x16x32xf32, #tpu.memory_space<vmem>>) attributes {dimension_semantics = [#tpu.dimension_semantics<parallel>], iteration_bounds = array<i64: 2>, scalar_prefetch = 0 : i64, scratch_operands = 0 : i64, tpu.core_type = #tpu.core_type<tc>, window_params = [{transform_indices = @transform_0, window_bounds = array<i64: 1, 256, 16>}, {transform_indices = @transform_1, window_bounds = array<i64: 1, 64, 24>}, {transform_indices = @transform_2, window_bounds = array<i64: 1, 16, 40>}, {pipeline_mode = #tpu.pipeline_mode<synchronous>, transform_indices = @transform_3, window_bounds = array<i64: 16, 32>}, {pipeline_mode = #tpu.pipeline_mode<synchronous>, transform_indices = @transform_4, window_bounds = array<i64: 1, 32>}, {pipeline_mode = #tpu.pipeline_mode<synchronous>, transform_indices = @transform_5, window_bounds = array<i64: 24, 32>}, {pipeline_mode = #tpu.pipeline_mode<synchronous>, transform_indices = @transform_6, window_bounds = array<i64: 1, 32>}, {pipeline_mode = #tpu.pipeline_mode<synchronous>, transform_indices = @transform_7, window_bounds = array<i64: 40, 32>}, {pipeline_mode = #tpu.pipeline_mode<synchronous>, transform_indices = @transform_8, window_bounds = array<i64: 1, 32>}, {pipeline_mode = #tpu.pipeline_mode<synchronous>, transform_indices = @transform_9, window_bounds = array<i64: 288, 32>}, {pipeline_mode = #tpu.pipeline_mode<synchronous>, transform_indices = @transform_10, window_bounds = array<i64: 1, 32>}, {pipeline_mode = #tpu.pipeline_mode<synchronous>, transform_indices = @transform_11, window_bounds = array<i64: 288, 32>}, {pipeline_mode = #tpu.pipeline_mode<synchronous>, transform_indices = @transform_12, window_bounds = array<i64: 1, 32>}, {pipeline_mode = #tpu.pipeline_mode<synchronous>, transform_indices = @transform_13, window_bounds = array<i64: 64, 16>}, {pipeline_mode = #tpu.pipeline_mode<synchronous>, transform_indices = @transform_14, window_bounds = array<i64: 256, 64>}, {transform_indices = @transform_15, window_bounds = array<i64: 1, 256, 32>}, {transform_indices = @transform_16, window_bounds = array<i64: 1, 64, 32>}, {transform_indices = @transform_17, window_bounds = array<i64: 1, 16, 32>}]} {
    %c0 = arith.constant 0 : index
    %c0_0 = arith.constant 0 : index
    %c0_1 = arith.constant 0 : index
    %0 = vector.load %arg1[%c0, %c0_0, %c0_1] : memref<1x256x16xf32, #tpu.memory_space<vmem>>, vector<1x256x16xf32>
    %1 = vector.shape_cast %0 : vector<1x256x16xf32> to vector<256x16xf32>
    %c0_2 = arith.constant 0 : index
    %c0_3 = arith.constant 0 : index
    %2 = vector.load %arg4[%c0_2, %c0_3] : memref<16x32xf32, #tpu.memory_space<vmem>>, vector<16x32xf32>
    %cst = arith.constant dense<0.000000e+00> : vector<256x32xf32>
    %3 = tpu.matmul %1, %2, %cst {dimension_numbers = #tpu.dot_dimension_numbers<[1], [0], [0], [1], [0, 0, 1, 1], [], []>} : vector<256x16xf32>, vector<16x32xf32>, vector<256x32xf32> -> vector<256x32xf32>
    %c0_4 = arith.constant 0 : index
    %c0_5 = arith.constant 0 : index
    %4 = vector.load %arg5[%c0_4, %c0_5] : memref<1x32xf32, #tpu.memory_space<vmem>>, vector<1x32xf32>
    %5 = vector.broadcast %4 : vector<1x32xf32> to vector<256x32xf32>
    %6 = arith.addf %3, %5 : vector<256x32xf32>
    %cst_6 = arith.constant 0.000000e+00 : f32
    %7 = vector.broadcast %cst_6 : f32 to vector<256x32xf32>
    %8 = arith.cmpf oge, %6, %7 : vector<256x32xf32>
    %cst_7 = arith.constant 1.000000e-01 : f32
    %9 = vector.broadcast %cst_7 : f32 to vector<256x32xf32>
    %10 = arith.mulf %6, %9 : vector<256x32xf32>
    %11 = arith.select %8, %6, %10 : vector<256x32xi1>, vector<256x32xf32>
    %c0_8 = arith.constant 0 : index
    %c0_9 = arith.constant 0 : index
    %c0_10 = arith.constant 0 : index
    %12 = vector.load %arg2[%c0_8, %c0_9, %c0_10] : memref<1x64x24xf32, #tpu.memory_space<vmem>>, vector<1x64x24xf32>
    %13 = vector.shape_cast %12 : vector<1x64x24xf32> to vector<64x24xf32>
    %c0_11 = arith.constant 0 : index
    %c0_12 = arith.constant 0 : index
    %14 = vector.load %arg6[%c0_11, %c0_12] : memref<24x32xf32, #tpu.memory_space<vmem>>, vector<24x32xf32>
    %cst_13 = arith.constant dense<0.000000e+00> : vector<64x32xf32>
    %15 = tpu.matmul %13, %14, %cst_13 {dimension_numbers = #tpu.dot_dimension_numbers<[1], [0], [0], [1], [0, 0, 1, 1], [], []>} : vector<64x24xf32>, vector<24x32xf32>, vector<64x32xf32> -> vector<64x32xf32>
    %c0_14 = arith.constant 0 : index
    %c0_15 = arith.constant 0 : index
    %16 = vector.load %arg7[%c0_14, %c0_15] : memref<1x32xf32, #tpu.memory_space<vmem>>, vector<1x32xf32>
    %17 = vector.broadcast %16 : vector<1x32xf32> to vector<64x32xf32>
    %18 = arith.addf %15, %17 : vector<64x32xf32>
    %cst_16 = arith.constant 0.000000e+00 : f32
    %19 = vector.broadcast %cst_16 : f32 to vector<64x32xf32>
    %20 = arith.cmpf oge, %18, %19 : vector<64x32xf32>
    %cst_17 = arith.constant 1.000000e-01 : f32
    %21 = vector.broadcast %cst_17 : f32 to vector<64x32xf32>
    %22 = arith.mulf %18, %21 : vector<64x32xf32>
    %23 = arith.select %20, %18, %22 : vector<64x32xi1>, vector<64x32xf32>
    %c0_18 = arith.constant 0 : index
    %c0_19 = arith.constant 0 : index
    %c0_20 = arith.constant 0 : index
    %24 = vector.load %arg3[%c0_18, %c0_19, %c0_20] : memref<1x16x40xf32, #tpu.memory_space<vmem>>, vector<1x16x40xf32>
    %25 = vector.shape_cast %24 : vector<1x16x40xf32> to vector<16x40xf32>
    %c0_21 = arith.constant 0 : index
    %c0_22 = arith.constant 0 : index
    %26 = vector.load %arg8[%c0_21, %c0_22] : memref<40x32xf32, #tpu.memory_space<vmem>>, vector<40x32xf32>
    %cst_23 = arith.constant dense<0.000000e+00> : vector<16x32xf32>
    %27 = tpu.matmul %25, %26, %cst_23 {dimension_numbers = #tpu.dot_dimension_numbers<[1], [0], [0], [1], [0, 0, 1, 1], [], []>} : vector<16x40xf32>, vector<40x32xf32>, vector<16x32xf32> -> vector<16x32xf32>
    %c0_24 = arith.constant 0 : index
    %c0_25 = arith.constant 0 : index
    %28 = vector.load %arg9[%c0_24, %c0_25] : memref<1x32xf32, #tpu.memory_space<vmem>>, vector<1x32xf32>
    %29 = vector.broadcast %28 : vector<1x32xf32> to vector<16x32xf32>
    %30 = arith.addf %27, %29 : vector<16x32xf32>
    %cst_26 = arith.constant 0.000000e+00 : f32
    %31 = vector.broadcast %cst_26 : f32 to vector<16x32xf32>
    %32 = arith.cmpf oge, %30, %31 : vector<16x32xf32>
    %cst_27 = arith.constant 1.000000e-01 : f32
    %33 = vector.broadcast %cst_27 : f32 to vector<16x32xf32>
    %34 = arith.mulf %30, %33 : vector<16x32xf32>
    %35 = arith.select %32, %30, %34 : vector<16x32xi1>, vector<16x32xf32>
    %c0_28 = arith.constant 0 : index
    %c0_29 = arith.constant 0 : index
    %c0_30 = arith.constant 0 : index
    %36 = vector.load %arg18[%c0_28, %c0_29, %c0_30] : memref<1x16x32xf32, #tpu.memory_space<vmem>>, vector<1x16x32xf32>
    %37 = vector.shape_cast %36 : vector<1x16x32xf32> to vector<16x32xf32>
    %38 = vector.shape_cast %35 : vector<16x32xf32> to vector<1x16x32xf32>
    tpu.vector_store %arg18[%c0_28, %c0_29, %c0_30], %38 {strides = array<i32>} : memref<1x16x32xf32, #tpu.memory_space<vmem>>, vector<1x16x32xf32>,
    %c0_31 = arith.constant 0 : index
    %c0_32 = arith.constant 0 : index
    %39 = vector.load %arg14[%c0_31, %c0_32] : memref<64x16xf32, #tpu.memory_space<vmem>>, vector<64x16xf32>
    %cst_33 = arith.constant dense<0.000000e+00> : vector<64x32xf32>
    %40 = tpu.matmul %39, %35, %cst_33 {dimension_numbers = #tpu.dot_dimension_numbers<[1], [0], [0], [1], [0, 0, 1, 1], [], []>} : vector<64x16xf32>, vector<16x32xf32>, vector<64x32xf32> -> vector<64x32xf32>
    %41 = arith.addf %23, %40 : vector<64x32xf32>
    %42 = vector.shape_cast %41 : vector<64x32xf32> to vector<8x8x32xf32>
    %cst_34 = arith.constant 0.000000e+00 : f32
    %43 = vector.broadcast %cst_34 : f32 to vector<1x8x32xf32>
    %44 = tpu.concatenate %43, %42, %43 in 0 : vector<1x8x32xf32>, vector<8x8x32xf32>, vector<1x8x32xf32> -> vector<10x8x32xf32>
    %cst_35 = arith.constant 0.000000e+00 : f32
    %45 = vector.broadcast %cst_35 : f32 to vector<10x1x32xf32>
    %46 = tpu.concatenate %45, %44, %45 in 1 : vector<10x1x32xf32>, vector<10x8x32xf32>, vector<10x1x32xf32> -> vector<10x10x32xf32>
    %47 = vector.extract_strided_slice %46 {offsets = [0, 0, 0], sizes = [8, 8, 32], strides = [1, 1, 1]} : vector<10x10x32xf32> to vector<8x8x32xf32>
    %48 = vector.shape_cast %47 : vector<8x8x32xf32> to vector<64x32xf32>
    %49 = vector.extract_strided_slice %46 {offsets = [0, 1, 0], sizes = [8, 8, 32], strides = [1, 1, 1]} : vector<10x10x32xf32> to vector<8x8x32xf32>
    %50 = vector.shape_cast %49 : vector<8x8x32xf32> to vector<64x32xf32>
    %51 = vector.extract_strided_slice %46 {offsets = [0, 2, 0], sizes = [8, 8, 32], strides = [1, 1, 1]} : vector<10x10x32xf32> to vector<8x8x32xf32>
    %52 = vector.shape_cast %51 : vector<8x8x32xf32> to vector<64x32xf32>
    %53 = vector.extract_strided_slice %46 {offsets = [1, 0, 0], sizes = [8, 8, 32], strides = [1, 1, 1]} : vector<10x10x32xf32> to vector<8x8x32xf32>
    %54 = vector.shape_cast %53 : vector<8x8x32xf32> to vector<64x32xf32>
    %55 = vector.extract_strided_slice %46 {offsets = [1, 1, 0], sizes = [8, 8, 32], strides = [1, 1, 1]} : vector<10x10x32xf32> to vector<8x8x32xf32>
    %56 = vector.shape_cast %55 : vector<8x8x32xf32> to vector<64x32xf32>
    %57 = vector.extract_strided_slice %46 {offsets = [1, 2, 0], sizes = [8, 8, 32], strides = [1, 1, 1]} : vector<10x10x32xf32> to vector<8x8x32xf32>
    %58 = vector.shape_cast %57 : vector<8x8x32xf32> to vector<64x32xf32>
    %59 = vector.extract_strided_slice %46 {offsets = [2, 0, 0], sizes = [8, 8, 32], strides = [1, 1, 1]} : vector<10x10x32xf32> to vector<8x8x32xf32>
    %60 = vector.shape_cast %59 : vector<8x8x32xf32> to vector<64x32xf32>
    %61 = vector.extract_strided_slice %46 {offsets = [2, 1, 0], sizes = [8, 8, 32], strides = [1, 1, 1]} : vector<10x10x32xf32> to vector<8x8x32xf32>
    %62 = vector.shape_cast %61 : vector<8x8x32xf32> to vector<64x32xf32>
    %63 = vector.extract_strided_slice %46 {offsets = [2, 2, 0], sizes = [8, 8, 32], strides = [1, 1, 1]} : vector<10x10x32xf32> to vector<8x8x32xf32>
    %64 = vector.shape_cast %63 : vector<8x8x32xf32> to vector<64x32xf32>
    %c0_36 = arith.constant 0 : index
    %c0_37 = arith.constant 0 : index
    %65 = vector.load %arg10[%c0_36, %c0_37] : memref<288x32xf32, #tpu.memory_space<vmem>>, vector<288x32xf32>
    %66 = vector.extract_strided_slice %65 {offsets = [0, 0], sizes = [32, 32], strides = [1, 1]} : vector<288x32xf32> to vector<32x32xf32>
    %cst_38 = arith.constant dense<0.000000e+00> : vector<64x32xf32>
    %67 = tpu.matmul %48, %66, %cst_38 {dimension_numbers = #tpu.dot_dimension_numbers<[1], [0], [0], [1], [0, 0, 1, 1], [], []>} : vector<64x32xf32>, vector<32x32xf32>, vector<64x32xf32> -> vector<64x32xf32>
    %68 = vector.extract_strided_slice %65 {offsets = [32, 0], sizes = [32, 32], strides = [1, 1]} : vector<288x32xf32> to vector<32x32xf32>
    %cst_39 = arith.constant dense<0.000000e+00> : vector<64x32xf32>
    %69 = tpu.matmul %50, %68, %cst_39 {dimension_numbers = #tpu.dot_dimension_numbers<[1], [0], [0], [1], [0, 0, 1, 1], [], []>} : vector<64x32xf32>, vector<32x32xf32>, vector<64x32xf32> -> vector<64x32xf32>
    %70 = arith.addf %67, %69 : vector<64x32xf32>
    %71 = vector.extract_strided_slice %65 {offsets = [64, 0], sizes = [32, 32], strides = [1, 1]} : vector<288x32xf32> to vector<32x32xf32>
    %cst_40 = arith.constant dense<0.000000e+00> : vector<64x32xf32>
    %72 = tpu.matmul %52, %71, %cst_40 {dimension_numbers = #tpu.dot_dimension_numbers<[1], [0], [0], [1], [0, 0, 1, 1], [], []>} : vector<64x32xf32>, vector<32x32xf32>, vector<64x32xf32> -> vector<64x32xf32>
    %73 = arith.addf %70, %72 : vector<64x32xf32>
    %74 = vector.extract_strided_slice %65 {offsets = [96, 0], sizes = [32, 32], strides = [1, 1]} : vector<288x32xf32> to vector<32x32xf32>
    %cst_41 = arith.constant dense<0.000000e+00> : vector<64x32xf32>
    %75 = tpu.matmul %54, %74, %cst_41 {dimension_numbers = #tpu.dot_dimension_numbers<[1], [0], [0], [1], [0, 0, 1, 1], [], []>} : vector<64x32xf32>, vector<32x32xf32>, vector<64x32xf32> -> vector<64x32xf32>
    %76 = arith.addf %73, %75 : vector<64x32xf32>
    %77 = vector.extract_strided_slice %65 {offsets = [128, 0], sizes = [32, 32], strides = [1, 1]} : vector<288x32xf32> to vector<32x32xf32>
    %cst_42 = arith.constant dense<0.000000e+00> : vector<64x32xf32>
    %78 = tpu.matmul %56, %77, %cst_42 {dimension_numbers = #tpu.dot_dimension_numbers<[1], [0], [0], [1], [0, 0, 1, 1], [], []>} : vector<64x32xf32>, vector<32x32xf32>, vector<64x32xf32> -> vector<64x32xf32>
    %79 = arith.addf %76, %78 : vector<64x32xf32>
    %80 = vector.extract_strided_slice %65 {offsets = [160, 0], sizes = [32, 32], strides = [1, 1]} : vector<288x32xf32> to vector<32x32xf32>
    %cst_43 = arith.constant dense<0.000000e+00> : vector<64x32xf32>
    %81 = tpu.matmul %58, %80, %cst_43 {dimension_numbers = #tpu.dot_dimension_numbers<[1], [0], [0], [1], [0, 0, 1, 1], [], []>} : vector<64x32xf32>, vector<32x32xf32>, vector<64x32xf32> -> vector<64x32xf32>
    %82 = arith.addf %79, %81 : vector<64x32xf32>
    %83 = vector.extract_strided_slice %65 {offsets = [192, 0], sizes = [32, 32], strides = [1, 1]} : vector<288x32xf32> to vector<32x32xf32>
    %cst_44 = arith.constant dense<0.000000e+00> : vector<64x32xf32>
    %84 = tpu.matmul %60, %83, %cst_44 {dimension_numbers = #tpu.dot_dimension_numbers<[1], [0], [0], [1], [0, 0, 1, 1], [], []>} : vector<64x32xf32>, vector<32x32xf32>, vector<64x32xf32> -> vector<64x32xf32>
    %85 = arith.addf %82, %84 : vector<64x32xf32>
    %86 = vector.extract_strided_slice %65 {offsets = [224, 0], sizes = [32, 32], strides = [1, 1]} : vector<288x32xf32> to vector<32x32xf32>
    %cst_45 = arith.constant dense<0.000000e+00> : vector<64x32xf32>
    %87 = tpu.matmul %62, %86, %cst_45 {dimension_numbers = #tpu.dot_dimension_numbers<[1], [0], [0], [1], [0, 0, 1, 1], [], []>} : vector<64x32xf32>, vector<32x32xf32>, vector<64x32xf32> -> vector<64x32xf32>
    %88 = arith.addf %85, %87 : vector<64x32xf32>
    %89 = vector.extract_strided_slice %65 {offsets = [256, 0], sizes = [32, 32], strides = [1, 1]} : vector<288x32xf32> to vector<32x32xf32>
    %cst_46 = arith.constant dense<0.000000e+00> : vector<64x32xf32>
    %90 = tpu.matmul %64, %89, %cst_46 {dimension_numbers = #tpu.dot_dimension_numbers<[1], [0], [0], [1], [0, 0, 1, 1], [], []>} : vector<64x32xf32>, vector<32x32xf32>, vector<64x32xf32> -> vector<64x32xf32>
    %91 = arith.addf %88, %90 : vector<64x32xf32>
    %c0_47 = arith.constant 0 : index
    %c0_48 = arith.constant 0 : index
    %92 = vector.load %arg11[%c0_47, %c0_48] : memref<1x32xf32, #tpu.memory_space<vmem>>, vector<1x32xf32>
    %93 = vector.broadcast %92 : vector<1x32xf32> to vector<64x32xf32>
    %94 = arith.addf %91, %93 : vector<64x32xf32>
    %cst_49 = arith.constant 0.000000e+00 : f32
    %95 = vector.broadcast %cst_49 : f32 to vector<64x32xf32>
    %96 = arith.cmpf oge, %94, %95 : vector<64x32xf32>
    %cst_50 = arith.constant 1.000000e-01 : f32
    %97 = vector.broadcast %cst_50 : f32 to vector<64x32xf32>
    %98 = arith.mulf %94, %97 : vector<64x32xf32>
    %99 = arith.select %96, %94, %98 : vector<64x32xi1>, vector<64x32xf32>
    %c0_51 = arith.constant 0 : index
    %c0_52 = arith.constant 0 : index
    %c0_53 = arith.constant 0 : index
    %100 = vector.load %arg17[%c0_51, %c0_52, %c0_53] : memref<1x64x32xf32, #tpu.memory_space<vmem>>, vector<1x64x32xf32>
    %101 = vector.shape_cast %100 : vector<1x64x32xf32> to vector<64x32xf32>
    %102 = vector.shape_cast %99 : vector<64x32xf32> to vector<1x64x32xf32>
    tpu.vector_store %arg17[%c0_51, %c0_52, %c0_53], %102 {strides = array<i32>} : memref<1x64x32xf32, #tpu.memory_space<vmem>>, vector<1x64x32xf32>,
    %c0_54 = arith.constant 0 : index
    %c0_55 = arith.constant 0 : index
    %103 = vector.load %arg15[%c0_54, %c0_55] : memref<256x64xf32, #tpu.memory_space<vmem>>, vector<256x64xf32>
    %cst_56 = arith.constant dense<0.000000e+00> : vector<256x32xf32>
    %104 = tpu.matmul %103, %99, %cst_56 {dimension_numbers = #tpu.dot_dimension_numbers<[1], [0], [0], [1], [0, 0, 1, 1], [], []>} : vector<256x64xf32>, vector<64x32xf32>, vector<256x32xf32> -> vector<256x32xf32>
    %105 = arith.addf %11, %104 : vector<256x32xf32>
    %106 = vector.shape_cast %105 : vector<256x32xf32> to vector<16x16x32xf32>
    %cst_57 = arith.constant 0.000000e+00 : f32
    %107 = vector.broadcast %cst_57 : f32 to vector<1x16x32xf32>
    %108 = tpu.concatenate %107, %106, %107 in 0 : vector<1x16x32xf32>, vector<16x16x32xf32>, vector<1x16x32xf32> -> vector<18x16x32xf32>
    %cst_58 = arith.constant 0.000000e+00 : f32
    %109 = vector.broadcast %cst_58 : f32 to vector<18x1x32xf32>
    %110 = tpu.concatenate %109, %108, %109 in 1 : vector<18x1x32xf32>, vector<18x16x32xf32>, vector<18x1x32xf32> -> vector<18x18x32xf32>
    %111 = vector.extract_strided_slice %110 {offsets = [0, 0, 0], sizes = [16, 16, 32], strides = [1, 1, 1]} : vector<18x18x32xf32> to vector<16x16x32xf32>
    %112 = vector.shape_cast %111 : vector<16x16x32xf32> to vector<256x32xf32>
    %113 = vector.extract_strided_slice %110 {offsets = [0, 1, 0], sizes = [16, 16, 32], strides = [1, 1, 1]} : vector<18x18x32xf32> to vector<16x16x32xf32>
    %114 = vector.shape_cast %113 : vector<16x16x32xf32> to vector<256x32xf32>
    %115 = vector.extract_strided_slice %110 {offsets = [0, 2, 0], sizes = [16, 16, 32], strides = [1, 1, 1]} : vector<18x18x32xf32> to vector<16x16x32xf32>
    %116 = vector.shape_cast %115 : vector<16x16x32xf32> to vector<256x32xf32>
    %117 = vector.extract_strided_slice %110 {offsets = [1, 0, 0], sizes = [16, 16, 32], strides = [1, 1, 1]} : vector<18x18x32xf32> to vector<16x16x32xf32>
    %118 = vector.shape_cast %117 : vector<16x16x32xf32> to vector<256x32xf32>
    %119 = vector.extract_strided_slice %110 {offsets = [1, 1, 0], sizes = [16, 16, 32], strides = [1, 1, 1]} : vector<18x18x32xf32> to vector<16x16x32xf32>
    %120 = vector.shape_cast %119 : vector<16x16x32xf32> to vector<256x32xf32>
    %121 = vector.extract_strided_slice %110 {offsets = [1, 2, 0], sizes = [16, 16, 32], strides = [1, 1, 1]} : vector<18x18x32xf32> to vector<16x16x32xf32>
    %122 = vector.shape_cast %121 : vector<16x16x32xf32> to vector<256x32xf32>
    %123 = vector.extract_strided_slice %110 {offsets = [2, 0, 0], sizes = [16, 16, 32], strides = [1, 1, 1]} : vector<18x18x32xf32> to vector<16x16x32xf32>
    %124 = vector.shape_cast %123 : vector<16x16x32xf32> to vector<256x32xf32>
    %125 = vector.extract_strided_slice %110 {offsets = [2, 1, 0], sizes = [16, 16, 32], strides = [1, 1, 1]} : vector<18x18x32xf32> to vector<16x16x32xf32>
    %126 = vector.shape_cast %125 : vector<16x16x32xf32> to vector<256x32xf32>
    %127 = vector.extract_strided_slice %110 {offsets = [2, 2, 0], sizes = [16, 16, 32], strides = [1, 1, 1]} : vector<18x18x32xf32> to vector<16x16x32xf32>
    %128 = vector.shape_cast %127 : vector<16x16x32xf32> to vector<256x32xf32>
    %c0_59 = arith.constant 0 : index
    %c0_60 = arith.constant 0 : index
    %129 = vector.load %arg12[%c0_59, %c0_60] : memref<288x32xf32, #tpu.memory_space<vmem>>, vector<288x32xf32>
    %130 = vector.extract_strided_slice %129 {offsets = [0, 0], sizes = [32, 32], strides = [1, 1]} : vector<288x32xf32> to vector<32x32xf32>
    %cst_61 = arith.constant dense<0.000000e+00> : vector<256x32xf32>
    %131 = tpu.matmul %112, %130, %cst_61 {dimension_numbers = #tpu.dot_dimension_numbers<[1], [0], [0], [1], [0, 0, 1, 1], [], []>} : vector<256x32xf32>, vector<32x32xf32>, vector<256x32xf32> -> vector<256x32xf32>
    %132 = vector.extract_strided_slice %129 {offsets = [32, 0], sizes = [32, 32], strides = [1, 1]} : vector<288x32xf32> to vector<32x32xf32>
    %cst_62 = arith.constant dense<0.000000e+00> : vector<256x32xf32>
    %133 = tpu.matmul %114, %132, %cst_62 {dimension_numbers = #tpu.dot_dimension_numbers<[1], [0], [0], [1], [0, 0, 1, 1], [], []>} : vector<256x32xf32>, vector<32x32xf32>, vector<256x32xf32> -> vector<256x32xf32>
    %134 = arith.addf %131, %133 : vector<256x32xf32>
    %135 = vector.extract_strided_slice %129 {offsets = [64, 0], sizes = [32, 32], strides = [1, 1]} : vector<288x32xf32> to vector<32x32xf32>
    %cst_63 = arith.constant dense<0.000000e+00> : vector<256x32xf32>
    %136 = tpu.matmul %116, %135, %cst_63 {dimension_numbers = #tpu.dot_dimension_numbers<[1], [0], [0], [1], [0, 0, 1, 1], [], []>} : vector<256x32xf32>, vector<32x32xf32>, vector<256x32xf32> -> vector<256x32xf32>
    %137 = arith.addf %134, %136 : vector<256x32xf32>
    %138 = vector.extract_strided_slice %129 {offsets = [96, 0], sizes = [32, 32], strides = [1, 1]} : vector<288x32xf32> to vector<32x32xf32>
    %cst_64 = arith.constant dense<0.000000e+00> : vector<256x32xf32>
    %139 = tpu.matmul %118, %138, %cst_64 {dimension_numbers = #tpu.dot_dimension_numbers<[1], [0], [0], [1], [0, 0, 1, 1], [], []>} : vector<256x32xf32>, vector<32x32xf32>, vector<256x32xf32> -> vector<256x32xf32>
    %140 = arith.addf %137, %139 : vector<256x32xf32>
    %141 = vector.extract_strided_slice %129 {offsets = [128, 0], sizes = [32, 32], strides = [1, 1]} : vector<288x32xf32> to vector<32x32xf32>
    %cst_65 = arith.constant dense<0.000000e+00> : vector<256x32xf32>
    %142 = tpu.matmul %120, %141, %cst_65 {dimension_numbers = #tpu.dot_dimension_numbers<[1], [0], [0], [1], [0, 0, 1, 1], [], []>} : vector<256x32xf32>, vector<32x32xf32>, vector<256x32xf32> -> vector<256x32xf32>
    %143 = arith.addf %140, %142 : vector<256x32xf32>
    %144 = vector.extract_strided_slice %129 {offsets = [160, 0], sizes = [32, 32], strides = [1, 1]} : vector<288x32xf32> to vector<32x32xf32>
    %cst_66 = arith.constant dense<0.000000e+00> : vector<256x32xf32>
    %145 = tpu.matmul %122, %144, %cst_66 {dimension_numbers = #tpu.dot_dimension_numbers<[1], [0], [0], [1], [0, 0, 1, 1], [], []>} : vector<256x32xf32>, vector<32x32xf32>, vector<256x32xf32> -> vector<256x32xf32>
    %146 = arith.addf %143, %145 : vector<256x32xf32>
    %147 = vector.extract_strided_slice %129 {offsets = [192, 0], sizes = [32, 32], strides = [1, 1]} : vector<288x32xf32> to vector<32x32xf32>
    %cst_67 = arith.constant dense<0.000000e+00> : vector<256x32xf32>
    %148 = tpu.matmul %124, %147, %cst_67 {dimension_numbers = #tpu.dot_dimension_numbers<[1], [0], [0], [1], [0, 0, 1, 1], [], []>} : vector<256x32xf32>, vector<32x32xf32>, vector<256x32xf32> -> vector<256x32xf32>
    %149 = arith.addf %146, %148 : vector<256x32xf32>
    %150 = vector.extract_strided_slice %129 {offsets = [224, 0], sizes = [32, 32], strides = [1, 1]} : vector<288x32xf32> to vector<32x32xf32>
    %cst_68 = arith.constant dense<0.000000e+00> : vector<256x32xf32>
    %151 = tpu.matmul %126, %150, %cst_68 {dimension_numbers = #tpu.dot_dimension_numbers<[1], [0], [0], [1], [0, 0, 1, 1], [], []>} : vector<256x32xf32>, vector<32x32xf32>, vector<256x32xf32> -> vector<256x32xf32>
    %152 = arith.addf %149, %151 : vector<256x32xf32>
    %153 = vector.extract_strided_slice %129 {offsets = [256, 0], sizes = [32, 32], strides = [1, 1]} : vector<288x32xf32> to vector<32x32xf32>
    %cst_69 = arith.constant dense<0.000000e+00> : vector<256x32xf32>
    %154 = tpu.matmul %128, %153, %cst_69 {dimension_numbers = #tpu.dot_dimension_numbers<[1], [0], [0], [1], [0, 0, 1, 1], [], []>} : vector<256x32xf32>, vector<32x32xf32>, vector<256x32xf32> -> vector<256x32xf32>
    %155 = arith.addf %152, %154 : vector<256x32xf32>
    %c0_70 = arith.constant 0 : index
    %c0_71 = arith.constant 0 : index
    %156 = vector.load %arg13[%c0_70, %c0_71] : memref<1x32xf32, #tpu.memory_space<vmem>>, vector<1x32xf32>
    %157 = vector.broadcast %156 : vector<1x32xf32> to vector<256x32xf32>
    %158 = arith.addf %155, %157 : vector<256x32xf32>
    %cst_72 = arith.constant 0.000000e+00 : f32
    %159 = vector.broadcast %cst_72 : f32 to vector<256x32xf32>
    %160 = arith.cmpf oge, %158, %159 : vector<256x32xf32>
    %cst_73 = arith.constant 1.000000e-01 : f32
    %161 = vector.broadcast %cst_73 : f32 to vector<256x32xf32>
    %162 = arith.mulf %158, %161 : vector<256x32xf32>
    %163 = arith.select %160, %158, %162 : vector<256x32xi1>, vector<256x32xf32>
    %c0_74 = arith.constant 0 : index
    %c0_75 = arith.constant 0 : index
    %c0_76 = arith.constant 0 : index
    %164 = vector.load %arg16[%c0_74, %c0_75, %c0_76] : memref<1x256x32xf32, #tpu.memory_space<vmem>>, vector<1x256x32xf32>
    %165 = vector.shape_cast %164 : vector<1x256x32xf32> to vector<256x32xf32>
    %166 = vector.shape_cast %163 : vector<256x32xf32> to vector<1x256x32xf32>
    tpu.vector_store %arg16[%c0_74, %c0_75, %c0_76], %166 {strides = array<i32>} : memref<1x256x32xf32, #tpu.memory_space<vmem>>, vector<1x256x32xf32>,
    return
  }
  func.func @transform_0(%arg0: i32) -> (i32, i32, i32) {
    %c0_i32 = arith.constant 0 : i32
    %c0_i32_0 = arith.constant 0 : i32
    %c0_i32_1 = arith.constant 0 : i32
    return %arg0, %c0_i32, %c0_i32_0 : i32, i32, i32
  }
  func.func @transform_1(%arg0: i32) -> (i32, i32, i32) {
    %c0_i32 = arith.constant 0 : i32
    %c0_i32_0 = arith.constant 0 : i32
    %c0_i32_1 = arith.constant 0 : i32
    return %arg0, %c0_i32, %c0_i32_0 : i32, i32, i32
  }
  func.func @transform_2(%arg0: i32) -> (i32, i32, i32) {
    %c0_i32 = arith.constant 0 : i32
    %c0_i32_0 = arith.constant 0 : i32
    %c0_i32_1 = arith.constant 0 : i32
    return %arg0, %c0_i32, %c0_i32_0 : i32, i32, i32
  }
  func.func @transform_3(%arg0: i32) -> (i32, i32) {
    %c0_i32 = arith.constant 0 : i32
    %c0_i32_0 = arith.constant 0 : i32
    %c0_i32_1 = arith.constant 0 : i32
    return %c0_i32, %c0_i32_0 : i32, i32
  }
  func.func @transform_4(%arg0: i32) -> (i32, i32) {
    %c0_i32 = arith.constant 0 : i32
    %c0_i32_0 = arith.constant 0 : i32
    %c0_i32_1 = arith.constant 0 : i32
    return %c0_i32, %c0_i32_0 : i32, i32
  }
  func.func @transform_5(%arg0: i32) -> (i32, i32) {
    %c0_i32 = arith.constant 0 : i32
    %c0_i32_0 = arith.constant 0 : i32
    %c0_i32_1 = arith.constant 0 : i32
    return %c0_i32, %c0_i32_0 : i32, i32
  }
  func.func @transform_6(%arg0: i32) -> (i32, i32) {
    %c0_i32 = arith.constant 0 : i32
    %c0_i32_0 = arith.constant 0 : i32
    %c0_i32_1 = arith.constant 0 : i32
    return %c0_i32, %c0_i32_0 : i32, i32
  }
  func.func @transform_7(%arg0: i32) -> (i32, i32) {
    %c0_i32 = arith.constant 0 : i32
    %c0_i32_0 = arith.constant 0 : i32
    %c0_i32_1 = arith.constant 0 : i32
    return %c0_i32, %c0_i32_0 : i32, i32
  }
  func.func @transform_8(%arg0: i32) -> (i32, i32) {
    %c0_i32 = arith.constant 0 : i32
    %c0_i32_0 = arith.constant 0 : i32
    %c0_i32_1 = arith.constant 0 : i32
    return %c0_i32, %c0_i32_0 : i32, i32
  }
  func.func @transform_9(%arg0: i32) -> (i32, i32) {
    %c0_i32 = arith.constant 0 : i32
    %c0_i32_0 = arith.constant 0 : i32
    %c0_i32_1 = arith.constant 0 : i32
    return %c0_i32, %c0_i32_0 : i32, i32
  }
  func.func @transform_10(%arg0: i32) -> (i32, i32) {
    %c0_i32 = arith.constant 0 : i32
    %c0_i32_0 = arith.constant 0 : i32
    %c0_i32_1 = arith.constant 0 : i32
    return %c0_i32, %c0_i32_0 : i32, i32
  }
  func.func @transform_11(%arg0: i32) -> (i32, i32) {
    %c0_i32 = arith.constant 0 : i32
    %c0_i32_0 = arith.constant 0 : i32
    %c0_i32_1 = arith.constant 0 : i32
    return %c0_i32, %c0_i32_0 : i32, i32
  }
  func.func @transform_12(%arg0: i32) -> (i32, i32) {
    %c0_i32 = arith.constant 0 : i32
    %c0_i32_0 = arith.constant 0 : i32
    %c0_i32_1 = arith.constant 0 : i32
    return %c0_i32, %c0_i32_0 : i32, i32
  }
  func.func @transform_13(%arg0: i32) -> (i32, i32) {
    %c0_i32 = arith.constant 0 : i32
    %c0_i32_0 = arith.constant 0 : i32
    %c0_i32_1 = arith.constant 0 : i32
    return %c0_i32, %c0_i32_0 : i32, i32
  }
  func.func @transform_14(%arg0: i32) -> (i32, i32) {
    %c0_i32 = arith.constant 0 : i32
    %c0_i32_0 = arith.constant 0 : i32
    %c0_i32_1 = arith.constant 0 : i32
    return %c0_i32, %c0_i32_0 : i32, i32
  }
  func.func @transform_15(%arg0: i32) -> (i32, i32, i32) {
    %c0_i32 = arith.constant 0 : i32
    %c0_i32_0 = arith.constant 0 : i32
    %c0_i32_1 = arith.constant 0 : i32
    return %arg0, %c0_i32, %c0_i32_0 : i32, i32, i32
  }
  func.func @transform_16(%arg0: i32) -> (i32, i32, i32) {
    %c0_i32 = arith.constant 0 : i32
    %c0_i32_0 = arith.constant 0 : i32
    %c0_i32_1 = arith.constant 0 : i32
    return %arg0, %c0_i32, %c0_i32_0 : i32, i32, i32
  }
  func.func @transform_17(%arg0: i32) -> (i32, i32, i32) {
    %c0_i32 = arith.constant 0 : i32
    %c0_i32_0 = arith.constant 0 : i32
    %c0_i32_1 = arith.constant 0 : i32
    return %arg0, %c0_i32, %c0_i32_0 : i32, i32, i32
  }
}

</mosaic_0001>

<bundles_post_ra>
// kernel: tpu_custom_call.1
= control target key start
LH: loop header
LB: loop body
LE: loop exit
PB: predicated region body
PF: predicated region fallthrough
CT: control target
= control target key end

     0   :  { %s8980_s0 = inlined_call_operand.vmem [shape: f32[2,256,16], index: 0, kind: input, shape index: {}]   ;;  %s8981_s1 = inlined_call_operand.vmem [shape: f32[2,64,24], index: 1, kind: input, shape index: {}]   ;;  %s8982_s2 = inlined_call_operand.vmem [shape: f32[2,16,40], index: 2, kind: input, shape index: {}]   ;;  %s8983_s3 = inlined_call_operand.vmem [shape: f32[16,32], index: 3, kind: input, shape index: {}]   ;;  %s8984_s4 = inlined_call_operand.vmem [shape: f32[1,32], index: 4, kind: input, shape index: {}]   ;;  %s8985_s5 = inlined_call_operand.vmem [shape: f32[24,32], index: 5, kind: input, shape index: {}]   ;;  %s8986_s6 = inlined_call_operand.vmem [shape: f32[1,32], index: 6, kind: input, shape index: {}]   ;;  %s8987_s7 = inlined_call_operand.vmem [shape: f32[40,32], index: 7, kind: input, shape index: {}]   ;;  %s8988_s8 = inlined_call_operand.vmem [shape: f32[1,32], index: 8, kind: input, shape index: {}]   ;;  %s8989_s9 = inlined_call_operand.vmem [shape: f32[288,32], index: 9, kind: input, shape index: {}]   ;;  %s8990_s10 = inlined_call_operand.vmem [shape: f32[1,32], index: 10, kind: input, shape index: {}]   ;;  %s8991_s11 = inlined_call_operand.vmem [shape: f32[288,32], index: 11, kind: input, shape index: {}]   ;;  %s8992_s12 = inlined_call_operand.vmem [shape: f32[1,32], index: 12, kind: input, shape index: {}]   ;;  %s8993_s13 = inlined_call_operand.vmem [shape: f32[64,16], index: 13, kind: input, shape index: {}]   ;;  %s8994_s14 = inlined_call_operand.vmem [shape: f32[256,64], index: 14, kind: input, shape index: {}]   ;;  %s8995_s15 = inlined_call_operand.vmem [shape: f32[2,256,32], index: 15, kind: output, shape index: {0}]   ;;  %s8996_s16 = inlined_call_operand.vmem [shape: f32[2,64,32], index: 16, kind: output, shape index: {1}]   ;;  %s8997_s17 = inlined_call_operand.hbm [shape: f32[2,16,32], index: 17, kind: output, shape index: {2}]  }
   0x1   :  { %9114 = sst [smem:[#allocation76_spill]] %s8980_s0 }
   0x2   :  { %9115 = sst [smem:[#allocation77_spill]] %s8981_s1 }
   0x3   :  { %9116 = sst [smem:[#allocation78_spill]] %s8982_s2 }
   0x4   :  { %9117 = sst [smem:[#allocation79_spill]] %s8985_s5 }
   0x5   :  { %23 = vsyncpa [#allocation3], 0 }
   0x6   :  { %25 = vsyncpa [#allocation3 + $0x1], 0  ;;  %s6073_s24 = smov 0   ;;  %s6075_s25 = smov 0  }
   0x7   :  { %s6077_s26 = smov 0   ;;  %s6079_s27 = smov 0  }
   0x8 LB: > { %9118 = sst [smem:[#allocation5_spill]] %s5961_s24  ;;  %s6094_s28 = sadd.s32 4294967295, %s5973_s27   ;;  %s5973_s27 = sphi %s6079_s27, %s9358_s27   ;;  %s5969_s26 = sphi %s6077_s26, %s9360_s26   ;;  %s5965_s25 = sphi %s6075_s25, %s9362_s25   ;;  %s5961_s24 = sphi %s6073_s24, %s9361_s24  }
   0x9   : > { %9119 = sst [smem:[#allocation6_spill]] %s5969_s26  ;;  %s4508_s29 = sadd.s32 4294967294, %s5973_s27  }
   0xa   : > { %s6098_s0 = sadd.s32 1, %s5973_s27   ;;  %s420_s30 = sadd.s32 1, %s5969_s26 }
   0xb   : > { %9120 = sst [smem:[#allocation7_spill]] %s6098_s0  ;;  %s417_s18 = ssub.s32 %s5973_s27, %s6098_s0 }
   0xc   : > { %p430_p0 = scmp.ne.s32.totalorder %s5969_s26, %s5965_s25  ;;  %p418_p1 = scmp.eq.s32.totalorder %s417_s18, 0 }
   0xd   : > { %p431_p2 = scmp.eq.s32.totalorder %s6094_s28, 1  ;;  %p436_p3 = scmp.ne.s32.totalorder %s5965_s25, %s5961_s24 }
   0xe   : > { %p437_p4 = scmp.eq.s32.totalorder %s4508_s29, 1  ;;  %p4511_p7 = scmp.ge.s32.totalorder %s5973_s27, 1 }
   0xf   : > { %s6109_s19 = scalar_select %p418_p1, %s5969_s26, %s420_s30  }
  0x10   : > { %p6111_p5 = por %p431_p2, %p430_p0  ;;  %p6115_p6 = por %p437_p4, %p436_p3 }
  0x11   : > { %9121 = sst [smem:[#allocation8_spill]] %s6109_s19  ;;  %p515_p8 = scmp.lt.s32.totalorder %s5973_s27, 3 }
  0x12   : > { %s9123_s20 = scalar_select %p6115_p6, 1, 0 }
  0x13   : > { %p516_p9 = pnand %p4511_p7, %p515_p8 }
  0x14   : > { %9124 = sst [smem:[#allocation9_spill]] %s9123_s20 }
  0x15   : > { %519 = sbr.rel (%p516_p9) target bundleno = 1663 (0x67f), region = 80 }
  0x1c   : > { %s9125_s5 = sld [smem:[#allocation79_spill]]  ;;  %p587_p10 = scmp.lt.s32.totalorder %s6094_s28, 1  ;;  %v1245_v4 = vld [vmem:[%s8987_s7] sm:$0xff]  ;;  %v1246_v5 = vld [vmem:[%s8987_s7 + $0x8] sm:$0xff]  ;;  %vm1089_vm0 = vcmask 195584   ;;  %v1247_v6 = vld [vmem:[%s8987_s7 + $0x10] sm:$0xff] }
  0x1d   : > { %v1248_v7 = vld [vmem:[%s8987_s7 + $0x18] sm:$0xff]  ;;  %v5114_v8 = vpack.c.bf16 %v1246_v5, %v1245_v4  ;;  %v1249_v15 = vld [vmem:[%s8987_s7 + $0x20] sm:$0xff]  ;;  %s9127_s2 = sld [smem:[#allocation78_spill]]  ;;  %vm1257_vm1 = vcmask 326656   ;;  %vm653_vm2 = vcmask 130048   ;;  %v645_v23 = vld [vmem:[%s8983_s3 + $0x8] sm:$0xff] }
  0x1e   : > { %s6132_s19 = scalar_select %p587_p10, %s6094_s28, 1  ;;  %v5118_v12 = vpack.c.bf16 %v1248_v7, %v1247_v6  ;;  %v1348_v21 = vld [vmem:[%s8993_s13] sm:$0xff]  ;;  %vm1345_vm4 = vcmask 261120   ;;  %v1349_v7 = vld [vmem:[%s8993_s13 + $0x8] sm:$0xff]  ;;  %vm1520_vm7 = vcmask 1040384   ;;  %vm1580_vm13 = vcmask 1045504  }
  0x1f   : > { %v644_v22 = vld [vmem:[%s8983_s3] sm:$0xff]  ;;  %s9003_s26 = sand.u32 1, %s5965_s25  }
  0x20   : > { %s9005_s23 = sshll.u32 %s6132_s19, 6  ;;  %s4657_s21 = sshll.u32 %s6132_s19, 4  ;;  %v5106_v25 = vpack.c.bf16 %v645_v23, %v644_v22  ;;  %v4565_v61 = vld [vmem:[%s8988_s8] ss:$0 sm:$0xff]  ;;  %v1850_v22 = vld [vmem:[%s8989_s9 + $0x118] sm:$0xff] }
  0x21   : > { %s9004_s0 = sshll.u32 %s6132_s19, 8 }
  0x22   : > { %v1079_v0 = vld [vmem:[%s9125_s5] sm:$0xff]  ;;  %v1080_v1 = vld [vmem:[%s9125_s5 + $0x8] sm:$0xff]  ;;  %v1081_v3 = vld [vmem:[%s9125_s5 + $0x10] sm:$0xff]  ;;  %s9126_s5 = sld [smem:[#allocation77_spill]]  ;;  %5107 = vmatprep.subr.bf16.mxu0 %v5106_v25 }
  0x23   : > { %v5110_v2 = vpack.c.bf16 %v1080_v1, %v1079_v0  ;;  %s601_s30 = scalar_lea.vmem %s9127_s2, %s4657_s21  ;;  %5109 = vmatpush3.bf16.msra.mxu0 %v5106_v25  ;;  %v1832_v25 = vld [vmem:[%s8989_s9 + $0x88] sm:$0xff]  ;;  %s4660_s2 = sshll.u32 %s6094_s28, 8 }
  0x24   : > { %v1243_v19 = vld [vmem:[%s601_s30] sm:$0xff]  ;;  %v1244_v20 = vld [vmem:[%s601_s30 + $0x8] sm:$0xff]  ;;  %s9139_s30 = sshll.u32 %s6132_s19, 6  ;;  %s9355_s28 = sand.u32 1, %s5965_s25  }
  0x25   : > { %5111 = vmatprep.subr.bf16.mxu1 %v5110_v2  ;;  %s6825_s20 = scalar_lea.vmem %s8996_s16, %s9139_s30  ;;  %s8803_s30 = scalar_lea.hbm %s8997_s17, %s4660_s2 }
  0x26   : > { %5113 = vmatpush3.bf16.msra.mxu1 %v5110_v2 }
  0x27   : > { %4923 = vmatprep.subr.mxu1 %v1081_v3 }
  0x28   : > { %s596_s24 = scalar_lea.vmem %s9126_s5, %s9005_s23  ;;  %s5977_s5 = smov 96  }
  0x29   : > { %v1071_v9 = vld [vmem:[%s596_s24] sm:$0xff]  ;;  %v1072_v10 = vld [vmem:[%s596_s24 + $0x8] sm:$0xff]  ;;  %v1073_v11 = vld [vmem:[%s596_s24 + $0x10] sm:$0xff] }
  0x2a   : > { %4925 = vmatprep.mubr.msk.f32.mxu1 %vm1089_vm0, %v1071_v9  ;;  %4924 = vmatpush3.msra.mxu1 %v1081_v3  ;;  %v1074_v13 = vld [vmem:[%s596_s24 + $0x18] sm:$0xff]  ;;  %v1075_v14 = vld [vmem:[%s596_s24 + $0x20] sm:$0xff]  ;;  %v1076_v16 = vld [vmem:[%s596_s24 + $0x28] sm:$0xff] }
  0x2b   : > { %4926 = vmatmul.mubr.msk.f32.vlgmr.msra.gmra.mrb[0].mxu1 %vm1089_vm0, %v1072_v10  ;;  %5115 = vmatprep.subr.bf16.mxu1 %v5114_v8  ;;  %v1077_v17 = vld [vmem:[%s596_s24 + $0x30] sm:$0xff]  ;;  %v1078_v18 = vld [vmem:[%s596_s24 + $0x38] sm:$0xff]  ;;  %s9128_s24 = sld [smem:[#allocation76_spill]]  ;;  %v1352_v10 = vld [vmem:[%s8993_s13 + $0x20] sm:$0xff] }
  0x2c   : > { %5117 = vmatpush3.bf16.msra.mxu1 %v5114_v8  ;;  %4928 = vmatprep.mubr.msk.f32.mxu1 %vm1089_vm0, %v1073_v11  ;;  %v1350_v8 = vld [vmem:[%s8993_s13 + $0x10] sm:$0xff]  ;;  %v1351_v9 = vld [vmem:[%s8993_s13 + $0x18] sm:$0xff]  ;;  %v1353_v11 = vld [vmem:[%s8993_s13 + $0x28] sm:$0xff] }
  0x2d   : > { %5119 = vmatprep.subr.bf16.mxu1 %v5118_v12 }
  0x2f   : > { %4929 = vmatmul.mubr.msk.f32.gmra.mrb[2].mxu1 %vm1089_vm0, %v1074_v13  ;;  %v1355_v13 = vld [vmem:[%s8993_s13 + $0x38] sm:$0xff] }
  0x30   : > { %4931 = vmatprep.mubr.msk.f32.mxu1 %vm1089_vm0, %v1075_v14  ;;  %5121 = vmatpush3.bf16.msra.mxu1 %v5118_v12  ;;  %v1354_v12 = vld [vmem:[%s8993_s13 + $0x30] sm:$0xff] }
  0x31   : > { %4945 = vmatprep.subr.mxu1 %v1249_v15  ;;  %s6177_s21 = scalar_lea.vmem %s9128_s24, %s9004_s0  ;;  %s4512_s24 = sshll.u32 %s9003_s26, 4 }
  0x32   : > { %v612_v24 = vld [vmem:[%s6177_s21] sm:$0xff]  ;;  %v613_v26 = vld [vmem:[%s6177_s21 + $0x8] sm:$0xff]  ;;  %v614_v27 = vld [vmem:[%s6177_s21 + $0x10] sm:$0xff]  ;;  %s6263_s22 = scalar_lea.vmem [#allocation2], %s4512_s24  ;;  %s5976_s26 = smov 64  }
  0x33   : > { %4932 = vmatmul.mubr.msk.f32.gmra.mrb[4].mxu1 %vm1089_vm0, %v1076_v16  ;;  %4871 = vmatprep.mubr.msk.f32.mxu0 %vm653_vm2, %v612_v24  ;;  %v615_v28 = vld [vmem:[%s6177_s21 + $0x18] sm:$0xff]  ;;  %v616_v29 = vld [vmem:[%s6177_s21 + $0x20] sm:$0xff]  ;;  %v617_v30 = vld [vmem:[%s6177_s21 + $0x28] sm:$0xff]  ;;  %s5978_s24 = smov 32  }
  0x34   : > { %4934 = vmatprep.mubr.msk.f32.mxu1 %vm1089_vm0, %v1077_v17  ;;  %4946 = vmatpush3.msra.mxu1 %v1249_v15  ;;  %v618_v31 = vld [vmem:[%s6177_s21 + $0x30] sm:$0xff]  ;;  %v619_v32 = vld [vmem:[%s6177_s21 + $0x38] sm:$0xff]  ;;  %v620_v33 = vld [vmem:[%s6177_s21 + $0x40] sm:$0xff] }
  0x35   : > { %4872 = vmatmul.mubr.msk.f32.vlgmr.msra.gmra.mrb[0].mxu0 %vm653_vm2, %v613_v26  ;;  %v621_v34 = vld [vmem:[%s6177_s21 + $0x48] sm:$0xff]  ;;  %v622_v35 = vld [vmem:[%s6177_s21 + $0x50] sm:$0xff]  ;;  %v623_v36 = vld [vmem:[%s6177_s21 + $0x58] sm:$0xff] }
  0x36   : > { %4874 = vmatprep.mubr.msk.f32.mxu0 %vm653_vm2, %v614_v27  ;;  %v624_v37 = vld [vmem:[%s6177_s21 + $0x60] sm:$0xff]  ;;  %v625_v38 = vld [vmem:[%s6177_s21 + $0x68] sm:$0xff]  ;;  %v626_v39 = vld [vmem:[%s6177_s21 + $0x70] sm:$0xff] }
  0x37   : > { %4935 = vmatmul.mubr.msk.f32.gmra.mrb[6].mxu1 %vm1089_vm0, %v1078_v18  ;;  %v627_v40 = vld [vmem:[%s6177_s21 + $0x78] sm:$0xff]  ;;  %v628_v41 = vld [vmem:[%s6177_s21 + $0x80] sm:$0xff]  ;;  %v629_v42 = vld [vmem:[%s6177_s21 + $0x88] sm:$0xff]  ;;  %vm1555_vm0 = vcmask 1046528  }
  0x38   : > { %4947 = vmatprep.mubr.msk.f32.mxu1 %vm1257_vm1, %v1243_v19  ;;  %v630_v43 = vld [vmem:[%s6177_s21 + $0x90] sm:$0xff]  ;;  %v631_v44 = vld [vmem:[%s6177_s21 + $0x98] sm:$0xff]  ;;  %v632_v45 = vld [vmem:[%s6177_s21 + $0xa0] sm:$0xff] }
  0x39   : > { %4875 = vmatmul.mubr.msk.f32.gmra.mrb[2].mxu0 %vm653_vm2, %v615_v28  ;;  %v633_v46 = vld [vmem:[%s6177_s21 + $0xa8] sm:$0xff]  ;;  %v634_v47 = vld [vmem:[%s6177_s21 + $0xb0] sm:$0xff]  ;;  %v635_v48 = vld [vmem:[%s6177_s21 + $0xb8] sm:$0xff] }
  0x3a   : > { %4877 = vmatprep.mubr.msk.f32.mxu0 %vm653_vm2, %v616_v29  ;;  %v636_v49 = vld [vmem:[%s6177_s21 + $0xc0] sm:$0xff]  ;;  %v637_v50 = vld [vmem:[%s6177_s21 + $0xc8] sm:$0xff]  ;;  %v638_v51 = vld [vmem:[%s6177_s21 + $0xd0] sm:$0xff] }
  0x3b   : > { %4948 = vmatmul.mubr.msk.f32.vlgmr.msra.gmra.mrb[8].mxu1 %vm1257_vm1, %v1244_v20  ;;  %v639_v52 = vld [vmem:[%s6177_s21 + $0xd8] sm:$0xff]  ;;  %v640_v14 = vld [vmem:[%s6177_s21 + $0xe0] sm:$0xff]  ;;  %v641_v15 = vld [vmem:[%s6177_s21 + $0xe8] sm:$0xff]  ;;  %vm1773_vm1 = vcmask 523264  }
  0x3c   : > { %4954 = vmatprep.mubr.msk.f32.mxu1 %vm653_vm2, %v1348_v21  ;;  %v1847_v16 = vld [vmem:[%s8989_s9 + $0x100] sm:$0xff]  ;;  %v1848_v17 = vld [vmem:[%s8989_s9 + $0x108] sm:$0xff]  ;;  %v642_v19 = vld [vmem:[%s6177_s21 + $0xf0] sm:$0xff] }
  0x3d   : > { %4878 = vmatmul.mubr.msk.f32.gmra.mrb[4].mxu0 %vm653_vm2, %v617_v30  ;;  %v5158_v18 = vpack.c.bf16 %v1848_v17, %v1847_v16  ;;  %v643_v20 = vld [vmem:[%s6177_s21 + $0xf8] sm:$0xff]  ;;  %v1849_v21 = vld [vmem:[%s8989_s9 + $0x110] sm:$0xff]  ;;  %v1831_v24 = vld [vmem:[%s8989_s9 + $0x80] sm:$0xff] }
  0x3e   : > { %4880 = vmatprep.mubr.msk.f32.mxu0 %vm653_vm2, %v618_v31  ;;  %v5162_v23 = vpack.c.bf16 %v1850_v22, %v1849_v21  ;;  %v1815_v26 = vld [vmem:[%s8989_s9] sm:$0xff]  ;;  %v5126_v27 = vpack.c.bf16 %v1832_v25, %v1831_v24  ;;  %v1816_v28 = vld [vmem:[%s8989_s9 + $0x8] sm:$0xff]  ;;  %v1833_v29 = vld [vmem:[%s8989_s9 + $0x90] sm:$0xff] }
  0x3f   : > { %5159 = vmatprep.subr.bf16.mxu0 %v5158_v18  ;;  %v1834_v30 = vld [vmem:[%s8989_s9 + $0x98] sm:$0xff]  ;;  %v5128_v31 = vpack.c.bf16 %v1816_v28, %v1815_v26 }
  0x40   : > { %5161 = vmatpush3.bf16.msra.mxu0 %v5158_v18 }
  0x41   : > { %4881 = vmatmul.mubr.msk.f32.gmra.mrb[6].mxu0 %vm653_vm2, %v619_v32  ;;  %5163 = vmatprep.subr.bf16.mxu0 %v5162_v23  ;;  %v5130_v32 = vpack.c.bf16 %v1834_v30, %v1833_v29 }
  0x42   : > { %4883 = vmatprep.mubr.msk.f32.mxu0 %vm653_vm2, %v620_v33  ;;  %v1817_v33 = vld [vmem:[%s8989_s9 + $0x10] sm:$0xff] }
  0x44   : > { %5165 = vmatpush3.bf16.msra.mxu0 %v5162_v23 }
  0x45   : > { %4884 = vmatmul.mubr.msk.f32.gmra.mrb[8].mxu0 %vm653_vm2, %v621_v34  ;;  %v1818_v34 = vld [vmem:[%s8989_s9 + $0x18] sm:$0xff] }
  0x46   : > { %4886 = vmatprep.mubr.msk.f32.mxu0 %vm653_vm2, %v622_v35  ;;  %v1835_v35 = vld [vmem:[%s8989_s9 + $0xa0] sm:$0xff] }
  0x49   : > { %4887 = vmatmul.mubr.msk.f32.gmra.mrb[10].mxu0 %vm653_vm2, %v623_v36  ;;  %v1836_v36 = vld [vmem:[%s8989_s9 + $0xa8] sm:$0xff] }
  0x4a   : > { %4889 = vmatprep.mubr.msk.f32.mxu0 %vm653_vm2, %v624_v37  ;;  %v5132_v37 = vpack.c.bf16 %v1818_v34, %v1817_v33 }
  0x4d   : > { %4890 = vmatmul.mubr.msk.f32.gmra.mrb[12].mxu0 %vm653_vm2, %v625_v38  ;;  %v5134_v38 = vpack.c.bf16 %v1836_v36, %v1835_v35 }
  0x4e   : > { %4892 = vmatprep.mubr.msk.f32.mxu0 %vm653_vm2, %v626_v39  ;;  %v1819_v39 = vld [vmem:[%s8989_s9 + $0x20] sm:$0xff] }
  0x51   : > { %4893 = vmatmul.mubr.msk.f32.gmra.mrb[14].mxu0 %vm653_vm2, %v627_v40  ;;  %v1820_v40 = vld [vmem:[%s8989_s9 + $0x28] sm:$0xff] }
  0x52   : > { %4895 = vmatprep.mubr.msk.f32.mxu0 %vm653_vm2, %v628_v41  ;;  %v1837_v41 = vld [vmem:[%s8989_s9 + $0xb0] sm:$0xff] }
  0x55   : > { %4896 = vmatmul.mubr.msk.f32.gmra.mrb[16].mxu0 %vm653_vm2, %v629_v42  ;;  %v1838_v42 = vld [vmem:[%s8989_s9 + $0xb8] sm:$0xff] }
  0x56   : > { %4898 = vmatprep.mubr.msk.f32.mxu0 %vm653_vm2, %v630_v43  ;;  %v5136_v43 = vpack.c.bf16 %v1820_v40, %v1819_v39 }
  0x59   : > { %4899 = vmatmul.mubr.msk.f32.gmra.mrb[18].mxu0 %vm653_vm2, %v631_v44  ;;  %v5138_v44 = vpack.c.bf16 %v1838_v42, %v1837_v41 }
  0x5a   : > { %4901 = vmatprep.mubr.msk.f32.mxu0 %vm653_vm2, %v632_v45  ;;  %v1821_v45 = vld [vmem:[%s8989_s9 + $0x30] sm:$0xff] }
  0x5d   : > { %4902 = vmatmul.mubr.msk.f32.gmra.mrb[20].mxu0 %vm653_vm2, %v633_v46  ;;  %v1822_v46 = vld [vmem:[%s8989_s9 + $0x38] sm:$0xff] }
  0x5e   : > { %4904 = vmatprep.mubr.msk.f32.mxu0 %vm653_vm2, %v634_v47  ;;  %v1839_v47 = vld [vmem:[%s8989_s9 + $0xc0] sm:$0xff] }
  0x61   : > { %4905 = vmatmul.mubr.msk.f32.gmra.mrb[22].mxu0 %vm653_vm2, %v635_v48  ;;  %v1840_v48 = vld [vmem:[%s8989_s9 + $0xc8] sm:$0xff] }
  0x62   : > { %4907 = vmatprep.mubr.msk.f32.mxu0 %vm653_vm2, %v636_v49  ;;  %v5140_v49 = vpack.c.bf16 %v1822_v46, %v1821_v45 }
  0x65   : > { %4908 = vmatmul.mubr.msk.f32.gmra.mrb[24].mxu0 %vm653_vm2, %v637_v50  ;;  %v5142_v50 = vpack.c.bf16 %v1840_v48, %v1839_v47 }
  0x66   : > { %4910 = vmatprep.mubr.msk.f32.mxu0 %vm653_vm2, %v638_v51  ;;  %v1823_v51 = vld [vmem:[%s8989_s9 + $0x40] sm:$0xff] }
  0x69   : > { %4911 = vmatmul.mubr.msk.f32.gmra.mrb[26].mxu0 %vm653_vm2, %v639_v52  ;;  %v1824_v52 = vld [vmem:[%s8989_s9 + $0x48] sm:$0xff] }
  0x6a   : > { %4913 = vmatprep.mubr.msk.f32.mxu0 %vm653_vm2, %v640_v14 }
  0x6d   : > { %4914 = vmatmul.mubr.msk.f32.gmra.mrb[28].mxu0 %vm653_vm2, %v641_v15 }
  0x6e   : > { %4916 = vmatprep.mubr.msk.f32.mxu0 %vm653_vm2, %v642_v19 }
  0x71   : > { %4917 = vmatmul.mubr.msk.f32.gmra.mrb[30].mxu0 %vm653_vm2, %v643_v20 }
  0xfe   : > { %v6241_v53 = vpop.f32.mrb[0].mxu1 }
  0xff   : > { %v6243_v54 = vpop.f32.mrb[1].mxu1 }
 0x102   : > { %v6245_v55 = vpop.f32.mrb[2].mxu1 }
 0x103   : > { %v6247_v56 = vpop.f32.mrb[3].mxu1 }
 0x106   : > { %v6249_v57 = vpop.f32.mrb[4].mxu1 }
 0x107   : > { %v6251_v58 = vpop.f32.mrb[5].mxu1 }
 0x10a   : > { %v6253_v59 = vpop.f32.mrb[6].mxu1 }
 0x10b   : > { %v6255_v60 = vpop.f32.mrb[7].mxu1 }
 0x10e   : > { %v4949_v62 = vpop.f32.mrb[8].mxu1 }
 0x10f   : > { %v1336_v63 = vadd.f32 %v4949_v62, %v4565_v61  ;;  %v1330_v0 = vpop.f32.mrb[9].mxu1  ;;  %v1842_v62 = vld [vmem:[%s8989_s9 + $0xd8] sm:$0xff] }
 0x110   : > { %v1331_v1 = vadd.f32 %v4565_v61, %v1330_v0  ;;  %v1841_v61 = vld [vmem:[%s8989_s9 + $0xd0] sm:$0xff] }
 0x111   : > { %vm1340_vm3 = vcmp.ge.f32.partialorder %v1336_v63, 0.0  ;;  %v1342_v2 = vmul.f32 0.1, %v1336_v63  ;;  %v5146_v0 = vpack.c.bf16 %v1842_v62, %v1841_v61 }
 0x112   : > { %vm1339_vm5 = vcmp.ge.f32.partialorder %v1331_v1, 0.0  ;;  %v1341_v3 = vmul.f32 0.1, %v1331_v1 }
 0x113   : > { %v1344_v4 = vsel %vm1340_vm3, %v1336_v63, %v1342_v2  ;;  %v5144_v63 = vpack.c.bf16 %v1824_v52, %v1823_v51  ;;  %v1826_v2 = vld [vmem:[%s8989_s9 + $0x58] sm:$0xff] }
 0x114   : > { %v1343_v5 = vsel %vm1339_vm5, %v1331_v1, %v1341_v3  ;;  %1347 = vst.msk [vmem:[%s6263_s22 + $0x8] sm:$0xff] %vm1345_vm4, %v1344_v4  ;;  %v1825_v1 = vld [vmem:[%s8989_s9 + $0x50] sm:$0xff] }
 0x115   : > { %1346 = vst.msk [vmem:[%s6263_s22] sm:$0xff] %vm1345_vm4, %v1343_v5  ;;  %v5122_v6 = vpack.c.bf16 %v1344_v4, %v1343_v5  ;;  %v5148_v3 = vpack.c.bf16 %v1826_v2, %v1825_v1  ;;  %v4556_v4 = vld [vmem:[%s8986_s6] ss:$0 sm:$0xff] }
 0x116   : > { %v1186_v5 = vadd.f32 %v6241_v53, %v4556_v4  ;;  %v1201_v14 = vadd.f32 %v4556_v4, %v6251_v58  ;;  %v1843_v53 = vld [vmem:[%s8989_s9 + $0xe0] sm:$0xff]  ;;  %v6415_v20 = vadd.f32 %v6253_v59, %v4556_v4  ;;  %v1211_v26 = vadd.f32 %v4556_v4, %v6255_v60 }
 0x117   : > { %5123 = vmatprep.subr.bf16.mxu1 %v5122_v6 }
 0x118   : > { %5125 = vmatpush3.bf16.msra.mxu1 %v5122_v6  ;;  %v1181_v6 = vadd.f32 %v4556_v4, %v6243_v54  ;;  %vm1220_vm6 = vcmp.ge.f32.partialorder %v1186_v5, 0.0  ;;  %v1844_v54 = vld [vmem:[%s8989_s9 + $0xe8] sm:$0xff]  ;;  %v1231_v19 = vmul.f32 0.1, %v1201_v14  ;;  %vm1223_vm12 = vcmp.ge.f32.partialorder %v1201_v14, 0.0 }
 0x119   : > { %5127 = vmatprep.subr.bf16.mxu1 %v5126_v27  ;;  %vm1226_vm14 = vcmp.ge.f32.partialorder %v6415_v20, 0.0  ;;  %v1233_v39 = vmul.f32 0.1, %v1211_v26  ;;  %vm1225_vm15 = vcmp.ge.f32.partialorder %v1211_v26, 0.0 }
 0x11a   : > { %vm1219_vm8 = vcmp.ge.f32.partialorder %v1181_v6, 0.0  ;;  %v1239_v34 = vsel %vm1223_vm12, %v1201_v14, %v1231_v19 }
 0x11b   : > { %4955 = vmatmul.mubr.msk.f32.vlgmr.msra.gmra.mrb[10].mxu1 %vm653_vm2, %v1349_v7  ;;  %v1228_v7 = vmul.f32 0.1, %v1186_v5 }
 0x11c   : > { %4957 = vmatprep.mubr.msk.f32.mxu1 %vm653_vm2, %v1350_v8  ;;  %5129 = vmatpush3.bf16.msra.mxu1 %v5128_v31  ;;  %v1196_v8 = vadd.f32 %v6245_v55, %v4556_v4  ;;  %v1234_v31 = vmul.f32 0.1, %v6415_v20 }
 0x11d   : > { %5131 = vmatprep.subr.bf16.mxu1 %v5130_v32  ;;  %v1236_v15 = vsel %vm1220_vm6, %v1186_v5, %v1228_v7 }
 0x11e   : > { %v1230_v55 = vmul.f32 0.1, %v1196_v8  ;;  %vm1222_vm9 = vcmp.ge.f32.partialorder %v1196_v8, 0.0 }
 0x11f   : > { %4958 = vmatmul.mubr.msk.f32.gmra.mrb[12].mxu1 %vm653_vm2, %v1351_v9  ;;  %v5975_v9 = vmov 0.0  }
 0x120   : > { %4960 = vmatprep.mubr.msk.f32.mxu1 %vm653_vm2, %v1352_v10  ;;  %5133 = vmatpush3.bf16.msra.mxu1 %v5132_v37  ;;  %v6395_v10 = vrot.slane %v5975_v9, 7  ;;  %v1238_v29 = vsel %vm1222_vm9, %v1196_v8, %v1230_v55 }
 0x121   : > { %5135 = vmatprep.subr.bf16.mxu1 %v5134_v38 }
 0x122   : > { %9129 = vst [vmem:[#allocation10_spill] sm:$0xff] %v6395_v10  ;;  %v6408_v16 = vsel %vm1520_vm7, 0.0, %v6395_v10 }
 0x123   : > { %4961 = vmatmul.mubr.msk.f32.gmra.mrb[14].mxu1 %vm653_vm2, %v1353_v11  ;;  %v1227_v11 = vmul.f32 0.1, %v1181_v6  ;;  %9130 = vst [vmem:[#allocation11_spill] sm:$0xff] %v6408_v16  ;;  %v9007_v24 = vrot.slane %v6408_v16, 2 }
 0x124   : > { %4963 = vmatprep.mubr.msk.f32.mxu1 %vm653_vm2, %v1354_v12  ;;  %5137 = vmatpush3.bf16.msra.mxu1 %v5136_v43  ;;  %v1191_v12 = vadd.f32 %v4556_v4, %v6247_v56  ;;  %v6412_v56 = vsel %vm1520_vm7, %v6395_v10, 0.0 }
 0x125   : > { %5139 = vmatprep.subr.bf16.mxu1 %v5138_v44  ;;  %9131 = vst [vmem:[#allocation12_spill] sm:$0xff] %v6412_v56  ;;  %v1235_v18 = vsel %vm1219_vm8, %v1181_v6, %v1227_v11  ;;  %v9006_v25 = vrot.slane %v6412_v56, 2  ;;  %v9008_v43 = vrot.slane %v6412_v56, 1  ;;  %v9009_v44 = vrot.slane %v6408_v16, 1 }
 0x126   : > { %v1229_v58 = vmul.f32 0.1, %v1191_v12  ;;  %vm1221_vm10 = vcmp.ge.f32.partialorder %v1191_v12, 0.0 }
 0x127   : > { %4964 = vmatmul.mubr.msk.f32.gmra.mrb[16].mxu1 %vm653_vm2, %v1355_v13  ;;  %v1206_v13 = vadd.f32 %v6249_v57, %v4556_v4  ;;  %v5150_v57 = vpack.c.bf16 %v1844_v54, %v1843_v53  ;;  %v6432_v38 = vsel %vm1580_vm13, %v9007_v24, %v9006_v25  ;;  %v6472_v54 = vsel %vm1555_vm0, %v9009_v44, %v9008_v43 }
 0x128   : > { %5141 = vmatpush3.bf16.msra.mxu1 %v5140_v49  ;;  %v1237_v59 = vsel %vm1221_vm10, %v1191_v12, %v1229_v58  ;;  %vm1782_vm2 = vcmask 785408  }
 0x129   : > { %5143 = vmatprep.subr.bf16.mxu1 %v5142_v50  ;;  %v1232_v17 = vmul.f32 0.1, %v1206_v13  ;;  %vm1224_vm11 = vcmp.ge.f32.partialorder %v1206_v13, 0.0 }
 0x12b   : > { %v1240_v30 = vsel %vm1224_vm11, %v1206_v13, %v1232_v17 }
 0x12c   : > { %5145 = vmatpush3.bf16.msra.mxu1 %v5144_v63 }
 0x12d   : > { %5147 = vmatprep.subr.bf16.mxu1 %v5146_v0 }
 0x130   : > { %5149 = vmatpush3.bf16.msra.mxu1 %v5148_v3 }
 0x131   : > { %5151 = vmatprep.subr.bf16.mxu1 %v5150_v57  ;;  %v1241_v57 = vsel %vm1225_vm15, %v1211_v26, %v1233_v39 }
 0x1ee   : > { %v4956_v21 = vpop.f32.mrb[10].mxu1 }
 0x1ef   : > { %v1486_v22 = vadd.f32 %v4956_v21, %v1236_v15  ;;  %v1446_v23 = vpop.f32.mrb[11].mxu1  ;;  %v1242_v15 = vsel %vm1226_vm14, %v6415_v20, %v1234_v31 }
 0x1f0   : > { %v1485_v27 = vadd.f32 %v1446_v23, %v1235_v18 }
 0x1f1   : > { %v1504_v28 = vrot.slane %v1486_v22, 7 }
 0x1f2   : > { %v1503_v32 = vrot.slane %v1485_v27, 7  ;;  %v4959_v33 = vpop.f32.mrb[12].mxu1 }
 0x1f3   : > { %v6424_v35 = vsel %vm1520_vm7, 0.0, %v1504_v28  ;;  %v1532_v36 = vsel %vm1520_vm7, %v1504_v28, 0.0  ;;  %v1488_v60 = vadd.f32 %v4959_v33, %v1238_v29  ;;  %v1456_v37 = vpop.f32.mrb[13].mxu1 }
 0x1f4   : > { %v6435_v40 = vsel %vm1520_vm7, 0.0, %v1503_v32  ;;  %v1531_v41 = vsel %vm1520_vm7, %v1503_v32, 0.0  ;;  %v1588_v42 = vrot.slane %v1532_v36, 2  ;;  %v1487_v46 = vadd.f32 %v1456_v37, %v1237_v59 }
 0x1f5   : > { %v1506_v45 = vrot.slane %v1488_v60, 7  ;;  %v5316_v47 = vpack.i.bf16 %v6432_v38, %v6424_v35  ;;  %v1587_v49 = vrot.slane %v6424_v35, 2  ;;  %v1563_v50 = vrot.slane %v1532_v36, 1 }
 0x1f6   : > { %v4962_v48 = vpop.f32.mrb[14].mxu1  ;;  %v1559_v51 = vrot.slane %v6435_v40, 1  ;;  %v1560_v52 = vrot.slane %v1531_v41, 1  ;;  %v1584_v63 = vrot.slane %v6435_v40, 2  ;;  %v1585_v0 = vrot.slane %v1531_v41, 2 }
 0x1f7   : > { %v1490_v61 = vadd.f32 %v4962_v48, %v1240_v30  ;;  %v1466_v62 = vpop.f32.mrb[15].mxu1  ;;  %v1505_v1 = vrot.slane %v1487_v46, 7  ;;  %5317 = vrot.lane.b32.xlu0 %v5316_v47, %s5976_s26  ;;  %v6447_v3 = vsel %vm1520_vm7, 0.0, %v1506_v45  ;;  %v1534_v4 = vsel %vm1520_vm7, %v1506_v45, 0.0 }
 0x1f8   : > { %v1489_v2 = vadd.f32 %v1466_v62, %v1239_v34  ;;  %v1562_v6 = vrot.slane %v6424_v35, 1  ;;  %v6458_v11 = vsel %vm1580_vm13, %v1587_v49, %v1588_v42  ;;  %v1586_v55 = vsel %vm1580_vm13, %v1584_v63, %v1585_v0 }
 0x1f9   : > { %v1508_v5 = vrot.slane %v1490_v61, 7  ;;  %v6452_v7 = vsel %vm1520_vm7, 0.0, %v1505_v1  ;;  %v6455_v8 = vsel %vm1520_vm7, %v1505_v1, 0.0  ;;  %4974 = vmatprep.mubr.msk.f32.mxu0 %vm1345_vm4, %v6458_v11  ;;  %v6477_v58 = vsel %vm1555_vm0, %v1559_v51, %v1560_v52 }
 0x1fa   : > { %v1507_v9 = vrot.slane %v1489_v2, 7  ;;  %v4965_v12 = vpop.f32.mrb[16].mxu1  ;;  %v1590_v13 = vrot.slane %v6452_v7, 2  ;;  %v1591_v14 = vrot.slane %v6455_v8, 2  ;;  %v1568_v17 = vrot.slane %v6447_v3, 1 }
 0x1fb   : > { %v1476_v53 = vpop.f32.mrb[17].mxu1  ;;  %v1594_v18 = vrot.slane %v1534_v4, 2  ;;  %v6481_v19 = vsel %vm1520_vm7, 0.0, %v1508_v5  ;;  %v6487_v21 = vsel %vm1520_vm7, %v1508_v5, 0.0  ;;  %v6493_v23 = vsel %vm1555_vm0, %v1562_v6, %v1563_v50 }
 0x1fc   : > { %v6484_v20 = vsel %vm1520_vm7, %v1507_v9, 0.0  ;;  %v6490_v22 = vsel %vm1520_vm7, 0.0, %v1507_v9  ;;  %v1492_v26 = vadd.f32 %v4965_v12, %v1242_v15  ;;  %v5321_v27 = vpack.i.bf16 %v6435_v40, %v6493_v23  ;;  %v1828_v9 = vld [vmem:[%s8989_s9 + $0x68] sm:$0xff]  ;;  %v1846_v12 = vld [vmem:[%s8989_s9 + $0xf8] sm:$0xff] }
 0x1fd   : > { %v5326_v28 = vpack.i.bf16 %v6472_v54, %v1586_v55  ;;  %v1491_v29 = vadd.f32 %v1476_v53, %v1241_v57  ;;  %v6499_v59 = vsel %vm1580_vm13, %v1590_v13, %v1591_v14  ;;  %v1569_v30 = vrot.slane %v1534_v4, 1  ;;  %v1830_v57 = vld [vmem:[%s8989_s9 + $0x78] sm:$0xff] }
 0x1fe   : > { %v1597_v31 = vrot.slane %v6484_v20, 2  ;;  %v1510_v32 = vrot.slane %v1492_v26, 7  ;;  %4975 = vmatmul.mubr.msk.f32.vlgmr.msra.gmra.mrb[32].mxu0 %vm1345_vm4, %v6499_v59  ;;  %v1593_v33 = vrot.slane %v6447_v3, 2  ;;  %v1565_v34 = vrot.slane %v6452_v7, 1  ;;  %5322 = vrot.lane.b32.xlu1 %v5321_v27, %s5977_s5 }
 0x1ff   : > { %5327 = vrot.lane.b32.xlu0 %v5326_v28, %s5978_s24  ;;  %v1509_v36 = vrot.slane %v1491_v29, 7  ;;  %v1596_v60 = vrot.slane %v6490_v22, 2  ;;  %v1566_v37 = vrot.slane %v6455_v8, 1  ;;  %v1600_v39 = vrot.slane %v6487_v21, 2  ;;  %v1827_v8 = vld [vmem:[%s8989_s9 + $0x60] sm:$0xff] }
 0x200   : > { %v1595_v41 = vsel %vm1580_vm13, %v1593_v33, %v1594_v18  ;;  %v1599_v42 = vrot.slane %v6481_v19, 2  ;;  %v6514_v45 = vsel %vm1520_vm7, 0.0, %v1510_v32  ;;  %v6517_v46 = vsel %vm1520_vm7, %v1510_v32, 0.0 }
 0x201   : > { %v5331_v47 = vpack.i.bf16 %v6477_v58, %v6458_v11  ;;  %4977 = vmatprep.mubr.msk.f32.mxu0 %vm1345_vm4, %v1595_v41  ;;  %v5341_v48 = vpack.i.bf16 %v1586_v55, %v6452_v7  ;;  %v6524_v49 = vsel %vm1520_vm7, 0.0, %v1509_v36  ;;  %v6527_v50 = vsel %vm1520_vm7, %v1509_v36, 0.0  ;;  %v1829_v55 = vld [vmem:[%s8989_s9 + $0x70] sm:$0xff] }
 0x202   : > { %v6530_v51 = vsel %vm1580_vm13, %v1596_v60, %v1597_v31  ;;  %v6533_v52 = vsel %vm1555_vm0, %v1568_v17, %v1569_v30  ;;  %v1603_v61 = vrot.slane %v6527_v50, 2  ;;  %v1618_v62 = vrot.slane %v6514_v45, 2 }
 0x203   : > { %5332 = vrot.lane.b32.xlu1 %v5331_v47, %s5978_s24  ;;  %5342 = vrot.lane.b32.xlu0 %v5341_v48, %s5976_s26  ;;  %v1619_v63 = vrot.slane %v6517_v46, 2  ;;  %v1601_v0 = vsel %vm1580_vm13, %v1599_v42, %v1600_v39  ;;  %v1602_v1 = vrot.slane %v6524_v49, 2  ;;  %v5336_v2 = vpack.i.bf16 %v6458_v11, %v6447_v3  ;;  %v1845_v11 = vld [vmem:[%s8989_s9 + $0xf0] sm:$0xff] }
 0x204   : > { %4978 = vmatmul.mubr.msk.f32.gmra.mrb[34].mxu0 %vm1345_vm4, %v6530_v51  ;;  %v5346_v4 = vpack.i.bf16 %v6452_v7, %v6533_v52  ;;  %v6553_v6 = vsel %vm1555_vm0, %v1565_v34, %v1566_v37  ;;  %v5396_v14 = vpack.i.bf16 %v1601_v0, %v6514_v45  ;;  %v5356_v53 = vpack.i.bf16 %v6493_v23, %v6499_v59 }
 0x205   : > { %4980 = vmatprep.mubr.msk.f32.mxu0 %vm1345_vm4, %v1601_v0  ;;  %v6550_v5 = vsel %vm1580_vm13, %v1602_v1, %v1603_v61  ;;  %v1620_v13 = vsel %vm1580_vm13, %v1618_v62, %v1619_v63  ;;  %v5351_v15 = vpack.i.bf16 %v6424_v35, %v6553_v6  ;;  %v1574_v17 = vrot.slane %v6481_v19, 1  ;;  %v6637_v61 = vpop.f32.mrb[0].mxu0 }
 0x206   : > { %v1575_v18 = vrot.slane %v6487_v21, 1  ;;  %v5152_v26 = vpack.c.bf16 %v1828_v9, %v1827_v8  ;;  %v5154_v27 = vpack.c.bf16 %v1846_v12, %v1845_v11  ;;  %v5156_v28 = vpack.c.bf16 %v1830_v57, %v1829_v55  ;;  %v6641_v62 = vpop.f32.mrb[1].mxu0 }
 0x207   : > { %5337 = vrot.lane.b32.xlu1 %v5336_v2, %s5976_s26  ;;  %5347 = vrot.lane.b32.xlu0 %v5346_v4, %s5977_s5  ;;  %v5361_v29 = vpack.i.bf16 %v6553_v6, %v1595_v41  ;;  %v5371_v30 = vpack.i.bf16 %v6499_v59, %v6490_v22  ;;  %v1571_v31 = vrot.slane %v6490_v22, 1  ;;  %v1572_v21 = vrot.slane %v6484_v20, 1  ;;  %v6643_v63 = vpop.f32.mrb[2].mxu0 }
 0x208   : > { %4981 = vmatmul.mubr.msk.f32.gmra.mrb[36].mxu0 %vm1345_vm4, %v6550_v5  ;;  %5153 = vmatpush3.bf16.msra.mxu1 %v5152_v26  ;;  %v6596_v32 = vsel %vm1555_vm0, %v1574_v17, %v1575_v18  ;;  %v5386_v34 = vpack.i.bf16 %v6533_v52, %v6530_v51  ;;  %v5401_v60 = vpack.i.bf16 %v6530_v51, %v6524_v49  ;;  %v1607_v37 = vrot.slane %v6514_v45, 1  ;;  %v6648_v2 = vpop.f32.mrb[3].mxu0 }
 0x209   : > { %4983 = vmatprep.mubr.msk.f32.mxu0 %vm1345_vm4, %v1620_v13  ;;  %5155 = vmatprep.subr.bf16.mxu1 %v5154_v27  ;;  %v5376_v33 = vpack.i.bf16 %v6490_v22, %v6596_v32  ;;  %v6604_v59 = vsel %vm1555_vm0, %v1571_v31, %v1572_v21  ;;  %v1608_v39 = vrot.slane %v6517_v46, 1  ;;  %v1578_v42 = vrot.slane %v6527_v50, 1  ;;  %v6650_v4 = vpop.f32.mrb[4].mxu0 }
 0x20a   : > { %v5381_v20 = vpack.i.bf16 %v6447_v3, %v6604_v59  ;;  %v5391_v36 = vpack.i.bf16 %v6604_v59, %v1601_v0  ;;  %v5411_v47 = vpack.i.bf16 %v6596_v32, %v6550_v5  ;;  %v5426_v1 = vpack.i.bf16 %v6550_v5, %v6408_v16  ;;  %v6654_v8 = vpop.f32.mrb[5].mxu0 }
 0x20b   : > { %5352 = vrot.lane.b32.xlu1 %v5351_v15, %s5977_s5  ;;  %5357 = vrot.lane.b32.xlu0 %v5356_v53, %s5978_s24  ;;  %v6629_v51 = vsel %vm1555_vm0, %v1607_v37, %v1608_v39  ;;  %v6656_v9 = vpop.f32.mrb[6].mxu0  ;;  %v5431_v11 = vpack.i.bf16 %v6514_v45, %v6472_v54  ;;  %v6678_v54 = vld [vmem:[%s8984_s4] ss:$0 sm:$0xff] }
 0x20c   : > { %4984 = vmatmul.mubr.msk.f32.gmra.mrb[38].mxu0 %vm1345_vm4, %v6432_v38  ;;  %5157 = vmatpush3.bf16.msra.mxu1 %v5156_v28  ;;  %v5366_v38 = vpack.i.bf16 %v1595_v41, %v6481_v19  ;;  %v1577_v41 = vrot.slane %v6524_v49, 1  ;;  %v5416_v50 = vpack.i.bf16 %v6524_v49, %v6629_v51  ;;  %v6660_v12 = vpop.f32.mrb[7].mxu0 }
 0x20e   : > { %v6626_v48 = vsel %vm1555_vm0, %v1577_v41, %v1578_v42 }
 0x20f   : > { %5362 = vrot.lane.b32.xlu1 %v5361_v29, %s5978_s24  ;;  %5372 = vrot.lane.b32.xlu0 %v5371_v30, %s5976_s26  ;;  %v5406_v46 = vpack.i.bf16 %v6481_v19, %v6626_v48  ;;  %v5421_v0 = vpack.i.bf16 %v6626_v48, %v1620_v13  ;;  %v6662_v13 = vpop.f32.mrb[8].mxu0 }
 0x210   : > { %v6665_v5 = vpop.f32.mrb[9].mxu0 }
 0x213   : > { %5367 = vrot.lane.b32.xlu1 %v5366_v38, %s5976_s26  ;;  %5377 = vrot.lane.b32.xlu0 %v5376_v33, %s5977_s5 }
 0x217   : > { %5382 = vrot.lane.b32.xlu1 %v5381_v20, %s5977_s5  ;;  %5387 = vrot.lane.b32.xlu0 %v5386_v34, %s5978_s24 }
 0x21b   : > { %5392 = vrot.lane.b32.xlu1 %v5391_v36, %s5978_s24  ;;  %5402 = vrot.lane.b32.xlu0 %v5401_v60, %s5976_s26 }
 0x21f   : > { %5397 = vrot.lane.b32.xlu1 %v5396_v14, %s5976_s26  ;;  %5412 = vrot.lane.b32.xlu0 %v5411_v47, %s5978_s24  ;;  %v6667_v14 = vpop.f32.mrb[10].mxu0 }
 0x220   : > { %v6669_v15 = vpop.f32.mrb[11].mxu0 }
 0x221   : > { %v6671_v53 = vpop.f32.mrb[12].mxu0 }
 0x222   : > { %v6673_v55 = vpop.f32.mrb[13].mxu0 }
 0x223   : > { %5407 = vrot.lane.b32.xlu1 %v5406_v46, %s5977_s5  ;;  %5417 = vrot.lane.b32.xlu0 %v5416_v50, %s5977_s5  ;;  %v4894_v45 = vpop.f32.mrb[14].mxu0 }
 0x224   : > { %v6681_v57 = vadd.f32 %v4894_v45, %v6678_v54  ;;  %v886_v17 = vpop.f32.mrb[15].mxu0 }
 0x225   : > { %v6684_v18 = vadd.f32 %v6678_v54, %v886_v17  ;;  %v4897_v26 = vpop.f32.mrb[16].mxu0 }
 0x226   : > { %v6687_v27 = vadd.f32 %v4897_v26, %v6678_v54  ;;  %v896_v28 = vpop.f32.mrb[17].mxu0 }
 0x227   : > { %5422 = vrot.lane.b32.xlu1 %v5421_v0, %s5978_s24  ;;  %5427 = vrot.lane.b32.xlu0 %v5426_v1, %s5976_s26  ;;  %v6690_v29 = vadd.f32 %v6678_v54, %v896_v28  ;;  %v4900_v30 = vpop.f32.mrb[18].mxu0 }
 0x228   : > { %v6693_v31 = vadd.f32 %v4900_v30, %v6678_v54  ;;  %v906_v21 = vpop.f32.mrb[19].mxu0 }
 0x229   : > { %v6696_v38 = vadd.f32 %v6678_v54, %v906_v21  ;;  %v4903_v33 = vpop.f32.mrb[20].mxu0 }
 0x22a   : > { %v6699_v20 = vadd.f32 %v4903_v33, %v6678_v54  ;;  %v916_v34 = vpop.f32.mrb[21].mxu0 }
 0x22b   : > { %5432 = vrot.lane.b32.xlu1 %v5431_v11, %s5977_s5  ;;  %v6702_v36 = vadd.f32 %v6678_v54, %v916_v34  ;;  %v4906_v60 = vpop.f32.mrb[22].mxu0 }
 0x22c   : > { %v6705_v37 = vadd.f32 %v4906_v60, %v6678_v54  ;;  %v926_v39 = vpop.f32.mrb[23].mxu0 }
 0x22d   : > { %v6708_v41 = vadd.f32 %v6678_v54, %v926_v39  ;;  %v4909_v42 = vpop.f32.mrb[24].mxu0 }
 0x22e   : > { %v6711_v47 = vadd.f32 %v4909_v42, %v6678_v54  ;;  %v936_v46 = vpop.f32.mrb[25].mxu0 }
 0x22f   : > { %v6714_v50 = vadd.f32 %v6678_v54, %v936_v46  ;;  %v4912_v0 = vpop.f32.mrb[26].mxu0 }
 0x230   : > { %v6717_v1 = vadd.f32 %v4912_v0, %v6678_v54  ;;  %v946_v11 = vpop.f32.mrb[27].mxu0 }
 0x231   : > { %v6720_v45 = vadd.f32 %v6678_v54, %v946_v11  ;;  %v4915_v17 = vpop.f32.mrb[28].mxu0 }
 0x232   : > { %9132 = vst [vmem:[#allocation13_spill] sm:$0xff] %v6717_v1  ;;  %v6723_v26 = vadd.f32 %v4915_v17, %v6678_v54  ;;  %v956_v28 = vpop.f32.mrb[29].mxu0 }
 0x233   : > { %9133 = vst [vmem:[#allocation14_spill] sm:$0xff] %v6720_v45  ;;  %v6726_v30 = vadd.f32 %v6678_v54, %v956_v28  ;;  %v4918_v21 = vpop.f32.mrb[30].mxu0 }
 0x234   : > { %9134 = vst [vmem:[#allocation15_spill] sm:$0xff] %v6723_v26  ;;  %v6729_v33 = vadd.f32 %v4918_v21, %v6678_v54  ;;  %v966_v34 = vpop.f32.mrb[31].mxu0 }
 0x235   : > { %9135 = vst [vmem:[#allocation16_spill] sm:$0xff] %v6726_v30  ;;  %v6732_v60 = vadd.f32 %v6678_v54, %v966_v34 }
 0x236   : > { %9136 = vst [vmem:[#allocation17_spill] sm:$0xff] %v6729_v33 }
 0x237   : > { %9137 = vst [vmem:[#allocation18_spill] sm:$0xff] %v6732_v60 }
 0x269   : > { %v5318_v39 = vpop.permute.xlu0 %5317 }
 0x26a   : > { %v5320_v17 = vunpack.i.h.bf16 %v5318_v39  ;;  %v5319_v25 = vunpack.i.l.bf16 %v5318_v39 }
 0x270   : > { %v5323_v42 = vpop.permute.xlu1 %5322 }
 0x271   : > { %v5328_v46 = vpop.permute.xlu0 %5327  ;;  %v5325_v24 = vunpack.i.h.bf16 %v5323_v42  ;;  %v5324_v43 = vunpack.i.l.bf16 %v5323_v42 }
 0x272   : > { %v5330_v0 = vunpack.i.h.bf16 %v5328_v46  ;;  %v5329_v11 = vunpack.i.l.bf16 %v5328_v46 }
 0x274   : > { %v1765_v28 = vsel %vm1345_vm4, %v6408_v16, %v5330_v0  ;;  %v1791_v21 = vsel %vm1345_vm4, %v6477_v58, %v5329_v11 }
 0x275   : > { %v5333_v44 = vpop.permute.xlu1 %5332  ;;  %v5343_v34 = vpop.permute.xlu0 %5342  ;;  %v1799_v60 = vsel %vm1773_vm1, %v1791_v21, %v5319_v25  ;;  %v1774_v33 = vsel %vm1773_vm1, %v1765_v28, %v5320_v17 }
 0x276   : > { %v1807_v46 = vsel %vm1782_vm2, %v1799_v60, %v5324_v43  ;;  %v1783_v30 = vsel %vm1782_vm2, %v1774_v33, %v5325_v24  ;;  %v5335_v39 = vunpack.i.h.bf16 %v5333_v44  ;;  %v5334_v56 = vunpack.i.l.bf16 %v5333_v44 }
 0x277   : > { %1938 = vmatprep.mubr.f32.mxu1 %v1807_v46  ;;  %v5345_v10 = vunpack.i.h.bf16 %v5343_v34  ;;  %v5344_v58 = vunpack.i.l.bf16 %v5343_v34 }
 0x278   : > { %1939 = vmatmul.mubr.f32.vlgmr.msra.gmra.mrb[18].mxu1 %v1783_v30  ;;  %v1792_v42 = vsel %vm1345_vm4, %v6493_v23, %v5334_v56  ;;  %v1766_v25 = vsel %vm1345_vm4, %v6435_v40, %v5335_v39 }
 0x279   : > { %v5338_v0 = vpop.permute.xlu1 %5337  ;;  %v5348_v16 = vpop.permute.xlu0 %5347  ;;  %v1800_v21 = vsel %vm1773_vm1, %v1792_v42, %v5344_v58  ;;  %v1775_v30 = vsel %vm1773_vm1, %v1766_v25, %v5345_v10 }
 0x27a   : > { %v5340_v33 = vunpack.i.h.bf16 %v5338_v0  ;;  %v5339_v44 = vunpack.i.l.bf16 %v5338_v0  ;;  %v5349_v23 = vunpack.i.l.bf16 %v5348_v16  ;;  %v5350_v10 = vunpack.i.h.bf16 %v5348_v16 }
 0x27d   : > { %v5353_v11 = vpop.permute.xlu1 %5352  ;;  %v5358_v17 = vpop.permute.xlu0 %5357 }
 0x27e   : > { %v5355_v28 = vunpack.i.h.bf16 %v5353_v11  ;;  %v5354_v43 = vunpack.i.l.bf16 %v5353_v11  ;;  %v5360_v60 = vunpack.i.h.bf16 %v5358_v17  ;;  %v5359_v24 = vunpack.i.l.bf16 %v5358_v17 }
 0x280   : > { %v1808_v34 = vsel %vm1782_vm2, %v1800_v21, %v5354_v43  ;;  %v1784_v46 = vsel %vm1782_vm2, %v1775_v30, %v5355_v28  ;;  %v1793_v56 = vsel %vm1345_vm4, %v6553_v6, %v5359_v24  ;;  %v1767_v40 = vsel %vm1345_vm4, %v6424_v35, %v5360_v60 }
 0x281   : > { %v5363_v39 = vpop.permute.xlu1 %5362  ;;  %1943 = vmatprep.mubr.f32.mxu1 %v1808_v34  ;;  %v5373_v11 = vpop.permute.xlu0 %5372  ;;  %v1801_v0 = vsel %vm1773_vm1, %v1793_v56, %v5339_v44  ;;  %v1776_v58 = vsel %vm1773_vm1, %v1767_v40, %v5340_v33 }
 0x282   : > { %1944 = vmatmul.mubr.f32.gmra.mrb[20].mxu1 %v1784_v46  ;;  %v1809_v42 = vsel %vm1782_vm2, %v1801_v0, %v5349_v23  ;;  %v5365_v25 = vunpack.i.h.bf16 %v5363_v39  ;;  %v5364_v17 = vunpack.i.l.bf16 %v5363_v39  ;;  %v1785_v43 = vsel %vm1782_vm2, %v1776_v58, %v5350_v10 }
 0x283   : > { %1948 = vmatprep.mubr.f32.mxu1 %v1809_v42  ;;  %v5375_v35 = vunpack.i.h.bf16 %v5373_v11  ;;  %v5374_v60 = vunpack.i.l.bf16 %v5373_v11 }
 0x284   : > { %v1794_v24 = vsel %vm1345_vm4, %v6533_v52, %v5364_v17  ;;  %v1768_v44 = vsel %vm1345_vm4, %v6452_v7, %v5365_v25 }
 0x285   : > { %v5368_v28 = vpop.permute.xlu1 %5367  ;;  %v5378_v6 = vpop.permute.xlu0 %5377  ;;  %v1802_v23 = vsel %vm1773_vm1, %v1794_v24, %v5374_v60  ;;  %v1777_v39 = vsel %vm1773_vm1, %v1768_v44, %v5375_v35 }
 0x286   : > { %1949 = vmatmul.mubr.f32.gmra.mrb[22].mxu1 %v1785_v43  ;;  %v5370_v56 = vunpack.i.h.bf16 %v5368_v28  ;;  %v5369_v40 = vunpack.i.l.bf16 %v5368_v28  ;;  %v5379_v58 = vunpack.i.l.bf16 %v5378_v6  ;;  %v5380_v28 = vunpack.i.h.bf16 %v5378_v6 }
 0x289   : > { %v5383_v33 = vpop.permute.xlu1 %5382  ;;  %v5388_v16 = vpop.permute.xlu0 %5387 }
 0x28a   : > { %v5385_v21 = vunpack.i.h.bf16 %v5383_v33  ;;  %v5384_v30 = vunpack.i.l.bf16 %v5383_v33  ;;  %v5390_v34 = vunpack.i.h.bf16 %v5388_v16  ;;  %v5389_v46 = vunpack.i.l.bf16 %v5388_v16 }
 0x28c   : > { %v1810_v11 = vsel %vm1782_vm2, %v1802_v23, %v5384_v30  ;;  %v1786_v0 = vsel %vm1782_vm2, %v1777_v39, %v5385_v21  ;;  %v1795_v52 = vsel %vm1345_vm4, %v6604_v59, %v5389_v46  ;;  %v1769_v7 = vsel %vm1345_vm4, %v6447_v3, %v5390_v34 }
 0x28d   : > { %v5393_v10 = vpop.permute.xlu1 %5392  ;;  %1953 = vmatprep.mubr.f32.mxu1 %v1810_v11  ;;  %v5403_v42 = vpop.permute.xlu0 %5402  ;;  %v1803_v25 = vsel %vm1773_vm1, %v1795_v52, %v5369_v40  ;;  %v1778_v17 = vsel %vm1773_vm1, %v1769_v7, %v5370_v56 }
 0x28e   : > { %1954 = vmatmul.mubr.f32.gmra.mrb[24].mxu1 %v1786_v0  ;;  %v1811_v43 = vsel %vm1782_vm2, %v1803_v25, %v5379_v58  ;;  %v5395_v35 = vunpack.i.h.bf16 %v5393_v10  ;;  %v5394_v60 = vunpack.i.l.bf16 %v5393_v10  ;;  %v1787_v44 = vsel %vm1782_vm2, %v1778_v17, %v5380_v28 }
 0x28f   : > { %1958 = vmatprep.mubr.f32.mxu1 %v1811_v43  ;;  %v5405_v33 = vunpack.i.h.bf16 %v5403_v42  ;;  %v5404_v16 = vunpack.i.l.bf16 %v5403_v42 }
 0x290   : > { %v1796_v21 = vsel %vm1345_vm4, %v6596_v32, %v5394_v60  ;;  %v1770_v30 = vsel %vm1345_vm4, %v6490_v22, %v5395_v35 }
 0x291   : > { %v5398_v24 = vpop.permute.xlu1 %5397  ;;  %v5413_v59 = vpop.permute.xlu0 %5412  ;;  %v1804_v0 = vsel %vm1773_vm1, %v1796_v21, %v5404_v16  ;;  %v1779_v52 = vsel %vm1773_vm1, %v1770_v30, %v5405_v33 }
 0x292   : > { %v5414_v3 = vunpack.i.l.bf16 %v5413_v59  ;;  %1959 = vmatmul.mubr.f32.gmra.mrb[26].mxu1 %v1787_v44  ;;  %v5399_v34 = vunpack.i.l.bf16 %v5398_v24  ;;  %v5415_v46 = vunpack.i.h.bf16 %v5413_v59  ;;  %v5400_v17 = vunpack.i.h.bf16 %v5398_v24 }
 0x294   : > { %v1797_v6 = vsel %vm1345_vm4, %v6626_v48, %v5414_v3  ;;  %v1771_v25 = vsel %vm1345_vm4, %v6481_v19, %v5415_v46 }
 0x295   : > { %v5408_v56 = vpop.permute.xlu1 %5407  ;;  %v5418_v40 = vpop.permute.xlu0 %5417  ;;  %v1805_v7 = vsel %vm1773_vm1, %v1797_v6, %v5399_v34  ;;  %v1780_v59 = vsel %vm1773_vm1, %v1771_v25, %v5400_v17 }
 0x296   : > { %v5410_v23 = vunpack.i.h.bf16 %v5408_v56  ;;  %v5409_v39 = vunpack.i.l.bf16 %v5408_v56  ;;  %v5419_v11 = vunpack.i.l.bf16 %v5418_v40  ;;  %v5420_v48 = vunpack.i.h.bf16 %v5418_v40 }
 0x298   : > { %v1812_v32 = vsel %vm1782_vm2, %v1804_v0, %v5409_v39  ;;  %v1788_v22 = vsel %vm1782_vm2, %v1779_v52, %v5410_v23  ;;  %v1813_v58 = vsel %vm1782_vm2, %v1805_v7, %v5419_v11  ;;  %v1789_v19 = vsel %vm1782_vm2, %v1780_v59, %v5420_v48  ;;  %v2116_v0 = vld [vmem:[%s8994_s14] sm:$0xff] }
 0x299   : > { %v5423_v10 = vpop.permute.xlu1 %5422  ;;  %1963 = vmatprep.mubr.f32.mxu1 %v1812_v32  ;;  %v6786_v42 = vpop.permute.xlu0 %5427  ;;  %5002 = vmatprep.mubr.msk.f32.mxu0 %vm1773_vm1, %v2116_v0  ;;  %v6817_v7 = vld [vmem:[%s8990_s10] ss:$0 sm:$0xff] }
 0x29a   : > { %9138 = vst [vmem:[#allocation19_spill] sm:$0xff] %v6786_v42  ;;  %v5425_v28 = vunpack.i.h.bf16 %v5423_v10  ;;  %v5424_v43 = vunpack.i.l.bf16 %v5423_v10  ;;  %1964 = vmatmul.mubr.f32.gmra.mrb[28].mxu1 %v1788_v22  ;;  %v5430_v35 = vunpack.i.h.bf16 %v6786_v42  ;;  %v9019_v60 = vunpack.i.l.bf16 %v6786_v42 }
 0x29b   : > { %1968 = vmatprep.mubr.f32.mxu1 %v1813_v58 }
 0x29c   : > { %v1798_v44 = vsel %vm1345_vm4, %v6629_v51, %v5424_v43  ;;  %v1772_v3 = vsel %vm1345_vm4, %v6524_v49, %v5425_v28 }
 0x29d   : > { %v5433_v33 = vpop.permute.xlu1 %5432  ;;  %v1806_v21 = vsel %vm1773_vm1, %v1798_v44, %v9019_v60  ;;  %v1781_v30 = vsel %vm1773_vm1, %v1772_v3, %v5430_v35  ;;  %v7201_v60 = vmul.f32 0.1, %v6720_v45 }
 0x29e   : > { %v5435_v24 = vunpack.i.h.bf16 %v5433_v33  ;;  %v5434_v16 = vunpack.i.l.bf16 %v5433_v33  ;;  %1969 = vmatmul.mubr.f32.gmra.mrb[30].mxu1 %v1789_v19 }
 0x29f   : > { %9141 = vst [vmem:[#allocation21_spill] sm:$0xff] %v7201_v60 }
 0x2a0   : > { %v1814_v6 = vsel %vm1782_vm2, %v1806_v21, %v5434_v16  ;;  %v1790_v34 = vsel %vm1782_vm2, %v1781_v30, %v5435_v24 }
 0x2a1   : > { %1973 = vmatprep.mubr.f32.mxu1 %v1814_v6 }
 0x2a2   : > { %1974 = vmatmul.mubr.f32.gmra.mrb[32].mxu1 %v1790_v34 }
 0x2d1   : > { %v4976_v51 = vpop.f32.mrb[32].mxu0 }
 0x2d2   : > { %v2045_v49 = vpop.f32.mrb[33].mxu0 }
 0x2d7   : > { %v4979_v46 = vpop.f32.mrb[34].mxu0 }
 0x2d8   : > { %v2055_v56 = vpop.f32.mrb[35].mxu0 }
 0x2db   : > { %v6804_v40 = vpop.f32.mrb[36].mxu0 }
 0x2dc   : > { %v2065_v23 = vpop.f32.mrb[37].mxu0 }
 0x2df   : > { %v6806_v39 = vpop.f32.mrb[38].mxu0 }
 0x2e0   : > { %v6808_v11 = vpop.f32.mrb[39].mxu0 }
 0x34b   : > { %v4755_v52 = vpop.f32.mrb[18].mxu1 }
 0x34c   : > { %v4756_v32 = vpop.f32.mrb[19].mxu1 }
 0x34d   : > { %v4757_v22 = vadd.f32 %v4756_v32, %v4755_v52 }
 0x34f   : > { %v1941_v58 = vadd.f32 %v4757_v22, %v6817_v7 }
 0x351   : > { %v2046_v48 = vadd.f32 %v2045_v49, %v1941_v58 }
 0x353   : > { %v2092_v10 = vmul.f32 0.1, %v2046_v48  ;;  %vm2084_vm3 = vcmp.ge.f32.partialorder %v2046_v48, 0.0 }
 0x355   : > { %v4758_v25 = vpop.f32.mrb[20].mxu1  ;;  %v2100_v28 = vsel %vm2084_vm3, %v2046_v48, %v2092_v10 }
 0x356   : > { %v4759_v17 = vpop.f32.mrb[21].mxu1  ;;  %2108 = vst.msk [vmem:[%s6825_s20] sm:$0xff] %vm1345_vm4, %v2100_v28 }
 0x357   : > { %v4760_v43 = vadd.f32 %v4759_v17, %v4758_v25 }
 0x359   : > { %v1946_v35 = vadd.f32 %v4760_v43, %v6817_v7  ;;  %v4761_v59 = vpop.f32.mrb[22].mxu1 }
 0x35a   : > { %v4762_v44 = vpop.f32.mrb[23].mxu1 }
 0x35b   : > { %v2051_v3 = vadd.f32 %v4976_v51, %v1946_v35  ;;  %v4763_v33 = vadd.f32 %v4762_v44, %v4761_v59 }
 0x35d   : > { %v2093_v19 = vmul.f32 0.1, %v2051_v3  ;;  %v1951_v24 = vadd.f32 %v4763_v33, %v6817_v7  ;;  %vm2085_vm5 = vcmp.ge.f32.partialorder %v2051_v3, 0.0 }
 0x35f   : > { %v2056_v16 = vadd.f32 %v2055_v56, %v1951_v24  ;;  %v2101_v21 = vsel %vm2085_vm5, %v2051_v3, %v2093_v19 }
 0x360   : > { %2109 = vst.msk [vmem:[%s6825_s20 + $0x8] sm:$0xff] %vm1345_vm4, %v2101_v21  ;;  %v5166_v30 = vpack.c.bf16 %v2101_v21, %v2100_v28 }
 0x361   : > { %v2094_v6 = vmul.f32 0.1, %v2056_v16  ;;  %v4764_v34 = vpop.f32.mrb[24].mxu1  ;;  %vm2086_vm6 = vcmp.ge.f32.partialorder %v2056_v16, 0.0 }
 0x362   : > { %v4765_v49 = vpop.f32.mrb[25].mxu1  ;;  %5167 = vmatprep.subr.bf16.mxu0 %v5166_v30 }
 0x363   : > { %v4766_v0 = vadd.f32 %v4765_v49, %v4764_v34  ;;  %5169 = vmatpush3.bf16.msra.mxu0 %v5166_v30  ;;  %v2102_v51 = vsel %vm2086_vm6, %v2056_v16, %v2094_v6 }
 0x364   : > { %2110 = vst.msk [vmem:[%s6825_s20 + $0x10] sm:$0xff] %vm1345_vm4, %v2102_v51 }
 0x365   : > { %v1956_v52 = vadd.f32 %v4766_v0, %v6817_v7  ;;  %v4767_v32 = vpop.f32.mrb[26].mxu1 }
 0x366   : > { %v4768_v22 = vpop.f32.mrb[27].mxu1 }
 0x367   : > { %v2061_v56 = vadd.f32 %v4979_v46, %v1956_v52  ;;  %v4769_v58 = vadd.f32 %v4768_v22, %v4767_v32 }
 0x369   : > { %v2095_v48 = vmul.f32 0.1, %v2061_v56  ;;  %v1961_v10 = vadd.f32 %v4769_v58, %v6817_v7  ;;  %vm2087_vm8 = vcmp.ge.f32.partialorder %v2061_v56, 0.0 }
 0x36b   : > { %v2066_v25 = vadd.f32 %v2065_v23, %v1961_v10  ;;  %v2103_v17 = vsel %vm2087_vm8, %v2061_v56, %v2095_v48  ;;  %v2119_v48 = vld [vmem:[%s8994_s14 + $0x18] sm:$0xff]  ;;  %v2120_v10 = vld [vmem:[%s8994_s14 + $0x20] sm:$0xff] }
 0x36c   : > { %2111 = vst.msk [vmem:[%s6825_s20 + $0x18] sm:$0xff] %vm1345_vm4, %v2103_v17  ;;  %v5170_v28 = vpack.c.bf16 %v2103_v17, %v2102_v51  ;;  %v2122_v17 = vld [vmem:[%s8994_s14 + $0x30] sm:$0xff] }
 0x36d   : > { %v2096_v43 = vmul.f32 0.1, %v2066_v25  ;;  %v4770_v35 = vpop.f32.mrb[28].mxu1  ;;  %vm2088_vm9 = vcmp.ge.f32.partialorder %v2066_v25, 0.0 }
 0x36e   : > { %v4771_v59 = vpop.f32.mrb[29].mxu1  ;;  %5171 = vmatprep.subr.bf16.mxu0 %v5170_v28 }
 0x36f   : > { %v4772_v44 = vadd.f32 %v4771_v59, %v4770_v35  ;;  %5173 = vmatpush3.bf16.msra.mxu0 %v5170_v28  ;;  %v2104_v46 = vsel %vm2088_vm9, %v2066_v25, %v2096_v43  ;;  %v2121_v25 = vld [vmem:[%s8994_s14 + $0x28] sm:$0xff]  ;;  %v2123_v28 = vld [vmem:[%s8994_s14 + $0x38] sm:$0xff]  ;;  %v2124_v43 = vld [vmem:[%s8994_s14 + $0x40] sm:$0xff] }
 0x370   : > { %2112 = vst.msk [vmem:[%s6825_s20 + $0x20] sm:$0xff] %vm1345_vm4, %v2104_v46  ;;  %v2125_v35 = vld [vmem:[%s8994_s14 + $0x48] sm:$0xff]  ;;  %v2126_v59 = vld [vmem:[%s8994_s14 + $0x50] sm:$0xff] }
 0x371   : > { %v1966_v3 = vadd.f32 %v4772_v44, %v6817_v7  ;;  %v4773_v33 = vpop.f32.mrb[30].mxu1  ;;  %v2127_v44 = vld [vmem:[%s8994_s14 + $0x58] sm:$0xff] }
 0x372   : > { %v4774_v19 = vpop.f32.mrb[31].mxu1 }
 0x373   : > { %v2071_v23 = vadd.f32 %v6804_v40, %v1966_v3  ;;  %v4775_v24 = vadd.f32 %v4774_v19, %v4773_v33  ;;  %v2129_v3 = vld [vmem:[%s8994_s14 + $0x68] sm:$0xff]  ;;  %v2130_v33 = vld [vmem:[%s8994_s14 + $0x70] sm:$0xff]  ;;  %v2131_v19 = vld [vmem:[%s8994_s14 + $0x78] sm:$0xff] }
 0x375   : > { %v2097_v16 = vmul.f32 0.1, %v2071_v23  ;;  %v4776_v21 = vpop.f32.mrb[32].mxu1  ;;  %v1971_v30 = vadd.f32 %v4775_v24, %v6817_v7  ;;  %vm2089_vm10 = vcmp.ge.f32.partialorder %v2071_v23, 0.0  ;;  %v2133_v24 = vld [vmem:[%s8994_s14 + $0x88] sm:$0xff] }
 0x376   : > { %v4777_v6 = vpop.f32.mrb[33].mxu1 }
 0x377   : > { %v4778_v34 = vadd.f32 %v4777_v6, %v4776_v21  ;;  %v2076_v49 = vadd.f32 %v6808_v11, %v1971_v30  ;;  %v2105_v0 = vsel %vm2089_vm10, %v2071_v23, %v2097_v16  ;;  %v2132_v23 = vld [vmem:[%s8994_s14 + $0x80] sm:$0xff]  ;;  %v2134_v16 = vld [vmem:[%s8994_s14 + $0x90] sm:$0xff]  ;;  %v2135_v21 = vld [vmem:[%s8994_s14 + $0x98] sm:$0xff] }
 0x378   : > { %2113 = vst.msk [vmem:[%s6825_s20 + $0x28] sm:$0xff] %vm1345_vm4, %v2105_v0  ;;  %v5174_v51 = vpack.c.bf16 %v2105_v0, %v2104_v46  ;;  %v2128_v46 = vld [vmem:[%s8994_s14 + $0x60] sm:$0xff]  ;;  %v2137_v6 = vld [vmem:[%s8994_s14 + $0xa8] sm:$0xff] }
 0x379   : > { %v1976_v52 = vadd.f32 %v4778_v34, %v6817_v7  ;;  %vm2090_vm11 = vcmp.ge.f32.partialorder %v2076_v49, 0.0  ;;  %v2098_v40 = vmul.f32 0.1, %v2076_v49  ;;  %v2117_v7 = vld [vmem:[%s8994_s14 + $0x8] sm:$0xff]  ;;  %v2136_v30 = vld [vmem:[%s8994_s14 + $0xa0] sm:$0xff]  ;;  %v2138_v34 = vld [vmem:[%s8994_s14 + $0xb0] sm:$0xff] }
 0x37a   : > { %5175 = vmatprep.subr.bf16.mxu0 %v5174_v51  ;;  %v2140_v0 = vld [vmem:[%s8994_s14 + $0xc0] sm:$0xff] }
 0x37b   : > { %v2081_v32 = vadd.f32 %v6806_v39, %v1976_v52  ;;  %5177 = vmatpush3.bf16.msra.mxu0 %v5174_v51  ;;  %v2106_v22 = vsel %vm2090_vm11, %v2076_v49, %v2098_v40  ;;  %v2118_v39 = vld [vmem:[%s8994_s14 + $0x10] sm:$0xff]  ;;  %v2139_v49 = vld [vmem:[%s8994_s14 + $0xb8] sm:$0xff]  ;;  %v2141_v51 = vld [vmem:[%s8994_s14 + $0xc8] sm:$0xff] }
 0x37c   : > { %2114 = vst.msk [vmem:[%s6825_s20 + $0x30] sm:$0xff] %vm1345_vm4, %v2106_v22  ;;  %v2142_v52 = vld [vmem:[%s8994_s14 + $0xd0] sm:$0xff]  ;;  %v2143_v40 = vld [vmem:[%s8994_s14 + $0xd8] sm:$0xff] }
 0x37d   : > { %v2099_v56 = vmul.f32 0.1, %v2081_v32  ;;  %vm2091_vm12 = vcmp.ge.f32.partialorder %v2081_v32, 0.0 }
 0x37f   : > { %v2107_v58 = vsel %vm2091_vm12, %v2081_v32, %v2099_v56  ;;  %v2144_v32 = vld [vmem:[%s8994_s14 + $0xe0] sm:$0xff]  ;;  %v2146_v56 = vld [vmem:[%s8994_s14 + $0xf0] sm:$0xff] }
 0x380   : > { %2115 = vst.msk [vmem:[%s6825_s20 + $0x38] sm:$0xff] %vm1345_vm4, %v2107_v58  ;;  %v5178_v11 = vpack.c.bf16 %v2107_v58, %v2106_v22  ;;  %v2145_v22 = vld [vmem:[%s8994_s14 + $0xe8] sm:$0xff]  ;;  %v2147_v58 = vld [vmem:[%s8994_s14 + $0xf8] sm:$0xff] }
 0x382   : > { %5179 = vmatprep.subr.bf16.mxu0 %v5178_v11 }
 0x383   : > { %5181 = vmatpush3.bf16.msra.mxu0 %v5178_v11  ;;  %v3657_v11 = vld [vmem:[%s8991_s11] sm:$0xff] }
 0x386   : > { %5003 = vmatmul.mubr.msk.f32.vlgmr.msra.gmra.mrb[40].mxu0 %vm1773_vm1, %v2117_v7  ;;  %v3658_v7 = vld [vmem:[%s8991_s11 + $0x8] sm:$0xff] }
 0x387   : > { %5005 = vmatprep.mubr.msk.f32.mxu0 %vm1773_vm1, %v2118_v39  ;;  %v9020_v39 = vmov 0.0|0.0  }
 0x388   : > { %5182 = vmatprep.subr.bf16.mxu0 %v9020_v39  ;;  %5238 = vmatprep.subr.bf16.mxu1 %v9020_v39 }
 0x38a   : > { %5006 = vmatmul.mubr.msk.f32.gmra.mrb[42].mxu0 %vm1773_vm1, %v2119_v48  ;;  %v5183_v48 = vpack.c.bf16 %v3658_v7, %v3657_v11  ;;  %v7079_v11 = vadd.f32 %v6678_v54, %v6660_v12  ;;  %v7084_v7 = vadd.f32 %v6662_v13, %v6678_v54  ;;  %v7102_v13 = vadd.f32 %v6671_v53, %v6678_v54 }
 0x38b   : > { %5008 = vmatprep.mubr.msk.f32.mxu0 %vm1773_vm1, %v2120_v10  ;;  %v3659_v10 = vld [vmem:[%s8991_s11 + $0x10] sm:$0xff]  ;;  %v7116_v53 = vadd.f32 %v6678_v54, %v6673_v55 }
 0x38c   : > { %5184 = vmatpush1.bf16.msra.mxu0 %v5183_v48  ;;  %5254 = vmatpush1.bf16.msra.mxu1 %v5183_v48  ;;  %v7098_v48 = vadd.f32 %v6678_v54, %v6669_v15  ;;  %vm981_vm10 = vcmp.ge.f32.partialorder %v7079_v11, 0.0  ;;  %vm984_vm11 = vcmp.ge.f32.partialorder %v7084_v7, 0.0 }
 0x38d   : > { %5185 = vmatprep.subr.bf16.mxu0 %v9020_v39  ;;  %5239 = vmatprep.subr.bf16.mxu1 %v9020_v39 }
 0x38e   : > { %5009 = vmatmul.mubr.msk.f32.gmra.mrb[44].mxu0 %vm1773_vm1, %v2121_v25  ;;  %v3660_v25 = vld [vmem:[%s8991_s11 + $0x18] sm:$0xff]  ;;  %v7135_v55 = vmul.f32 0.1, %v7098_v48 }
 0x38f   : > { %5011 = vmatprep.mubr.msk.f32.mxu0 %vm1773_vm1, %v2122_v17  ;;  %v5186_v17 = vpack.c.bf16 %v3660_v25, %v3659_v10 }
 0x391   : > { %5187 = vmatpush1.bf16.msra.mxu0 %v5186_v17  ;;  %5255 = vmatpush1.bf16.msra.mxu1 %v5186_v17 }
 0x392   : > { %5012 = vmatmul.mubr.msk.f32.gmra.mrb[46].mxu0 %vm1773_vm1, %v2123_v28  ;;  %5188 = vmatprep.subr.bf16.mxu0 %v9020_v39  ;;  %v3661_v28 = vld [vmem:[%s8991_s11 + $0x20] sm:$0xff] }
 0x393   : > { %5014 = vmatprep.mubr.msk.f32.mxu0 %vm1773_vm1, %v2124_v43  ;;  %v3662_v43 = vld [vmem:[%s8991_s11 + $0x28] sm:$0xff]  ;;  %5240 = vmatprep.subr.bf16.mxu1 %v9020_v39 }
 0x396   : > { %5015 = vmatmul.mubr.msk.f32.gmra.mrb[48].mxu0 %vm1773_vm1, %v2125_v35  ;;  %v5189_v35 = vpack.c.bf16 %v3662_v43, %v3661_v28  ;;  %v7123_v43 = vmul.f32 0.1, %v7079_v11 }
 0x397   : > { %5017 = vmatprep.mubr.msk.f32.mxu0 %vm1773_vm1, %v2126_v59  ;;  %v3663_v59 = vld [vmem:[%s8991_s11 + $0x30] sm:$0xff] }
 0x398   : > { %5190 = vmatpush1.bf16.msra.mxu0 %v5189_v35  ;;  %5256 = vmatpush1.bf16.msra.mxu1 %v5189_v35  ;;  %v7126_v35 = vmul.f32 0.1, %v7084_v7 }
 0x399   : > { %5191 = vmatprep.subr.bf16.mxu0 %v9020_v39  ;;  %5241 = vmatprep.subr.bf16.mxu1 %v9020_v39 }
 0x39a   : > { %5018 = vmatmul.mubr.msk.f32.gmra.mrb[50].mxu0 %vm1773_vm1, %v2127_v44  ;;  %v3664_v44 = vld [vmem:[%s8991_s11 + $0x38] sm:$0xff] }
 0x39b   : > { %5020 = vmatprep.mubr.msk.f32.mxu0 %vm1773_vm1, %v2128_v46  ;;  %v5192_v46 = vpack.c.bf16 %v3664_v44, %v3663_v59 }
 0x39d   : > { %5193 = vmatpush1.bf16.msra.mxu0 %v5192_v46  ;;  %5257 = vmatpush1.bf16.msra.mxu1 %v5192_v46  ;;  %v3677_v46 = vld [vmem:[%s8991_s11 + $0xa0] sm:$0xff] }
 0x39e   : > { %5021 = vmatmul.mubr.msk.f32.gmra.mrb[52].mxu0 %vm1773_vm1, %v2129_v3  ;;  %5194 = vmatprep.subr.bf16.mxu0 %v9020_v39  ;;  %v3665_v3 = vld [vmem:[%s8991_s11 + $0x40] sm:$0xff] }
 0x39f   : > { %5023 = vmatprep.mubr.msk.f32.mxu0 %vm1773_vm1, %v2130_v33  ;;  %v3666_v33 = vld [vmem:[%s8991_s11 + $0x48] sm:$0xff]  ;;  %5242 = vmatprep.subr.bf16.mxu1 %v9020_v39 }
 0x3a2   : > { %5024 = vmatmul.mubr.msk.f32.gmra.mrb[54].mxu0 %vm1773_vm1, %v2131_v19  ;;  %v5195_v19 = vpack.c.bf16 %v3666_v33, %v3665_v3  ;;  %v3678_v3 = vld [vmem:[%s8991_s11 + $0xa8] sm:$0xff]  ;;  %v7149_v33 = vmul.f32 0.1, %v7116_v53 }
 0x3a3   : > { %5026 = vmatprep.mubr.msk.f32.mxu0 %vm1773_vm1, %v2132_v23  ;;  %v3667_v23 = vld [vmem:[%s8991_s11 + $0x50] sm:$0xff] }
 0x3a4   : > { %5196 = vmatpush1.bf16.msra.mxu0 %v5195_v19  ;;  %5258 = vmatpush1.bf16.msra.mxu1 %v5195_v19  ;;  %v7152_v19 = vmul.f32 0.1, %v6681_v57 }
 0x3a5   : > { %5197 = vmatprep.subr.bf16.mxu0 %v9020_v39  ;;  %5243 = vmatprep.subr.bf16.mxu1 %v9020_v39 }
 0x3a6   : > { %5027 = vmatmul.mubr.msk.f32.gmra.mrb[56].mxu0 %vm1773_vm1, %v2133_v24  ;;  %v3668_v24 = vld [vmem:[%s8991_s11 + $0x58] sm:$0xff] }
 0x3a7   : > { %5029 = vmatprep.mubr.msk.f32.mxu0 %vm1773_vm1, %v2134_v16  ;;  %v5198_v16 = vpack.c.bf16 %v3668_v24, %v3667_v23  ;;  %v7155_v23 = vmul.f32 0.1, %v6684_v18  ;;  %v5213_v24 = vpack.c.bf16 %v3678_v3, %v3677_v46 }
 0x3a9   : > { %5199 = vmatpush1.bf16.msra.mxu0 %v5198_v16  ;;  %5259 = vmatpush1.bf16.msra.mxu1 %v5198_v16  ;;  %v7158_v16 = vmul.f32 0.1, %v6687_v27 }
 0x3aa   : > { %5030 = vmatmul.mubr.msk.f32.gmra.mrb[58].mxu0 %vm1773_vm1, %v2135_v21  ;;  %5200 = vmatprep.subr.bf16.mxu0 %v9020_v39  ;;  %v3669_v21 = vld [vmem:[%s8991_s11 + $0x60] sm:$0xff] }
 0x3ab   : > { %5032 = vmatprep.mubr.msk.f32.mxu0 %vm1773_vm1, %v2136_v30  ;;  %v3670_v30 = vld [vmem:[%s8991_s11 + $0x68] sm:$0xff]  ;;  %5244 = vmatprep.subr.bf16.mxu1 %v9020_v39 }
 0x3ae   : > { %5033 = vmatmul.mubr.msk.f32.gmra.mrb[60].mxu0 %vm1773_vm1, %v2137_v6  ;;  %v5201_v6 = vpack.c.bf16 %v3670_v30, %v3669_v21  ;;  %v7161_v21 = vmul.f32 0.1, %v6690_v29  ;;  %v7164_v30 = vmul.f32 0.1, %v6693_v31 }
 0x3af   : > { %5035 = vmatprep.mubr.msk.f32.mxu0 %vm1773_vm1, %v2138_v34  ;;  %v3671_v34 = vld [vmem:[%s8991_s11 + $0x70] sm:$0xff] }
 0x3b0   : > { %5202 = vmatpush1.bf16.msra.mxu0 %v5201_v6  ;;  %5260 = vmatpush1.bf16.msra.mxu1 %v5201_v6  ;;  %v7167_v6 = vmul.f32 0.1, %v6696_v38 }
 0x3b1   : > { %5203 = vmatprep.subr.bf16.mxu0 %v9020_v39  ;;  %5245 = vmatprep.subr.bf16.mxu1 %v9020_v39 }
 0x3b2   : > { %5036 = vmatmul.mubr.msk.f32.gmra.mrb[62].mxu0 %vm1773_vm1, %v2139_v49  ;;  %v3672_v49 = vld [vmem:[%s8991_s11 + $0x78] sm:$0xff] }
 0x3b3   : > { %5038 = vmatprep.mubr.msk.f32.mxu0 %vm1773_vm1, %v2140_v0  ;;  %v5204_v0 = vpack.c.bf16 %v3672_v49, %v3671_v34  ;;  %v7170_v34 = vmul.f32 0.1, %v6699_v20  ;;  %v7174_v49 = vmul.f32 0.1, %v6702_v36 }
 0x3b5   : > { %5205 = vmatpush1.bf16.msra.mxu0 %v5204_v0  ;;  %5261 = vmatpush1.bf16.msra.mxu1 %v5204_v0  ;;  %v7177_v0 = vmul.f32 0.1, %v6705_v37 }
 0x3b6   : > { %5039 = vmatmul.mubr.msk.f32.gmra.mrb[64].mxu0 %vm1773_vm1, %v2141_v51  ;;  %v7043_v51 = vadd.f32 %v6637_v61, %v6678_v54  ;;  %5206 = vmatprep.subr.bf16.mxu0 %v9020_v39  ;;  %v3674_v61 = vld [vmem:[%s8991_s11 + $0x88] sm:$0xff] }
 0x3b7   : > { %5041 = vmatprep.mubr.msk.f32.mxu0 %vm1773_vm1, %v2142_v52  ;;  %v7047_v52 = vadd.f32 %v6678_v54, %v6641_v62  ;;  %5246 = vmatprep.subr.bf16.mxu1 %v9020_v39  ;;  %v7063_v62 = vadd.f32 %v6678_v54, %v6648_v2 }
 0x3b8   : > { %v1008_v2 = vmul.f32 0.1, %v7043_v51  ;;  %vm976_vm14 = vcmp.ge.f32.partialorder %v7043_v51, 0.0 }
 0x3b9   : > { %v1009_v10 = vmul.f32 0.1, %v7063_v62  ;;  %vm975_vm15 = vcmp.ge.f32.partialorder %v7047_v52, 0.0  ;;  %vm977_vm5 = vcmp.ge.f32.partialorder %v7063_v62, 0.0 }
 0x3ba   : > { %5042 = vmatmul.mubr.msk.f32.gmra.mrb[66].mxu0 %vm1773_vm1, %v2143_v40  ;;  %v7051_v40 = vadd.f32 %v6643_v63, %v6678_v54  ;;  %v7067_v63 = vadd.f32 %v6650_v4, %v6678_v54  ;;  %v7088_v4 = vadd.f32 %v6678_v54, %v6665_v5  ;;  %v3675_v5 = vld [vmem:[%s8991_s11 + $0x90] sm:$0xff] }
 0x3bb   : > { %5044 = vmatprep.mubr.msk.f32.mxu0 %vm1773_vm1, %v2144_v32  ;;  %v3673_v32 = vld [vmem:[%s8991_s11 + $0x80] sm:$0xff] }
 0x3bc   : > { %v1010_v12 = vmul.f32 0.1, %v7051_v40  ;;  %v1012_v15 = vmul.f32 0.1, %v7067_v63  ;;  %v7129_v59 = vmul.f32 0.1, %v7088_v4 }
 0x3bd   : > { %vm978_vm3 = vcmp.ge.f32.partialorder %v7051_v40, 0.0  ;;  %vm980_vm6 = vcmp.ge.f32.partialorder %v7067_v63, 0.0  ;;  %vm983_vm12 = vcmp.ge.f32.partialorder %v7088_v4, 0.0 }
 0x3be   : > { %5045 = vmatmul.mubr.msk.f32.gmra.mrb[68].mxu0 %vm1773_vm1, %v2145_v22  ;;  %v5207_v22 = vpack.c.bf16 %v3674_v61, %v3673_v32  ;;  %v7183_v32 = vmul.f32 0.1, %v6708_v41  ;;  %v7186_v61 = vmul.f32 0.1, %v6711_v47 }
 0x3bf   : > { %5047 = vmatprep.mubr.msk.f32.mxu0 %vm1773_vm1, %v2146_v56  ;;  %v7071_v56 = vadd.f32 %v6678_v54, %v6654_v8  ;;  %v7092_v8 = vadd.f32 %v6667_v14, %v6678_v54  ;;  %v3676_v14 = vld [vmem:[%s8991_s11 + $0x98] sm:$0xff] }
 0x3c0   : > { %5208 = vmatpush1.bf16.msra.mxu0 %v5207_v22  ;;  %5262 = vmatpush1.bf16.msra.mxu1 %v5207_v22  ;;  %v5210_v25 = vpack.c.bf16 %v3676_v14, %v3675_v5  ;;  %v7190_v22 = vmul.f32 0.1, %v6714_v50  ;;  %v7193_v5 = vmul.f32 0.1, %v6717_v1  ;;  %v1040_v14 = vsel %vm976_vm14, %v7043_v51, %v1008_v2  ;;  %v3679_v2 = vld [vmem:[%s8991_s11 + $0xb0] sm:$0xff] }
 0x3c1   : > { %5209 = vmatprep.subr.bf16.mxu0 %v9020_v39  ;;  %5247 = vmatprep.subr.bf16.mxu1 %v9020_v39  ;;  %v1011_v17 = vmul.f32 0.1, %v7071_v56  ;;  %v7132_v44 = vmul.f32 0.1, %v7092_v8  ;;  %vm979_vm8 = vcmp.ge.f32.partialorder %v7071_v56, 0.0  ;;  %v1042_v51 = vsel %vm978_vm3, %v7051_v40, %v1010_v12  ;;  %v9143_v12 = vld [vmem:[#allocation10_spill] sm:$0xff] }
 0x3c2   : > { %5048 = vmatmul.mubr.msk.f32.gmra.mrb[70].mxu0 %vm1773_vm1, %v2147_v58  ;;  %v7075_v58 = vadd.f32 %v6656_v9, %v6678_v54  ;;  %v1007_v9 = vmul.f32 0.1, %v7047_v52  ;;  %v7138_v54 = vmul.f32 0.1, %v7102_v13  ;;  %9140 = vst [vmem:[#allocation20_spill] sm:$0xff] %v7193_v5  ;;  %vm986_vm14 = vcmp.ge.f32.partialorder %v7092_v8, 0.0 }
 0x3c3   : > { %v1043_v40 = vsel %vm979_vm8, %v7071_v56, %v1011_v17  ;;  %v1047_v1 = vsel %vm983_vm12, %v7088_v4, %v7129_v59  ;;  %v9151_v4 = vld [vmem:[#allocation12_spill] sm:$0xff]  ;;  %vm988_vm3 = vcmp.ge.f32.partialorder %v7102_v13, 0.0  ;;  %vm989_vm8 = vcmp.ge.f32.partialorder %v6684_v18, 0.0 }
 0x3c4   : > { %v7120_v28 = vmul.f32 0.1, %v7075_v58  ;;  %5211 = vmatpush1.bf16.msra.mxu0 %v5210_v25  ;;  %5263 = vmatpush1.bf16.msra.mxu1 %v5210_v25  ;;  %v1039_v3 = vsel %vm975_vm15, %v7047_v52, %v1007_v9  ;;  %v3680_v52 = vld [vmem:[%s8991_s11 + $0xb8] sm:$0xff]  ;;  %vm982_vm9 = vcmp.ge.f32.partialorder %v7075_v58, 0.0  ;;  %v9152_v59 = vrot.slane %v9151_v4, 1 }
 0x3c5   : > { %5212 = vmatprep.subr.bf16.mxu0 %v9020_v39  ;;  %5248 = vmatprep.subr.bf16.mxu1 %v9020_v39  ;;  %vm985_vm15 = vcmp.ge.f32.partialorder %v7098_v48, 0.0  ;;  %vm993_vm12 = vcmp.ge.f32.partialorder %v6696_v38, 0.0 }
 0x3c6   : > { %v1046_v17 = vsel %vm982_vm9, %v7075_v58, %v7120_v28  ;;  %v1045_v28 = vsel %vm981_vm10, %v7079_v11, %v7123_v43  ;;  %v2770_v11 = vrot.slane %v9143_v12, 2  ;;  %vm992_vm9 = vcmp.ge.f32.partialorder %v6687_v27, 0.0 }
 0x3c7   : > { %vm991_vm10 = vcmp.ge.f32.partialorder %v6690_v29, 0.0 }
 0x3c8   : > { %5214 = vmatpush1.bf16.msra.mxu0 %v5213_v24  ;;  %5264 = vmatpush1.bf16.msra.mxu1 %v5213_v24 }
 0x3c9   : > { %5215 = vmatprep.subr.bf16.mxu0 %v9020_v39  ;;  %5249 = vmatprep.subr.bf16.mxu1 %v9020_v39  ;;  %v7204_v39 = vmul.f32 0.1, %v6723_v26 }
 0x3cb   : > { %9142 = vst [vmem:[#allocation22_spill] sm:$0xff] %v7204_v39  ;;  %v3681_v39 = vld [vmem:[%s8991_s11 + $0xc0] sm:$0xff] }
 0x459   : > { %v5004_v25 = vpop.f32.mrb[40].mxu0 }
 0x45a   : > { %v2470_v46 = vadd.f32 %v5004_v25, %v1040_v14  ;;  %v2310_v24 = vpop.f32.mrb[41].mxu0  ;;  %v1041_v14 = vsel %vm977_vm5, %v7063_v62, %v1009_v10  ;;  %v5216_v25 = vpack.c.bf16 %v3680_v52, %v3679_v2  ;;  %vm987_vm5 = vcmp.ge.f32.partialorder %v7116_v53, 0.0 }
 0x45b   : > { %v2469_v42 = vadd.f32 %v2310_v24, %v1039_v3  ;;  %v1044_v3 = vsel %vm980_vm6, %v7067_v63, %v1012_v15  ;;  %v2692_v24 = vrot.slane %v9143_v12, 1  ;;  %vm990_vm6 = vcmp.ge.f32.partialorder %v6681_v57, 0.0 }
 0x45c   : > { %v2535_v9 = vrot.slane %v2470_v46, 7  ;;  %v3682_v46 = vld [vmem:[%s8991_s11 + $0xc8] sm:$0xff]  ;;  %5217 = vmatpush1.bf16.msra.mxu0 %v5216_v25  ;;  %5265 = vmatpush1.bf16.msra.mxu1 %v5216_v25 }
 0x45d   : > { %v2534_v60 = vrot.slane %v2469_v42, 7  ;;  %v5007_v5 = vpop.f32.mrb[42].mxu0  ;;  %v5219_v63 = vpack.c.bf16 %v3682_v46, %v3681_v39 }
 0x45e   : > { %v7225_v62 = vsel %vm1520_vm7, %v2535_v9, 0.0  ;;  %v2472_v10 = vadd.f32 %v5007_v5, %v1042_v51  ;;  %v2320_v42 = vpop.f32.mrb[43].mxu0  ;;  %v9146_v5 = vmov 0.0|0.0  }
 0x45f   : > { %v7229_v56 = vsel %vm1520_vm7, %v2534_v60, %v2535_v9  ;;  %v7232_v15 = vsel %vm1520_vm7, 0.0, %v2534_v60  ;;  %5218 = vmatprep.subr.bf16.mxu0 %v9146_v5  ;;  %5250 = vmatprep.subr.bf16.mxu1 %v9146_v5  ;;  %v2471_v2 = vadd.f32 %v2320_v42, %v1041_v14  ;;  %v2776_v60 = vrot.slane %v7225_v62, 2  ;;  %v9147_v9 = vld [vmem:[#allocation11_spill] sm:$0xff] }
 0x460   : > { %9144 = vst [vmem:[#allocation23_spill] sm:$0xff] %v7229_v56  ;;  %9145 = vst [vmem:[#allocation24_spill] sm:$0xff] %v7232_v15  ;;  %v2773_v39 = vrot.slane %v7232_v15, 2  ;;  %v2538_v51 = vrot.slane %v2472_v10, 7  ;;  %v9148_v25 = vrot.slane %v9147_v9, 1  ;;  %v2774_v58 = vrot.slane %v7229_v56, 2  ;;  %5220 = vmatpush1.bf16.msra.mxu0 %v5219_v63  ;;  %5266 = vmatpush1.bf16.msra.mxu1 %v5219_v63 }
 0x461   : > { %v5010_v52 = vpop.f32.mrb[44].mxu0  ;;  %v2537_v26 = vrot.slane %v2471_v2, 7  ;;  %v1048_v42 = vsel %vm984_vm11, %v7084_v7, %v7126_v35  ;;  %5221 = vmatprep.subr.bf16.mxu0 %v9146_v5  ;;  %5251 = vmatprep.subr.bf16.mxu1 %v9146_v5  ;;  %vm994_vm11 = vcmp.ge.f32.partialorder %v6693_v31, 0.0 }
 0x462   : > { %v7247_v46 = vsel %vm1555_vm0, %v9148_v25, %v2692_v24  ;;  %v7254_v10 = vadd.f32 %v5010_v52, %v1044_v3  ;;  %v2330_v14 = vpop.f32.mrb[45].mxu0  ;;  %v7260_v45 = vsel %vm1580_vm13, %v2773_v39, %v2774_v58  ;;  %v7279_v39 = vsel %vm1555_vm0, %v2692_v24, %v9152_v59 }
 0x463   : > { %9149 = vst [vmem:[#allocation25_spill] sm:$0xff] %v7247_v46  ;;  %v2473_v25 = vadd.f32 %v2330_v14, %v1043_v40  ;;  %v7268_v43 = vsel %vm1520_vm7, %v2537_v26, %v2538_v51  ;;  %v7271_v7 = vsel %vm1520_vm7, 0.0, %v2537_v26  ;;  %v5436_v3 = vpack.i.bf16 %v7247_v46, %v7260_v45  ;;  %9153 = vst [vmem:[#allocation12_spill] sm:$0xff] %v7279_v39 }
 0x464   : > { %9150 = vst [vmem:[#allocation26_spill] sm:$0xff] %v7268_v43  ;;  %v7282_v2 = vsel %vm1580_vm13, %v2774_v58, %v2776_v60  ;;  %v1050_v26 = vsel %vm986_vm14, %v7092_v8, %v7132_v44  ;;  %v2700_v52 = vrot.slane %v7271_v7, 1  ;;  %v7295_v24 = vsel %vm1520_vm7, %v2538_v51, 0.0 }
 0x465   : > { %v2540_v40 = vrot.slane %v2473_v25, 7  ;;  %v5013_v63 = vpop.f32.mrb[46].mxu0  ;;  %5437 = vrot.lane.b32.xlu1 %v5436_v3, %s5978_s24  ;;  %v9154_v60 = vrot.slane %v7254_v10, 7  ;;  %v9157_v44 = vrot.slane %v9147_v9, 2  ;;  %v5441_v51 = vpack.i.bf16 %v7279_v39, %v7282_v2 }
 0x466   : > { %v7289_v14 = vadd.f32 %v5013_v63, %v1046_v17  ;;  %v2340_v25 = vpop.f32.mrb[47].mxu0  ;;  %vm996_vm14 = vcmp.ge.f32.partialorder %v6699_v20, 0.0 }
 0x467   : > { %v7300_v58 = vsel %vm1520_vm7, %v2540_v40, %v9154_v60  ;;  %v7303_v8 = vsel %vm1520_vm7, 0.0, %v2540_v40  ;;  %v7308_v17 = vsel %vm1580_vm13, %v9157_v44, %v2770_v11  ;;  %v2475_v59 = vadd.f32 %v2340_v25, %v1045_v28 }
 0x468   : > { %9155 = vst [vmem:[#allocation27_spill] sm:$0xff] %v7300_v58  ;;  %9156 = vst [vmem:[#allocation28_spill] sm:$0xff] %v7303_v8  ;;  %v2783_v3 = vrot.slane %v7303_v8, 2  ;;  %v2781_v40 = vrot.slane %v7295_v24, 2  ;;  %v9159_v25 = vrot.slane %v7268_v43, 1  ;;  %v9161_v39 = vrot.slane %v7300_v58, 2 }
 0x469   : > { %9158 = vst [vmem:[#allocation29_spill] sm:$0xff] %v7308_v17  ;;  %v5016_v35 = vpop.f32.mrb[48].mxu0  ;;  %v2543_v44 = vrot.slane %v2475_v59, 7  ;;  %5442 = vrot.lane.b32.xlu1 %v5441_v51, %s5978_s24  ;;  %v5446_v5 = vpack.i.bf16 %v7308_v17, %v7271_v7 }
 0x46a   : > { %v7319_v12 = vadd.f32 %v5016_v35, %v1048_v42  ;;  %v2350_v28 = vpop.f32.mrb[49].mxu0  ;;  %v7325_v63 = vsel %vm1555_vm0, %v2700_v52, %v9159_v25  ;;  %v7330_v9 = vsel %vm1580_vm13, %v2783_v3, %v9161_v39  ;;  %v9162_v35 = vrot.slane %v7289_v14, 7 }
 0x46b   : > { %9160 = vst [vmem:[#allocation30_spill] sm:$0xff] %v7325_v63  ;;  %v2477_v60 = vadd.f32 %v2350_v28, %v1047_v1  ;;  %v7341_v51 = vsel %vm1520_vm7, 0.0, %v2543_v44  ;;  %v5486_v52 = vpack.i.bf16 %v7325_v63, %v7330_v9  ;;  %v1049_v25 = vsel %vm985_vm15, %v7098_v48, %v7135_v55 }
 0x46c   : > { %v7338_v59 = vsel %vm1520_vm7, %v2543_v44, %v9162_v35  ;;  %9164 = vst [vmem:[#allocation32_spill] sm:$0xff] %v7341_v51  ;;  %v2710_v39 = vrot.slane %v7341_v51, 1  ;;  %v9165_v35 = vrot.slane %v9151_v4, 2  ;;  %v9167_v48 = vrot.slane %v7319_v12, 7 }
 0x46d   : > { %9163 = vst [vmem:[#allocation31_spill] sm:$0xff] %v7338_v59  ;;  %v2546_v3 = vrot.slane %v2477_v60, 7  ;;  %v5019_v28 = vpop.f32.mrb[50].mxu0  ;;  %5487 = vrot.lane.b32.xlu0 %v5486_v52, %s5978_s24  ;;  %5447 = vrot.lane.b32.xlu1 %v5446_v5, %s5976_s26  ;;  %v1052_v60 = vsel %vm988_vm3, %v7102_v13, %v7138_v54  ;;  %v9034_v17 = vrot.slane %v7338_v59, 1  ;;  %v1051_v5 = vsel %vm987_vm5, %v7116_v53, %v7149_v33 }
 0x46e   : > { %v7354_v42 = vsel %vm1580_vm13, %v2770_v11, %v9165_v35  ;;  %v7356_v44 = vadd.f32 %v5019_v28, %v1050_v26  ;;  %v2360_v1 = vpop.f32.mrb[51].mxu0  ;;  %v9169_v11 = vrot.slane %v7268_v43, 2  ;;  %v1054_v13 = vsel %vm990_vm6, %v6681_v57, %v7152_v19 }
 0x46f   : > { %9166 = vst [vmem:[#allocation33_spill] sm:$0xff] %v7354_v42  ;;  %v7369_v55 = vsel %vm1520_vm7, %v2546_v3, %v9167_v48  ;;  %v7385_v26 = vadd.f32 %v2360_v1, %v1049_v25  ;;  %v2788_v28 = vrot.slane %v7341_v51, 2  ;;  %v7395_v53 = vsel %vm1555_vm0, %v2710_v39, %v9034_v17 }
 0x470   : > { %9168 = vst [vmem:[#allocation34_spill] sm:$0xff] %v7369_v55  ;;  %v7374_v4 = vsel %vm1580_vm13, %v9169_v11, %v2781_v40  ;;  %v9035_v54 = vrot.slane %v7356_v44, 7  ;;  %v5451_v40 = vpack.i.bf16 %v7354_v42, %v7268_v43  ;;  %9171 = vst [vmem:[#allocation36_spill] sm:$0xff] %v7395_v53  ;;  %v1053_v57 = vsel %vm989_vm8, %v6684_v18, %v7155_v23 }
 0x471   : > { %9170 = vst [vmem:[#allocation35_spill] sm:$0xff] %v7374_v4  ;;  %v5511_v52 = vpack.i.bf16 %v7374_v4, %v7338_v59  ;;  %v5022_v35 = vpop.f32.mrb[52].mxu0  ;;  %v9037_v33 = vrot.slane %v7338_v59, 2  ;;  %v2703_v19 = vrot.slane %v7295_v24, 1  ;;  %v9036_v1 = vrot.slane %v7385_v26, 7 }
 0x472   : > { %v7402_v25 = vadd.f32 %v5022_v35, %v1052_v60  ;;  %5452 = vrot.lane.b32.xlu1 %v5451_v40, %s5976_s26  ;;  %v2370_v48 = vpop.f32.mrb[53].mxu0  ;;  %v9172_v39 = vrot.slane %v7254_v10, 7  ;;  %v2705_v18 = vrot.slane %v7303_v8, 1  ;;  %v5516_v10 = vpack.i.bf16 %v7303_v8, %v7395_v53 }
 0x473   : > { %5512 = vrot.lane.b32.xlu0 %v5511_v52, %s5976_s26  ;;  %v7413_v23 = vadd.f32 %v2370_v48, %v1051_v5  ;;  %v7421_v60 = vsel %vm1520_vm7, %v9036_v1, %v9035_v54  ;;  %v5456_v40 = vpack.i.bf16 %v7232_v15, %v7325_v63  ;;  %v1056_v48 = vsel %vm992_vm9, %v6687_v27, %v7158_v16 }
 0x474   : > { %v7410_v11 = vsel %vm1520_vm7, %v9172_v39, 0.0  ;;  %9173 = vst [vmem:[#allocation37_spill] sm:$0xff] %v7421_v60  ;;  %v9040_v52 = vrot.slane %v7402_v25, 7  ;;  %v7434_v39 = vsel %vm1580_vm13, %v2788_v28, %v9037_v33  ;;  %v2778_v17 = vrot.slane %v7271_v7, 2 }
 0x475   : > { %v9041_v5 = vrot.slane %v7413_v23, 7  ;;  %v5025_v35 = vpop.f32.mrb[54].mxu0  ;;  %v7439_v54 = vsel %vm1520_vm7, 0.0, %v2546_v3  ;;  %v9175_v27 = vrot.slane %v7268_v43, 1  ;;  %v2695_v28 = vrot.slane %v7232_v15, 1 }
 0x476   : > { %9174 = vst [vmem:[#allocation38_spill] sm:$0xff] %v7439_v54  ;;  %v7441_v1 = vadd.f32 %v5025_v35, %v1054_v13  ;;  %5457 = vrot.lane.b32.xlu1 %v5456_v40, %s5977_s5  ;;  %v2380_v24 = vpop.f32.mrb[55].mxu0  ;;  %v2786_v33 = vrot.slane %v7410_v11, 2  ;;  %v9178_v13 = vrot.slane %v7300_v58, 1  ;;  %v2715_v42 = vrot.slane %v7439_v54, 1 }
 0x477   : > { %5517 = vrot.lane.b32.xlu0 %v5516_v10, %s5977_s5  ;;  %v7448_v16 = vsel %vm1555_vm0, %v9175_v27, %v2703_v19  ;;  %v7457_v3 = vsel %vm1520_vm7, %v9041_v5, %v9040_v52  ;;  %v7465_v19 = vadd.f32 %v2380_v24, %v1053_v57  ;;  %v2696_v27 = vrot.slane %v7229_v56, 1 }
 0x478   : > { %9176 = vst [vmem:[#allocation39_spill] sm:$0xff] %v7448_v16  ;;  %9177 = vst [vmem:[#allocation40_spill] sm:$0xff] %v7457_v3  ;;  %v7462_v10 = vsel %vm1555_vm0, %v2705_v18, %v9178_v13  ;;  %v5461_v52 = vpack.i.bf16 %v7229_v56, %v7448_v16  ;;  %v1055_v18 = vsel %vm991_vm10, %v6690_v29, %v7161_v21  ;;  %v9179_v5 = vrot.slane %v7268_v43, 2 }
 0x479   : > { %v5526_v35 = vpack.i.bf16 %v7462_v10, %v7434_v39  ;;  %v5028_v15 = vpop.f32.mrb[56].mxu0  ;;  %v9043_v57 = vrot.slane %v7465_v19, 7  ;;  %v2698_v56 = vrot.slane %v7225_v62, 1  ;;  %v9180_v21 = vrot.slane %v7300_v58, 2 }
 0x47a   : > { %v7479_v24 = vadd.f32 %v5028_v15, %v1056_v48  ;;  %v2390_v13 = vpop.f32.mrb[57].mxu0  ;;  %v7485_v40 = vsel %vm1580_vm13, %v2778_v17, %v9179_v5  ;;  %5462 = vrot.lane.b32.xlu1 %v5461_v52, %s5977_s5  ;;  %v9044_v48 = vrot.slane %v7369_v55, 1  ;;  %v7509_v5 = vsel %vm1555_vm0, %v2695_v28, %v2696_v27 }
 0x47b   : > { %5527 = vrot.lane.b32.xlu0 %v5526_v35, %s5978_s24  ;;  %v7490_v29 = vadd.f32 %v2390_v13, %v1055_v18  ;;  %v7495_v15 = vsel %vm1580_vm13, %v9180_v21, %v2786_v33  ;;  %v9182_v35 = vrot.slane %v7441_v1, 7  ;;  %9184 = vst [vmem:[#allocation43_spill] sm:$0xff] %v7509_v5  ;;  %v1058_v18 = vsel %vm994_vm11, %v6693_v31, %v7164_v30 }
 0x47c   : > { %9181 = vst [vmem:[#allocation41_spill] sm:$0xff] %v7495_v15  ;;  %v9045_v62 = vrot.slane %v7479_v24, 7  ;;  %v5541_v52 = vpack.i.bf16 %v7495_v15, %v7369_v55  ;;  %v5466_v21 = vpack.i.bf16 %v7509_v5, %v7485_v40  ;;  %v1057_v28 = vsel %vm993_vm12, %v6696_v38, %v7167_v6 }
 0x47d   : > { %v7503_v17 = vsel %vm1520_vm7, %v9043_v57, %v9182_v35  ;;  %v5031_v13 = vpop.f32.mrb[58].mxu0  ;;  %v7521_v35 = vsel %vm1555_vm0, %v2715_v42, %v9044_v48  ;;  %vm995_vm15 = vcmp.ge.f32.partialorder %v6702_v36, 0.0  ;;  %v9186_v31 = vrot.slane %v7289_v14, 7 }
 0x47e   : > { %9183 = vst [vmem:[#allocation42_spill] sm:$0xff] %v7503_v17  ;;  %9185 = vst [vmem:[#allocation44_spill] sm:$0xff] %v7521_v35  ;;  %v7523_v57 = vadd.f32 %v5031_v13, %v1058_v18  ;;  %v2400_v33 = vpop.f32.mrb[59].mxu0  ;;  %v2793_v42 = vrot.slane %v7439_v54, 2  ;;  %5467 = vrot.lane.b32.xlu1 %v5466_v21, %s5978_s24  ;;  %vm998_vm3 = vcmp.ge.f32.partialorder %v6705_v37, 0.0  ;;  %v5546_v14 = vpack.i.bf16 %v7341_v51, %v7521_v35 }
 0x47f   : > { %5542 = vrot.lane.b32.xlu0 %v5541_v52, %s5976_s26  ;;  %v7535_v30 = vsel %vm1520_vm7, %v9186_v31, 0.0  ;;  %v9187_v52 = vrot.slane %v7490_v29, 7  ;;  %v7548_v6 = vadd.f32 %v2400_v33, %v1057_v28  ;;  %v7553_v13 = vsel %vm1555_vm0, %v2696_v27, %v2698_v56 }
 0x480   : > { %v9047_v38 = vrot.slane %v7523_v57, 7  ;;  %9189 = vst [vmem:[#allocation46_spill] sm:$0xff] %v7553_v13  ;;  %v1060_v31 = vsel %vm996_vm14, %v6699_v20, %v7170_v34  ;;  %v1059_v21 = vsel %vm995_vm15, %v6702_v36, %v7174_v49  ;;  %v9190_v33 = vrot.slane %v7385_v26, 7 }
 0x481   : > { %v7543_v18 = vsel %vm1520_vm7, %v9187_v52, %v9045_v62  ;;  %v5034_v48 = vpop.f32.mrb[60].mxu0  ;;  %v5471_v52 = vpack.i.bf16 %v7553_v13, %v7374_v4  ;;  %v9048_v62 = vrot.slane %v7369_v55, 2  ;;  %v9046_v56 = vrot.slane %v7548_v6, 7 }
 0x482   : > { %9188 = vst [vmem:[#allocation45_spill] sm:$0xff] %v7543_v18  ;;  %v7565_v28 = vsel %vm1520_vm7, 0.0, %v9190_v33  ;;  %v7568_v27 = vadd.f32 %v5034_v48, %v1060_v31  ;;  %v2410_v20 = vpop.f32.mrb[61].mxu0  ;;  %vm997_vm5 = vcmp.ge.f32.partialorder %v6708_v41, 0.0  ;;  %v2791_v34 = vrot.slane %v7535_v30, 2  ;;  %v9193_v33 = vld [vmem:[#allocation16_spill] sm:$0xff] }
 0x483   : > { %9191 = vst [vmem:[#allocation47_spill] sm:$0xff] %v7565_v28  ;;  %5547 = vrot.lane.b32.xlu0 %v5546_v14, %s5977_s5  ;;  %5472 = vrot.lane.b32.xlu1 %v5471_v52, %s5978_s24  ;;  %v7574_v36 = vadd.f32 %v2410_v20, %v1059_v21  ;;  %v1062_v49 = vsel %vm998_vm3, %v6705_v37, %v7177_v0  ;;  %vm1000_vm6 = vcmp.ge.f32.partialorder %v6711_v47, 0.0  ;;  %v2720_v37 = vrot.slane %v7565_v28, 1 }
 0x484   : > { %v7583_v26 = vsel %vm1580_vm13, %v2793_v42, %v9048_v62  ;;  %v7590_v48 = vsel %vm1520_vm7, %v9046_v56, %v9047_v38  ;;  %v5476_v52 = vpack.i.bf16 %v7260_v45, %v7303_v8  ;;  %v7602_v20 = vmul.f32 0.1, %v9193_v33  ;;  %v9194_v56 = vld [vmem:[#allocation17_spill] sm:$0xff] }
 0x485   : > { %9192 = vst [vmem:[#allocation48_spill] sm:$0xff] %v7590_v48  ;;  %v5556_v31 = vpack.i.bf16 %v7395_v53, %v7583_v26  ;;  %v9051_v0 = vrot.slane %v7574_v36, 7  ;;  %v5037_v42 = vpop.f32.mrb[62].mxu0  ;;  %v7605_v38 = vmul.f32 0.1, %v9194_v56  ;;  %v9195_v53 = vrot.slane %v7568_v27, 7 }
 0x486   : > { %v7607_v62 = vadd.f32 %v5037_v42, %v1062_v49  ;;  %v2420_v14 = vpop.f32.mrb[63].mxu0  ;;  %v1061_v45 = vsel %vm997_vm5, %v6708_v41, %v7183_v32  ;;  %v9197_v49 = vrot.slane %v7338_v59, 2  ;;  %vm999_vm8 = vcmp.ge.f32.partialorder %v6714_v50, 0.0  ;;  %v9201_v8 = vld [vmem:[#allocation13_spill] sm:$0xff] }
 0x487   : > { %5557 = vrot.lane.b32.xlu0 %v5556_v31, %s5978_s24  ;;  %v7615_v4 = vsel %vm1520_vm7, %v9051_v0, %v9195_v53  ;;  %5477 = vrot.lane.b32.xlu1 %v5476_v52, %s5976_s26  ;;  %v7629_v21 = vadd.f32 %v2420_v14, %v1061_v45  ;;  %v1064_v53 = vsel %vm1000_vm6, %v6711_v47, %v7186_v61  ;;  %v2798_v41 = vrot.slane %v7565_v28, 2  ;;  %v9204_v14 = vld [vmem:[#allocation15_spill] sm:$0xff] }
 0x488   : > { %9196 = vst [vmem:[#allocation16_spill] sm:$0xff] %v7615_v4  ;;  %v7625_v42 = vsel %vm1580_vm13, %v9197_v49, %v2791_v34  ;;  %v5481_v34 = vpack.i.bf16 %v7282_v2, %v7300_v58  ;;  %v9199_v49 = vrot.slane %v7421_v60, 1  ;;  %v1063_v47 = vsel %vm999_vm8, %v6714_v50, %v7190_v22  ;;  %v9202_v2 = vld [vmem:[#allocation18_spill] sm:$0xff] }
 0x489   : > { %9198 = vst [vmem:[#allocation17_spill] sm:$0xff] %v7629_v21  ;;  %v5571_v52 = vpack.i.bf16 %v7625_v42, %v7421_v60  ;;  %v5040_v32 = vpop.f32.mrb[64].mxu0  ;;  %v9057_v45 = vrot.slane %v7629_v21, 7  ;;  %vm1002_vm9 = vcmp.ge.f32.partialorder %v9201_v8, 0.0  ;;  %v1037_v63 = vmul.f32 0.1, %v9202_v2 }
 0x48a   : > { %v7643_v0 = vsel %vm1555_vm0, %v2720_v37, %v9199_v49  ;;  %v7647_v31 = vadd.f32 %v5040_v32, %v1064_v53  ;;  %v2430_v61 = vpop.f32.mrb[65].mxu0  ;;  %v9203_v49 = vld [vmem:[#allocation14_spill] sm:$0xff]  ;;  %vm1004_vm11 = vcmp.ge.f32.partialorder %v9204_v14, 0.0  ;;  %v9205_v53 = vrot.slane %v7319_v12, 7 }
 0x48b   : > { %9200 = vst [vmem:[#allocation49_spill] sm:$0xff] %v7643_v0  ;;  %5572 = vrot.lane.b32.xlu0 %v5571_v52, %s5976_s26  ;;  %5482 = vrot.lane.b32.xlu1 %v5481_v34, %s5976_s26  ;;  %v7655_v37 = vadd.f32 %v2430_v61, %v1063_v47  ;;  %vm1001_vm10 = vcmp.ge.f32.partialorder %v9203_v49, 0.0  ;;  %v9206_v50 = vrot.slane %v7607_v62, 7  ;;  %v5576_v34 = vpack.i.bf16 %v7439_v54, %v7643_v0  ;;  %v9208_v61 = vld [vmem:[#allocation20_spill] sm:$0xff] }
 0x48c   : > { %v7662_v52 = vsel %vm1520_vm7, %v9205_v53, 0.0  ;;  %v1066_v12 = vsel %vm1002_vm9, %v9201_v8, %v9208_v61  ;;  %v5491_v53 = vpack.i.bf16 %v7448_v16, %v7495_v15  ;;  %v9209_v5 = vrot.slane %v7421_v60, 2  ;;  %v9213_v8 = vld [vmem:[#allocation21_spill] sm:$0xff] }
 0x48d   : > { %v7669_v22 = vsel %vm1520_vm7, %v9057_v45, %v9206_v50  ;;  %v5043_v13 = vpop.f32.mrb[66].mxu0  ;;  %v2708_v50 = vrot.slane %v7410_v11, 1  ;;  %v9211_v45 = vrot.slane %v7413_v23, 7  ;;  %v1065_v61 = vsel %vm1001_vm10, %v9203_v49, %v9213_v8  ;;  %v9217_v23 = vld [vmem:[#allocation22_spill] sm:$0xff] }
 0x48e   : > { %9207 = vst [vmem:[#allocation13_spill] sm:$0xff] %v7669_v22  ;;  %v7682_v21 = vsel %vm1580_vm13, %v2798_v41, %v9209_v5  ;;  %v7690_v47 = vadd.f32 %v5043_v13, %v1066_v12  ;;  %v2440_v15 = vpop.f32.mrb[67].mxu0  ;;  %v2796_v16 = vrot.slane %v7662_v52, 2  ;;  %v9214_v5 = vrot.slane %v7647_v31, 7 }
 0x48f   : > { %9210 = vst [vmem:[#allocation18_spill] sm:$0xff] %v7682_v21  ;;  %v7688_v32 = vsel %vm1520_vm7, 0.0, %v9211_v45  ;;  %5577 = vrot.lane.b32.xlu0 %v5576_v34, %s5977_s5  ;;  %v9215_v41 = vrot.slane %v7655_v37, 7  ;;  %5492 = vrot.lane.b32.xlu1 %v5491_v53, %s5978_s24  ;;  %v1068_v13 = vsel %vm1004_vm11, %v9204_v14, %v9217_v23  ;;  %vm1003_vm12 = vcmp.ge.f32.partialorder %v9193_v33, 0.0 }
 0x490   : > { %9212 = vst [vmem:[#allocation14_spill] sm:$0xff] %v7688_v32  ;;  %v7710_v49 = vadd.f32 %v2440_v15, %v1065_v61  ;;  %v5586_v34 = vpack.i.bf16 %v7521_v35, %v7682_v21  ;;  %vm1006_vm14 = vcmp.ge.f32.partialorder %v9194_v56, 0.0  ;;  %v2725_v12 = vrot.slane %v7688_v32, 1 }
 0x491   : > { %v7701_v11 = vsel %vm1520_vm7, %v9215_v41, %v9214_v5  ;;  %v5046_v8 = vpop.f32.mrb[68].mxu0  ;;  %v5496_v53 = vpack.i.bf16 %v7271_v7, %v7462_v10  ;;  %vm1005_vm15 = vcmp.ge.f32.partialorder %v9202_v2, 0.0  ;;  %v1067_v15 = vsel %vm1003_vm12, %v9193_v33, %v7602_v20 }
 0x492   : > { %9216 = vst [vmem:[#allocation15_spill] sm:$0xff] %v7701_v11  ;;  %v9061_v5 = vrot.slane %v7710_v49, 7  ;;  %v7721_v41 = vadd.f32 %v5046_v8, %v1068_v13  ;;  %v2450_v61 = vpop.f32.mrb[69].mxu0  ;;  %v9218_v23 = vrot.slane %v7300_v58, 1  ;;  %v1070_v14 = vsel %vm1006_vm14, %v9194_v56, %v7605_v38 }
 0x493   : > { %5587 = vrot.lane.b32.xlu0 %v5586_v34, %s5978_s24  ;;  %5497 = vrot.lane.b32.xlu1 %v5496_v53, %s5977_s5  ;;  %v7732_v35 = vadd.f32 %v2450_v61, %v1067_v15  ;;  %v9219_v13 = vrot.slane %v7369_v55, 2  ;;  %v9221_v33 = vrot.slane %v7690_v47, 7  ;;  %v1069_v53 = vsel %vm1005_vm15, %v9202_v2, %v1037_v63 }
 0x494   : > { %v7729_v45 = vsel %vm1555_vm0, %v9218_v23, %v2708_v50  ;;  %v2803_v38 = vrot.slane %v7688_v32, 2  ;;  %v9222_v15 = vrot.slane %v7457_v3, 1  ;;  %v2804_v23 = vrot.slane %v7457_v3, 2 }
 0x495   : > { %v7739_v34 = vsel %vm1580_vm13, %v9219_v13, %v2796_v16  ;;  %v7746_v20 = vsel %vm1520_vm7, %v9061_v5, %v9221_v33  ;;  %v5049_v56 = vpop.f32.mrb[70].mxu0  ;;  %v5501_v16 = vpack.i.bf16 %v7268_v43, %v7729_v45  ;;  %v2713_v13 = vrot.slane %v7535_v30, 1 }
 0x496   : > { %9220 = vst [vmem:[#allocation20_spill] sm:$0xff] %v7739_v34  ;;  %v5601_v8 = vpack.i.bf16 %v7739_v34, %v7457_v3  ;;  %v7758_v61 = vsel %vm1555_vm0, %v2725_v12, %v9222_v15  ;;  %v9224_v33 = vrot.slane %v7402_v25, 7  ;;  %v9063_v63 = vrot.slane %v7732_v35, 7  ;;  %v2460_v50 = vpop.f32.mrb[71].mxu0 }
 0x497   : > { %9223 = vst [vmem:[#allocation21_spill] sm:$0xff] %v7758_v61  ;;  %v7768_v2 = vadd.f32 %v5049_v56, %v1070_v14  ;;  %5502 = vrot.lane.b32.xlu1 %v5501_v16, %s5977_s5  ;;  %v2499_v12 = vadd.f32 %v2460_v50, %v1069_v53  ;;  %v9225_v15 = vrot.slane %v7356_v44, 7  ;;  %v9226_v30 = vrot.slane %v7721_v41, 7 }
 0x498   : > { %v7765_v5 = vsel %vm1520_vm7, %v9224_v33, 0.0  ;;  %5602 = vrot.lane.b32.xlu0 %v5601_v8, %s5976_s26  ;;  %v5606_v8 = vpack.i.bf16 %v7565_v28, %v7758_v61  ;;  %v5506_v50 = vpack.i.bf16 %v7485_v40, %v7341_v51  ;;  %v7789_v44 = vsel %vm1580_vm13, %v2803_v38, %v2804_v23 }
 0x499   : > { %v2651_v43 = vsel %vm1520_vm7, %v9225_v15, 0.0  ;;  %v7780_v25 = vsel %vm1520_vm7, %v9063_v63, %v9226_v30  ;;  %v2580_v14 = vrot.slane %v7768_v2, 7  ;;  %v2806_v56 = vrot.slane %v7765_v5, 2  ;;  %9227 = vst [vmem:[#allocation22_spill] sm:$0xff] %v7789_v44 }
 0x49a   : > { %v2579_v53 = vrot.slane %v2499_v12, 7  ;;  %v9228_v16 = vrot.slane %v7338_v59, 1  ;;  %v2723_v2 = vrot.slane %v2651_v43, 1  ;;  %v5616_v38 = vpack.i.bf16 %v7643_v0, %v7789_v44 }
 0x49b   : > { %5507 = vrot.lane.b32.xlu1 %v5506_v50, %s5976_s26  ;;  %v9231_v50 = vrot.slane %v7421_v60, 1  ;;  %v9233_v12 = vrot.slane %v7465_v19, 7  ;;  %v5536_v19 = vpack.i.bf16 %v7330_v9, %v7439_v54  ;;  %v2809_v46 = vrot.slane %v7503_v17, 2 }
 0x49c   : > { %5607 = vrot.lane.b32.xlu0 %v5606_v8, %s5977_s5  ;;  %v7795_v33 = vsel %vm1555_vm0, %v9228_v16, %v2713_v13  ;;  %v7799_v15 = vsel %vm1520_vm7, 0.0, %v2579_v53  ;;  %v7802_v30 = vsel %vm1520_vm7, %v2579_v53, %v2580_v14  ;;  %v7811_v13 = vsel %vm1580_vm13, %v2804_v23, %v2806_v56 }
 0x49d   : > { %9229 = vst [vmem:[#allocation50_spill] sm:$0xff] %v7795_v33  ;;  %v5521_v8 = vpack.i.bf16 %v7300_v58, %v7795_v33  ;;  %9230 = vst [vmem:[#allocation51_spill] sm:$0xff] %v7811_v13  ;;  %v7818_v53 = vsel %vm1555_vm0, %v9231_v50, %v2723_v2  ;;  %v7825_v63 = vsel %vm1520_vm7, 0.0, %v9233_v12  ;;  %v5531_v23 = vpack.i.bf16 %v7729_v45, %v7625_v42 }
 0x49e   : > { %9232 = vst [vmem:[#allocation52_spill] sm:$0xff] %v7818_v53  ;;  %v5621_v16 = vpack.i.bf16 %v7818_v53, %v7811_v13  ;;  %9234 = vst [vmem:[#allocation53_spill] sm:$0xff] %v7825_v63  ;;  %v2718_v56 = vrot.slane %v7662_v52, 1  ;;  %v5626_v2 = vpack.i.bf16 %v7682_v21, %v7825_v63  ;;  %v2731_v12 = vrot.slane %v7503_v17, 1 }
 0x49f   : > { %5522 = vrot.lane.b32.xlu1 %v5521_v8, %s5977_s5  ;;  %v2730_v8 = vrot.slane %v7825_v63, 1  ;;  %v9235_v50 = vrot.slane %v7441_v1, 7  ;;  %v3683_v1 = vld [vmem:[%s8991_s11 + $0xd0] sm:$0xff]  ;;  %v2808_v51 = vrot.slane %v7825_v63, 2 }
 0x4a0   : > { %5617 = vrot.lane.b32.xlu0 %v5616_v38, %s5978_s24  ;;  %v2801_v38 = vrot.slane %v2651_v43, 2  ;;  %v9236_v43 = vrot.slane %v7369_v55, 1 }
 0x4a1   : > { %v2653_v0 = vsel %vm1520_vm7, %v9235_v50, 0.0  ;;  %v7864_v50 = vsel %vm1555_vm0, %v2730_v8, %v2731_v12  ;;  %v5561_v8 = vpack.i.bf16 %v7795_v33, %v7739_v34  ;;  %v2888_v33 = vrot.slane %v7802_v30, 2 }
 0x4a2   : > { %v7845_v52 = vsel %vm1555_vm0, %v9236_v43, %v2718_v56  ;;  %v2733_v56 = vrot.slane %v2653_v0, 1  ;;  %9239 = vst [vmem:[#allocation55_spill] sm:$0xff] %v7864_v50  ;;  %v3686_v43 = vld [vmem:[%s8991_s11 + $0xe8] sm:$0xff] }
 0x4a3   : > { %5532 = vrot.lane.b32.xlu1 %v5531_v23, %s5978_s24  ;;  %9237 = vst [vmem:[#allocation54_spill] sm:$0xff] %v7845_v52 }
 0x4a4   : > { %5622 = vrot.lane.b32.xlu0 %v5621_v16, %s5978_s24  ;;  %v9238_v16 = vrot.slane %v7421_v60, 2 }
 0x4a6   : > { %v7851_v23 = vsel %vm1580_vm13, %v9238_v16, %v2801_v38  ;;  %v3685_v38 = vld [vmem:[%s8991_s11 + $0xe0] sm:$0xff] }
 0x4a7   : > { %5537 = vrot.lane.b32.xlu1 %v5536_v19, %s5976_s26  ;;  %v5631_v54 = vpack.i.bf16 %v7851_v23, %v7503_v17  ;;  %v5551_v19 = vpack.i.bf16 %v7338_v59, %v7845_v52  ;;  %v5636_v59 = vpack.i.bf16 %v7688_v32, %v7864_v50  ;;  %v5225_v21 = vpack.c.bf16 %v3686_v43, %v3685_v38 }
 0x4a8   : > { %5627 = vrot.lane.b32.xlu0 %v5626_v2, %s5976_s26  ;;  %v3684_v2 = vld [vmem:[%s8991_s11 + $0xd8] sm:$0xff]  ;;  %v5566_v38 = vpack.i.bf16 %v7434_v39, %v7565_v28  ;;  %v7899_v43 = vsel %vm1580_vm13, %v2808_v51, %v2809_v46 }
 0x4a9   : > { %v5222_v16 = vpack.c.bf16 %v3684_v2, %v3683_v1  ;;  %v3687_v1 = vld [vmem:[%s8991_s11 + $0xf0] sm:$0xff]  ;;  %v3688_v2 = vld [vmem:[%s8991_s11 + $0xf8] sm:$0xff]  ;;  %9242 = vst [vmem:[#allocation57_spill] sm:$0xff] %v7899_v43 }
 0x4ab   : > { %5552 = vrot.lane.b32.xlu1 %v5551_v19, %s5977_s5  ;;  %5223 = vmatpush1.bf16.msra.mxu0 %v5222_v16  ;;  %v9241_v19 = vmov 0.0|0.0  }
 0x4ac   : > { %5632 = vrot.lane.b32.xlu0 %v5631_v54, %s5976_s26  ;;  %v7880_v54 = vsel %vm1555_vm0, %v2731_v12, %v2733_v56  ;;  %5267 = vmatpush1.bf16.msra.mxu1 %v5222_v16  ;;  %v2811_v12 = vrot.slane %v2653_v0, 2  ;;  %v5228_v16 = vpack.c.bf16 %v3688_v2, %v3687_v1  ;;  %v3689_v0 = vld [vmem:[%s8991_s11 + $0x100] sm:$0xff]  ;;  %v5646_v1 = vpack.i.bf16 %v7758_v61, %v7899_v43 }
 0x4ad   : > { %9240 = vst [vmem:[#allocation56_spill] sm:$0xff] %v7880_v54  ;;  %5224 = vmatprep.subr.bf16.mxu0 %v9241_v19  ;;  %5252 = vmatprep.subr.bf16.mxu1 %v9241_v19  ;;  %v5641_v56 = vpack.i.bf16 %v7457_v3, %v7880_v54  ;;  %v2851_v2 = vrot.slane %v7802_v30, 1 }
 0x4ae   : > { %v7917_v28 = vsel %vm1580_vm13, %v2809_v46, %v2811_v12 }
 0x4af   : > { %5562 = vrot.lane.b32.xlu1 %v5561_v8, %s5978_s24  ;;  %5226 = vmatpush1.bf16.msra.mxu0 %v5225_v21  ;;  %v2728_v8 = vrot.slane %v7765_v5, 1  ;;  %9243 = vst [vmem:[#allocation58_spill] sm:$0xff] %v7917_v28  ;;  %v2850_v5 = vrot.slane %v7799_v15, 1 }
 0x4b0   : > { %5637 = vrot.lane.b32.xlu0 %v5636_v59, %s5977_s5  ;;  %v2661_v59 = vsel %vm1520_vm7, %v2580_v14, 0.0  ;;  %5227 = vmatprep.subr.bf16.mxu0 %v9241_v19  ;;  %v3690_v14 = vld [vmem:[%s8991_s11 + $0x108] sm:$0xff] }
 0x4b1   : > { %v2853_v51 = vrot.slane %v2661_v59, 1  ;;  %5268 = vmatpush1.bf16.msra.mxu1 %v5225_v21  ;;  %v7919_v58 = vpack.c.bf16 %v3690_v14, %v3689_v0  ;;  %v2890_v34 = vrot.slane %v2661_v59, 2  ;;  %v9244_v21 = vrot.slane %v7457_v3, 1 }
 0x4b2   : > { %5253 = vmatprep.subr.bf16.mxu1 %v9241_v19  ;;  %v9246_v59 = vrot.slane %v7490_v29, 7  ;;  %v5591_v19 = vpack.i.bf16 %v7845_v52, %v7851_v23  ;;  %v9248_v29 = vrot.slane %v7479_v24, 7  ;;  %v5661_v24 = vpack.i.bf16 %v7811_v13, %v7543_v18 }
 0x4b3   : > { %5567 = vrot.lane.b32.xlu1 %v5566_v38, %s5976_s26  ;;  %5229 = vmatpush1.bf16.msra.mxu0 %v5228_v16  ;;  %v2887_v38 = vrot.slane %v7799_v15, 2  ;;  %v7930_v46 = vsel %vm1555_vm0, %v9244_v21, %v2728_v8  ;;  %v7943_v14 = vsel %vm1555_vm0, %v2851_v2, %v2853_v51  ;;  %v7947_v8 = vsel %vm1555_vm0, %v2850_v5, %v2851_v2 }
 0x4b4   : > { %5642 = vrot.lane.b32.xlu0 %v5641_v56, %s5977_s5  ;;  %v5581_v56 = vpack.i.bf16 %v7369_v55, %v7818_v53  ;;  %9245 = vst [vmem:[#allocation59_spill] sm:$0xff] %v7930_v46  ;;  %5231 = vmatprep.subr.bf16.mxu0 %v7919_v58  ;;  %v5651_v12 = vpack.i.bf16 %v7930_v46, %v7917_v28  ;;  %v7938_v0 = vsel %vm1520_vm7, 0.0, %v9246_v59 }
 0x4b5   : > { %5269 = vmatpush1.bf16.msra.mxu1 %v5228_v16  ;;  %9247 = vst [vmem:[#allocation60_spill] sm:$0xff] %v7938_v0  ;;  %v7953_v16 = vsel %vm1580_vm13, %v2887_v38, %v2888_v33  ;;  %v5656_v51 = vpack.i.bf16 %v7789_v44, %v7938_v0  ;;  %v2735_v21 = vrot.slane %v7938_v0, 1  ;;  %v5596_v2 = vpack.i.bf16 %v7583_v26, %v7688_v32 }
 0x4b7   : > { %5582 = vrot.lane.b32.xlu1 %v5581_v56, %s5977_s5  ;;  %v2654_v56 = vsel %vm1520_vm7, %v9248_v29, 0.0  ;;  %v9251_v29 = vrot.slane %v7523_v57, 7 }
 0x4b8   : > { %5647 = vrot.lane.b32.xlu0 %v5646_v1, %s5978_s24  ;;  %v7950_v1 = vsel %vm1580_vm13, %v2888_v33, %v2890_v34  ;;  %v2736_v34 = vrot.slane %v7543_v18, 1  ;;  %v2816_v5 = vrot.slane %v2654_v56, 2  ;;  %v2814_v33 = vrot.slane %v7543_v18, 2 }
 0x4b9   : > { %v2738_v38 = vrot.slane %v2654_v56, 1 }
 0x4ba   : > { %v7973_v59 = vsel %vm1555_vm0, %v2735_v21, %v2736_v34 }
 0x4bb   : > { %5592 = vrot.lane.b32.xlu1 %v5591_v19, %s5978_s24  ;;  %9249 = vst [vmem:[#allocation61_spill] sm:$0xff] %v7973_v59  ;;  %v7977_v19 = vsel %vm1580_vm13, %v2814_v33, %v2816_v5  ;;  %v5666_v56 = vpack.i.bf16 %v7825_v63, %v7973_v59  ;;  %v7989_v3 = vsel %vm1555_vm0, %v2736_v34, %v2738_v38  ;;  %v9253_v5 = vrot.slane %v7548_v6, 7 }
 0x4bc   : > { %5652 = vrot.lane.b32.xlu0 %v5651_v12, %s5978_s24  ;;  %v5611_v12 = vpack.i.bf16 %v7421_v60, %v7930_v46  ;;  %9250 = vst [vmem:[#allocation62_spill] sm:$0xff] %v7977_v19  ;;  %v5681_v21 = vpack.i.bf16 %v7880_v54, %v7977_v19  ;;  %9252 = vst [vmem:[#allocation63_spill] sm:$0xff] %v7989_v3  ;;  %v9266_v54 = vld [vmem:[#allocation17_spill] sm:$0xff] }
 0x4bd   : > { %v7994_v57 = vsel %vm1520_vm7, 0.0, %v9253_v5 }
 0x4be   : > { %9254 = vst [vmem:[#allocation64_spill] sm:$0xff] %v7994_v57  ;;  %v5686_v63 = vpack.i.bf16 %v7899_v43, %v7994_v57  ;;  %v2740_v5 = vrot.slane %v7994_v57, 1  ;;  %v9275_v43 = vld [vmem:[#allocation43_spill] sm:$0xff] }
 0x4bf   : > { %5597 = vrot.lane.b32.xlu1 %v5596_v2, %s5976_s26  ;;  %v2813_v2 = vrot.slane %v7938_v0, 2 }
 0x4c0   : > { %5657 = vrot.lane.b32.xlu0 %v5656_v51, %s5976_s26  ;;  %v2655_v51 = vsel %vm1520_vm7, %v9251_v29, 0.0  ;;  %v5671_v29 = vpack.i.bf16 %v7503_v17, %v7989_v3 }
 0x4c1   : > { %v8004_v34 = vsel %vm1580_vm13, %v2813_v2, %v2814_v33  ;;  %v2821_v38 = vrot.slane %v2655_v51, 2 }
 0x4c2   : > { %9255 = vst [vmem:[#allocation65_spill] sm:$0xff] %v8004_v34 }
 0x4c3   : > { %5612 = vrot.lane.b32.xlu1 %v5611_v12, %s5977_s5  ;;  %v2741_v12 = vrot.slane %v7590_v48, 1 }
 0x4c4   : > { %5662 = vrot.lane.b32.xlu0 %v5661_v24, %s5976_s26  ;;  %v2743_v24 = vrot.slane %v2655_v51, 1  ;;  %v9258_v51 = vrot.slane %v7568_v27, 7 }
 0x4c6   : > { %v8008_v6 = vsel %vm1555_vm0, %v2741_v12, %v2743_v24  ;;  %v2656_v2 = vsel %vm1520_vm7, %v9258_v51, 0.0  ;;  %v2818_v24 = vrot.slane %v7994_v57, 2 }
 0x4c7   : > { %5682 = vrot.lane.b32.xlu1 %v5681_v21, %s5978_s24  ;;  %9256 = vst [vmem:[#allocation66_spill] sm:$0xff] %v8008_v6  ;;  %v5676_v21 = vpack.i.bf16 %v7864_v50, %v8004_v34  ;;  %v5701_v17 = vpack.i.bf16 %v7543_v18, %v8008_v6  ;;  %v8031_v18 = vsel %vm1555_vm0, %v2740_v5, %v2741_v12  ;;  %v2826_v5 = vrot.slane %v2656_v2, 2 }
 0x4c8   : > { %5667 = vrot.lane.b32.xlu0 %v5666_v56, %s5977_s5  ;;  %v2819_v56 = vrot.slane %v7590_v48, 2  ;;  %9259 = vst [vmem:[#allocation68_spill] sm:$0xff] %v8031_v18  ;;  %v5696_v51 = vpack.i.bf16 %v7938_v0, %v8031_v18 }
 0x4ca   : > { %v8019_v33 = vsel %vm1580_vm13, %v2819_v56, %v2821_v38  ;;  %v9260_v38 = vrot.slane %v7574_v36, 7  ;;  %v8046_v12 = vsel %vm1580_vm13, %v2818_v24, %v2819_v56  ;;  %v9264_v24 = vrot.slane %v7607_v62, 7 }
 0x4cb   : > { %5687 = vrot.lane.b32.xlu1 %v5686_v63, %s5976_s26  ;;  %9257 = vst [vmem:[#allocation67_spill] sm:$0xff] %v8019_v33  ;;  %v5691_v63 = vpack.i.bf16 %v7917_v28, %v7590_v48  ;;  %9262 = vst [vmem:[#allocation70_spill] sm:$0xff] %v8046_v12  ;;  %v9267_v62 = vrot.slane %v9266_v54, 7  ;;  %v5751_v53 = vpack.i.bf16 %v8019_v33, %v7669_v22  ;;  %v9274_v28 = vld [vmem:[#allocation11_spill] sm:$0xff] }
 0x4cc   : > { %5672 = vrot.lane.b32.xlu0 %v5671_v29, %s5977_s5  ;;  %v5711_v29 = vpack.i.bf16 %v7989_v3, %v8019_v33  ;;  %v8036_v27 = vsel %vm1520_vm7, 0.0, %v9260_v38  ;;  %v5706_v38 = vpack.i.bf16 %v7973_v59, %v8046_v12 }
 0x4cd   : > { %9261 = vst [vmem:[#allocation69_spill] sm:$0xff] %v8036_v27  ;;  %v5716_v3 = vpack.i.bf16 %v8004_v34, %v8036_v27  ;;  %v2745_v0 = vrot.slane %v8036_v27, 1  ;;  %v2823_v59 = vrot.slane %v8036_v27, 2  ;;  %v2756_v34 = vrot.slane %v7701_v11, 1 }
 0x4cf   : > { %5702 = vrot.lane.b32.xlu1 %v5701_v17, %s5977_s5  ;;  %v2746_v17 = vrot.slane %v7615_v4, 1 }
 0x4d0   : > { %5677 = vrot.lane.b32.xlu0 %v5676_v21, %s5978_s24  ;;  %v2748_v21 = vrot.slane %v2656_v2, 1 }
 0x4d2   : > { %v8050_v36 = vsel %vm1555_vm0, %v2746_v17, %v2748_v21  ;;  %v2657_v21 = vsel %vm1520_vm7, %v9264_v24, 0.0  ;;  %v8080_v24 = vsel %vm1520_vm7, 0.0, %v9267_v62  ;;  %v2829_v62 = vrot.slane %v7669_v22, 2 }
 0x4d3   : > { %5712 = vrot.lane.b32.xlu1 %v5711_v29, %s5978_s24  ;;  %9263 = vst [vmem:[#allocation71_spill] sm:$0xff] %v8050_v36  ;;  %v5731_v56 = vpack.i.bf16 %v7590_v48, %v8050_v36  ;;  %9268 = vst [vmem:[#allocation17_spill] sm:$0xff] %v8080_v24 }
 0x4d4   : > { %5692 = vrot.lane.b32.xlu0 %v5691_v63, %s5976_s26  ;;  %v2824_v63 = vrot.slane %v7615_v4, 2 }
 0x4d6   : > { %v8061_v2 = vsel %vm1580_vm13, %v2824_v63, %v2826_v5  ;;  %v2753_v5 = vrot.slane %v2657_v21, 1  ;;  %v8092_v54 = vsel %vm1580_vm13, %v2823_v59, %v2824_v63 }
 0x4d7   : > { %5717 = vrot.lane.b32.xlu1 %v5716_v3, %s5976_s26  ;;  %v5438_v29 = vpop.permute.xlu1 %5437  ;;  %v5741_v48 = vpack.i.bf16 %v8008_v6, %v8061_v2  ;;  %v5736_v63 = vpack.i.bf16 %v8031_v18, %v8092_v54 }
 0x4d8   : > { %5697 = vrot.lane.b32.xlu0 %v5696_v51, %s5977_s5  ;;  %v5721_v51 = vpack.i.bf16 %v7977_v19, %v7615_v4  ;;  %v5440_v46 = vunpack.i.h.bf16 %v5438_v29 }
 0x4db   : > { %5732 = vrot.lane.b32.xlu1 %v5731_v56, %s5977_s5  ;;  %v8067_v3 = vpop.permute.xlu1 %5442  ;;  %v2751_v56 = vrot.slane %v7669_v22, 1 }
 0x4dc   : > { %5707 = vrot.lane.b32.xlu0 %v5706_v38, %s5978_s24  ;;  %v8075_v38 = vsel %vm1555_vm0, %v2745_v0, %v2746_v17  ;;  %v2831_v0 = vrot.slane %v2657_v21, 2  ;;  %v5746_v17 = vpack.i.bf16 %v8046_v12, %v8080_v24  ;;  %v5445_v13 = vunpack.i.h.bf16 %v8067_v3 }
 0x4dd   : > { %9265 = vst [vmem:[#allocation72_spill] sm:$0xff] %v8075_v38  ;;  %v5726_v6 = vpack.i.bf16 %v7994_v57, %v8075_v38  ;;  %v9270_v57 = vrot.slane %v7647_v31, 7  ;;  %v3691_v31 = vld [vmem:[%s8991_s11 + $0x110] sm:$0xff]  ;;  %v5444_v44 = vunpack.i.l.bf16 %v8067_v3 }
 0x4df   : > { %5742 = vrot.lane.b32.xlu1 %v5741_v48, %s5978_s24  ;;  %v8085_v32 = vpop.permute.xlu0 %5487  ;;  %v5448_v50 = vpop.permute.xlu1 %5447  ;;  %v2750_v48 = vrot.slane %v8080_v24, 1  ;;  %v8104_v21 = vsel %vm1520_vm7, %v9270_v57, 0.0  ;;  %v3692_v57 = vld [vmem:[%s8991_s11 + $0x118] sm:$0xff] }
 0x4e0   : > { %5722 = vrot.lane.b32.xlu0 %v5721_v51, %s5976_s26  ;;  %v8097_v51 = vsel %vm1555_vm0, %v2751_v56, %v2753_v5  ;;  %v5450_v61 = vunpack.i.h.bf16 %v5448_v50  ;;  %v5449_v55 = vunpack.i.l.bf16 %v5448_v50  ;;  %v2758_v18 = vrot.slane %v8104_v21, 1 }
 0x4e1   : > { %9269 = vst [vmem:[#allocation73_spill] sm:$0xff] %v8097_v51  ;;  %v5761_v5 = vpack.i.bf16 %v7615_v4, %v8097_v51  ;;  %v9271_v4 = vrot.slane %v7655_v37, 7  ;;  %v5234_v37 = vpack.c.bf16 %v3692_v57, %v3691_v31  ;;  %v9278_v57 = vld [vmem:[#allocation10_spill] sm:$0xff] }
 0x4e3   : > { %5747 = vrot.lane.b32.xlu1 %v5746_v17, %s5976_s26  ;;  %v8113_v17 = vsel %vm1580_vm13, %v2829_v62, %v2831_v0  ;;  %v8127_v0 = vsel %vm1520_vm7, 0.0, %v9271_v4  ;;  %v3465_v4 = vsel %vm1345_vm4, %v9274_v28, %v5440_v46 }
 0x4e4   : > { %5727 = vrot.lane.b32.xlu0 %v5726_v6, %s5977_s5  ;;  %v5453_v59 = vpop.permute.xlu1 %5452  ;;  %v5439_v6 = vunpack.i.l.bf16 %v5438_v29  ;;  %v2828_v29 = vrot.slane %v8080_v24, 2  ;;  %9272 = vst [vmem:[#allocation74_spill] sm:$0xff] %v8127_v0  ;;  %v5771_v50 = vpack.i.bf16 %v8050_v36, %v8113_v17  ;;  %v3497_v36 = vsel %vm1773_vm1, %v3465_v4, %v5450_v61 }
 0x4e5   : > { %v8106_v60 = vpop.permute.xlu0 %5512  ;;  %v5454_v31 = vunpack.i.l.bf16 %v5453_v59 }
 0x4e6   : > { %v3561_v33 = vsel %vm1345_vm4, %v9275_v43, %v5439_v6  ;;  %v2836_v43 = vrot.slane %v8104_v21, 2 }
 0x4e7   : > { %5762 = vrot.lane.b32.xlu1 %v5761_v5, %s5977_s5 }
 0x4e8   : > { %5737 = vrot.lane.b32.xlu0 %v5736_v63, %s5978_s24  ;;  %v5458_v19 = vpop.permute.xlu1 %5457  ;;  %v8137_v63 = vsel %vm1555_vm0, %v2750_v48, %v2751_v56  ;;  %v3593_v56 = vsel %vm1773_vm1, %v3561_v33, %v5449_v55  ;;  %v5455_v48 = vunpack.i.h.bf16 %v5453_v59  ;;  %v5776_v55 = vpack.i.bf16 %v8092_v54, %v8127_v0  ;;  %v9277_v59 = vld [vmem:[#allocation46_spill] sm:$0xff] }
 0x4e9   : > { %v8132_v12 = vpop.permute.xlu0 %5517  ;;  %9273 = vst [vmem:[#allocation75_spill] sm:$0xff] %v8137_v63  ;;  %v5460_v52 = vunpack.i.h.bf16 %v5458_v19  ;;  %v5459_v5 = vunpack.i.l.bf16 %v5458_v19  ;;  %v5756_v61 = vpack.i.bf16 %v8036_v27, %v8137_v63  ;;  %v8163_v33 = vsel %vm1555_vm0, %v2756_v34, %v2758_v18 }
 0x4ea   : > { %9276 = vst [vmem:[#allocation11_spill] sm:$0xff] %v8163_v33  ;;  %v3562_v6 = vsel %vm1345_vm4, %v9277_v59, %v5444_v44  ;;  %v2761_v59 = vrot.slane %v7746_v20, 1 }
 0x4eb   : > { %5772 = vrot.lane.b32.xlu1 %v5771_v50, %s5978_s24  ;;  %v3625_v28 = vsel %vm1782_vm2, %v3593_v56, %v5459_v5  ;;  %v3529_v46 = vsel %vm1782_vm2, %v3497_v36, %v5460_v52  ;;  %v2834_v52 = vrot.slane %v7701_v11, 2  ;;  %v3466_v50 = vsel %vm1345_vm4, %v9278_v57, %v5445_v13 }
 0x4ec   : > { %5752 = vrot.lane.b32.xlu0 %v5751_v53, %s5976_s26  ;;  %3828 = vmatprep.mubr.f32.mxu0 %v3625_v28  ;;  %v5463_v3 = vpop.permute.xlu1 %5462  ;;  %v8160_v53 = vsel %vm1580_vm13, %v2828_v29, %v2829_v62  ;;  %v3594_v62 = vsel %vm1773_vm1, %v3562_v6, %v5454_v31  ;;  %v3498_v18 = vsel %vm1773_vm1, %v3466_v50, %v5455_v48  ;;  %v2755_v13 = vrot.slane %v8127_v0, 1 }
 0x4ed   : > { %v8153_v19 = vpop.permute.xlu0 %5527  ;;  %3829 = vmatmul.mubr.f32.vlgmr.msra.gmra.mrb[72].mxu0 %v3529_v46  ;;  %v5465_v36 = vunpack.i.h.bf16 %v5463_v3  ;;  %v5464_v21 = vunpack.i.l.bf16 %v5463_v3  ;;  %v5766_v44 = vpack.i.bf16 %v8075_v38, %v8160_v53  ;;  %v8188_v48 = vsel %vm1580_vm13, %v2834_v52, %v2836_v43 }
 0x4ee   : > { %5233 = vmatpush3.bf16.msra.mxu0 %v7919_v58  ;;  %v5791_v58 = vpack.i.bf16 %v7669_v22, %v8163_v33  ;;  %v9279_v31 = vrot.slane %v7690_v47, 7  ;;  %v2833_v3 = vrot.slane %v8127_v0, 2  ;;  %v5801_v43 = vpack.i.bf16 %v8097_v51, %v8188_v48 }
 0x4ef   : > { %5777 = vrot.lane.b32.xlu1 %v5776_v55, %s5976_s26  ;;  %5235 = vmatprep.subr.bf16.mxu0 %v5234_v37  ;;  %v3626_v4 = vsel %vm1782_vm2, %v3594_v62, %v5464_v21  ;;  %v3530_v5 = vsel %vm1782_vm2, %v3498_v18, %v5465_v36  ;;  %v8204_v36 = vsel %vm1555_vm0, %v2755_v13, %v2756_v34  ;;  %v9280_v21 = vrot.slane %v7710_v49, 7 }
 0x4f0   : > { %5757 = vrot.lane.b32.xlu0 %v5756_v61, %s5977_s5  ;;  %v8182_v56 = vpop.permute.xlu1 %5467  ;;  %3833 = vmatprep.mubr.f32.mxu0 %v3626_v4  ;;  %v2659_v28 = vsel %vm1520_vm7, %v9279_v31, 0.0  ;;  %v5781_v61 = vpack.i.bf16 %v8061_v2, %v7701_v11  ;;  %v5786_v50 = vpack.i.bf16 %v8080_v24, %v8204_v36  ;;  %v8221_v49 = vsel %vm1580_vm13, %v2833_v3, %v2834_v52 }
 0x4f1   : > { %v8175_v29 = vpop.permute.xlu0 %5542  ;;  %3834 = vmatmul.mubr.f32.gmra.mrb[74].mxu0 %v3530_v5  ;;  %v2763_v47 = vrot.slane %v2659_v28, 1  ;;  %9281 = vst [vmem:[#allocation43_spill] sm:$0xff] %v8221_v49  ;;  %v2841_v18 = vrot.slane %v2659_v28, 2  ;;  %v2839_v4 = vrot.slane %v7746_v20, 2  ;;  %v5796_v13 = vpack.i.bf16 %v8137_v63, %v8221_v49 }
 0x4f2   : > { %5237 = vmatpush3.bf16.msra.mxu0 %v5234_v37  ;;  %v8209_v37 = vsel %vm1520_vm7, 0.0, %v9280_v21  ;;  %v9282_v52 = vrot.slane %v7721_v41, 7  ;;  %v5811_v41 = vpack.i.bf16 %v8113_v17, %v7746_v20 }
 0x4f3   : > { %5792 = vrot.lane.b32.xlu1 %v5791_v58, %s5977_s5  ;;  %v5806_v34 = vpack.i.bf16 %v8160_v53, %v8209_v37  ;;  %v8226_v5 = vsel %vm1555_vm0, %v2761_v59, %v2763_v47  ;;  %v2760_v58 = vrot.slane %v8209_v37, 1  ;;  %v8241_v3 = vsel %vm1580_vm13, %v2839_v4, %v2841_v18 }
 0x4f4   : > { %5767 = vrot.lane.b32.xlu0 %v5766_v44, %s5978_s24  ;;  %v2660_v31 = vsel %vm1520_vm7, %v9282_v52, 0.0  ;;  %v5469_v52 = vunpack.i.l.bf16 %v8182_v56  ;;  %v5831_v18 = vpack.i.bf16 %v8163_v33, %v8241_v3 }
 0x4f5   : > { %v8194_v46 = vpop.permute.xlu0 %5547  ;;  %v8199_v55 = vpop.permute.xlu1 %5472  ;;  %v2768_v47 = vrot.slane %v2660_v31, 1 }
 0x4f6   : > { %v5474_v51 = vunpack.i.l.bf16 %v8199_v55 }
 0x4f7   : > { %5802 = vrot.lane.b32.xlu1 %v5801_v43, %s5978_s24  ;;  %v2838_v43 = vrot.slane %v8209_v37, 2 }
 0x4f8   : > { %5782 = vrot.lane.b32.xlu0 %v5781_v61, %s5976_s26  ;;  %v5821_v61 = vpack.i.bf16 %v7701_v11, %v8226_v5  ;;  %v9283_v11 = vrot.slane %v7732_v35, 7 }
 0x4f9   : > { %v8214_v6 = vpop.permute.xlu0 %5557  ;;  %v5478_v62 = vpop.permute.xlu1 %5477  ;;  %v8268_v27 = vsel %vm1580_vm13, %v2838_v43, %v2839_v4  ;;  %v5475_v43 = vunpack.i.h.bf16 %v8199_v55 }
 0x4fa   : > { %v8262_v21 = vsel %vm1520_vm7, 0.0, %v9283_v11  ;;  %v5480_v22 = vunpack.i.h.bf16 %v5478_v62  ;;  %v5479_v24 = vunpack.i.l.bf16 %v5478_v62  ;;  %v5826_v55 = vpack.i.bf16 %v8204_v36, %v8268_v27 }
 0x4fb   : > { %5807 = vrot.lane.b32.xlu1 %v5806_v34, %s5976_s26  ;;  %v5470_v34 = vunpack.i.h.bf16 %v8182_v56  ;;  %v2846_v56 = vrot.slane %v2660_v31, 2  ;;  %v5836_v11 = vpack.i.bf16 %v8221_v49, %v8262_v21 }
 0x4fc   : > { %5787 = vrot.lane.b32.xlu0 %v5786_v50, %s5977_s5 }
 0x4fd   : > { %v8229_v44 = vpop.permute.xlu0 %5572  ;;  %v5483_v28 = vpop.permute.xlu1 %5482 }
 0x4fe   : > { %v5485_v38 = vunpack.i.h.bf16 %v5483_v28  ;;  %v5484_v49 = vunpack.i.l.bf16 %v5483_v28 }
 0x4ff   : > { %5822 = vrot.lane.b32.xlu1 %v5821_v61, %s5977_s5  ;;  %v8257_v61 = vsel %vm1555_vm0, %v2760_v58, %v2761_v59  ;;  %v9284_v58 = vld [vmem:[#allocation30_spill] sm:$0xff] }
 0x500   : > { %5797 = vrot.lane.b32.xlu0 %v5796_v13, %s5978_s24  ;;  %v5816_v35 = vpack.i.bf16 %v8127_v0, %v8257_v61  ;;  %v3563_v62 = vsel %vm1345_vm4, %v9284_v58, %v5469_v52 }
 0x501   : > { %v8246_v50 = vpop.permute.xlu0 %5577  ;;  %v8252_v13 = vpop.permute.xlu1 %5492  ;;  %v3595_v52 = vsel %vm1773_vm1, %v3563_v62, %v5479_v24 }
 0x503   : > { %5832 = vrot.lane.b32.xlu1 %v5831_v18, %s5978_s24  ;;  %v9286_v18 = vrot.slane %v7780_v25, 1 }
 0x504   : > { %5812 = vrot.lane.b32.xlu0 %v5811_v41, %s5976_s26  ;;  %v9285_v41 = vld [vmem:[#allocation24_spill] sm:$0xff] }
 0x505   : > { %v8270_v33 = vpop.permute.xlu0 %5587  ;;  %v5498_v59 = vpop.permute.xlu1 %5497  ;;  %v3467_v31 = vsel %vm1345_vm4, %v9285_v41, %v5470_v34  ;;  %v8283_v4 = vsel %vm1555_vm0, %v9286_v18, %v2768_v47  ;;  %v9289_v18 = vld [vmem:[#allocation23_spill] sm:$0xff] }
 0x506   : > { %v5500_v0 = vunpack.i.h.bf16 %v5498_v59  ;;  %v5499_v63 = vunpack.i.l.bf16 %v5498_v59  ;;  %v3499_v34 = vsel %vm1773_vm1, %v3467_v31, %v5480_v22  ;;  %v2765_v59 = vrot.slane %v8262_v21, 1 }
 0x507   : > { %5837 = vrot.lane.b32.xlu1 %v5836_v11, %s5976_s26  ;;  %v5851_v24 = vpack.i.bf16 %v7746_v20, %v8283_v4  ;;  %v9287_v22 = vrot.slane %v7780_v25, 2 }
 0x508   : > { %5817 = vrot.lane.b32.xlu0 %v5816_v35, %s5977_s5  ;;  %v3627_v47 = vsel %vm1782_vm2, %v3595_v52, %v5499_v63  ;;  %v3531_v41 = vsel %vm1782_vm2, %v3499_v34, %v5500_v0  ;;  %v5490_v35 = vunpack.i.h.bf16 %v8085_v32  ;;  %v9288_v0 = vld [vmem:[#allocation39_spill] sm:$0xff]  ;;  %v3468_v52 = vsel %vm1345_vm4, %v9289_v18, %v5475_v43 }
 0x509   : > { %v5503_v28 = vpop.permute.xlu1 %5502  ;;  %3838 = vmatprep.mubr.f32.mxu0 %v3627_v47  ;;  %v8304_v11 = vsel %vm1580_vm13, %v9287_v22, %v2846_v56  ;;  %v3564_v31 = vsel %vm1345_vm4, %v9288_v0, %v5474_v51  ;;  %v5489_v34 = vunpack.i.l.bf16 %v8085_v32  ;;  %v3500_v56 = vsel %vm1773_vm1, %v3468_v52, %v5485_v38 }
 0x50a   : > { %v8291_v58 = vpop.permute.xlu0 %5602  ;;  %v5505_v63 = vunpack.i.h.bf16 %v5503_v28  ;;  %v5504_v62 = vunpack.i.l.bf16 %v5503_v28  ;;  %3839 = vmatmul.mubr.f32.gmra.mrb[76].mxu0 %v3531_v41  ;;  %v3596_v47 = vsel %vm1773_vm1, %v3564_v31, %v5484_v49  ;;  %v5494_v22 = vunpack.i.l.bf16 %v8252_v13 }
 0x50b   : > { %5852 = vrot.lane.b32.xlu1 %v5851_v24, %s5977_s5  ;;  %v5841_v51 = vpack.i.bf16 %v8188_v48, %v7780_v25  ;;  %v2843_v43 = vrot.slane %v8262_v21, 2  ;;  %v5861_v49 = vpack.i.bf16 %v8226_v5, %v8304_v11  ;;  %v3469_v38 = vsel %vm1345_vm4, %v7271_v7, %v5490_v35 }
 0x50c   : > { %5827 = vrot.lane.b32.xlu0 %v5826_v55, %s5978_s24  ;;  %v3628_v41 = vsel %vm1782_vm2, %v3596_v47, %v5504_v62  ;;  %v3532_v55 = vsel %vm1782_vm2, %v3500_v56, %v5505_v63  ;;  %v9290_v63 = vrot.slane %v7780_v25, 1  ;;  %v5520_v31 = vunpack.i.h.bf16 %v8132_v12 }
 0x50d   : > { %v5508_v32 = vpop.permute.xlu1 %5507  ;;  %3843 = vmatprep.mubr.f32.mxu0 %v3628_v41  ;;  %v5519_v18 = vunpack.i.l.bf16 %v8132_v12  ;;  %v5495_v52 = vunpack.i.h.bf16 %v8252_v13  ;;  %v3565_v7 = vsel %vm1345_vm4, %v7462_v10, %v5489_v34  ;;  %v5866_v35 = vpack.i.bf16 %v8268_v27, %v7799_v15 }
 0x50e   : > { %v8316_v28 = vpop.permute.xlu0 %5607  ;;  %v5510_v24 = vunpack.i.h.bf16 %v5508_v32  ;;  %v5509_v0 = vunpack.i.l.bf16 %v5508_v32  ;;  %3844 = vmatmul.mubr.f32.gmra.mrb[78].mxu0 %v3532_v55  ;;  %v8331_v62 = vsel %vm1555_vm0, %v2765_v59, %v9290_v63  ;;  %v3566_v12 = vsel %vm1345_vm4, %v7729_v45, %v5494_v22 }
 0x50f   : > { %5862 = vrot.lane.b32.xlu1 %v5861_v49, %s5978_s24  ;;  %5058 = vmatprep.mubr.msk.f32.mxu0 %vm1345_vm4, %v7485_v40  ;;  %v5514_v13 = vunpack.i.l.bf16 %v8106_v60  ;;  %v5846_v10 = vpack.i.bf16 %v8209_v37, %v8331_v62  ;;  %v9292_v32 = vrot.slane %v7780_v25, 2 }
 0x510   : > { %5842 = vrot.lane.b32.xlu0 %v5841_v51, %s5976_s26  ;;  %v3501_v59 = vsel %vm1773_vm1, %v3469_v38, %v5510_v24  ;;  %v3597_v56 = vsel %vm1773_vm1, %v3565_v7, %v5509_v0  ;;  %v9291_v51 = vld [vmem:[#allocation35_spill] sm:$0xff]  ;;  %v9293_v38 = vld [vmem:[#allocation26_spill] sm:$0xff]  ;;  %v5515_v0 = vunpack.i.h.bf16 %v8106_v60 }
 0x511   : > { %v5523_v41 = vpop.permute.xlu1 %5522  ;;  %v3629_v40 = vsel %vm1782_vm2, %v3597_v56, %v5519_v18  ;;  %v3533_v34 = vsel %vm1782_vm2, %v3501_v59, %v5520_v31  ;;  %v8359_v49 = vsel %vm1580_vm13, %v2843_v43, %v9292_v32  ;;  %v3598_v22 = vsel %vm1773_vm1, %v3566_v12, %v5514_v13  ;;  %v9296_v32 = vld [vmem:[#allocation28_spill] sm:$0xff] }
 0x512   : > { %v8344_v47 = vpop.permute.xlu0 %5617  ;;  %v5524_v55 = vunpack.i.l.bf16 %v5523_v41  ;;  %3848 = vmatprep.mubr.f32.mxu1 %v3629_v40  ;;  %5059 = vmatmul.mubr.msk.f32.vlgmr.msra.gmra.mrb[80].mxu0 %vm1345_vm4, %v9291_v51  ;;  %v5525_v45 = vunpack.i.h.bf16 %v5523_v41  ;;  %v3470_v24 = vsel %vm1345_vm4, %v9293_v38, %v5495_v52  ;;  %v5856_v18 = vpack.i.bf16 %v8257_v61, %v8359_v49 }
 0x513   : > { %5867 = vrot.lane.b32.xlu1 %v5866_v35, %s5976_s26  ;;  %3849 = vmatmul.mubr.f32.vlgmr.msra.gmra.mrb[34].mxu1 %v3533_v34  ;;  %v5871_v7 = vpack.i.bf16 %v9278_v57, %v8359_v49  ;;  %v5529_v52 = vunpack.i.l.bf16 %v8153_v19  ;;  %v9294_v35 = vld [vmem:[#allocation41_spill] sm:$0xff]  ;;  %v3502_v60 = vsel %vm1773_vm1, %v3470_v24, %v5515_v0  ;;  %v5876_v13 = vpack.i.bf16 %v8241_v3, %v7802_v30  ;;  %v9297_v24 = vld [vmem:[#allocation50_spill] sm:$0xff] }
 0x514   : > { %5847 = vrot.lane.b32.xlu0 %v5846_v10, %s5977_s5  ;;  %5061 = vmatprep.mubr.msk.f32.mxu0 %vm1345_vm4, %v7330_v9  ;;  %v3630_v43 = vsel %vm1782_vm2, %v3598_v22, %v5524_v55  ;;  %v5530_v9 = vunpack.i.h.bf16 %v8153_v19  ;;  %v3534_v59 = vsel %vm1782_vm2, %v3502_v60, %v5525_v45  ;;  %v5886_v19 = vpack.i.bf16 %v7780_v25, %v7943_v14  ;;  %v9295_v10 = vld [vmem:[#allocation36_spill] sm:$0xff] }
 0x515   : > { %v5533_v31 = vpop.permute.xlu1 %5532  ;;  %3853 = vmatprep.mubr.f32.mxu1 %v3630_v43  ;;  %v3567_v34 = vsel %vm1345_vm4, %v9295_v10, %v5529_v52  ;;  %v5550_v55 = vunpack.i.h.bf16 %v8194_v46  ;;  %v5881_v38 = vpack.i.bf16 %v8262_v21, %v7947_v8  ;;  %v5544_v43 = vunpack.i.l.bf16 %v8175_v29 }
 0x516   : > { %v8369_v63 = vpop.permute.xlu0 %5622  ;;  %5062 = vmatmul.mubr.msk.f32.gmra.mrb[82].mxu0 %vm1345_vm4, %v9294_v35  ;;  %v5534_v56 = vunpack.i.l.bf16 %v5533_v31  ;;  %v5535_v51 = vunpack.i.h.bf16 %v5533_v31  ;;  %v3471_v45 = vsel %vm1345_vm4, %v9296_v32, %v5530_v9  ;;  %v9298_v35 = vld [vmem:[#allocation20_spill] sm:$0xff]  ;;  %v5891_v10 = vpack.i.bf16 %v8331_v62, %v7953_v16 }
 0x517   : > { %5872 = vrot.lane.b32.xlu1 %v5871_v7, %s5976_s26  ;;  %3854 = vmatmul.mubr.f32.gmra.mrb[36].mxu1 %v3534_v59  ;;  %v9299_v59 = vld [vmem:[#allocation27_spill] sm:$0xff] }
 0x518   : > { %5857 = vrot.lane.b32.xlu0 %v5856_v18, %s5978_s24  ;;  %5064 = vmatprep.mubr.msk.f32.mxu0 %vm1345_vm4, %v7434_v39  ;;  %v5549_v39 = vunpack.i.l.bf16 %v8194_v46  ;;  %v3568_v0 = vsel %vm1345_vm4, %v9297_v24, %v5534_v56  ;;  %v3472_v56 = vsel %vm1345_vm4, %v9299_v59, %v5535_v51  ;;  %v5559_v51 = vunpack.i.l.bf16 %v8214_v6 }
 0x519   : > { %v5538_v12 = vpop.permute.xlu1 %5537  ;;  %v3600_v9 = vsel %vm1773_vm1, %v3568_v0, %v5544_v43  ;;  %v9303_v0 = vld [vmem:[#allocation51_spill] sm:$0xff]  ;;  %v5579_v43 = vunpack.i.l.bf16 %v8246_v50 }
 0x51a   : > { %v8386_v57 = vpop.permute.xlu0 %5627  ;;  %v5540_v41 = vunpack.i.h.bf16 %v5538_v12  ;;  %v5539_v40 = vunpack.i.l.bf16 %v5538_v12  ;;  %5065 = vmatmul.mubr.msk.f32.gmra.mrb[84].mxu0 %vm1345_vm4, %v7625_v42  ;;  %v5545_v12 = vunpack.i.h.bf16 %v8175_v29 }
 0x51b   : > { %5887 = vrot.lane.b32.xlu1 %v5886_v19, %s5977_s5  ;;  %5067 = vmatprep.mubr.msk.f32.mxu0 %vm1345_vm4, %v7583_v26  ;;  %v5901_v26 = vpack.i.bf16 %v8283_v4, %v7950_v1 }
 0x51c   : > { %5877 = vrot.lane.b32.xlu0 %v5876_v13, %s5976_s26  ;;  %v3599_v42 = vsel %vm1773_vm1, %v3567_v34, %v5539_v40  ;;  %v3503_v46 = vsel %vm1773_vm1, %v3471_v45, %v5540_v41  ;;  %v9300_v13 = vld [vmem:[#allocation18_spill] sm:$0xff]  ;;  %v9301_v34 = vld [vmem:[#allocation12_spill] sm:$0xff]  ;;  %v3504_v29 = vsel %vm1773_vm1, %v3472_v56, %v5545_v12 }
 0x51d   : > { %v5553_v31 = vpop.permute.xlu1 %5552  ;;  %v3631_v18 = vsel %vm1782_vm2, %v3599_v42, %v5549_v39  ;;  %v3535_v7 = vsel %vm1782_vm2, %v3503_v46, %v5550_v55  ;;  %v5906_v55 = vpack.i.bf16 %v7802_v30, %v9301_v34  ;;  %v5560_v39 = vunpack.i.h.bf16 %v8214_v6  ;;  %v9302_v42 = vld [vmem:[#allocation22_spill] sm:$0xff] }
 0x51e   : > { %v8404_v22 = vpop.permute.xlu0 %5632  ;;  %v5554_v52 = vunpack.i.l.bf16 %v5553_v31  ;;  %3858 = vmatprep.mubr.f32.mxu1 %v3631_v18  ;;  %5068 = vmatmul.mubr.msk.f32.gmra.mrb[86].mxu0 %vm1345_vm4, %v9298_v35  ;;  %v5555_v60 = vunpack.i.h.bf16 %v5553_v31  ;;  %v5580_v6 = vunpack.i.h.bf16 %v8246_v50  ;;  %v9304_v31 = vld [vmem:[#allocation25_spill] sm:$0xff]  ;;  %v9308_v35 = vld [vmem:[#allocation32_spill] sm:$0xff]  ;;  %v9309_v56 = vld [vmem:[#allocation54_spill] sm:$0xff] }
 0x51f   : > { %5902 = vrot.lane.b32.xlu1 %v5901_v26, %s5978_s24  ;;  %3859 = vmatmul.mubr.f32.gmra.mrb[38].mxu1 %v3535_v7  ;;  %v9305_v18 = vpack.i.bf16 %v7799_v15, %v9304_v31  ;;  %v9306_v26 = vld [vmem:[#allocation57_spill] sm:$0xff]  ;;  %v9307_v7 = vld [vmem:[#allocation44_spill] sm:$0xff]  ;;  %v5574_v15 = vunpack.i.l.bf16 %v8229_v44 }
 0x520   : > { %5882 = vrot.lane.b32.xlu0 %v5881_v38, %s5977_s5  ;;  %5070 = vmatprep.mubr.msk.f32.mxu0 %vm1345_vm4, %v9300_v13  ;;  %v3632_v41 = vsel %vm1782_vm2, %v3600_v9, %v5554_v52  ;;  %v3536_v32 = vsel %vm1782_vm2, %v3504_v29, %v5555_v60  ;;  %v3569_v52 = vsel %vm1345_vm4, %v9307_v7, %v5559_v51  ;;  %v9311_v29 = vld [vmem:[#allocation31_spill] sm:$0xff]  ;;  %v5575_v51 = vunpack.i.h.bf16 %v8229_v44 }
 0x521   : > { %v5563_v40 = vpop.permute.xlu1 %5562  ;;  %3863 = vmatprep.mubr.f32.mxu1 %v3632_v41  ;;  %v3473_v60 = vsel %vm1345_vm4, %v9308_v35, %v5560_v39 }
 0x522   : > { %v8427_v19 = vpop.permute.xlu0 %5637  ;;  %5071 = vmatmul.mubr.msk.f32.gmra.mrb[88].mxu0 %vm1345_vm4, %v7851_v23  ;;  %v5564_v45 = vunpack.i.l.bf16 %v5563_v40  ;;  %v5565_v38 = vunpack.i.h.bf16 %v5563_v40 }
 0x523   : > { %5907 = vrot.lane.b32.xlu1 %v5906_v55, %s5977_s5  ;;  %3864 = vmatmul.mubr.f32.gmra.mrb[40].mxu1 %v3536_v32  ;;  %v9310_v55 = vld [vmem:[#allocation58_spill] sm:$0xff] }
 0x524   : > { %5892 = vrot.lane.b32.xlu0 %v5891_v10, %s5978_s24  ;;  %5073 = vmatprep.mubr.msk.f32.mxu0 %vm1345_vm4, %v9302_v42  ;;  %v3570_v12 = vsel %vm1345_vm4, %v9309_v56, %v5564_v45  ;;  %v3474_v39 = vsel %vm1345_vm4, %v9311_v29, %v5565_v38  ;;  %v9312_v45 = vld [vmem:[#allocation65_spill] sm:$0xff]  ;;  %v9313_v38 = vld [vmem:[#allocation62_spill] sm:$0xff]  ;;  %s9354_s24 = sshll.u32 %s6132_s19, 8  ;;  %s4372_s19 = sshll.u32 %s6263_s22, 4  ;;  %s8805_s19 = int_to_ptr.vmem [resolvable:$true] %s4372_s19 }
 0x525   : > { %v5568_v23 = vpop.permute.xlu1 %5567  ;;  %v3602_v32 = vsel %vm1773_vm1, %v3570_v12, %v5574_v15  ;;  %v9317_v12 = vld [vmem:[#allocation38_spill] sm:$0xff]  ;;  %s8766_s0 = scalar_lea.vmem %s8995_s15, %s9354_s24  ;;  %s8812_s22 = scalar_lea.sflag [#allocation3], %s9355_s28 }
 0x526   : > { %v8444_v30 = vpop.permute.xlu0 %5642  ;;  %v5570_v46 = vunpack.i.h.bf16 %v5568_v23  ;;  %v5569_v24 = vunpack.i.l.bf16 %v5568_v23  ;;  %5074 = vmatmul.mubr.msk.f32.gmra.mrb[90].mxu0 %vm1345_vm4, %v9303_v0  ;;  %v5590_v0 = vunpack.i.h.bf16 %v8270_v33  ;;  %s5911_s21 = scalar_lea.vmem %s8805_s19, 256 }
 0x527   : > { %5076 = vmatprep.mubr.msk.f32.mxu0 %vm1345_vm4, %v9306_v26  ;;  %p5912_p11 = scmp.ne.s32.totalorder %s8805_s19, %s5911_s21 }
 0x528   : > { %5897 = vrot.lane.b32.xlu0 %v9305_v18, %s5977_s5  ;;  %v3601_v59 = vsel %vm1773_vm1, %v3569_v52, %v5569_v24  ;;  %v3505_v50 = vsel %vm1773_vm1, %v3473_v60, %v5570_v46  ;;  %v3506_v24 = vsel %vm1773_vm1, %v3474_v39, %v5575_v51  ;;  %v9315_v60 = vld [vmem:[#allocation67_spill] sm:$0xff]  ;;  %v3475_v15 = vsel %vm1345_vm4, %v9317_v12, %v5590_v0 }
 0x529   : > { %v5583_v13 = vpop.permute.xlu1 %5582  ;;  %v3633_v41 = vsel %vm1782_vm2, %v3601_v59, %v5579_v43  ;;  %v3537_v40 = vsel %vm1782_vm2, %v3505_v50, %v5580_v6  ;;  %v5589_v6 = vunpack.i.l.bf16 %v8270_v33  ;;  %v9314_v43 = vld [vmem:[#allocation70_spill] sm:$0xff]  ;;  %v5610_v59 = vunpack.i.h.bf16 %v8316_v28  ;;  %v9316_v33 = vld [vmem:[#allocation49_spill] sm:$0xff]  ;;  %p5913_p12 = pnand %p5912_p11, %p6111_p5 }
 0x52a   : > { %v8460_v9 = vpop.permute.xlu0 %5647  ;;  %v5585_v10 = vunpack.i.h.bf16 %v5583_v13  ;;  %v5584_v34 = vunpack.i.l.bf16 %v5583_v13  ;;  %3868 = vmatprep.mubr.f32.mxu1 %v3633_v41  ;;  %5077 = vmatmul.mubr.msk.f32.gmra.mrb[92].mxu0 %vm1345_vm4, %v9310_v55  ;;  %v5609_v50 = vunpack.i.l.bf16 %v8316_v28  ;;  %v5604_v28 = vunpack.i.l.bf16 %v8291_v58 }
 0x52b   : > { %3869 = vmatmul.mubr.f32.gmra.mrb[42].mxu1 %v3537_v40  ;;  %5079 = vmatprep.mubr.msk.f32.mxu0 %vm1345_vm4, %v9312_v45  ;;  %v3571_v56 = vsel %vm1345_vm4, %v9316_v33, %v5589_v6  ;;  %v5619_v55 = vunpack.i.l.bf16 %v8344_v47  ;;  %v5629_v51 = vunpack.i.l.bf16 %v8386_v57  ;;  %v5620_v0 = vunpack.i.h.bf16 %v8344_v47  ;;  %p5914_p13 = pneg %p5913_p12 }
 0x52c   : > { %3050 = vrot.lane.b32.xlu0 %v8304_v11, %s5976_s26  ;;  %v3634_v23 = vsel %vm1782_vm2, %v3602_v32, %v5584_v34  ;;  %v3538_v44 = vsel %vm1782_vm2, %v3506_v24, %v5585_v10  ;;  %v9318_v10 = vld [vmem:[#allocation52_spill] sm:$0xff]  ;;  %v5605_v24 = vunpack.i.h.bf16 %v8291_v58  ;;  %v5640_v47 = vunpack.i.h.bf16 %v8427_v19  ;;  %s5980_s26 = smov [#allocation2]  }
 0x52d   : > { %v5593_v46 = vpop.permute.xlu1 %5592  ;;  %3873 = vmatprep.mubr.f32.mxu1 %v3634_v23  ;;  %v9319_v23 = vld [vmem:[#allocation34_spill] sm:$0xff]  ;;  %v5625_v33 = vunpack.i.h.bf16 %v8369_v63  ;;  %v5635_v12 = vunpack.i.h.bf16 %v8404_v22  ;;  %s5915_s5 = sshll.u32 %s5980_s26, 4  ;;  %s5916_s5 = int_to_ptr.vmem [resolvable:$false] %s5915_s5 }
 0x52e   : > { %v8479_v42 = vpop.permute.xlu0 %5652  ;;  %5080 = vmatmul.mubr.msk.f32.gmra.mrb[94].mxu0 %vm1345_vm4, %v9313_v38  ;;  %v5594_v31 = vunpack.i.l.bf16 %v5593_v46  ;;  %v5595_v7 = vunpack.i.h.bf16 %v5593_v46  ;;  %v5639_v38 = vunpack.i.l.bf16 %v8427_v19  ;;  %v9322_v19 = vld [vmem:[#allocation47_spill] sm:$0xff]  ;;  %s5917_s24 = scalar_lea.vmem %s5916_s5, 512  ;;  %p5918_p0 = scmp.lt.s32.totalorder %s8805_s19, %s5916_s5 }
 0x52f   : > { %3874 = vmatmul.mubr.f32.gmra.mrb[44].mxu1 %v3538_v44  ;;  %5082 = vmatprep.mubr.msk.f32.mxu0 %vm1345_vm4, %v9314_v43  ;;  %p5919_p1 = scmp.lt.s32.totalorder %s5917_s24, %s5911_s21 }
 0x530   : > { %v3572_v34 = vsel %vm1345_vm4, %v9318_v10, %v5594_v31  ;;  %v3476_v46 = vsel %vm1345_vm4, %v9319_v23, %v5595_v7  ;;  %v5630_v31 = vunpack.i.h.bf16 %v8386_v57  ;;  %v9320_v7 = vld [vmem:[#allocation21_spill] sm:$0xff]  ;;  %v5644_v57 = vunpack.i.l.bf16 %v8444_v30  ;;  %v9323_v10 = vld [vmem:[#allocation59_spill] sm:$0xff] }
 0x531   : > { %v5598_v26 = vpop.permute.xlu1 %5597  ;;  %v3604_v44 = vsel %vm1773_vm1, %v3572_v34, %v5604_v28  ;;  %v3508_v58 = vsel %vm1773_vm1, %v3476_v46, %v5605_v24  ;;  %v5645_v28 = vunpack.i.h.bf16 %v8444_v30  ;;  %v9325_v24 = vld [vmem:[#allocation55_spill] sm:$0xff]  ;;  %p5920_p2 = por %p5919_p1, %p5918_p0 }
 0x532   : > { %v8490_v18 = vpop.permute.xlu0 %5657  ;;  %v5600_v52 = vunpack.i.h.bf16 %v5598_v26  ;;  %v5599_v35 = vunpack.i.l.bf16 %v5598_v26  ;;  %5083 = vmatmul.mubr.msk.f32.gmra.mrb[96].mxu0 %vm1345_vm4, %v9315_v60 }
 0x533   : > { %5085 = vmatprep.mubr.msk.f32.mxu0 %vm1345_vm4, %v8092_v54  ;;  %p5921_p3 = pnand %p5920_p2, %p5914_p13 }
 0x534   : > { %v3603_v41 = vsel %vm1773_vm1, %v3571_v56, %v5599_v35  ;;  %v3507_v40 = vsel %vm1773_vm1, %v3475_v15, %v5600_v52  ;;  %v5634_v52 = vunpack.i.l.bf16 %v8404_v22  ;;  %v5649_v15 = vunpack.i.l.bf16 %v8460_v9 }
 0x535   : > { %v5613_v54 = vpop.permute.xlu1 %5612  ;;  %v3635_v29 = vsel %vm1782_vm2, %v3603_v41, %v5609_v50  ;;  %v3539_v39 = vsel %vm1782_vm2, %v3507_v40, %v5610_v59  ;;  %v9321_v59 = vld [vmem:[#allocation43_spill] sm:$0xff] }
 0x536   : > { %v8502_v13 = vpop.permute.xlu0 %5662  ;;  %v5615_v32 = vunpack.i.h.bf16 %v5613_v54  ;;  %v5614_v45 = vunpack.i.l.bf16 %v5613_v54  ;;  %3878 = vmatprep.mubr.f32.mxu1 %v3635_v29  ;;  %5086 = vmatmul.mubr.msk.f32.gmra.mrb[98].mxu0 %vm1345_vm4, %v8061_v2  ;;  %v5624_v2 = vunpack.i.l.bf16 %v8369_v63  ;;  %v5659_v63 = vunpack.i.l.bf16 %v8490_v18 }
 0x537   : > { %3879 = vmatmul.mubr.f32.gmra.mrb[46].mxu1 %v3539_v39  ;;  %5088 = vmatprep.mubr.msk.f32.mxu0 %vm1345_vm4, %v8160_v53  ;;  %v3573_v53 = vsel %vm1345_vm4, %v9320_v7, %v5619_v55  ;;  %v5650_v39 = vunpack.i.h.bf16 %v8460_v9  ;;  %v5665_v7 = vunpack.i.h.bf16 %v8502_v13 }
 0x538   : > { %v3636_v43 = vsel %vm1782_vm2, %v3604_v44, %v5614_v45  ;;  %v3540_v35 = vsel %vm1782_vm2, %v3508_v58, %v5615_v32  ;;  %v3605_v60 = vsel %vm1773_vm1, %v3573_v53, %v5629_v51  ;;  %v3574_v34 = vsel %vm1345_vm4, %v9323_v10, %v5624_v2  ;;  %v9324_v51 = vld [vmem:[#allocation37_spill] sm:$0xff]  ;;  %v9326_v58 = vld [vmem:[#allocation14_spill] sm:$0xff] }
 0x539   : > { %v8528_v26 = vpop.permute.xlu1 %5682  ;;  %3883 = vmatprep.mubr.f32.mxu1 %v3636_v43  ;;  %v3637_v50 = vsel %vm1782_vm2, %v3605_v60, %v5639_v38  ;;  %v3606_v22 = vsel %vm1773_vm1, %v3574_v34, %v5634_v52  ;;  %v3478_v32 = vsel %vm1345_vm4, %v9324_v51, %v5625_v33  ;;  %v5660_v45 = vunpack.i.h.bf16 %v8490_v18  ;;  %v9332_v51 = vld [vmem:[#allocation29_spill] sm:$0xff] }
 0x53a   : > { %v8523_v6 = vpop.permute.xlu0 %5667  ;;  %5089 = vmatmul.mubr.msk.f32.gmra.mrb[100].mxu0 %vm1345_vm4, %v8113_v17  ;;  %v3477_v17 = vsel %vm1345_vm4, %v9322_v19, %v5620_v0  ;;  %v3638_v29 = vsel %vm1782_vm2, %v3606_v22, %v5644_v57  ;;  %v3510_v46 = vsel %vm1773_vm1, %v3478_v32, %v5635_v12  ;;  %v5664_v38 = vunpack.i.l.bf16 %v8502_v13 }
 0x53b   : > { %3884 = vmatmul.mubr.f32.gmra.mrb[48].mxu1 %v3540_v35  ;;  %5091 = vmatprep.mubr.msk.f32.mxu0 %vm1345_vm4, %v9321_v59  ;;  %v3509_v40 = vsel %vm1773_vm1, %v3477_v17, %v5630_v31  ;;  %v5669_v54 = vunpack.i.l.bf16 %v8523_v6  ;;  %v5670_v9 = vunpack.i.h.bf16 %v8523_v6  ;;  %v3542_v44 = vsel %vm1782_vm2, %v3510_v46, %v5645_v28  ;;  %v9329_v17 = vld [vmem:[#allocation40_spill] sm:$0xff] }
 0x53c   : > { %3888 = vmatprep.mubr.f32.mxu1 %v3637_v50  ;;  %v3541_v55 = vsel %vm1782_vm2, %v3509_v40, %v5640_v47  ;;  %v5655_v31 = vunpack.i.h.bf16 %v8479_v42  ;;  %v9327_v47 = vld [vmem:[#allocation56_spill] sm:$0xff]  ;;  %v5684_v59 = vunpack.i.l.bf16 %v8528_v26  ;;  %v9328_v50 = vld [vmem:[#allocation61_spill] sm:$0xff] }
 0x53d   : > { %v8550_v41 = vpop.permute.xlu1 %5687 }
 0x53e   : > { %v8544_v56 = vpop.permute.xlu0 %5672  ;;  %5092 = vmatmul.mubr.msk.f32.gmra.mrb[102].mxu0 %vm1345_vm4, %v8188_v48  ;;  %v5654_v48 = vunpack.i.l.bf16 %v8479_v42  ;;  %v3480_v12 = vsel %vm1345_vm4, %v9329_v17, %v5655_v31 }
 0x53f   : > { %3889 = vmatmul.mubr.f32.gmra.mrb[50].mxu1 %v3541_v55  ;;  %5094 = vmatprep.mubr.msk.f32.mxu0 %vm1345_vm4, %v8268_v27  ;;  %v3575_v27 = vsel %vm1345_vm4, %v9325_v24, %v5649_v15  ;;  %v5674_v18 = vunpack.i.l.bf16 %v8544_v56  ;;  %v5685_v15 = vunpack.i.h.bf16 %v8528_v26  ;;  %v3512_v34 = vsel %vm1773_vm1, %v3480_v12, %v5665_v7  ;;  %v9330_v55 = vld [vmem:[#allocation53_spill] sm:$0xff]  ;;  %v9333_v24 = vld [vmem:[#allocation42_spill] sm:$0xff]  ;;  %v9335_v7 = vld [vmem:[#allocation68_spill] sm:$0xff] }
 0x540   : > { %3893 = vmatprep.mubr.f32.mxu1 %v3638_v29  ;;  %v3607_v0 = vsel %vm1773_vm1, %v3575_v27, %v5659_v63  ;;  %v3576_v35 = vsel %vm1345_vm4, %v9327_v47, %v5654_v48  ;;  %v9336_v47 = vld [vmem:[#allocation60_spill] sm:$0xff] }
 0x541   : > { %v8570_v23 = vpop.permute.xlu1 %5702  ;;  %v3639_v2 = vsel %vm1782_vm2, %v3607_v0, %v5669_v54  ;;  %v3608_v57 = vsel %vm1773_vm1, %v3576_v35, %v5664_v38  ;;  %v5690_v54 = vunpack.i.h.bf16 %v8550_v41  ;;  %v3482_v27 = vsel %vm1345_vm4, %v9333_v24, %v5685_v15  ;;  %v9334_v38 = vld [vmem:[#allocation33_spill] sm:$0xff] }
 0x542   : > { %v5678_v30 = vpop.permute.xlu0 %5677  ;;  %5095 = vmatmul.mubr.msk.f32.gmra.mrb[104].mxu0 %vm1345_vm4, %v8241_v3  ;;  %v3479_v3 = vsel %vm1345_vm4, %v9326_v58, %v5650_v39  ;;  %v3640_v13 = vsel %vm1782_vm2, %v3608_v57, %v5674_v18  ;;  %v9331_v39 = vld [vmem:[#allocation63_spill] sm:$0xff]  ;;  %v5704_v48 = vunpack.i.l.bf16 %v8570_v23 }
 0x543   : > { %v5679_v43 = vunpack.i.l.bf16 %v5678_v30  ;;  %3894 = vmatmul.mubr.f32.gmra.mrb[52].mxu1 %v3542_v44  ;;  %5097 = vmatprep.mubr.msk.f32.mxu0 %vm1345_vm4, %v8359_v49  ;;  %v3511_v52 = vsel %vm1773_vm1, %v3479_v3, %v5660_v45  ;;  %v5675_v49 = vunpack.i.h.bf16 %v8544_v56  ;;  %v5680_v60 = vunpack.i.h.bf16 %v5678_v30 }
 0x544   : > { %3898 = vmatprep.mubr.f32.mxu1 %v3639_v2  ;;  %v3543_v42 = vsel %vm1782_vm2, %v3511_v52, %v5670_v9  ;;  %v5689_v56 = vunpack.i.l.bf16 %v8550_v41  ;;  %v3578_v30 = vsel %vm1345_vm4, %v9331_v39, %v5684_v59 }
 0x545   : > { %v8589_v53 = vpop.permute.xlu1 %5712  ;;  %v3577_v33 = vsel %vm1345_vm4, %v9328_v50, %v5679_v43  ;;  %v3544_v28 = vsel %vm1782_vm2, %v3512_v34, %v5675_v49  ;;  %v3481_v22 = vsel %vm1345_vm4, %v9330_v55, %v5680_v60  ;;  %v5705_v43 = vunpack.i.h.bf16 %v8570_v23 }
 0x546   : > { %v5693_v6 = vpop.permute.xlu0 %5692  ;;  %5098 = vmatmul.mubr.msk.f32.gmra.mrb[106].mxu0 %vm1345_vm4, %v8304_v11  ;;  %v3609_v63 = vsel %vm1773_vm1, %v3577_v33, %v5689_v56  ;;  %v3513_v46 = vsel %vm1773_vm1, %v3481_v22, %v5690_v54  ;;  %v5714_v31 = vunpack.i.l.bf16 %v8589_v53  ;;  %v5715_v49 = vunpack.i.h.bf16 %v8589_v53  ;;  %v9337_v33 = vld [vmem:[#allocation66_spill] sm:$0xff] }
 0x547   : > { %3899 = vmatmul.mubr.f32.gmra.mrb[54].mxu1 %v3543_v42  ;;  %5100 = vmatprep.mubr.msk.f32.mxu0 %vm1345_vm4, %v7953_v16  ;;  %v5694_v19 = vunpack.i.l.bf16 %v5693_v6  ;;  %v5695_v29 = vunpack.i.h.bf16 %v5693_v6 }
 0x548   : > { %3903 = vmatprep.mubr.f32.mxu1 %v3640_v13  ;;  %v3580_v56 = vsel %vm1345_vm4, %v9337_v33, %v5714_v31 }
 0x549   : > { %v5718_v10 = vpop.permute.xlu1 %5717  ;;  %v3610_v32 = vsel %vm1773_vm1, %v3578_v30, %v5694_v19  ;;  %v3514_v18 = vsel %vm1773_vm1, %v3482_v27, %v5695_v29 }
 0x54a   : > { %v5698_v11 = vpop.permute.xlu0 %5697  ;;  %5101 = vmatmul.mubr.msk.f32.gmra.mrb[108].mxu0 %vm1345_vm4, %v7950_v1  ;;  %v3642_v0 = vsel %vm1782_vm2, %v3610_v32, %v5704_v48  ;;  %v3546_v3 = vsel %vm1782_vm2, %v3514_v18, %v5705_v43  ;;  %v5720_v60 = vunpack.i.h.bf16 %v5718_v10  ;;  %v5719_v42 = vunpack.i.l.bf16 %v5718_v10  ;;  %v9338_v10 = vld [vmem:[#allocation45_spill] sm:$0xff]  ;;  %v9340_v48 = vld [vmem:[#allocation64_spill] sm:$0xff]  ;;  %v9341_v18 = vld [vmem:[#allocation71_spill] sm:$0xff] }
 0x54b   : > { %v5699_v40 = vunpack.i.l.bf16 %v5698_v11  ;;  %v5700_v16 = vunpack.i.h.bf16 %v5698_v11  ;;  %3904 = vmatmul.mubr.f32.gmra.mrb[56].mxu1 %v3544_v28  ;;  %5103 = vmatprep.mubr.msk.f32.mxu0 %vm1345_vm4, %v9332_v51  ;;  %v3484_v34 = vsel %vm1345_vm4, %v9338_v10, %v5715_v49 }
 0x54d   : > { %v3641_v26 = vsel %vm1782_vm2, %v3609_v63, %v5699_v40  ;;  %v5733_v45 = vpop.permute.xlu1 %5732  ;;  %v3545_v41 = vsel %vm1782_vm2, %v3513_v46, %v5700_v16 }
 0x54e   : > { %v5708_v1 = vpop.permute.xlu0 %5707  ;;  %3908 = vmatprep.mubr.f32.mxu1 %v3641_v26  ;;  %5104 = vmatmul.mubr.msk.f32.gmra.mrb[110].mxu0 %vm1345_vm4, %v9334_v38  ;;  %v5734_v12 = vunpack.i.l.bf16 %v5733_v45  ;;  %v5735_v55 = vunpack.i.h.bf16 %v5733_v45 }
 0x54f   : > { %v5710_v9 = vunpack.i.h.bf16 %v5708_v1  ;;  %v5709_v44 = vunpack.i.l.bf16 %v5708_v1  ;;  %3909 = vmatmul.mubr.f32.gmra.mrb[58].mxu1 %v3545_v41  ;;  %v9339_v1 = vld [vmem:[#allocation72_spill] sm:$0xff] }
 0x550   : > { %3913 = vmatprep.mubr.f32.mxu1 %v3642_v0 }
 0x551   : > { %v5743_v6 = vpop.permute.xlu1 %5742  ;;  %v3579_v52 = vsel %vm1345_vm4, %v9335_v7, %v5709_v44  ;;  %v3483_v35 = vsel %vm1345_vm4, %v9336_v47, %v5710_v9  ;;  %v9342_v47 = vld [vmem:[#allocation48_spill] sm:$0xff] }
 0x552   : > { %v5723_v2 = vpop.permute.xlu0 %5722  ;;  %v3611_v19 = vsel %vm1773_vm1, %v3579_v52, %v5719_v42  ;;  %v3515_v11 = vsel %vm1773_vm1, %v3483_v35, %v5720_v60  ;;  %v5744_v39 = vunpack.i.l.bf16 %v5743_v6  ;;  %v5745_v41 = vunpack.i.h.bf16 %v5743_v6 }
 0x553   : > { %v5724_v58 = vunpack.i.l.bf16 %v5723_v2  ;;  %3914 = vmatmul.mubr.f32.gmra.mrb[60].mxu1 %v3546_v3  ;;  %v5725_v57 = vunpack.i.h.bf16 %v5723_v2 }
 0x554   : > { %v3582_v43 = vsel %vm1345_vm4, %v9341_v18, %v5744_v39  ;;  %v3486_v35 = vsel %vm1345_vm4, %v9342_v47, %v5745_v41 }
 0x555   : > { %v5748_v50 = vpop.permute.xlu1 %5747  ;;  %v3612_v17 = vsel %vm1773_vm1, %v3580_v56, %v5724_v58  ;;  %v3516_v63 = vsel %vm1773_vm1, %v3484_v34, %v5725_v57 }
 0x556   : > { %v5728_v23 = vpop.permute.xlu0 %5727  ;;  %v3644_v28 = vsel %vm1782_vm2, %v3612_v17, %v5734_v12  ;;  %v3548_v26 = vsel %vm1782_vm2, %v3516_v63, %v5735_v55  ;;  %v5750_v24 = vunpack.i.h.bf16 %v5748_v50  ;;  %v5749_v27 = vunpack.i.l.bf16 %v5748_v50  ;;  %v9344_v12 = vld [vmem:[#allocation69_spill] sm:$0xff] }
 0x557   : > { %v5730_v59 = vunpack.i.h.bf16 %v5728_v23  ;;  %v5729_v13 = vunpack.i.l.bf16 %v5728_v23 }
 0x559   : > { %v3643_v15 = vsel %vm1782_vm2, %v3611_v19, %v5729_v13  ;;  %v3547_v53 = vsel %vm1782_vm2, %v3515_v11, %v5730_v59  ;;  %v5763_v16 = vpop.permute.xlu1 %5762  ;;  %v9343_v11 = vld [vmem:[#allocation75_spill] sm:$0xff] }
 0x55a   : > { %v5738_v40 = vpop.permute.xlu0 %5737  ;;  %3918 = vmatprep.mubr.f32.mxu1 %v3643_v15  ;;  %v5764_v3 = vunpack.i.l.bf16 %v5763_v16  ;;  %v5765_v23 = vunpack.i.h.bf16 %v5763_v16 }
 0x55b   : > { %3919 = vmatmul.mubr.f32.gmra.mrb[62].mxu1 %v3547_v53  ;;  %v5740_v22 = vunpack.i.h.bf16 %v5738_v40  ;;  %v5739_v54 = vunpack.i.l.bf16 %v5738_v40 }
 0x55c   : > { %3923 = vmatprep.mubr.f32.mxu1 %v3644_v28 }
 0x55d   : > { %v5773_v30 = vpop.permute.xlu1 %5772  ;;  %v3581_v32 = vsel %vm1345_vm4, %v9339_v1, %v5739_v54  ;;  %v3485_v46 = vsel %vm1345_vm4, %v9340_v48, %v5740_v22  ;;  %v9345_v22 = vld [vmem:[#allocation73_spill] sm:$0xff]  ;;  %v9346_v48 = vld [vmem:[#allocation16_spill] sm:$0xff] }
 0x55e   : > { %v5753_v29 = vpop.permute.xlu0 %5752  ;;  %v3613_v2 = vsel %vm1773_vm1, %v3581_v32, %v5749_v27  ;;  %v3517_v31 = vsel %vm1773_vm1, %v3485_v46, %v5750_v24  ;;  %v5774_v33 = vunpack.i.l.bf16 %v5773_v30  ;;  %v5775_v53 = vunpack.i.h.bf16 %v5773_v30 }
 0x55f   : > { %3924 = vmatmul.mubr.f32.gmra.mrb[64].mxu1 %v3548_v26  ;;  %v5754_v51 = vunpack.i.l.bf16 %v5753_v29  ;;  %v5755_v38 = vunpack.i.h.bf16 %v5753_v29 }
 0x560   : > { %v3584_v54 = vsel %vm1345_vm4, %v9345_v22, %v5774_v33  ;;  %v3488_v46 = vsel %vm1345_vm4, %v9346_v48, %v5775_v53 }
 0x561   : > { %v5778_v0 = vpop.permute.xlu1 %5777  ;;  %v3614_v58 = vsel %vm1773_vm1, %v3582_v43, %v5754_v51  ;;  %v3518_v42 = vsel %vm1773_vm1, %v3486_v35, %v5755_v38 }
 0x562   : > { %v5758_v45 = vpop.permute.xlu0 %5757  ;;  %v3646_v60 = vsel %vm1782_vm2, %v3614_v58, %v5764_v3  ;;  %v3550_v50 = vsel %vm1782_vm2, %v3518_v42, %v5765_v23  ;;  %v5780_v40 = vunpack.i.h.bf16 %v5778_v0  ;;  %v5779_v10 = vunpack.i.l.bf16 %v5778_v0  ;;  %v9347_v58 = vld [vmem:[#allocation17_spill] sm:$0xff]  ;;  %v9348_v23 = vld [vmem:[#allocation11_spill] sm:$0xff] }
 0x563   : > { %v5760_v9 = vunpack.i.h.bf16 %v5758_v45  ;;  %v5759_v44 = vunpack.i.l.bf16 %v5758_v45 }
 0x565   : > { %v3645_v7 = vsel %vm1782_vm2, %v3613_v2, %v5759_v44  ;;  %v3549_v6 = vsel %vm1782_vm2, %v3517_v31, %v5760_v9  ;;  %v5793_v49 = vpop.permute.xlu1 %5792 }
 0x566   : > { %v5768_v52 = vpop.permute.xlu0 %5767  ;;  %3928 = vmatprep.mubr.f32.mxu1 %v3645_v7  ;;  %v5794_v51 = vunpack.i.l.bf16 %v5793_v49  ;;  %v5795_v45 = vunpack.i.h.bf16 %v5793_v49 }
 0x567   : > { %3929 = vmatmul.mubr.f32.gmra.mrb[66].mxu1 %v3549_v6  ;;  %v5770_v57 = vunpack.i.h.bf16 %v5768_v52  ;;  %v5769_v59 = vunpack.i.l.bf16 %v5768_v52 }
 0x568   : > { %3933 = vmatprep.mubr.f32.mxu1 %v3646_v60 }
 0x569   : > { %v5803_v56 = vpop.permute.xlu1 %5802  ;;  %v3583_v17 = vsel %vm1345_vm4, %v9343_v11, %v5769_v59  ;;  %v3487_v15 = vsel %vm1345_vm4, %v9344_v12, %v5770_v57  ;;  %v9349_v11 = vld [vmem:[#allocation13_spill] sm:$0xff] }
 0x56a   : > { %v5783_v13 = vpop.permute.xlu0 %5782  ;;  %v3615_v29 = vsel %vm1773_vm1, %v3583_v17, %v5779_v10  ;;  %v3519_v26 = vsel %vm1773_vm1, %v3487_v15, %v5780_v40  ;;  %v5804_v18 = vunpack.i.l.bf16 %v5803_v56  ;;  %v5805_v7 = vunpack.i.h.bf16 %v5803_v56 }
 0x56b   : > { %3934 = vmatmul.mubr.f32.gmra.mrb[68].mxu1 %v3550_v50  ;;  %v5784_v19 = vunpack.i.l.bf16 %v5783_v13  ;;  %v5785_v16 = vunpack.i.h.bf16 %v5783_v13 }
 0x56c   : > { %v3586_v57 = vsel %vm1345_vm4, %v9348_v23, %v5804_v18  ;;  %v3490_v17 = vsel %vm1345_vm4, %v9349_v11, %v5805_v7 }
 0x56d   : > { %v5808_v55 = vpop.permute.xlu1 %5807  ;;  %v3616_v39 = vsel %vm1773_vm1, %v3584_v54, %v5784_v19  ;;  %v3520_v27 = vsel %vm1773_vm1, %v3488_v46, %v5785_v16 }
 0x56e   : > { %v5788_v34 = vpop.permute.xlu0 %5787  ;;  %v3648_v24 = vsel %vm1782_vm2, %v3616_v39, %v5794_v51  ;;  %v3552_v0 = vsel %vm1782_vm2, %v3520_v27, %v5795_v45  ;;  %v5810_v6 = vunpack.i.h.bf16 %v5808_v55  ;;  %v5809_v52 = vunpack.i.l.bf16 %v5808_v55 }
 0x56f   : > { %v5790_v28 = vunpack.i.h.bf16 %v5788_v34  ;;  %v5789_v63 = vunpack.i.l.bf16 %v5788_v34 }
 0x571   : > { %v3647_v1 = vsel %vm1782_vm2, %v3615_v29, %v5789_v63  ;;  %v3551_v30 = vsel %vm1782_vm2, %v3519_v26, %v5790_v28  ;;  %v5823_v41 = vpop.permute.xlu1 %5822  ;;  %v9350_v29 = vld [vmem:[#allocation74_spill] sm:$0xff] }
 0x572   : > { %v5798_v32 = vpop.permute.xlu0 %5797  ;;  %3938 = vmatprep.mubr.f32.mxu1 %v3647_v1  ;;  %v5824_v50 = vunpack.i.l.bf16 %v5823_v41  ;;  %v5825_v40 = vunpack.i.h.bf16 %v5823_v41 }
 0x573   : > { %3939 = vmatmul.mubr.f32.gmra.mrb[70].mxu1 %v3551_v30  ;;  %v5800_v38 = vunpack.i.h.bf16 %v5798_v32  ;;  %v5799_v9 = vunpack.i.l.bf16 %v5798_v32 }
 0x574   : > { %3943 = vmatprep.mubr.f32.mxu1 %v3648_v24 }
 0x575   : > { %v5833_v43 = vpop.permute.xlu1 %5832  ;;  %v3585_v31 = vsel %vm1345_vm4, %v8204_v36, %v5799_v9  ;;  %v3489_v3 = vsel %vm1345_vm4, %v9347_v58, %v5800_v38 }
 0x576   : > { %v5813_v44 = vpop.permute.xlu0 %5812  ;;  %v3617_v59 = vsel %vm1773_vm1, %v3585_v31, %v5809_v52  ;;  %v3521_v13 = vsel %vm1773_vm1, %v3489_v3, %v5810_v6  ;;  %v5834_v55 = vunpack.i.l.bf16 %v5833_v43  ;;  %v5835_v39 = vunpack.i.h.bf16 %v5833_v43  ;;  %v9351_v43 = vld [vmem:[#allocation15_spill] sm:$0xff] }
 0x577   : > { %3944 = vmatmul.mubr.f32.gmra.mrb[72].mxu1 %v3552_v0  ;;  %v5814_v2 = vunpack.i.l.bf16 %v5813_v44  ;;  %v5815_v35 = vunpack.i.h.bf16 %v5813_v44 }
 0x578   : > { %v3588_v24 = vsel %vm1345_vm4, %v8226_v5, %v5834_v55 }
 0x579   : > { %v5838_v42 = vpop.permute.xlu1 %5837  ;;  %v3618_v36 = vsel %vm1773_vm1, %v3586_v57, %v5814_v2  ;;  %v3522_v53 = vsel %vm1773_vm1, %v3490_v17, %v5815_v35  ;;  %v3492_v2 = vsel %vm1345_vm4, %v9351_v43, %v5835_v39 }
 0x57a   : > { %v5818_v47 = vpop.permute.xlu0 %5817  ;;  %v3650_v15 = vsel %vm1782_vm2, %v3618_v36, %v5824_v50  ;;  %v3554_v28 = vsel %vm1782_vm2, %v3522_v53, %v5825_v40  ;;  %v5840_v51 = vunpack.i.h.bf16 %v5838_v42  ;;  %v5839_v1 = vunpack.i.l.bf16 %v5838_v42 }
 0x57b   : > { %v5820_v49 = vunpack.i.h.bf16 %v5818_v47  ;;  %v5819_v60 = vunpack.i.l.bf16 %v5818_v47 }
 0x57d   : > { %v3649_v33 = vsel %vm1782_vm2, %v3617_v59, %v5819_v60  ;;  %v3553_v56 = vsel %vm1782_vm2, %v3521_v13, %v5820_v49  ;;  %v5853_v12 = vpop.permute.xlu1 %5852 }
 0x57e   : > { %v5828_v19 = vpop.permute.xlu0 %5827  ;;  %3948 = vmatprep.mubr.f32.mxu1 %v3649_v33  ;;  %v5854_v38 = vunpack.i.l.bf16 %v5853_v12  ;;  %v5855_v58 = vunpack.i.h.bf16 %v5853_v12 }
 0x57f   : > { %3949 = vmatmul.mubr.f32.gmra.mrb[74].mxu1 %v3553_v56  ;;  %v5830_v10 = vunpack.i.h.bf16 %v5828_v19  ;;  %v5829_v34 = vunpack.i.l.bf16 %v5828_v19 }
 0x580   : > { %3953 = vmatprep.mubr.f32.mxu1 %v3650_v15 }
 0x581   : > { %v5863_v63 = vpop.permute.xlu1 %5862  ;;  %v3587_v54 = vsel %vm1345_vm4, %v8257_v61, %v5829_v34  ;;  %v3491_v26 = vsel %vm1345_vm4, %v9350_v29, %v5830_v10 }
 0x582   : > { %v5843_v16 = vpop.permute.xlu0 %5842  ;;  %v3619_v27 = vsel %vm1773_vm1, %v3587_v54, %v5839_v1  ;;  %v3523_v45 = vsel %vm1773_vm1, %v3491_v26, %v5840_v51  ;;  %v5864_v35 = vunpack.i.l.bf16 %v5863_v63  ;;  %v5865_v60 = vunpack.i.h.bf16 %v5863_v63 }
 0x583   : > { %3954 = vmatmul.mubr.f32.gmra.mrb[76].mxu1 %v3554_v28  ;;  %v5844_v22 = vunpack.i.l.bf16 %v5843_v16  ;;  %v5845_v48 = vunpack.i.h.bf16 %v5843_v16 }
 0x584   : > { %v3590_v11 = vsel %vm1345_vm4, %v8283_v4, %v5864_v35  ;;  %v3494_v53 = vsel %vm1345_vm4, %v7746_v20, %v5865_v60 }
 0x585   : > { %v5868_v32 = vpop.permute.xlu1 %5867  ;;  %v3620_v61 = vsel %vm1773_vm1, %v3588_v24, %v5844_v22  ;;  %v3524_v31 = vsel %vm1773_vm1, %v3492_v2, %v5845_v48 }
 0x586   : > { %v5848_v30 = vpop.permute.xlu0 %5847  ;;  %v3652_v5 = vsel %vm1782_vm2, %v3620_v61, %v5854_v38  ;;  %v3556_v47 = vsel %vm1782_vm2, %v3524_v31, %v5855_v58  ;;  %v5870_v57 = vunpack.i.h.bf16 %v5868_v32  ;;  %v5869_v59 = vunpack.i.l.bf16 %v5868_v32 }
 0x587   : > { %v5850_v46 = vunpack.i.h.bf16 %v5848_v30  ;;  %v5849_v41 = vunpack.i.l.bf16 %v5848_v30 }
 0x589   : > { %v3651_v9 = vsel %vm1782_vm2, %v3619_v27, %v5849_v41  ;;  %v3555_v44 = vsel %vm1782_vm2, %v3523_v45, %v5850_v46  ;;  %v8711_v18 = vpop.permute.xlu1 %5872  ;;  %v9352_v46 = vld [vmem:[#allocation19_spill] sm:$0xff] }
 0x58a   : > { %v5858_v0 = vpop.permute.xlu0 %5857  ;;  %3958 = vmatprep.mubr.f32.mxu1 %v3651_v9  ;;  %v5874_v20 = vunpack.i.l.bf16 %v8711_v18  ;;  %v5875_v48 = vunpack.i.h.bf16 %v8711_v18 }
 0x58b   : > { %3959 = vmatmul.mubr.f32.gmra.mrb[78].mxu1 %v3555_v44  ;;  %v5860_v3 = vunpack.i.h.bf16 %v5858_v0  ;;  %v5859_v7 = vunpack.i.l.bf16 %v5858_v0 }
 0x58c   : > { %3963 = vmatprep.mubr.f32.mxu1 %v3652_v5 }
 0x58d   : > { %v5888_v52 = vpop.permute.xlu1 %5887  ;;  %v3589_v42 = vsel %vm1345_vm4, %v8331_v62, %v5859_v7  ;;  %v3493_v23 = vsel %vm1345_vm4, %v8209_v37, %v5860_v3  ;;  %v8757_v3 = vld [vmem:[%s8992_s12] ss:$0 sm:$0xff] }
 0x58e   : > { %v5878_v6 = vpop.permute.xlu0 %5877  ;;  %v5889_v33 = vunpack.i.l.bf16 %v5888_v52  ;;  %v3621_v17 = vsel %vm1773_vm1, %v3589_v42, %v5869_v59  ;;  %v3525_v12 = vsel %vm1773_vm1, %v3493_v23, %v5870_v57  ;;  %v5890_v40 = vunpack.i.h.bf16 %v5888_v52 }
 0x58f   : > { %3964 = vmatmul.mubr.f32.gmra.mrb[80].mxu1 %v3556_v47  ;;  %v5879_v49 = vunpack.i.l.bf16 %v5878_v6  ;;  %v5880_v13 = vunpack.i.h.bf16 %v5878_v6 }
 0x591   : > { %v5903_v50 = vpop.permute.xlu1 %5902  ;;  %v3622_v62 = vsel %vm1773_vm1, %v3590_v11, %v5879_v49  ;;  %v3526_v34 = vsel %vm1773_vm1, %v3494_v53, %v5880_v13 }
 0x592   : > { %v5883_v36 = vpop.permute.xlu0 %5882  ;;  %v5904_v16 = vunpack.i.l.bf16 %v5903_v50  ;;  %v3654_v63 = vsel %vm1782_vm2, %v3622_v62, %v5889_v33  ;;  %v5905_v29 = vunpack.i.h.bf16 %v5903_v50  ;;  %v3558_v39 = vsel %vm1782_vm2, %v3526_v34, %v5890_v40 }
 0x593   : > { %v5885_v56 = vunpack.i.h.bf16 %v5883_v36  ;;  %v5884_v19 = vunpack.i.l.bf16 %v5883_v36 }
 0x594   : > { %v3592_v32 = vsel %vm1345_vm4, %v7943_v14, %v5904_v16  ;;  %v3496_v61 = vsel %vm1345_vm4, %v7780_v25, %v5905_v29 }
 0x595   : > { %v3653_v15 = vsel %vm1782_vm2, %v3621_v17, %v5884_v19  ;;  %v3557_v37 = vsel %vm1782_vm2, %v3525_v12, %v5885_v56  ;;  %v5908_v55 = vpop.permute.xlu1 %5907  ;;  %v3624_v38 = vsel %vm1773_vm1, %v3592_v32, %v5875_v48 }
 0x596   : > { %v5893_v10 = vpop.permute.xlu0 %5892  ;;  %3968 = vmatprep.mubr.f32.mxu1 %v3653_v15  ;;  %v5909_v51 = vunpack.i.l.bf16 %v5908_v55  ;;  %v5910_v44 = vunpack.i.h.bf16 %v5908_v55 }
 0x597   : > { %v5895_v4 = vunpack.i.h.bf16 %v5893_v10  ;;  %v5894_v28 = vunpack.i.l.bf16 %v5893_v10  ;;  %3969 = vmatmul.mubr.f32.gmra.mrb[82].mxu1 %v3557_v37 }
 0x598   : > { %3973 = vmatprep.mubr.f32.mxu1 %v3654_v63  ;;  %v3656_v9 = vsel %vm1782_vm2, %v3624_v38, %v5909_v51 }
 0x599   : > { %v3591_v22 = vsel %vm1345_vm4, %v7947_v8, %v5894_v28  ;;  %v3495_v54 = vsel %vm1345_vm4, %v8262_v21, %v5895_v4  ;;  %v9353_v8 = vunpack.i.l.bf16 %v9352_v46 }
 0x59a   : > { %v5898_v26 = vpop.permute.xlu0 %5897  ;;  %v3527_v21 = vsel %vm1773_vm1, %v3495_v54, %v5874_v20 }
 0x59b   : > { %v5900_v1 = vunpack.i.h.bf16 %v5898_v26  ;;  %v5899_v30 = vunpack.i.l.bf16 %v5898_v26  ;;  %3974 = vmatmul.mubr.f32.gmra.mrb[84].mxu1 %v3558_v39  ;;  %v3623_v41 = vsel %vm1773_vm1, %v3591_v22, %v9353_v8 }
 0x59d   : > { %v3655_v24 = vsel %vm1782_vm2, %v3623_v41, %v5899_v30  ;;  %v3559_v27 = vsel %vm1782_vm2, %v3527_v21, %v5900_v1 }
 0x59e   : > { %v3051_v45 = vpop.permute.xlu0 %3050  ;;  %3978 = vmatprep.mubr.f32.mxu1 %v3655_v24 }
 0x59f   : > { %v3528_v14 = vsel %vm1773_vm1, %v3496_v61, %v3051_v45  ;;  %3979 = vmatmul.mubr.f32.gmra.mrb[86].mxu1 %v3559_v27 }
 0x5a0   : > { %3983 = vmatprep.mubr.f32.mxu1 %v3656_v9  ;;  %v3560_v0 = vsel %vm1782_vm2, %v3528_v14, %v5910_v44 }
 0x5a3   : > { %3984 = vmatmul.mubr.f32.gmra.mrb[88].mxu1 %v3560_v0 }
 0x5c0   : > { %v3830_v18 = vpop.f32.mrb[72].mxu0 }
 0x5c1   : > { %v3832_v43 = vpop.f32.mrb[73].mxu0  ;;  %v3831_v52 = vadd.f32 %v8757_v3, %v3830_v18 }
 0x5c4   : > { %v3835_v2 = vpop.f32.mrb[74].mxu0 }
 0x5c5   : > { %v3837_v5 = vpop.f32.mrb[75].mxu0  ;;  %v3836_v6 = vadd.f32 %v8757_v3, %v3835_v2 }
 0x5dd   : > { %v3840_v31 = vpop.f32.mrb[76].mxu0 }
 0x5de   : > { %v3842_v25 = vpop.f32.mrb[77].mxu0  ;;  %v3841_v13 = vadd.f32 %v8757_v3, %v3840_v31 }
 0x5e1   : > { %v3845_v58 = vpop.f32.mrb[78].mxu0 }
 0x5e2   : > { %v3847_v7 = vpop.f32.mrb[79].mxu0  ;;  %v3846_v23 = vadd.f32 %v8757_v3, %v3845_v58 }
 0x5e5   : > { %v5060_v47 = vpop.f32.mrb[80].mxu0 }
 0x5e6   : > { %v4061_v35 = vadd.f32 %v5060_v47, %v3836_v6  ;;  %v4055_v49 = vpop.f32.mrb[81].mxu0  ;;  %v3850_v60 = vpop.f32.mrb[34].mxu1 }
 0x5e7   : > { %v4056_v42 = vadd.f32 %v4055_v49, %v3831_v52  ;;  %v3852_v59 = vpop.f32.mrb[35].mxu1  ;;  %v3851_v53 = vadd.f32 %v8757_v3, %v3850_v60 }
 0x5e8   : > { %vm4215_vm7 = vcmp.ge.f32.partialorder %v4061_v35, 0.0  ;;  %v4247_v57 = vmul.f32 0.1, %v4061_v35 }
 0x5e9   : > { %vm4214_vm13 = vcmp.ge.f32.partialorder %v4056_v42, 0.0  ;;  %v4246_v36 = vmul.f32 0.1, %v4056_v42  ;;  %v5063_v50 = vpop.f32.mrb[82].mxu0 }
 0x5ea   : > { %v4279_v33 = vsel %vm4215_vm7, %v4061_v35, %v4247_v57  ;;  %v4071_v56 = vadd.f32 %v5063_v50, %v3846_v23  ;;  %v4065_v19 = vpop.f32.mrb[83].mxu0  ;;  %v3855_v17 = vpop.f32.mrb[36].mxu1 }
 0x5eb   : > { %4311 = vst.msk [vmem:[%s8766_s0 + $0x8] sm:$0xff] %vm1345_vm4, %v4279_v33  ;;  %v4278_v11 = vsel %vm4214_vm13, %v4056_v42, %v4246_v36  ;;  %v4066_v12 = vadd.f32 %v4065_v19, %v3841_v13  ;;  %v3856_v15 = vadd.f32 %v8757_v3, %v3855_v17  ;;  %v3857_v37 = vpop.f32.mrb[37].mxu1 }
 0x5ec   : > { %4310 = vst.msk [vmem:[%s8766_s0] sm:$0xff] %vm1345_vm4, %v4278_v11  ;;  %vm4217_vm0 = vcmp.ge.f32.partialorder %v4071_v56, 0.0  ;;  %v4249_v62 = vmul.f32 0.1, %v4071_v56 }
 0x5ed   : > { %vm4216_vm1 = vcmp.ge.f32.partialorder %v4066_v12, 0.0  ;;  %v4248_v40 = vmul.f32 0.1, %v4066_v12  ;;  %v5066_v10 = vpop.f32.mrb[84].mxu0 }
 0x5ee   : > { %v4281_v34 = vsel %vm4217_vm0, %v4071_v56, %v4249_v62  ;;  %v4081_v16 = vadd.f32 %v5066_v10, %v3856_v15  ;;  %v4075_v4 = vpop.f32.mrb[85].mxu0 }
 0x5ef   : > { %4313 = vst.msk [vmem:[%s8766_s0 + $0x18] sm:$0xff] %vm1345_vm4, %v4281_v34  ;;  %v4280_v28 = vsel %vm4216_vm1, %v4066_v12, %v4248_v40  ;;  %v4076_v63 = vadd.f32 %v4075_v4, %v3851_v53 }
 0x5f0   : > { %4312 = vst.msk [vmem:[%s8766_s0 + $0x10] sm:$0xff] %vm1345_vm4, %v4280_v28  ;;  %vm4219_vm2 = vcmp.ge.f32.partialorder %v4081_v16, 0.0  ;;  %v4251_v55 = vmul.f32 0.1, %v4081_v16 }
 0x5f1   : > { %vm4218_vm3 = vcmp.ge.f32.partialorder %v4076_v63, 0.0  ;;  %v4250_v22 = vmul.f32 0.1, %v4076_v63  ;;  %v5069_v54 = vpop.f32.mrb[86].mxu0 }
 0x5f2   : > { %v4283_v20 = vsel %vm4219_vm2, %v4081_v16, %v4251_v55  ;;  %v4085_v29 = vpop.f32.mrb[87].mxu0  ;;  %v3860_v39 = vpop.f32.mrb[38].mxu1 }
 0x5f3   : > { %4315 = vst.msk [vmem:[%s8766_s0 + $0x28] sm:$0xff] %vm1345_vm4, %v4283_v20  ;;  %v4282_v26 = vsel %vm4218_vm3, %v4076_v63, %v4250_v22  ;;  %v3861_v51 = vadd.f32 %v8757_v3, %v3860_v39  ;;  %v3862_v1 = vpop.f32.mrb[39].mxu1 }
 0x5f4   : > { %4314 = vst.msk [vmem:[%s8766_s0 + $0x20] sm:$0xff] %vm1345_vm4, %v4282_v26 }
 0x5f5   : > { %v8785_v30 = vpop.f32.mrb[88].mxu0  ;;  %v4086_v32 = vadd.f32 %v4085_v29, %v3861_v51 }
 0x5f6   : > { %v4095_v48 = vpop.f32.mrb[89].mxu0  ;;  %v3865_v46 = vpop.f32.mrb[40].mxu1 }
 0x5f7   : > { %vm4220_vm5 = vcmp.ge.f32.partialorder %v4086_v32, 0.0  ;;  %v4252_v8 = vmul.f32 0.1, %v4086_v32  ;;  %v3866_v41 = vadd.f32 %v8757_v3, %v3865_v46  ;;  %v3867_v21 = vpop.f32.mrb[41].mxu1 }
 0x5f9   : > { %v8788_v24 = vpop.f32.mrb[90].mxu0  ;;  %v4284_v27 = vsel %vm4220_vm5, %v4086_v32, %v4252_v8  ;;  %v4091_v45 = vadd.f32 %v5069_v54, %v3866_v41 }
 0x5fa   : > { %v8790_v61 = vpop.f32.mrb[91].mxu0  ;;  %4316 = vst.msk [vmem:[%s8766_s0 + $0x30] sm:$0xff] %vm1345_vm4, %v4284_v27 }
 0x5fb   : > { %vm4221_vm6 = vcmp.ge.f32.partialorder %v4091_v45, 0.0  ;;  %v4253_v38 = vmul.f32 0.1, %v4091_v45 }
 0x5fd   : > { %v8795_v14 = vpop.f32.mrb[92].mxu0  ;;  %v4285_v9 = vsel %vm4221_vm6, %v4091_v45, %v4253_v38 }
 0x5fe   : > { %v3870_v44 = vpop.f32.mrb[42].mxu1  ;;  %v8798_v0 = vpop.f32.mrb[93].mxu0  ;;  %4317 = vst.msk [vmem:[%s8766_s0 + $0x38] sm:$0xff] %vm1345_vm4, %v4285_v9 }
 0x5ff   : > { %v3871_v18 = vadd.f32 %v8757_v3, %v3870_v44  ;;  %v3872_v43 = vpop.f32.mrb[43].mxu1 }
 0x600   : > { %5924 = shalt.err (!%p5921_p3)
}
 0x601   : > { %s5925_s18 = scalar_lea.hbm %s8803_s30, 256  ;;  %s5929_s29 = scalar_lea.hbm %s8997_s17, 512 }
 0x602   : > { %p5926_p4 = scmp.ne.s32.totalorder %s8803_s30, %s5925_s18  ;;  %p5930_p9 = scmp.lt.u32.totalorder %s8803_s30, %s8997_s17 }
 0x603   : > { %p5931_p10 = scmp.lt.u32.totalorder %s5929_s29, %s5925_s18  ;;  %p5933_p12 = scmp.lt.u32.totalorder %s5925_s18, %s8803_s30 }
 0x604   : > { %p5927_p7 = pnand %p5926_p4, %p6111_p5 }
 0x605   : > { %p5932_p11 = por %p5931_p10, %p5930_p9 }
 0x606   : > { %p5928_p8 = pneg %p5927_p7 }
 0x607   : > { %p5934_p13 = por %p5933_p12, %p5932_p11 }
 0x609   : > { %p5935_p0 = pnand %p5934_p13, %p5928_p8 }
 0x60b   : > { %5938 = shalt.err (!%p5935_p0)
}
 0x60c   : > { %s5981_s21 = smov 128   ;;  %s5982_s26 = smov 8   ;;  %v4096_v2 = vadd.f32 %v4095_v48, %v3871_v18  ;;  %v8836_v5 = vpop.f32.mrb[94].mxu0  ;;  %v3875_v31 = vpop.f32.mrb[44].mxu1 }
 0x60d   : > { %5270 = dma.vmem_to_hbm [thread:$0]  (%p6111_p5), %s8805_s19, 256, %s8803_s30, %s8812_s22, %s5981_s21, %s5981_s21, %s5982_s26   ;;  %v4125_v25 = vpop.f32.mrb[95].mxu0  ;;  %v3876_v7 = vadd.f32 %v8757_v3, %v3875_v31  ;;  %v3877_v6 = vpop.f32.mrb[45].mxu1 }
 0x60e   : > { %vm4222_vm8 = vcmp.ge.f32.partialorder %v4096_v2, 0.0  ;;  %v4254_v58 = vmul.f32 0.1, %v4096_v2  ;;  %v8840_v35 = vpop.f32.mrb[96].mxu0  ;;  %v3880_v57 = vpop.f32.mrb[46].mxu1 }
 0x60f   : > { %v4101_v47 = vadd.f32 %v8785_v30, %v3876_v7  ;;  %v8844_v49 = vpop.f32.mrb[97].mxu0  ;;  %v3881_v13 = vadd.f32 %v8757_v3, %v3880_v57  ;;  %v3882_v36 = vpop.f32.mrb[47].mxu1 }
 0x610   : > { %v4286_v52 = vsel %vm4222_vm8, %v4096_v2, %v4254_v58  ;;  %v8846_v23 = vpop.f32.mrb[98].mxu0  ;;  %v3885_v56 = vpop.f32.mrb[48].mxu1 }
 0x611   : > { %4318 = vst.msk [vmem:[%s8766_s0 + $0x40] sm:$0xff] %vm1345_vm4, %v4286_v52  ;;  %vm4223_vm9 = vcmp.ge.f32.partialorder %v4101_v47, 0.0  ;;  %v4255_v60 = vmul.f32 0.1, %v4101_v47  ;;  %v8850_v59 = vpop.f32.mrb[99].mxu0  ;;  %v4106_v50 = vadd.f32 %v8790_v61, %v3881_v13  ;;  %v3886_v17 = vadd.f32 %v8757_v3, %v3885_v56  ;;  %v3887_v12 = vpop.f32.mrb[49].mxu1 }
 0x612   : > { %v8854_v33 = vpop.f32.mrb[100].mxu0  ;;  %v3890_v53 = vpop.f32.mrb[50].mxu1 }
 0x613   : > { %v4287_v42 = vsel %vm4223_vm9, %v4101_v47, %v4255_v60  ;;  %v8856_v19 = vpop.f32.mrb[101].mxu0  ;;  %vm4224_vm10 = vcmp.ge.f32.partialorder %v4106_v50, 0.0  ;;  %v4256_v11 = vmul.f32 0.1, %v4106_v50  ;;  %v4111_v15 = vadd.f32 %v8788_v24, %v3886_v17  ;;  %v3892_v16 = vpop.f32.mrb[51].mxu1 }
 0x614   : > { %4319 = vst.msk [vmem:[%s8766_s0 + $0x48] sm:$0xff] %vm1345_vm4, %v4287_v42  ;;  %v8860_v37 = vpop.f32.mrb[102].mxu0  ;;  %v3891_v34 = vadd.f32 %v8757_v3, %v3890_v53 }
 0x615   : > { %v4288_v62 = vsel %vm4224_vm10, %v4106_v50, %v4256_v11  ;;  %v8864_v40 = vpop.f32.mrb[103].mxu0  ;;  %vm4225_vm11 = vcmp.ge.f32.partialorder %v4111_v15, 0.0  ;;  %v4257_v10 = vmul.f32 0.1, %v4111_v15 }
 0x616   : > { %4320 = vst.msk [vmem:[%s8766_s0 + $0x50] sm:$0xff] %vm1345_vm4, %v4288_v62  ;;  %v4116_v28 = vadd.f32 %v8798_v0, %v3891_v34  ;;  %v8868_v63 = vpop.f32.mrb[104].mxu0  ;;  %v3895_v55 = vpop.f32.mrb[52].mxu1 }
 0x617   : > { %v4289_v4 = vsel %vm4225_vm11, %v4111_v15, %v4257_v10  ;;  %v8872_v22 = vpop.f32.mrb[105].mxu0  ;;  %v3896_v20 = vadd.f32 %v8757_v3, %v3895_v55  ;;  %v3897_v29 = vpop.f32.mrb[53].mxu1 }
 0x618   : > { %4321 = vst.msk [vmem:[%s8766_s0 + $0x58] sm:$0xff] %vm1345_vm4, %v4289_v4  ;;  %vm4226_vm12 = vcmp.ge.f32.partialorder %v4116_v28, 0.0  ;;  %v4258_v54 = vmul.f32 0.1, %v4116_v28 }
 0x619   : > { %v4121_v39 = vadd.f32 %v8795_v14, %v3896_v20  ;;  %v8876_v51 = vpop.f32.mrb[106].mxu0 }
 0x61a   : > { %v4290_v26 = vsel %vm4226_vm12, %v4116_v28, %v4258_v54  ;;  %v3900_v1 = vpop.f32.mrb[54].mxu1  ;;  %v8880_v30 = vpop.f32.mrb[107].mxu0 }
 0x61b   : > { %4322 = vst.msk [vmem:[%s8766_s0 + $0x60] sm:$0xff] %vm1345_vm4, %v4290_v26  ;;  %vm4227_vm14 = vcmp.ge.f32.partialorder %v4121_v39, 0.0  ;;  %v4259_v32 = vmul.f32 0.1, %v4121_v39  ;;  %v3901_v48 = vadd.f32 %v8757_v3, %v3900_v1  ;;  %v3902_v46 = vpop.f32.mrb[55].mxu1 }
 0x61d   : > { %v4291_v8 = vsel %vm4227_vm14, %v4121_v39, %v4259_v32  ;;  %v4126_v41 = vadd.f32 %v4125_v25, %v3901_v48  ;;  %v8883_v21 = vpop.f32.mrb[108].mxu0 }
 0x61e   : > { %4323 = vst.msk [vmem:[%s8766_s0 + $0x68] sm:$0xff] %vm1345_vm4, %v4291_v8  ;;  %v3905_v24 = vpop.f32.mrb[56].mxu1  ;;  %v8887_v27 = vpop.f32.mrb[109].mxu0 }
 0x61f   : > { %vm4228_vm15 = vcmp.ge.f32.partialorder %v4126_v41, 0.0  ;;  %v4260_v45 = vmul.f32 0.1, %v4126_v41  ;;  %v3906_v61 = vadd.f32 %v8757_v3, %v3905_v24  ;;  %v3907_v38 = vpop.f32.mrb[57].mxu1 }
 0x621   : > { %v4292_v14 = vsel %vm4228_vm15, %v4126_v41, %v4260_v45  ;;  %v4131_v9 = vadd.f32 %v8836_v5, %v3906_v61  ;;  %v8891_v44 = vpop.f32.mrb[110].mxu0 }
 0x622   : > { %4324 = vst.msk [vmem:[%s8766_s0 + $0x70] sm:$0xff] %vm1345_vm4, %v4292_v14  ;;  %v3910_v0 = vpop.f32.mrb[58].mxu1  ;;  %v8895_v18 = vpop.f32.mrb[111].mxu0 }
 0x623   : > { %vm4229_vm7 = vcmp.ge.f32.partialorder %v4131_v9, 0.0  ;;  %v4261_v43 = vmul.f32 0.1, %v4131_v9  ;;  %v3911_v2 = vadd.f32 %v8757_v3, %v3910_v0  ;;  %v3912_v31 = vpop.f32.mrb[59].mxu1 }
 0x625   : > { %v4293_v25 = vsel %vm4229_vm7, %v4131_v9, %v4261_v43  ;;  %v4136_v58 = vadd.f32 %v8844_v49, %v3911_v2 }
 0x626   : > { %4325 = vst.msk [vmem:[%s8766_s0 + $0x78] sm:$0xff] %vm1345_vm4, %v4293_v25  ;;  %v3915_v5 = vpop.f32.mrb[60].mxu1 }
 0x627   : > { %vm4230_vm13 = vcmp.ge.f32.partialorder %v4136_v58, 0.0  ;;  %v4262_v7 = vmul.f32 0.1, %v4136_v58  ;;  %v3916_v6 = vadd.f32 %v8757_v3, %v3915_v5  ;;  %v3917_v52 = vpop.f32.mrb[61].mxu1 }
 0x629   : > { %v4294_v47 = vsel %vm4230_vm13, %v4136_v58, %v4262_v7  ;;  %v4141_v60 = vadd.f32 %v8840_v35, %v3916_v6 }
 0x62a   : > { %4326 = vst.msk [vmem:[%s8766_s0 + $0x80] sm:$0xff] %vm1345_vm4, %v4294_v47 }
 0x62b   : > { %vm4231_vm0 = vcmp.ge.f32.partialorder %v4141_v60, 0.0  ;;  %v4263_v42 = vmul.f32 0.1, %v4141_v60 }
 0x62d   : > { %v4295_v13 = vsel %vm4231_vm0, %v4141_v60, %v4263_v42 }
 0x62e   : > { %v3920_v57 = vpop.f32.mrb[62].mxu1  ;;  %4327 = vst.msk [vmem:[%s8766_s0 + $0x88] sm:$0xff] %vm1345_vm4, %v4295_v13 }
 0x62f   : > { %v3921_v49 = vadd.f32 %v8757_v3, %v3920_v57  ;;  %v3922_v36 = vpop.f32.mrb[63].mxu1 }
 0x631   : > { %v4146_v50 = vadd.f32 %v8850_v59, %v3921_v49 }
 0x632   : > { %v3925_v56 = vpop.f32.mrb[64].mxu1 }
 0x633   : > { %vm4232_vm1 = vcmp.ge.f32.partialorder %v4146_v50, 0.0  ;;  %v4264_v11 = vmul.f32 0.1, %v4146_v50  ;;  %v3926_v35 = vadd.f32 %v8757_v3, %v3925_v56  ;;  %v3927_v17 = vpop.f32.mrb[65].mxu1 }
 0x635   : > { %v4296_v12 = vsel %vm4232_vm1, %v4146_v50, %v4264_v11  ;;  %v4151_v62 = vadd.f32 %v8846_v23, %v3926_v35 }
 0x636   : > { %4328 = vst.msk [vmem:[%s8766_s0 + $0x90] sm:$0xff] %vm1345_vm4, %v4296_v12 }
 0x637   : > { %vm4233_vm2 = vcmp.ge.f32.partialorder %v4151_v62, 0.0  ;;  %v4265_v15 = vmul.f32 0.1, %v4151_v62 }
 0x639   : > { %v4297_v53 = vsel %vm4233_vm2, %v4151_v62, %v4265_v15 }
 0x63a   : > { %4329 = vst.msk [vmem:[%s8766_s0 + $0x98] sm:$0xff] %vm1345_vm4, %v4297_v53  ;;  %v3930_v10 = vpop.f32.mrb[66].mxu1 }
 0x63b   : > { %v3931_v59 = vadd.f32 %v8757_v3, %v3930_v10  ;;  %v3932_v34 = vpop.f32.mrb[67].mxu1 }
 0x63d   : > { %v4156_v16 = vadd.f32 %v8856_v19, %v3931_v59 }
 0x63e   : > { %v3935_v4 = vpop.f32.mrb[68].mxu1 }
 0x63f   : > { %vm4234_vm3 = vcmp.ge.f32.partialorder %v4156_v16, 0.0  ;;  %v4266_v28 = vmul.f32 0.1, %v4156_v16  ;;  %v3936_v23 = vadd.f32 %v8757_v3, %v3935_v4  ;;  %v3937_v55 = vpop.f32.mrb[69].mxu1 }
 0x641   : > { %v4298_v54 = vsel %vm4234_vm3, %v4156_v16, %v4266_v28  ;;  %v4161_v20 = vadd.f32 %v8854_v33, %v3936_v23 }
 0x642   : > { %4330 = vst.msk [vmem:[%s8766_s0 + $0xa0] sm:$0xff] %vm1345_vm4, %v4298_v54 }
 0x643   : > { %vm4235_vm5 = vcmp.ge.f32.partialorder %v4161_v20, 0.0  ;;  %v4267_v29 = vmul.f32 0.1, %v4161_v20 }
 0x645   : > { %v4299_v26 = vsel %vm4235_vm5, %v4161_v20, %v4267_v29 }
 0x646   : > { %4331 = vst.msk [vmem:[%s8766_s0 + $0xa8] sm:$0xff] %vm1345_vm4, %v4299_v26  ;;  %v3940_v39 = vpop.f32.mrb[70].mxu1 }
 0x647   : > { %v3941_v19 = vadd.f32 %v8757_v3, %v3940_v39  ;;  %v3942_v1 = vpop.f32.mrb[71].mxu1 }
 0x649   : > { %v4166_v32 = vadd.f32 %v8864_v40, %v3941_v19 }
 0x64a   : > { %v3945_v48 = vpop.f32.mrb[72].mxu1 }
 0x64b   : > { %vm4236_vm6 = vcmp.ge.f32.partialorder %v4166_v32, 0.0  ;;  %v4268_v46 = vmul.f32 0.1, %v4166_v32  ;;  %v3946_v33 = vadd.f32 %v8757_v3, %v3945_v48  ;;  %v3947_v8 = vpop.f32.mrb[73].mxu1 }
 0x64d   : > { %v4300_v41 = vsel %vm4236_vm6, %v4166_v32, %v4268_v46  ;;  %v4171_v24 = vadd.f32 %v8860_v37, %v3946_v33 }
 0x64e   : > { %4332 = vst.msk [vmem:[%s8766_s0 + $0xb0] sm:$0xff] %vm1345_vm4, %v4300_v41 }
 0x64f   : > { %vm4237_vm8 = vcmp.ge.f32.partialorder %v4171_v24, 0.0  ;;  %v4269_v45 = vmul.f32 0.1, %v4171_v24 }
 0x651   : > { %v4301_v61 = vsel %vm4237_vm8, %v4171_v24, %v4269_v45 }
 0x652   : > { %4333 = vst.msk [vmem:[%s8766_s0 + $0xb8] sm:$0xff] %vm1345_vm4, %v4301_v61  ;;  %v3950_v38 = vpop.f32.mrb[74].mxu1 }
 0x653   : > { %v3951_v40 = vadd.f32 %v8757_v3, %v3950_v38  ;;  %v3952_v14 = vpop.f32.mrb[75].mxu1 }
 0x655   : > { %v4176_v9 = vadd.f32 %v8872_v22, %v3951_v40 }
 0x656   : > { %v3955_v0 = vpop.f32.mrb[76].mxu1 }
 0x657   : > { %vm4238_vm9 = vcmp.ge.f32.partialorder %v4176_v9, 0.0  ;;  %v4270_v43 = vmul.f32 0.1, %v4176_v9  ;;  %v3956_v37 = vadd.f32 %v8757_v3, %v3955_v0  ;;  %v3957_v2 = vpop.f32.mrb[77].mxu1 }
 0x659   : > { %v4302_v31 = vsel %vm4238_vm9, %v4176_v9, %v4270_v43  ;;  %v4181_v25 = vadd.f32 %v8868_v63, %v3956_v37 }
 0x65a   : > { %4334 = vst.msk [vmem:[%s8766_s0 + $0xc0] sm:$0xff] %vm1345_vm4, %v4302_v31 }
 0x65b   : > { %vm4239_vm10 = vcmp.ge.f32.partialorder %v4181_v25, 0.0  ;;  %v4271_v58 = vmul.f32 0.1, %v4181_v25 }
 0x65d   : > { %v4303_v5 = vsel %vm4239_vm10, %v4181_v25, %v4271_v58 }
 0x65e   : > { %4335 = vst.msk [vmem:[%s8766_s0 + $0xc8] sm:$0xff] %vm1345_vm4, %v4303_v5  ;;  %v3960_v7 = vpop.f32.mrb[78].mxu1 }
 0x65f   : > { %v3961_v22 = vadd.f32 %v8757_v3, %v3960_v7  ;;  %v3962_v6 = vpop.f32.mrb[79].mxu1 }
 0x661   : > { %v4186_v52 = vadd.f32 %v8880_v30, %v3961_v22 }
 0x662   : > { %v3965_v47 = vpop.f32.mrb[80].mxu1 }
 0x663   : > { %vm4240_vm11 = vcmp.ge.f32.partialorder %v4186_v52, 0.0  ;;  %v4272_v60 = vmul.f32 0.1, %v4186_v52  ;;  %v3966_v63 = vadd.f32 %v8757_v3, %v3965_v47  ;;  %v3967_v42 = vpop.f32.mrb[81].mxu1 }
 0x665   : > { %v4304_v57 = vsel %vm4240_vm11, %v4186_v52, %v4272_v60  ;;  %v4191_v13 = vadd.f32 %v8876_v51, %v3966_v63 }
 0x666   : > { %4336 = vst.msk [vmem:[%s8766_s0 + $0xd0] sm:$0xff] %vm1345_vm4, %v4304_v57 }
 0x667   : > { %vm4241_vm12 = vcmp.ge.f32.partialorder %v4191_v13, 0.0  ;;  %v4273_v49 = vmul.f32 0.1, %v4191_v13 }
 0x669   : > { %v4305_v36 = vsel %vm4241_vm12, %v4191_v13, %v4273_v49 }
 0x66a   : > { %4337 = vst.msk [vmem:[%s8766_s0 + $0xd8] sm:$0xff] %vm1345_vm4, %v4305_v36  ;;  %v3970_v50 = vpop.f32.mrb[82].mxu1 }
 0x66b   : > { %v3971_v30 = vadd.f32 %v8757_v3, %v3970_v50  ;;  %v3972_v56 = vpop.f32.mrb[83].mxu1 }
 0x66d   : > { %v4196_v11 = vadd.f32 %v8887_v27, %v3971_v30 }
 0x66e   : > { %v3975_v35 = vpop.f32.mrb[84].mxu1 }
 0x66f   : > { %vm4242_vm14 = vcmp.ge.f32.partialorder %v4196_v11, 0.0  ;;  %v4274_v17 = vmul.f32 0.1, %v4196_v11  ;;  %v3976_v51 = vadd.f32 %v8757_v3, %v3975_v35  ;;  %v3977_v12 = vpop.f32.mrb[85].mxu1 }
 0x671   : > { %v4306_v62 = vsel %vm4242_vm14, %v4196_v11, %v4274_v17  ;;  %v4201_v15 = vadd.f32 %v8883_v21, %v3976_v51 }
 0x672   : > { %4338 = vst.msk [vmem:[%s8766_s0 + $0xe0] sm:$0xff] %vm1345_vm4, %v4306_v62  ;;  %v3980_v53 = vpop.f32.mrb[86].mxu1 }
 0x673   : > { %vm4243_vm15 = vcmp.ge.f32.partialorder %v4201_v15, 0.0  ;;  %v4275_v10 = vmul.f32 0.1, %v4201_v15  ;;  %v3981_v59 = vadd.f32 %v8757_v3, %v3980_v53  ;;  %v3982_v27 = vpop.f32.mrb[87].mxu1 }
 0x675   : > { %v4307_v34 = vsel %vm4243_vm15, %v4201_v15, %v4275_v10  ;;  %v4206_v16 = vadd.f32 %v8895_v18, %v3981_v59 }
 0x676   : > { %4339 = vst.msk [vmem:[%s8766_s0 + $0xe8] sm:$0xff] %vm1345_vm4, %v4307_v34  ;;  %v3985_v4 = vpop.f32.mrb[88].mxu1 }
 0x677   : > { %vm4244_vm7 = vcmp.ge.f32.partialorder %v4206_v16, 0.0  ;;  %v4276_v28 = vmul.f32 0.1, %v4206_v16  ;;  %v3986_v21 = vadd.f32 %v8757_v3, %v3985_v4  ;;  %v3987_v23 = vpop.f32.mrb[89].mxu1 }
 0x679   : > { %v4308_v55 = vsel %vm4244_vm7, %v4206_v16, %v4276_v28  ;;  %v4211_v54 = vadd.f32 %v8891_v44, %v3986_v21 }
 0x67a   : > { %4340 = vst.msk [vmem:[%s8766_s0 + $0xf0] sm:$0xff] %vm1345_vm4, %v4308_v55 }
 0x67b   : > { %vm4245_vm13 = vcmp.ge.f32.partialorder %v4211_v54, 0.0  ;;  %v4277_v20 = vmul.f32 0.1, %v4211_v54 }
 0x67d   : > { %v4309_v29 = vsel %vm4245_vm13, %v4211_v54, %v4277_v20 }
 0x67e   : > { %4341 = vst.msk [vmem:[%s8766_s0 + $0xf8] sm:$0xff] %vm1345_vm4, %v4309_v29 }
 0x67f PF: > { %s9356_s1 = sld [smem:[#allocation5_spill]]  ;;  %p5276_p5 = scmp.ge.s32.totalorder %s5973_s27, 2 }
 0x681   : > { %p5273_p1 = pnand %p5276_p5, %p6115_p6 }
 0x685   : > { %s4403_s30 = sand.u32 1, %s9356_s1  }
 0x686   : > { %s4404_s22 = scalar_lea.sflag [#allocation3], %s4403_s30 }
 0x687   : > { %5956 = dma.done.wait (!%p5273_p1), %s4404_s22, 256  }
 0x688   : > { %5958 = vsyncadd (!%p5273_p1), %s4404_s22, 4294967040  ;;  %s9358_s27 = sld [smem:[#allocation7_spill]]  ;;  %s9359_s5 = sld [smem:[#allocation6_spill]] }
 0x689   : > { %s9360_s26 = sld [smem:[#allocation8_spill]]  ;;  %s9361_s24 = smov %s5965_s25 }
 0x68e   : > { %p28_p2 = scmp.ge.s32.totalorder %s9358_s27, 4   ;;  %s9362_s25 = smov %s9359_s5 }
 0x690   :  { %30 = sbr.rel (!%p28_p2) target bundleno = 8 (0x8), region = 145 }
 0x697   :  { %4409 = vsyncpa [#allocation3], 1 }
 0x698   :  { %4411 = vsyncpa [#allocation3 + $0x1], 1 }

// kernel: tpu_custom_call.1
= control target key start
LH: loop header
LB: loop body
LE: loop exit
PB: predicated region body
PF: predicated region fallthrough
CT: control target
= control target key end

     0   :  { %s11287_s0 = inlined_call_operand.vmem [shape: f32[2,256,16], index: 0, kind: input, shape index: {}]   ;;  %s11288_s1 = inlined_call_operand.vmem [shape: f32[2,64,24], index: 1, kind: input, shape index: {}]   ;;  %s11289_s2 = inlined_call_operand.vmem [shape: f32[2,16,40], index: 2, kind: input, shape index: {}]   ;;  %s11290_s3 = inlined_call_operand.vmem [shape: f32[16,32], index: 3, kind: input, shape index: {}]   ;;  %s11291_s4 = inlined_call_operand.vmem [shape: f32[1,32], index: 4, kind: input, shape index: {}]   ;;  %s11292_s5 = inlined_call_operand.vmem [shape: f32[24,32], index: 5, kind: input, shape index: {}]   ;;  %s11293_s6 = inlined_call_operand.vmem [shape: f32[1,32], index: 6, kind: input, shape index: {}]   ;;  %s11294_s7 = inlined_call_operand.vmem [shape: f32[40,32], index: 7, kind: input, shape index: {}]   ;;  %s11295_s8 = inlined_call_operand.vmem [shape: f32[1,32], index: 8, kind: input, shape index: {}]   ;;  %s11296_s9 = inlined_call_operand.vmem [shape: f32[288,32], index: 9, kind: input, shape index: {}]   ;;  %s11297_s10 = inlined_call_operand.vmem [shape: f32[1,32], index: 10, kind: input, shape index: {}]   ;;  %s11298_s11 = inlined_call_operand.vmem [shape: f32[288,32], index: 11, kind: input, shape index: {}]   ;;  %s11299_s12 = inlined_call_operand.vmem [shape: f32[1,32], index: 12, kind: input, shape index: {}]   ;;  %s11300_s13 = inlined_call_operand.vmem [shape: f32[64,16], index: 13, kind: input, shape index: {}]   ;;  %s11301_s14 = inlined_call_operand.vmem [shape: f32[256,64], index: 14, kind: input, shape index: {}]   ;;  %s11302_s15 = inlined_call_operand.vmem [shape: f32[2,256,32], index: 15, kind: output, shape index: {0}]   ;;  %s11303_s16 = inlined_call_operand.vmem [shape: f32[2,64,32], index: 16, kind: output, shape index: {1}]   ;;  %s11304_s17 = inlined_call_operand.hbm [shape: f32[2,16,32], index: 17, kind: output, shape index: {2}]  }
   0x1   :  { %11393 = sst [smem:[#allocation56_spill]] %s11287_s0 }
   0x2   :  { %11394 = sst [smem:[#allocation57_spill]] %s11288_s1 }
   0x3   :  { %11395 = sst [smem:[#allocation58_spill]] %s11290_s3 }
   0x4   :  { %23 = vsyncpa [#allocation3], 0 }
   0x5   :  { %25 = vsyncpa [#allocation3 + $0x1], 0  ;;  %s8856_s24 = smov 0   ;;  %s8858_s25 = smov 0  }
   0x6   :  { %s8860_s26 = smov 0   ;;  %s8862_s27 = smov 0  }
   0x7 LB: > { %11396 = sst [smem:[#allocation5_spill]] %s8748_s24  ;;  %s8877_s28 = sadd.s32 4294967295, %s8760_s27   ;;  %s8760_s27 = sphi %s8862_s27, %s11546_s27   ;;  %s8756_s26 = sphi %s8860_s26, %s11548_s26   ;;  %s8752_s25 = sphi %s8858_s25, %s11550_s25   ;;  %s8748_s24 = sphi %s8856_s24, %s11549_s24  }
   0x8   : > { %11397 = sst [smem:[#allocation6_spill]] %s8756_s26  ;;  %s6300_s29 = sadd.s32 4294967294, %s8760_s27  }
   0x9   : > { %11398 = sst [smem:[#allocation7_spill]] %s8760_s27  ;;  %s8881_s0 = sadd.s32 1, %s8760_s27  }
   0xa   : > { %11399 = sst [smem:[#allocation8_spill]] %s8881_s0  ;;  %s420_s30 = sadd.s32 1, %s8756_s26 }
   0xb   : > { %s417_s18 = ssub.s32 %s8760_s27, %s8881_s0  ;;  %p430_p0 = scmp.ne.s32.totalorder %s8756_s26, %s8752_s25 }
   0xc   : > { %p418_p1 = scmp.eq.s32.totalorder %s417_s18, 0  ;;  %p431_p2 = scmp.eq.s32.totalorder %s8877_s28, 1 }
   0xd   : > { %p436_p3 = scmp.ne.s32.totalorder %s8752_s25, %s8748_s24  ;;  %p437_p4 = scmp.eq.s32.totalorder %s6300_s29, 1 }
   0xe   : > { %s8892_s19 = scalar_select %p418_p1, %s8756_s26, %s420_s30  }
   0xf   : > { %p8894_p5 = por %p431_p2, %p430_p0  ;;  %p8898_p6 = por %p437_p4, %p436_p3 }
  0x10   : > { %11400 = sst [smem:[#allocation9_spill]] %s8892_s19  ;;  %p6303_p7 = scmp.ge.s32.totalorder %s8760_s27, 1 }
  0x11   : > { %s11402_s20 = scalar_select %p8898_p6, 1, 0 }
  0x12   : > { %p515_p8 = scmp.lt.s32.totalorder %s8760_s27, 3 }
  0x13   : > { %11403 = sst [smem:[#allocation10_spill]] %s11402_s20 }
  0x14   : > { %p516_p9 = pnand %p6303_p7, %p515_p8 }
  0x16   : > { %519 = sbr.rel (%p516_p9) target bundleno = 1696 (0x6a0), region = 80 }
  0x1d   : > { %s11404_s3 = sld [smem:[#allocation58_spill]]  ;;  %p587_p10 = scmp.lt.s32.totalorder %s8877_s28, 1  ;;  %v1079_v2 = vld [vmem:[%s11292_s5] sm:$0xff]  ;;  %v1080_v4 = vld [vmem:[%s11292_s5 + $0x8] sm:$0xff]  ;;  %vm653_vm0 = vcmask 130048   ;;  %v1081_v8 = vld [vmem:[%s11292_s5 + $0x10] sm:$0xff] }
  0x1e   : > { %v8158_v5 = vpack.c.bf16 %v1080_v4, %v1079_v2  ;;  %s11405_s30 = sld [smem:[#allocation56_spill]]  ;;  %s11406_s24 = sld [smem:[#allocation57_spill]]  ;;  %vm1089_vm1 = vcmask 195584   ;;  %v1245_v10 = vld [vmem:[%s11294_s7] sm:$0xff]  ;;  %v1246_v11 = vld [vmem:[%s11294_s7 + $0x8] sm:$0xff]  ;;  %v1247_v12 = vld [vmem:[%s11294_s7 + $0x10] sm:$0xff] }
  0x1f   : > { %s8918_s0 = scalar_select %p587_p10, %s8877_s28, 1  ;;  %v1248_v13 = vld [vmem:[%s11294_s7 + $0x18] sm:$0xff]  ;;  %v8162_v14 = vpack.c.bf16 %v1246_v11, %v1245_v10  ;;  %v1249_v20 = vld [vmem:[%s11294_s7 + $0x20] sm:$0xff]  ;;  %vm1257_vm2 = vcmask 326656   ;;  %vm1345_vm4 = vcmask 261120   ;;  %v1618_v47 = vld [vmem:[%s11296_s9 + $0x28] sm:$0xff] }
  0x20   : > { %v8166_v17 = vpack.c.bf16 %v1248_v13, %v1247_v12  ;;  %v1348_v26 = vld [vmem:[%s11300_s13] sm:$0xff]  ;;  %s584_s29 = sand.u32 1, %s8752_s25   ;;  %v1349_v52 = vld [vmem:[%s11300_s13 + $0x8] sm:$0xff]  ;;  %v1350_v53 = vld [vmem:[%s11300_s13 + $0x10] sm:$0xff]  ;;  %vm1520_vm6 = vcmask 1040384   ;;  %v8762_v62 = vmov 0.0  }
  0x21   : > { %s11311_s21 = sshll.u32 %s8918_s0, 8  ;;  %s6768_s22 = sshll.u32 %s8918_s0, 6  ;;  %v9001_v35 = vld [vmem:[%s11293_s6] ss:$0 sm:$0xff]  ;;  %v1351_v54 = vld [vmem:[%s11300_s13 + $0x18] sm:$0xff]  ;;  %v1353_v56 = vld [vmem:[%s11300_s13 + $0x28] sm:$0xff] }
  0x22   : > { %v6357_v39 = vld [vmem:[%s11295_s8] ss:$0 sm:$0xff]  ;;  %v1354_v57 = vld [vmem:[%s11300_s13 + $0x30] sm:$0xff]  ;;  %v1355_v58 = vld [vmem:[%s11300_s13 + $0x38] sm:$0xff]  ;;  %v9060_v63 = vrot.slane %v8762_v62, 7  ;;  %vm1555_vm7 = vcmask 1046528  }
  0x23   : > { %v644_v0 = vld [vmem:[%s11404_s3] sm:$0xff]  ;;  %v645_v1 = vld [vmem:[%s11404_s3 + $0x8] sm:$0xff]  ;;  %s6304_s3 = sshll.u32 %s584_s29, 4  ;;  %v1619_v59 = vld [vmem:[%s11296_s9 + $0x30] sm:$0xff] }
  0x24   : > { %v8154_v3 = vpack.c.bf16 %v645_v1, %v644_v0  ;;  %s8927_s26 = scalar_lea.vmem %s11405_s30, %s11311_s21  ;;  %s8939_s27 = scalar_lea.vmem %s11406_s24, %s6768_s22  ;;  %v1617_v46 = vld [vmem:[%s11296_s9 + $0x20] sm:$0xff]  ;;  %v1620_v60 = vld [vmem:[%s11296_s9 + $0x38] sm:$0xff]  ;;  %v9064_v0 = vsel %vm1520_vm6, 0.0, %v9060_v63  ;;  %v9068_v1 = vsel %vm1520_vm6, %v9060_v63, 0.0 }
  0x25   : > { %v642_v6 = vld [vmem:[%s8927_s26 + $0xf0] sm:$0xff]  ;;  %v643_v7 = vld [vmem:[%s8927_s26 + $0xf8] sm:$0xff]  ;;  %v1071_v9 = vld [vmem:[%s8939_s27] sm:$0xff]  ;;  %s6769_s30 = sshll.u32 %s8918_s0, 4  ;;  %s9020_s23 = scalar_lea.vmem [#allocation2], %s6304_s3  ;;  %v8174_v51 = vpack.c.bf16 %v1618_v47, %v1617_v46  ;;  %v8178_v61 = vpack.c.bf16 %v1620_v60, %v1619_v59  ;;  %11407 = vst [vmem:[#allocation11_spill] sm:$0xff] %v9068_v1 }
  0x26   : > { %8334 = vmatprep.subr.bf16.mxu1 %v8154_v3  ;;  %8155 = vmatprep.subr.bf16.mxu0 %v8154_v3  ;;  %v1072_v15 = vld [vmem:[%s8939_s27 + $0x8] sm:$0xff]  ;;  %v1073_v16 = vld [vmem:[%s8939_s27 + $0x10] sm:$0xff]  ;;  %v1074_v18 = vld [vmem:[%s8939_s27 + $0x18] sm:$0xff]  ;;  %s601_s24 = scalar_lea.vmem %s11289_s2, %s6769_s30  ;;  %v1556_v2 = vrot.slane %v9064_v0, 1  ;;  %s6164_s21 = sshll.u32 %s9020_s23, 4  ;;  %s11102_s21 = int_to_ptr.vmem [resolvable:$true] %s6164_s21 }
  0x27   : > { %8335 = vmatpush3.bf16.msra.mxu1 %v8154_v3  ;;  %8157 = vmatpush3.bf16.msra.mxu0 %v8154_v3  ;;  %v1075_v19 = vld [vmem:[%s8939_s27 + $0x20] sm:$0xff]  ;;  %v1076_v21 = vld [vmem:[%s8939_s27 + $0x28] sm:$0xff]  ;;  %v1077_v22 = vld [vmem:[%s8939_s27 + $0x30] sm:$0xff]  ;;  %v1557_v3 = vrot.slane %v9068_v1, 1  ;;  %s8698_s20 = scalar_lea.vmem %s11102_s21, 256 }
  0x28   : > { %8159 = vmatprep.subr.bf16.mxu1 %v8158_v5  ;;  %7356 = vmatprep.mubr.msk.f32.mxu1 %vm653_vm0, %v642_v6  ;;  %v1078_v23 = vld [vmem:[%s8939_s27 + $0x38] sm:$0xff]  ;;  %v1243_v24 = vld [vmem:[%s601_s24] sm:$0xff]  ;;  %v1244_v25 = vld [vmem:[%s601_s24 + $0x8] sm:$0xff]  ;;  %s9546_s27 = scalar_lea.vmem %s11303_s16, %s6768_s22  ;;  %s6772_s22 = sshll.u32 %s8877_s28, 8 }
  0x29   : > { %v1352_v55 = vld [vmem:[%s11300_s13 + $0x20] sm:$0xff]  ;;  %v9077_v4 = vsel %vm1555_vm7, %v1556_v2, %v1557_v3  ;;  %v1614_v6 = vld [vmem:[%s11296_s9 + $0x8] sm:$0xff]  ;;  %s11100_s19 = scalar_lea.hbm %s11304_s17, %s6772_s22  ;;  %s11106_s24 = scalar_lea.sflag [#allocation3], %s584_s29 }
  0x2a   : > { %7357 = vmatmul.mubr.msk.f32.vlgmr.msra.gmra.mrb[0].mxu1 %vm653_vm0, %v643_v7  ;;  %v1622_v59 = vld [vmem:[%s11296_s9 + $0x48] sm:$0xff]  ;;  %p8699_p11 = scmp.ne.s32.totalorder %s11102_s21, %s8698_s20 }
  0x2b   : > { %8161 = vmatpush3.bf16.msra.mxu1 %v8158_v5  ;;  %7365 = vmatprep.mubr.msk.f32.mxu1 %vm1089_vm1, %v1071_v9  ;;  %v1613_v5 = vld [vmem:[%s11296_s9] sm:$0xff] }
  0x2c   : > { %7363 = vmatprep.subr.mxu1 %v1081_v8  ;;  %v9087_v7 = vpack.c.bf16 %v1614_v6, %v1613_v5  ;;  %p8700_p12 = pnand %p8699_p11, %p8894_p5 }
  0x2e   : > { %p8701_p13 = pneg %p8700_p12 }
  0x2f   : > { %7364 = vmatpush3.msra.mxu1 %v1081_v8 }
  0x30   : > { %7366 = vmatmul.mubr.msk.f32.vlgmr.msra.gmra.mrb[2].mxu1 %vm1089_vm1, %v1072_v15  ;;  %8163 = vmatprep.subr.bf16.mxu1 %v8162_v14 }
  0x31   : > { %8165 = vmatpush3.bf16.msra.mxu1 %v8162_v14  ;;  %7368 = vmatprep.mubr.msk.f32.mxu1 %vm1089_vm1, %v1073_v16 }
  0x32   : > { %8167 = vmatprep.subr.bf16.mxu1 %v8166_v17 }
  0x34   : > { %7369 = vmatmul.mubr.msk.f32.gmra.mrb[4].mxu1 %vm1089_vm1, %v1074_v18 }
  0x35   : > { %7371 = vmatprep.mubr.msk.f32.mxu1 %vm1089_vm1, %v1075_v19  ;;  %8169 = vmatpush3.bf16.msra.mxu1 %v8166_v17 }
  0x36   : > { %7385 = vmatprep.subr.mxu1 %v1249_v20 }
  0x38   : > { %7372 = vmatmul.mubr.msk.f32.gmra.mrb[6].mxu1 %vm1089_vm1, %v1076_v21 }
  0x39   : > { %7374 = vmatprep.mubr.msk.f32.mxu1 %vm1089_vm1, %v1077_v22  ;;  %7386 = vmatpush3.msra.mxu1 %v1249_v20 }
  0x3c   : > { %7375 = vmatmul.mubr.msk.f32.gmra.mrb[8].mxu1 %vm1089_vm1, %v1078_v23  ;;  %vm1580_vm1 = vcmask 1045504  }
  0x3d   : > { %7387 = vmatprep.mubr.msk.f32.mxu1 %vm1257_vm2, %v1243_v24 }
  0x40   : > { %7388 = vmatmul.mubr.msk.f32.vlgmr.msra.gmra.mrb[10].mxu1 %vm1257_vm2, %v1244_v25  ;;  %vm2783_vm2 = vcmask 523264  }
  0x41   : > { %7394 = vmatprep.mubr.msk.f32.mxu1 %vm653_vm0, %v1348_v26 }
  0xfd   : > { %v8982_v27 = vpop.f32.mrb[0].mxu1 }
  0xfe   : > { %v8984_v28 = vpop.f32.mrb[1].mxu1 }
 0x103   : > { %v8986_v29 = vpop.f32.mrb[2].mxu1 }
 0x104   : > { %v8988_v30 = vpop.f32.mrb[3].mxu1  ;;  %v1186_v8 = vadd.f32 %v8986_v29, %v9001_v35 }
 0x105   : > { %v1181_v9 = vadd.f32 %v9001_v35, %v8988_v30 }
 0x106   : > { %v1228_v10 = vmul.f32 0.1, %v1186_v8  ;;  %vm1220_vm8 = vcmp.ge.f32.partialorder %v1186_v8, 0.0 }
 0x107   : > { %v8990_v31 = vpop.f32.mrb[4].mxu1  ;;  %v1227_v13 = vmul.f32 0.1, %v1181_v9  ;;  %vm1219_vm9 = vcmp.ge.f32.partialorder %v1181_v9, 0.0 }
 0x108   : > { %v8992_v32 = vpop.f32.mrb[5].mxu1  ;;  %v1196_v11 = vadd.f32 %v8990_v31, %v9001_v35  ;;  %v1236_v18 = vsel %vm1220_vm8, %v1186_v8, %v1228_v10 }
 0x109   : > { %v1191_v12 = vadd.f32 %v9001_v35, %v8992_v32  ;;  %v1235_v21 = vsel %vm1219_vm9, %v1181_v9, %v1227_v13 }
 0x10a   : > { %v1230_v15 = vmul.f32 0.1, %v1196_v11  ;;  %vm1222_vm10 = vcmp.ge.f32.partialorder %v1196_v11, 0.0 }
 0x10b   : > { %v8994_v33 = vpop.f32.mrb[6].mxu1  ;;  %v1229_v16 = vmul.f32 0.1, %v1191_v12  ;;  %vm1221_vm11 = vcmp.ge.f32.partialorder %v1191_v12, 0.0 }
 0x10c   : > { %v8996_v34 = vpop.f32.mrb[7].mxu1  ;;  %v1206_v14 = vadd.f32 %v8994_v33, %v9001_v35  ;;  %v1238_v30 = vsel %vm1222_vm10, %v1196_v11, %v1230_v15 }
 0x10d   : > { %v1201_v17 = vadd.f32 %v9001_v35, %v8996_v34  ;;  %v1237_v32 = vsel %vm1221_vm11, %v1191_v12, %v1229_v16 }
 0x10e   : > { %v1232_v23 = vmul.f32 0.1, %v1206_v14  ;;  %vm1224_vm12 = vcmp.ge.f32.partialorder %v1206_v14, 0.0 }
 0x10f   : > { %v7376_v36 = vpop.f32.mrb[8].mxu1  ;;  %v1231_v26 = vmul.f32 0.1, %v1201_v17  ;;  %vm1223_vm13 = vcmp.ge.f32.partialorder %v1201_v17, 0.0 }
 0x110   : > { %v9004_v37 = vadd.f32 %v7376_v36, %v9001_v35  ;;  %v9006_v38 = vpop.f32.mrb[9].mxu1 }
 0x111   : > { %v1211_v33 = vadd.f32 %v9001_v35, %v9006_v38  ;;  %v1240_v38 = vsel %vm1224_vm12, %v1206_v14, %v1232_v23 }
 0x112   : > { %vm1226_vm14 = vcmp.ge.f32.partialorder %v9004_v37, 0.0 }
 0x113   : > { %v7389_v40 = vpop.f32.mrb[10].mxu1  ;;  %vm1225_vm15 = vcmp.ge.f32.partialorder %v1211_v33, 0.0 }
 0x114   : > { %v1336_v41 = vadd.f32 %v7389_v40, %v6357_v39  ;;  %v1330_v42 = vpop.f32.mrb[11].mxu1 }
 0x115   : > { %v1331_v43 = vadd.f32 %v6357_v39, %v1330_v42  ;;  %v1616_v42 = vld [vmem:[%s11296_s9 + $0x18] sm:$0xff] }
 0x116   : > { %vm1340_vm3 = vcmp.ge.f32.partialorder %v1336_v41, 0.0  ;;  %v1342_v44 = vmul.f32 0.1, %v1336_v41 }
 0x117   : > { %vm1339_vm5 = vcmp.ge.f32.partialorder %v1331_v43, 0.0  ;;  %v1341_v45 = vmul.f32 0.1, %v1331_v43 }
 0x118   : > { %v1344_v48 = vsel %vm1340_vm3, %v1336_v41, %v1342_v44  ;;  %v1615_v41 = vld [vmem:[%s11296_s9 + $0x10] sm:$0xff]  ;;  %v1234_v44 = vmul.f32 0.1, %v9004_v37 }
 0x119   : > { %v1343_v49 = vsel %vm1339_vm5, %v1331_v43, %v1341_v45  ;;  %1347 = vst.msk [vmem:[%s9020_s23 + $0x8] sm:$0xff] %vm1345_vm4, %v1344_v48 }
 0x11a   : > { %1346 = vst.msk [vmem:[%s9020_s23] sm:$0xff] %vm1345_vm4, %v1343_v49  ;;  %v8170_v50 = vpack.c.bf16 %v1344_v48, %v1343_v49  ;;  %v1242_v14 = vsel %vm1226_vm14, %v9004_v37, %v1234_v44  ;;  %s8763_s23 = smov [#allocation2]  }
 0x11b   : > { %s8702_s28 = sshll.u32 %s8763_s23, 4  ;;  %s8703_s28 = int_to_ptr.vmem [resolvable:$false] %s8702_s28 }
 0x11c   : > { %8171 = vmatprep.subr.bf16.mxu1 %v8170_v50  ;;  %p8705_p0 = scmp.lt.s32.totalorder %s11102_s21, %s8703_s28 }
 0x11d   : > { %8173 = vmatpush3.bf16.msra.mxu1 %v8170_v50 }
 0x11e   : > { %8175 = vmatprep.subr.bf16.mxu1 %v8174_v51 }
 0x120   : > { %7395 = vmatmul.mubr.msk.f32.vlgmr.msra.gmra.mrb[12].mxu1 %vm653_vm0, %v1349_v52  ;;  %v8186_v52 = vpack.c.bf16 %v1616_v42, %v1615_v41 }
 0x121   : > { %7397 = vmatprep.mubr.msk.f32.mxu1 %vm653_vm0, %v1350_v53  ;;  %8177 = vmatpush3.bf16.msra.mxu1 %v8174_v51  ;;  %v1233_v53 = vmul.f32 0.1, %v1211_v33 }
 0x122   : > { %8179 = vmatprep.subr.bf16.mxu1 %v8178_v61 }
 0x123   : > { %v1241_v15 = vsel %vm1225_vm15, %v1211_v33, %v1233_v53  ;;  %v11312_v53 = vrot.slane %v9068_v1, 2 }
 0x124   : > { %7398 = vmatmul.mubr.msk.f32.gmra.mrb[14].mxu1 %vm653_vm0, %v1351_v54 }
 0x125   : > { %7400 = vmatprep.mubr.msk.f32.mxu1 %vm653_vm0, %v1352_v55  ;;  %8181 = vmatpush3.bf16.msra.mxu1 %v8178_v61  ;;  %v1239_v55 = vsel %vm1223_vm13, %v1201_v17, %v1231_v26 }
 0x126   : > { %8183 = vmatprep.subr.bf16.mxu1 %v9087_v7 }
 0x128   : > { %7401 = vmatmul.mubr.msk.f32.gmra.mrb[16].mxu1 %vm653_vm0, %v1353_v56 }
 0x129   : > { %7403 = vmatprep.mubr.msk.f32.mxu1 %vm653_vm0, %v1354_v57 }
 0x12c   : > { %7404 = vmatmul.mubr.msk.f32.gmra.mrb[18].mxu1 %vm653_vm0, %v1355_v58  ;;  %v1621_v58 = vld [vmem:[%s11296_s9 + $0x40] sm:$0xff] }
 0x12d   : > { %7414 = vmatprep.mubr.msk.f32.mxu1 %vm1345_vm4, %v9077_v4  ;;  %v8190_v12 = vpack.c.bf16 %v1622_v59, %v1621_v58  ;;  %v1627_v58 = vld [vmem:[%s11296_s9 + $0x70] sm:$0xff]  ;;  %v1628_v59 = vld [vmem:[%s11296_s9 + $0x78] sm:$0xff] }
 0x1f3   : > { %v7396_v19 = vpop.f32.mrb[12].mxu1 }
 0x1f4   : > { %v1486_v20 = vadd.f32 %v7396_v19, %v1236_v18  ;;  %v1446_v22 = vpop.f32.mrb[13].mxu1 }
 0x1f5   : > { %v1485_v24 = vadd.f32 %v1446_v22, %v1235_v21 }
 0x1f6   : > { %v1504_v25 = vrot.slane %v1486_v20, 7 }
 0x1f7   : > { %v1503_v29 = vrot.slane %v1485_v24, 7  ;;  %v7399_v31 = vpop.f32.mrb[14].mxu1 }
 0x1f8   : > { %v9105_v34 = vsel %vm1520_vm6, 0.0, %v1504_v25  ;;  %v9108_v36 = vsel %vm1520_vm6, %v1504_v25, 0.0  ;;  %v1488_v39 = vadd.f32 %v7399_v31, %v1238_v30  ;;  %v1456_v40 = vpop.f32.mrb[15].mxu1 }
 0x1f9   : > { %v9117_v43 = vsel %vm1520_vm6, 0.0, %v1503_v29  ;;  %v9120_v35 = vsel %vm1520_vm6, %v1503_v29, 0.0  ;;  %v1563_v45 = vrot.slane %v9108_v36, 1  ;;  %v1487_v49 = vadd.f32 %v1456_v40, %v1237_v32 }
 0x1fa   : > { %v1559_v46 = vrot.slane %v9117_v43, 1  ;;  %v1560_v47 = vrot.slane %v9120_v35, 1  ;;  %v1506_v48 = vrot.slane %v1488_v39, 7  ;;  %v1562_v51 = vrot.slane %v9105_v34, 1 }
 0x1fb   : > { %v7402_v50 = vpop.f32.mrb[16].mxu1  ;;  %v1505_v60 = vrot.slane %v1487_v49, 7  ;;  %v1625_v49 = vld [vmem:[%s11296_s9 + $0x60] sm:$0xff] }
 0x1fc   : > { %v1490_v54 = vadd.f32 %v7402_v50, %v1240_v38  ;;  %v1466_v56 = vpop.f32.mrb[17].mxu1  ;;  %v9128_v57 = vsel %vm1555_vm7, %v1559_v46, %v1560_v47  ;;  %v9140_v62 = vsel %vm1520_vm6, %v1506_v48, 0.0  ;;  %v9143_v6 = vsel %vm1555_vm7, %v1562_v51, %v1563_v45  ;;  %v1623_v46 = vld [vmem:[%s11296_s9 + $0x50] sm:$0xff]  ;;  %v1624_v47 = vld [vmem:[%s11296_s9 + $0x58] sm:$0xff]  ;;  %v1626_v50 = vld [vmem:[%s11296_s9 + $0x68] sm:$0xff] }
 0x1fd   : > { %v1489_v61 = vadd.f32 %v1466_v56, %v1239_v55  ;;  %7415 = vmatmul.mubr.msk.f32.vlgmr.msra.gmra.mrb[20].mxu1 %vm1345_vm4, %v9128_v57  ;;  %v9147_v8 = vsel %vm1520_vm6, 0.0, %v1506_v48  ;;  %v9150_v9 = vsel %vm1520_vm6, %v1505_v60, 0.0  ;;  %v9155_v13 = vsel %vm1520_vm6, 0.0, %v1505_v60 }
 0x1fe   : > { %v1508_v5 = vrot.slane %v1490_v54, 7  ;;  %8185 = vmatpush3.bf16.msra.mxu1 %v9087_v7  ;;  %7417 = vmatprep.mubr.msk.f32.mxu1 %vm1345_vm4, %v9143_v6  ;;  %v1569_v16 = vrot.slane %v9140_v62, 1  ;;  %v1566_v17 = vrot.slane %v9150_v9, 1  ;;  %v1568_v37 = vrot.slane %v9147_v8, 1 }
 0x1ff   : > { %v1507_v10 = vrot.slane %v1489_v61, 7  ;;  %v7405_v11 = vpop.f32.mrb[18].mxu1  ;;  %8187 = vmatprep.subr.bf16.mxu1 %v8186_v52  ;;  %v1565_v25 = vrot.slane %v9155_v13, 1  ;;  %v8194_v48 = vpack.c.bf16 %v1624_v47, %v1623_v46  ;;  %v8198_v51 = vpack.c.bf16 %v1626_v50, %v1625_v49  ;;  %v1636_v49 = vld [vmem:[%s11296_s9 + $0xb8] sm:$0xff]  ;;  %v1637_v50 = vld [vmem:[%s11296_s9 + $0xc0] sm:$0xff] }
 0x200   : > { %v1476_v7 = vpop.f32.mrb[19].mxu1  ;;  %v9167_v20 = vsel %vm1520_vm6, %v1508_v5, 0.0  ;;  %v9169_v21 = vadd.f32 %v7405_v11, %v1242_v14  ;;  %v9173_v23 = vsel %vm1520_vm6, 0.0, %v1508_v5  ;;  %v9191_v39 = vsel %vm1555_vm7, %v1568_v37, %v1569_v16 }
 0x201   : > { %v9161_v18 = vsel %vm1520_vm6, 0.0, %v1507_v10  ;;  %v9164_v19 = vsel %vm1520_vm6, %v1507_v10, 0.0  ;;  %v1491_v22 = vadd.f32 %v1476_v7, %v1241_v15  ;;  %v1575_v30 = vrot.slane %v9167_v20, 1 }
 0x202   : > { %8189 = vmatpush3.bf16.msra.mxu1 %v8186_v52  ;;  %v1572_v24 = vrot.slane %v9164_v19, 1  ;;  %v1571_v26 = vrot.slane %v9161_v18, 1  ;;  %v9180_v31 = vsel %vm1555_vm7, %v1565_v25, %v1566_v17  ;;  %v1574_v40 = vrot.slane %v9173_v23, 1 }
 0x203   : > { %8191 = vmatprep.subr.bf16.mxu1 %v8190_v12  ;;  %v1509_v29 = vrot.slane %v1491_v22, 7  ;;  %7418 = vmatmul.mubr.msk.f32.gmra.mrb[22].mxu1 %vm1345_vm4, %v9180_v31  ;;  %v11313_v52 = vrot.slane %v9064_v0, 2  ;;  %v1584_v55 = vrot.slane %v9117_v43, 2  ;;  %v1585_v56 = vrot.slane %v9120_v35, 2 }
 0x204   : > { %7420 = vmatprep.mubr.msk.f32.mxu1 %vm1345_vm4, %v9191_v39  ;;  %v9197_v41 = vsel %vm1555_vm7, %v1571_v26, %v1572_v24  ;;  %v9204_v44 = vsel %vm1555_vm7, %v1574_v40, %v1575_v30  ;;  %v1588_v60 = vrot.slane %v9108_v36, 2  ;;  %v1587_v61 = vrot.slane %v9105_v34, 2  ;;  %v1629_v36 = vld [vmem:[%s11296_s9 + $0x80] sm:$0xff]  ;;  %v1631_v30 = vld [vmem:[%s11296_s9 + $0x90] sm:$0xff] }
 0x205   : > { %v9183_v32 = vsel %vm1520_vm6, 0.0, %v1509_v29  ;;  %v9186_v33 = vsel %vm1520_vm6, %v1509_v29, 0.0  ;;  %v9246_v54 = vsel %vm1580_vm1, %v11313_v52, %v11312_v53  ;;  %v8202_v5 = vpack.c.bf16 %v1628_v59, %v1627_v58 }
 0x206   : > { %v1578_v42 = vrot.slane %v9186_v33, 1  ;;  %v1577_v38 = vrot.slane %v9183_v32, 1  ;;  %v1591_v35 = vrot.slane %v9150_v9, 2  ;;  %v9264_v10 = vsel %vm1580_vm1, %v1584_v55, %v1585_v56 }
 0x207   : > { %7421 = vmatmul.mubr.msk.f32.gmra.mrb[24].mxu1 %vm1345_vm4, %v9197_v41  ;;  %v1590_v11 = vrot.slane %v9155_v13, 2  ;;  %v1594_v14 = vrot.slane %v9140_v62, 2  ;;  %v9277_v9 = vsel %vm1580_vm1, %v1587_v61, %v1588_v60  ;;  %v1593_v15 = vrot.slane %v9147_v8, 2  ;;  %v1639_v60 = vld [vmem:[%s11296_s9 + $0xd0] sm:$0xff]  ;;  %v1640_v61 = vld [vmem:[%s11296_s9 + $0xd8] sm:$0xff] }
 0x208   : > { %7423 = vmatprep.mubr.msk.f32.mxu1 %vm1345_vm4, %v9204_v44  ;;  %v9209_v45 = vsel %vm1555_vm7, %v1577_v38, %v1578_v42  ;;  %v1597_v16 = vrot.slane %v9164_v19, 2  ;;  %v1596_v62 = vrot.slane %v9161_v18, 2  ;;  %v1600_v22 = vrot.slane %v9167_v20, 2  ;;  %v1633_v42 = vld [vmem:[%s11296_s9 + $0xa0] sm:$0xff]  ;;  %v1634_v38 = vld [vmem:[%s11296_s9 + $0xa8] sm:$0xff] }
 0x209   : > { %v9284_v17 = vsel %vm1580_vm1, %v1590_v11, %v1591_v35  ;;  %v9291_v37 = vsel %vm1580_vm1, %v1593_v15, %v1594_v14  ;;  %v1599_v24 = vrot.slane %v9173_v23, 2  ;;  %v1603_v19 = vrot.slane %v9186_v33, 2  ;;  %v1632_v33 = vld [vmem:[%s11296_s9 + $0x98] sm:$0xff]  ;;  %v1641_v35 = vld [vmem:[%s11296_s9 + $0xe0] sm:$0xff]  ;;  %v1642_v11 = vld [vmem:[%s11296_s9 + $0xe8] sm:$0xff] }
 0x20a   : > { %v9298_v25 = vsel %vm1580_vm1, %v1596_v62, %v1597_v16  ;;  %v1602_v20 = vrot.slane %v9183_v32, 2  ;;  %v8210_v40 = vpack.c.bf16 %v1632_v33, %v1631_v30  ;;  %v8214_v46 = vpack.c.bf16 %v1634_v38, %v1633_v42  ;;  %v1643_v15 = vld [vmem:[%s11296_s9 + $0xf0] sm:$0xff]  ;;  %v1645_v62 = vld [vmem:[%s11296_s9 + $0x100] sm:$0xff]  ;;  %v631_v33 = vld [vmem:[%s8927_s26 + $0x98] sm:$0xff] }
 0x20b   : > { %7424 = vmatmul.mubr.msk.f32.gmra.mrb[26].mxu1 %vm1345_vm4, %v9209_v45  ;;  %v9304_v26 = vsel %vm1580_vm1, %v1599_v24, %v1600_v22  ;;  %v1646_v22 = vld [vmem:[%s11296_s9 + $0x108] sm:$0xff]  ;;  %v630_v30 = vld [vmem:[%s8927_s26 + $0x90] sm:$0xff] }
 0x20c   : > { %7434 = vmatprep.mubr.msk.f32.mxu1 %vm1345_vm4, %v9064_v0  ;;  %v9309_v29 = vsel %vm1580_vm1, %v1602_v20, %v1603_v19  ;;  %v8238_v24 = vpack.c.bf16 %v1646_v22, %v1645_v62  ;;  %v625_v19 = vld [vmem:[%s8927_s26 + $0x68] sm:$0xff]  ;;  %v627_v20 = vld [vmem:[%s8927_s26 + $0x78] sm:$0xff]  ;;  %v634_v38 = vld [vmem:[%s8927_s26 + $0xb0] sm:$0xff] }
 0x20d   : > { %v633_v42 = vld [vmem:[%s8927_s26 + $0xa8] sm:$0xff] }
 0x20f   : > { %7435 = vmatmul.mubr.msk.f32.vlgmr.msra.gmra.mrb[20].mxu1 %vm1345_vm4, %v9117_v43 }
 0x210   : > { %7437 = vmatprep.mubr.msk.f32.mxu1 %vm1345_vm4, %v9105_v34  ;;  %8193 = vmatpush3.bf16.msra.mxu1 %v8190_v12  ;;  %v1630_v12 = vld [vmem:[%s11296_s9 + $0x88] sm:$0xff] }
 0x211   : > { %8195 = vmatprep.subr.bf16.mxu1 %v8194_v48  ;;  %v8206_v7 = vpack.c.bf16 %v1630_v12, %v1629_v36  ;;  %v8230_v36 = vpack.c.bf16 %v1642_v11, %v1641_v35 }
 0x213   : > { %7438 = vmatmul.mubr.msk.f32.gmra.mrb[22].mxu1 %vm1345_vm4, %v9155_v13 }
 0x214   : > { %7440 = vmatprep.mubr.msk.f32.mxu1 %vm1345_vm4, %v9147_v8  ;;  %8197 = vmatpush3.bf16.msra.mxu1 %v8194_v48  ;;  %v1635_v48 = vld [vmem:[%s11296_s9 + $0xb0] sm:$0xff] }
 0x215   : > { %8199 = vmatprep.subr.bf16.mxu1 %v8198_v51 }
 0x217   : > { %7441 = vmatmul.mubr.msk.f32.gmra.mrb[24].mxu1 %vm1345_vm4, %v9161_v18 }
 0x218   : > { %7443 = vmatprep.mubr.msk.f32.mxu1 %vm1345_vm4, %v9173_v23 }
 0x21b   : > { %7444 = vmatmul.mubr.msk.f32.gmra.mrb[26].mxu1 %vm1345_vm4, %v9183_v32 }
 0x21c   : > { %7454 = vmatprep.mubr.msk.f32.mxu1 %vm1345_vm4, %v9246_v54 }
 0x21f   : > { %7455 = vmatmul.mubr.msk.f32.vlgmr.msra.gmra.mrb[20].mxu1 %vm1345_vm4, %v9264_v10 }
 0x220   : > { %7457 = vmatprep.mubr.msk.f32.mxu1 %vm1345_vm4, %v9277_v9  ;;  %8201 = vmatpush3.bf16.msra.mxu1 %v8198_v51  ;;  %v1638_v51 = vld [vmem:[%s11296_s9 + $0xc8] sm:$0xff] }
 0x221   : > { %8203 = vmatprep.subr.bf16.mxu1 %v8202_v5  ;;  %v8222_v55 = vpack.c.bf16 %v1638_v51, %v1637_v50  ;;  %v641_v50 = vld [vmem:[%s8927_s26 + $0xe8] sm:$0xff]  ;;  %v3492_v51 = vld [vmem:[%s11298_s11 + $0x60] sm:$0xff] }
 0x223   : > { %7458 = vmatmul.mubr.msk.f32.gmra.mrb[22].mxu1 %vm1345_vm4, %v9284_v17 }
 0x224   : > { %7460 = vmatprep.mubr.msk.f32.mxu1 %vm1345_vm4, %v9291_v37  ;;  %8205 = vmatpush3.bf16.msra.mxu1 %v8202_v5  ;;  %v8226_v5 = vpack.c.bf16 %v1640_v61, %v1639_v60  ;;  %v6440_v60 = vld [vmem:[%s11297_s10] ss:$0 sm:$0xff] }
 0x225   : > { %8207 = vmatprep.subr.bf16.mxu1 %v8206_v7 }
 0x227   : > { %7461 = vmatmul.mubr.msk.f32.gmra.mrb[24].mxu1 %vm1345_vm4, %v9298_v25 }
 0x228   : > { %7463 = vmatprep.mubr.msk.f32.mxu1 %vm1345_vm4, %v9304_v26 }
 0x22b   : > { %7464 = vmatmul.mubr.msk.f32.gmra.mrb[26].mxu1 %vm1345_vm4, %v9309_v29 }
 0x22c   : > { %7474 = vmatprep.mubr.msk.f32.mxu1 %vm1345_vm4, %v9117_v43  ;;  %v1510_v43 = vrot.slane %v9169_v21, 7  ;;  %v8218_v21 = vpack.c.bf16 %v1636_v49, %v1635_v48  ;;  %v638_v48 = vld [vmem:[%s8927_s26 + $0xd0] sm:$0xff]  ;;  %v639_v49 = vld [vmem:[%s8927_s26 + $0xd8] sm:$0xff] }
 0x22e   : > { %v1529_v47 = vsel %vm1520_vm6, 0.0, %v1510_v43 }
 0x22f   : > { %7475 = vmatmul.mubr.msk.f32.vlgmr.msra.gmra.mrb[20].mxu1 %vm1345_vm4, %v9105_v34  ;;  %v1607_v56 = vrot.slane %v1529_v47, 1 }
 0x230   : > { %7477 = vmatprep.mubr.msk.f32.mxu1 %vm1345_vm4, %v9155_v13  ;;  %8209 = vmatpush3.bf16.msra.mxu1 %v8206_v7  ;;  %v1644_v7 = vld [vmem:[%s11296_s9 + $0xf8] sm:$0xff] }
 0x231   : > { %8211 = vmatprep.subr.bf16.mxu1 %v8210_v40  ;;  %v8234_v16 = vpack.c.bf16 %v1644_v7, %v1643_v15 }
 0x233   : > { %7478 = vmatmul.mubr.msk.f32.gmra.mrb[22].mxu1 %vm1345_vm4, %v9147_v8 }
 0x234   : > { %7480 = vmatprep.mubr.msk.f32.mxu1 %vm1345_vm4, %v9161_v18  ;;  %8213 = vmatpush3.bf16.msra.mxu1 %v8210_v40  ;;  %v632_v40 = vld [vmem:[%s8927_s26 + $0xa0] sm:$0xff] }
 0x235   : > { %8215 = vmatprep.subr.bf16.mxu1 %v8214_v46 }
 0x237   : > { %7481 = vmatmul.mubr.msk.f32.gmra.mrb[24].mxu1 %vm1345_vm4, %v9173_v23 }
 0x238   : > { %7483 = vmatprep.mubr.msk.f32.mxu1 %vm1345_vm4, %v9183_v32 }
 0x23b   : > { %7484 = vmatmul.mubr.msk.f32.gmra.mrb[26].mxu1 %vm1345_vm4, %v1529_v47 }
 0x23c   : > { %7494 = vmatprep.mubr.msk.f32.mxu1 %vm1345_vm4, %v9128_v57  ;;  %v1538_v57 = vsel %vm1520_vm6, %v1510_v43, 0.0  ;;  %v636_v43 = vld [vmem:[%s8927_s26 + $0xc0] sm:$0xff] }
 0x23d   : > { %v1608_v58 = vrot.slane %v1538_v57, 1  ;;  %v1611_v12 = vrot.slane %v1538_v57, 2  ;;  %v3494_v57 = vld [vmem:[%s11298_s11 + $0x70] sm:$0xff] }
 0x23f   : > { %7495 = vmatmul.mubr.msk.f32.vlgmr.msra.gmra.mrb[20].mxu1 %vm1345_vm4, %v9143_v6  ;;  %v1609_v59 = vsel %vm1555_vm7, %v1607_v56, %v1608_v58  ;;  %v3495_v58 = vld [vmem:[%s11298_s11 + $0x78] sm:$0xff] }
 0x240   : > { %7497 = vmatprep.mubr.msk.f32.mxu1 %vm1345_vm4, %v9180_v31  ;;  %8217 = vmatpush3.bf16.msra.mxu1 %v8214_v46  ;;  %v635_v46 = vld [vmem:[%s8927_s26 + $0xb8] sm:$0xff] }
 0x241   : > { %8219 = vmatprep.subr.bf16.mxu1 %v8218_v21 }
 0x243   : > { %7498 = vmatmul.mubr.msk.f32.gmra.mrb[22].mxu1 %vm1345_vm4, %v9191_v39 }
 0x244   : > { %7500 = vmatprep.mubr.msk.f32.mxu1 %vm1345_vm4, %v9197_v41  ;;  %8221 = vmatpush3.bf16.msra.mxu1 %v8218_v21  ;;  %v640_v21 = vld [vmem:[%s8927_s26 + $0xe0] sm:$0xff] }
 0x245   : > { %8223 = vmatprep.subr.bf16.mxu1 %v8222_v55 }
 0x247   : > { %7501 = vmatmul.mubr.msk.f32.gmra.mrb[24].mxu1 %vm1345_vm4, %v9204_v44 }
 0x248   : > { %7503 = vmatprep.mubr.msk.f32.mxu1 %vm1345_vm4, %v9209_v45 }
 0x24b   : > { %7504 = vmatmul.mubr.msk.f32.gmra.mrb[26].mxu1 %vm1345_vm4, %v1609_v59 }
 0x24c   : > { %7514 = vmatprep.mubr.msk.f32.mxu1 %vm1345_vm4, %v9264_v10  ;;  %v1610_v10 = vrot.slane %v1529_v47, 2 }
 0x24e   : > { %v1612_v14 = vsel %vm1580_vm1, %v1610_v10, %v1611_v12 }
 0x24f   : > { %7515 = vmatmul.mubr.msk.f32.vlgmr.msra.gmra.mrb[20].mxu1 %vm1345_vm4, %v9277_v9 }
 0x250   : > { %7517 = vmatprep.mubr.msk.f32.mxu1 %vm1345_vm4, %v9284_v17  ;;  %8225 = vmatpush3.bf16.msra.mxu1 %v8222_v55  ;;  %v3493_v55 = vld [vmem:[%s11298_s11 + $0x68] sm:$0xff] }
 0x251   : > { %8227 = vmatprep.subr.bf16.mxu1 %v8226_v5  ;;  %v8286_v56 = vpack.c.bf16 %v3493_v55, %v3492_v51  ;;  %v2761_v51 = vld [vmem:[%s11301_s14 + $0x50] sm:$0xff]  ;;  %v2762_v55 = vld [vmem:[%s11301_s14 + $0x58] sm:$0xff] }
 0x253   : > { %7518 = vmatmul.mubr.msk.f32.gmra.mrb[22].mxu1 %vm1345_vm4, %v9291_v37  ;;  %8287 = vmatprep.subr.bf16.mxu0 %v8286_v56 }
 0x254   : > { %7520 = vmatprep.mubr.msk.f32.mxu1 %vm1345_vm4, %v9298_v25  ;;  %8229 = vmatpush3.bf16.msra.mxu1 %v8226_v5 }
 0x255   : > { %8231 = vmatprep.subr.bf16.mxu1 %v8230_v36 }
 0x257   : > { %7521 = vmatmul.mubr.msk.f32.gmra.mrb[24].mxu1 %vm1345_vm4, %v9304_v26 }
 0x258   : > { %7523 = vmatprep.mubr.msk.f32.mxu1 %vm1345_vm4, %v9309_v29 }
 0x25b   : > { %7524 = vmatmul.mubr.msk.f32.gmra.mrb[26].mxu1 %vm1345_vm4, %v1612_v14 }
 0x25c   : > { %7534 = vmatprep.mubr.msk.f32.mxu1 %vm1345_vm4, %v9105_v34  ;;  %v1647_v34 = vld [vmem:[%s11296_s9 + $0x110] sm:$0xff] }
 0x25f   : > { %7535 = vmatmul.mubr.msk.f32.vlgmr.msra.gmra.mrb[20].mxu1 %vm1345_vm4, %v9155_v13 }
 0x260   : > { %7537 = vmatprep.mubr.msk.f32.mxu1 %vm1345_vm4, %v9147_v8  ;;  %8233 = vmatpush3.bf16.msra.mxu1 %v8230_v36  ;;  %v1648_v8 = vld [vmem:[%s11296_s9 + $0x118] sm:$0xff] }
 0x261   : > { %8235 = vmatprep.subr.bf16.mxu1 %v8234_v16  ;;  %v8242_v13 = vpack.c.bf16 %v1648_v8, %v1647_v34 }
 0x263   : > { %7538 = vmatmul.mubr.msk.f32.gmra.mrb[22].mxu1 %vm1345_vm4, %v9161_v18  ;;  %v614_v18 = vld [vmem:[%s8927_s26 + $0x10] sm:$0xff] }
 0x264   : > { %7540 = vmatprep.mubr.msk.f32.mxu1 %vm1345_vm4, %v9173_v23  ;;  %8237 = vmatpush3.bf16.msra.mxu1 %v8234_v16  ;;  %v615_v23 = vld [vmem:[%s8927_s26 + $0x18] sm:$0xff] }
 0x265   : > { %8239 = vmatprep.subr.bf16.mxu1 %v8238_v24 }
 0x267   : > { %7541 = vmatmul.mubr.msk.f32.gmra.mrb[24].mxu1 %vm1345_vm4, %v9183_v32  ;;  %v616_v32 = vld [vmem:[%s8927_s26 + $0x20] sm:$0xff] }
 0x268   : > { %7543 = vmatprep.mubr.msk.f32.mxu1 %vm1345_vm4, %v1529_v47  ;;  %v637_v47 = vld [vmem:[%s8927_s26 + $0xc8] sm:$0xff] }
 0x26b   : > { %7544 = vmatmul.mubr.msk.f32.gmra.mrb[26].mxu1 %vm1345_vm4, %v9064_v0 }
 0x26c   : > { %7554 = vmatprep.mubr.msk.f32.mxu1 %vm1345_vm4, %v9143_v6  ;;  %v613_v6 = vld [vmem:[%s8927_s26 + $0x8] sm:$0xff] }
 0x26f   : > { %7555 = vmatmul.mubr.msk.f32.vlgmr.msra.gmra.mrb[20].mxu1 %vm1345_vm4, %v9180_v31  ;;  %v2751_v31 = vld [vmem:[%s11301_s14] sm:$0xff] }
 0x270   : > { %7557 = vmatprep.mubr.msk.f32.mxu1 %vm1345_vm4, %v9191_v39  ;;  %8241 = vmatpush3.bf16.msra.mxu1 %v8238_v24  ;;  %v617_v39 = vld [vmem:[%s8927_s26 + $0x28] sm:$0xff] }
 0x271   : > { %8243 = vmatprep.subr.bf16.mxu1 %v8242_v13 }
 0x273   : > { %7558 = vmatmul.mubr.msk.f32.gmra.mrb[22].mxu1 %vm1345_vm4, %v9197_v41  ;;  %v618_v41 = vld [vmem:[%s8927_s26 + $0x30] sm:$0xff] }
 0x274   : > { %7560 = vmatprep.mubr.msk.f32.mxu1 %vm1345_vm4, %v9204_v44  ;;  %8245 = vmatpush3.bf16.msra.mxu1 %v8242_v13  ;;  %v619_v44 = vld [vmem:[%s8927_s26 + $0x38] sm:$0xff] }
 0x277   : > { %7561 = vmatmul.mubr.msk.f32.gmra.mrb[24].mxu1 %vm1345_vm4, %v9209_v45  ;;  %v620_v45 = vld [vmem:[%s8927_s26 + $0x40] sm:$0xff] }
 0x278   : > { %7563 = vmatprep.mubr.msk.f32.mxu1 %vm1345_vm4, %v1609_v59  ;;  %v8290_v59 = vpack.c.bf16 %v3495_v58, %v3494_v57  ;;  %v2763_v57 = vld [vmem:[%s11301_s14 + $0x60] sm:$0xff]  ;;  %v2765_v58 = vld [vmem:[%s11301_s14 + $0x70] sm:$0xff] }
 0x27b   : > { %7564 = vmatmul.mubr.msk.f32.gmra.mrb[26].mxu1 %vm1345_vm4, %v9077_v4  ;;  %v612_v4 = vld [vmem:[%s8927_s26] sm:$0xff] }
 0x27c   : > { %7574 = vmatprep.mubr.msk.f32.mxu1 %vm1345_vm4, %v9277_v9  ;;  %7311 = vmatprep.mubr.msk.f32.mxu0 %vm653_vm0, %v612_v4  ;;  %v622_v9 = vld [vmem:[%s8927_s26 + $0x50] sm:$0xff] }
 0x27d   : > { %7312 = vmatmul.mubr.msk.f32.vlgmr.msra.gmra.mrb[0].mxu0 %vm653_vm0, %v613_v6 }
 0x27e   : > { %7314 = vmatprep.mubr.msk.f32.mxu0 %vm653_vm0, %v614_v18  ;;  %8289 = vmatpush3.bf16.msra.mxu0 %v8286_v56  ;;  %v2764_v56 = vld [vmem:[%s11301_s14 + $0x68] sm:$0xff] }
 0x27f   : > { %7575 = vmatmul.mubr.msk.f32.vlgmr.msra.gmra.mrb[20].mxu1 %vm1345_vm4, %v9284_v17  ;;  %v623_v17 = vld [vmem:[%s8927_s26 + $0x58] sm:$0xff]  ;;  %8291 = vmatprep.subr.bf16.mxu0 %v8290_v59 }
 0x280   : > { %7577 = vmatprep.mubr.msk.f32.mxu1 %vm1345_vm4, %v9291_v37  ;;  %v624_v37 = vld [vmem:[%s8927_s26 + $0x60] sm:$0xff] }
 0x281   : > { %7315 = vmatmul.mubr.msk.f32.gmra.mrb[2].mxu0 %vm653_vm0, %v615_v23 }
 0x282   : > { %7317 = vmatprep.mubr.msk.f32.mxu0 %vm653_vm0, %v616_v32  ;;  %8293 = vmatpush3.bf16.msra.mxu0 %v8290_v59  ;;  %v2766_v59 = vld [vmem:[%s11301_s14 + $0x78] sm:$0xff] }
 0x283   : > { %7578 = vmatmul.mubr.msk.f32.gmra.mrb[22].mxu1 %vm1345_vm4, %v9298_v25  ;;  %v626_v25 = vld [vmem:[%s8927_s26 + $0x70] sm:$0xff] }
 0x284   : > { %7580 = vmatprep.mubr.msk.f32.mxu1 %vm1345_vm4, %v9304_v26  ;;  %v628_v26 = vld [vmem:[%s8927_s26 + $0x80] sm:$0xff] }
 0x285   : > { %7318 = vmatmul.mubr.msk.f32.gmra.mrb[4].mxu0 %vm653_vm0, %v617_v39 }
 0x286   : > { %7320 = vmatprep.mubr.msk.f32.mxu0 %vm653_vm0, %v618_v41 }
 0x287   : > { %7581 = vmatmul.mubr.msk.f32.gmra.mrb[24].mxu1 %vm1345_vm4, %v9309_v29  ;;  %v629_v29 = vld [vmem:[%s8927_s26 + $0x88] sm:$0xff] }
 0x288   : > { %7583 = vmatprep.mubr.msk.f32.mxu1 %vm1345_vm4, %v1612_v14 }
 0x289   : > { %7321 = vmatmul.mubr.msk.f32.gmra.mrb[6].mxu0 %vm653_vm0, %v619_v44 }
 0x28a   : > { %7323 = vmatprep.mubr.msk.f32.mxu0 %vm653_vm0, %v620_v45 }
 0x28b   : > { %7584 = vmatmul.mubr.msk.f32.gmra.mrb[26].mxu1 %vm1345_vm4, %v9246_v54  ;;  %v621_v54 = vld [vmem:[%s8927_s26 + $0x48] sm:$0xff]  ;;  %s8704_s26 = scalar_lea.vmem %s8703_s28, 512 }
 0x28c   : > { %7602 = vmatprep.mubr.msk.f32.mxu1 %vm2783_vm2, %v2751_v31  ;;  %p8706_p1 = scmp.lt.s32.totalorder %s8704_s26, %s8698_s20 }
 0x28d   : > { %7324 = vmatmul.mubr.msk.f32.gmra.mrb[8].mxu0 %vm653_vm0, %v621_v54 }
 0x28e   : > { %7326 = vmatprep.mubr.msk.f32.mxu0 %vm653_vm0, %v622_v9  ;;  %p8707_p2 = por %p8706_p1, %p8705_p0 }
 0x290   : > { %p8708_p3 = pnand %p8707_p2, %p8701_p13 }
 0x291   : > { %7327 = vmatmul.mubr.msk.f32.gmra.mrb[10].mxu0 %vm653_vm0, %v623_v17 }
 0x292   : > { %7329 = vmatprep.mubr.msk.f32.mxu0 %vm653_vm0, %v624_v37 }
 0x295   : > { %7330 = vmatmul.mubr.msk.f32.gmra.mrb[12].mxu0 %vm653_vm0, %v625_v19 }
 0x296   : > { %7332 = vmatprep.mubr.msk.f32.mxu0 %vm653_vm0, %v626_v25 }
 0x299   : > { %7333 = vmatmul.mubr.msk.f32.gmra.mrb[14].mxu0 %vm653_vm0, %v627_v20  ;;  %v3484_v20 = vld [vmem:[%s11298_s11 + $0x20] sm:$0xff] }
 0x29a   : > { %7335 = vmatprep.mubr.msk.f32.mxu0 %vm653_vm0, %v628_v26  ;;  %v3485_v26 = vld [vmem:[%s11298_s11 + $0x28] sm:$0xff] }
 0x29d   : > { %7336 = vmatmul.mubr.msk.f32.gmra.mrb[16].mxu0 %vm653_vm0, %v629_v29 }
 0x29e   : > { %7338 = vmatprep.mubr.msk.f32.mxu0 %vm653_vm0, %v630_v30 }
 0x2a1   : > { %7339 = vmatmul.mubr.msk.f32.gmra.mrb[18].mxu0 %vm653_vm0, %v631_v33 }
 0x2a2   : > { %7341 = vmatprep.mubr.msk.f32.mxu0 %vm653_vm0, %v632_v40  ;;  %v8262_v40 = vpack.c.bf16 %v3485_v26, %v3484_v20 }
 0x2a5   : > { %7342 = vmatmul.mubr.msk.f32.gmra.mrb[20].mxu0 %vm653_vm0, %v633_v42  ;;  %v2752_v42 = vld [vmem:[%s11301_s14 + $0x8] sm:$0xff] }
 0x2a6   : > { %7344 = vmatprep.mubr.msk.f32.mxu0 %vm653_vm0, %v634_v38  ;;  %v2753_v38 = vld [vmem:[%s11301_s14 + $0x10] sm:$0xff] }
 0x2a9   : > { %7345 = vmatmul.mubr.msk.f32.gmra.mrb[22].mxu0 %vm653_vm0, %v635_v46  ;;  %v2754_v46 = vld [vmem:[%s11301_s14 + $0x18] sm:$0xff] }
 0x2aa   : > { %7347 = vmatprep.mubr.msk.f32.mxu0 %vm653_vm0, %v636_v43  ;;  %v2755_v43 = vld [vmem:[%s11301_s14 + $0x20] sm:$0xff] }
 0x2ad   : > { %7348 = vmatmul.mubr.msk.f32.gmra.mrb[24].mxu0 %vm653_vm0, %v637_v47  ;;  %v2756_v47 = vld [vmem:[%s11301_s14 + $0x28] sm:$0xff] }
 0x2ae   : > { %7350 = vmatprep.mubr.msk.f32.mxu0 %vm653_vm0, %v638_v48  ;;  %v2757_v48 = vld [vmem:[%s11301_s14 + $0x30] sm:$0xff] }
 0x2b1   : > { %7351 = vmatmul.mubr.msk.f32.gmra.mrb[26].mxu0 %vm653_vm0, %v639_v49  ;;  %v2758_v49 = vld [vmem:[%s11301_s14 + $0x38] sm:$0xff] }
 0x2b2   : > { %7353 = vmatprep.mubr.msk.f32.mxu0 %vm653_vm0, %v640_v21  ;;  %v2759_v21 = vld [vmem:[%s11301_s14 + $0x40] sm:$0xff] }
 0x2b5   : > { %7354 = vmatmul.mubr.msk.f32.gmra.mrb[28].mxu0 %vm653_vm0, %v641_v50  ;;  %v2760_v50 = vld [vmem:[%s11301_s14 + $0x48] sm:$0xff] }
 0x352   : > { %v7576_v61 = vpop.f32.mrb[20].mxu1 }
 0x353   : > { %v2712_v5 = vadd.f32 %v7576_v61, %v6440_v60  ;;  %v2657_v35 = vpop.f32.mrb[21].mxu1  ;;  %v2768_v61 = vld [vmem:[%s11301_s14 + $0x88] sm:$0xff] }
 0x354   : > { %v2711_v11 = vadd.f32 %v6440_v60, %v2657_v35  ;;  %v2770_v35 = vld [vmem:[%s11301_s14 + $0x98] sm:$0xff] }
 0x355   : > { %vm2720_vm0 = vcmp.ge.f32.partialorder %v2712_v5, 0.0  ;;  %v2728_v36 = vmul.f32 0.1, %v2712_v5 }
 0x356   : > { %vm2719_vm3 = vcmp.ge.f32.partialorder %v2711_v11, 0.0  ;;  %v2727_v10 = vmul.f32 0.1, %v2711_v11  ;;  %v7579_v12 = vpop.f32.mrb[22].mxu1 }
 0x357   : > { %v2714_v14 = vadd.f32 %v7579_v12, %v6440_v60  ;;  %v2667_v15 = vpop.f32.mrb[23].mxu1  ;;  %v2736_v7 = vsel %vm2720_vm0, %v2712_v5, %v2728_v36  ;;  %v2769_v5 = vld [vmem:[%s11301_s14 + $0x90] sm:$0xff]  ;;  %v2772_v36 = vld [vmem:[%s11301_s14 + $0xa8] sm:$0xff]  ;;  %v2774_v12 = vld [vmem:[%s11301_s14 + $0xb8] sm:$0xff] }
 0x358   : > { %v2713_v16 = vadd.f32 %v6440_v60, %v2667_v15  ;;  %v2735_v62 = vsel %vm2719_vm3, %v2711_v11, %v2727_v10  ;;  %2744 = vst.msk [vmem:[%s9546_s27 + $0x8] sm:$0xff] %vm1345_vm4, %v2736_v7  ;;  %v2771_v11 = vld [vmem:[%s11301_s14 + $0xa0] sm:$0xff]  ;;  %v2773_v10 = vld [vmem:[%s11301_s14 + $0xb0] sm:$0xff]  ;;  %v2776_v15 = vld [vmem:[%s11301_s14 + $0xc8] sm:$0xff] }
 0x359   : > { %vm2722_vm5 = vcmp.ge.f32.partialorder %v2714_v14, 0.0  ;;  %v2730_v22 = vmul.f32 0.1, %v2714_v14  ;;  %2743 = vst.msk [vmem:[%s9546_s27] sm:$0xff] %vm1345_vm4, %v2735_v62  ;;  %v8246_v24 = vpack.c.bf16 %v2736_v7, %v2735_v62  ;;  %v2777_v7 = vld [vmem:[%s11301_s14 + $0xd0] sm:$0xff]  ;;  %v2779_v62 = vld [vmem:[%s11301_s14 + $0xe0] sm:$0xff] }
 0x35a   : > { %vm2721_vm8 = vcmp.ge.f32.partialorder %v2713_v16, 0.0  ;;  %v2729_v34 = vmul.f32 0.1, %v2713_v16  ;;  %v7582_v8 = vpop.f32.mrb[24].mxu1 }
 0x35b   : > { %v2716_v13 = vadd.f32 %v7582_v8, %v6440_v60  ;;  %v2677_v4 = vpop.f32.mrb[25].mxu1  ;;  %8247 = vmatprep.subr.bf16.mxu1 %v8246_v24  ;;  %v2738_v6 = vsel %vm2722_vm5, %v2714_v14, %v2730_v22  ;;  %v2775_v14 = vld [vmem:[%s11301_s14 + $0xc0] sm:$0xff]  ;;  %v2780_v22 = vld [vmem:[%s11301_s14 + $0xe8] sm:$0xff]  ;;  %v7313_v8 = vpop.f32.mrb[0].mxu0 }
 0x35c   : > { %v2715_v18 = vadd.f32 %v6440_v60, %v2677_v4  ;;  %8249 = vmatpush3.bf16.msra.mxu1 %v8246_v24  ;;  %v2737_v23 = vsel %vm2721_vm8, %v2713_v16, %v2729_v34  ;;  %2746 = vst.msk [vmem:[%s9546_s27 + $0x18] sm:$0xff] %vm1345_vm4, %v2738_v6  ;;  %v2778_v16 = vld [vmem:[%s11301_s14 + $0xd8] sm:$0xff]  ;;  %v2781_v24 = vld [vmem:[%s11301_s14 + $0xf0] sm:$0xff] }
 0x35d   : > { %vm2724_vm9 = vcmp.ge.f32.partialorder %v2716_v13, 0.0  ;;  %v2732_v31 = vmul.f32 0.1, %v2716_v13  ;;  %2745 = vst.msk [vmem:[%s9546_s27 + $0x10] sm:$0xff] %vm1345_vm4, %v2737_v23  ;;  %v8250_v32 = vpack.c.bf16 %v2738_v6, %v2737_v23  ;;  %v2782_v34 = vld [vmem:[%s11301_s14 + $0xf8] sm:$0xff]  ;;  %v3486_v23 = vld [vmem:[%s11298_s11 + $0x30] sm:$0xff] }
 0x35e   : > { %vm2723_vm10 = vcmp.ge.f32.partialorder %v2715_v18, 0.0  ;;  %v2731_v39 = vmul.f32 0.1, %v2715_v18  ;;  %v7585_v41 = vpop.f32.mrb[26].mxu1 }
 0x35f   : > { %v2718_v44 = vadd.f32 %v7585_v41, %v6440_v60  ;;  %v2687_v45 = vpop.f32.mrb[27].mxu1  ;;  %8251 = vmatprep.subr.bf16.mxu1 %v8250_v32  ;;  %v2740_v54 = vsel %vm2724_vm9, %v2716_v13, %v2732_v31  ;;  %v816_v13 = vpop.f32.mrb[1].mxu0  ;;  %v3487_v31 = vld [vmem:[%s11298_s11 + $0x38] sm:$0xff]  ;;  %v3312_v41 = vrot.slane %v9060_v63, 1 }
 0x360   : > { %v2717_v9 = vadd.f32 %v6440_v60, %v2687_v45  ;;  %8253 = vmatpush3.bf16.msra.mxu1 %v8250_v32  ;;  %v2739_v17 = vsel %vm2723_vm10, %v2715_v18, %v2731_v39  ;;  %2748 = vst.msk [vmem:[%s9546_s27 + $0x28] sm:$0xff] %vm1345_vm4, %v2740_v54  ;;  %v2767_v60 = vld [vmem:[%s11301_s14 + $0x80] sm:$0xff]  ;;  %v7316_v4 = vpop.f32.mrb[2].mxu0  ;;  %v8266_v39 = vpack.c.bf16 %v3487_v31, %v3486_v23 }
 0x361   : > { %vm2726_vm11 = vcmp.ge.f32.partialorder %v2718_v44, 0.0  ;;  %v2734_v37 = vmul.f32 0.1, %v2718_v44  ;;  %2747 = vst.msk [vmem:[%s9546_s27 + $0x20] sm:$0xff] %vm1345_vm4, %v2739_v17  ;;  %v8254_v19 = vpack.c.bf16 %v2740_v54, %v2739_v17  ;;  %v826_v6 = vpop.f32.mrb[3].mxu0  ;;  %v9704_v54 = vsel %vm1555_vm7, %v1556_v2, %v3312_v41  ;;  %v3497_v2 = vld [vmem:[%s11298_s11 + $0x88] sm:$0xff] }
 0x362   : > { %vm2725_vm12 = vcmp.ge.f32.partialorder %v2717_v9, 0.0  ;;  %v2733_v25 = vmul.f32 0.1, %v2717_v9  ;;  %v7319_v18 = vpop.f32.mrb[4].mxu0  ;;  %11408 = vst [vmem:[#allocation12_spill] sm:$0xff] %v9704_v54 }
 0x363   : > { %8255 = vmatprep.subr.bf16.mxu1 %v8254_v19  ;;  %v2742_v29 = vsel %vm2726_vm11, %v2718_v44, %v2734_v37  ;;  %v836_v32 = vpop.f32.mrb[5].mxu0  ;;  %v3496_v37 = vld [vmem:[%s11298_s11 + $0x80] sm:$0xff] }
 0x364   : > { %8257 = vmatpush3.bf16.msra.mxu1 %v8254_v19  ;;  %v2741_v30 = vsel %vm2725_vm12, %v2717_v9, %v2733_v25  ;;  %2750 = vst.msk [vmem:[%s9546_s27 + $0x38] sm:$0xff] %vm1345_vm4, %v2742_v29  ;;  %v7322_v44 = vpop.f32.mrb[6].mxu0  ;;  %v9711_v9 = vsel %vm1555_vm7, %v3312_v41, %v1557_v3  ;;  %v9723_v25 = vpack.c.bf16 %v3497_v2, %v3496_v37 }
 0x365   : > { %2749 = vst.msk [vmem:[%s9546_s27 + $0x30] sm:$0xff] %vm1345_vm4, %v2741_v30  ;;  %v8258_v33 = vpack.c.bf16 %v2742_v29, %v2741_v30  ;;  %v846_v45 = vpop.f32.mrb[7].mxu0  ;;  %11409 = vst [vmem:[#allocation13_spill] sm:$0xff] %v9711_v9 }
 0x366   : > { %v7325_v17 = vpop.f32.mrb[8].mxu0  ;;  %8295 = vmatprep.subr.bf16.mxu0 %v9723_v25 }
 0x367   : > { %8259 = vmatprep.subr.bf16.mxu1 %v8258_v33  ;;  %v9721_v19 = vpop.f32.mrb[9].mxu0 }
 0x368   : > { %8261 = vmatpush3.bf16.msra.mxu1 %v8258_v33  ;;  %v9726_v3 = vpop.f32.mrb[10].mxu0 }
 0x369   : > { %8263 = vmatprep.subr.bf16.mxu1 %v8262_v40  ;;  %v9728_v20 = vpop.f32.mrb[11].mxu0 }
 0x36a   : > { %v9730_v26 = vpop.f32.mrb[12].mxu0 }
 0x36b   : > { %7603 = vmatmul.mubr.msk.f32.vlgmr.msra.gmra.mrb[28].mxu1 %vm2783_vm2, %v2752_v42  ;;  %v9732_v29 = vpop.f32.mrb[13].mxu0 }
 0x36c   : > { %7605 = vmatprep.mubr.msk.f32.mxu1 %vm2783_vm2, %v2753_v38  ;;  %8265 = vmatpush3.bf16.msra.mxu1 %v8262_v40  ;;  %v9734_v30 = vpop.f32.mrb[14].mxu0 }
 0x36d   : > { %8267 = vmatprep.subr.bf16.mxu1 %v8266_v39  ;;  %v9736_v33 = vpop.f32.mrb[15].mxu0 }
 0x36f   : > { %7606 = vmatmul.mubr.msk.f32.gmra.mrb[30].mxu1 %vm2783_vm2, %v2754_v46 }
 0x370   : > { %7608 = vmatprep.mubr.msk.f32.mxu1 %vm2783_vm2, %v2755_v43  ;;  %8269 = vmatpush3.bf16.msra.mxu1 %v8266_v39  ;;  %v9738_v40 = vpop.f32.mrb[16].mxu0 }
 0x371   : > { %v9740_v42 = vpop.f32.mrb[17].mxu0 }
 0x373   : > { %7609 = vmatmul.mubr.msk.f32.gmra.mrb[32].mxu1 %vm2783_vm2, %v2756_v47 }
 0x374   : > { %7611 = vmatprep.mubr.msk.f32.mxu1 %vm2783_vm2, %v2757_v48  ;;  %v9742_v38 = vpop.f32.mrb[18].mxu0 }
 0x375   : > { %v9744_v46 = vpop.f32.mrb[19].mxu0 }
 0x377   : > { %7612 = vmatmul.mubr.msk.f32.gmra.mrb[34].mxu1 %vm2783_vm2, %v2758_v49 }
 0x378   : > { %7614 = vmatprep.mubr.msk.f32.mxu1 %vm2783_vm2, %v2759_v21  ;;  %v9746_v43 = vpop.f32.mrb[20].mxu0 }
 0x379   : > { %v9748_v47 = vpop.f32.mrb[21].mxu0 }
 0x37b   : > { %7615 = vmatmul.mubr.msk.f32.gmra.mrb[36].mxu1 %vm2783_vm2, %v2760_v50 }
 0x37c   : > { %7617 = vmatprep.mubr.msk.f32.mxu1 %vm2783_vm2, %v2761_v51  ;;  %v9750_v48 = vpop.f32.mrb[22].mxu0 }
 0x37d   : > { %v9752_v49 = vpop.f32.mrb[23].mxu0 }
 0x37f   : > { %7618 = vmatmul.mubr.msk.f32.gmra.mrb[38].mxu1 %vm2783_vm2, %v2762_v55 }
 0x380   : > { %7620 = vmatprep.mubr.msk.f32.mxu1 %vm2783_vm2, %v2763_v57  ;;  %v9754_v21 = vpop.f32.mrb[24].mxu0 }
 0x381   : > { %v9756_v50 = vpop.f32.mrb[25].mxu0 }
 0x383   : > { %7621 = vmatmul.mubr.msk.f32.gmra.mrb[40].mxu1 %vm2783_vm2, %v2764_v56 }
 0x384   : > { %7623 = vmatprep.mubr.msk.f32.mxu1 %vm2783_vm2, %v2765_v58  ;;  %v9758_v51 = vpop.f32.mrb[26].mxu0  ;;  %v3480_v58 = vld [vmem:[%s11298_s11] sm:$0xff] }
 0x385   : > { %v9760_v55 = vpop.f32.mrb[27].mxu0 }
 0x387   : > { %7624 = vmatmul.mubr.msk.f32.gmra.mrb[42].mxu1 %vm2783_vm2, %v2766_v59  ;;  %v3481_v59 = vld [vmem:[%s11298_s11 + $0x8] sm:$0xff] }
 0x388   : > { %7626 = vmatprep.mubr.msk.f32.mxu1 %vm2783_vm2, %v2767_v60  ;;  %v9762_v57 = vpop.f32.mrb[28].mxu0  ;;  %v8270_v60 = vpack.c.bf16 %v3481_v59, %v3480_v58 }
 0x389   : > { %v9764_v56 = vpop.f32.mrb[29].mxu0 }
 0x38a   : > { %8271 = vmatprep.subr.bf16.mxu1 %v8270_v60 }
 0x38b   : > { %7627 = vmatmul.mubr.msk.f32.gmra.mrb[44].mxu1 %vm2783_vm2, %v2768_v61  ;;  %v3482_v61 = vld [vmem:[%s11298_s11 + $0x10] sm:$0xff] }
 0x38c   : > { %7629 = vmatprep.mubr.msk.f32.mxu1 %vm2783_vm2, %v2769_v5  ;;  %v3483_v5 = vld [vmem:[%s11298_s11 + $0x18] sm:$0xff] }
 0x38f   : > { %7630 = vmatmul.mubr.msk.f32.gmra.mrb[46].mxu1 %vm2783_vm2, %v2770_v35  ;;  %v8274_v35 = vpack.c.bf16 %v3483_v5, %v3482_v61 }
 0x390   : > { %7632 = vmatprep.mubr.msk.f32.mxu1 %vm2783_vm2, %v2771_v11  ;;  %v9781_v11 = vld [vmem:[%s11291_s4] ss:$0 sm:$0xff] }
 0x391   : > { %v872_v37 = vadd.f32 %v9726_v3, %v9781_v11  ;;  %v882_v58 = vadd.f32 %v9730_v26, %v9781_v11  ;;  %v877_v59 = vadd.f32 %v9781_v11, %v9732_v29  ;;  %v892_v61 = vadd.f32 %v9734_v30, %v9781_v11 }
 0x392   : > { %v887_v3 = vadd.f32 %v9781_v11, %v9736_v33  ;;  %v902_v33 = vadd.f32 %v9738_v40, %v9781_v11 }
 0x393   : > { %7633 = vmatmul.mubr.msk.f32.gmra.mrb[48].mxu1 %vm2783_vm2, %v2772_v36  ;;  %v822_v36 = vadd.f32 %v7313_v8, %v9781_v11  ;;  %v847_v8 = vadd.f32 %v9781_v11, %v846_v45  ;;  %v857_v45 = vadd.f32 %v9781_v11, %v9721_v19  ;;  %v1018_v26 = vmul.f32 0.1, %v872_v37 }
 0x394   : > { %7635 = vmatprep.mubr.msk.f32.mxu1 %vm2783_vm2, %v2773_v10  ;;  %v817_v10 = vadd.f32 %v9781_v11, %v816_v13  ;;  %vm986_vm11 = vcmp.ge.f32.partialorder %v872_v37, 0.0  ;;  %v1020_v29 = vmul.f32 0.1, %v882_v58  ;;  %v1022_v30 = vmul.f32 0.1, %v892_v61 }
 0x395   : > { %vm976_vm13 = vcmp.ge.f32.partialorder %v822_v36, 0.0  ;;  %vm981_vm8 = vcmp.ge.f32.partialorder %v847_v8, 0.0  ;;  %v1015_v5 = vmul.f32 0.1, %v857_v45  ;;  %vm983_vm10 = vcmp.ge.f32.partialorder %v857_v45, 0.0 }
 0x396   : > { %vm975_vm14 = vcmp.ge.f32.partialorder %v817_v10, 0.0  ;;  %v9843_v40 = vsel %vm986_vm11, %v872_v37, %v1018_v26 }
 0x397   : > { %7636 = vmatmul.mubr.msk.f32.gmra.mrb[50].mxu1 %vm2783_vm2, %v2774_v12  ;;  %v832_v12 = vadd.f32 %v7316_v4, %v9781_v11 }
 0x398   : > { %7638 = vmatprep.mubr.msk.f32.mxu1 %vm2783_vm2, %v2775_v14  ;;  %v9788_v14 = vadd.f32 %v8982_v27, %v9781_v11  ;;  %v9800_v27 = vadd.f32 %v9781_v11, %v8984_v28 }
 0x399   : > { %vm978_vm15 = vcmp.ge.f32.partialorder %v832_v12, 0.0 }
 0x39a   : > { %v9796_v13 = vmul.f32 0.1, %v9788_v14 }
 0x39b   : > { %7639 = vmatmul.mubr.msk.f32.gmra.mrb[52].mxu1 %vm2783_vm2, %v2776_v15  ;;  %v1008_v15 = vmul.f32 0.1, %v822_v36 }
 0x39c   : > { %7641 = vmatprep.mubr.msk.f32.mxu1 %vm2783_vm2, %v2777_v7  ;;  %v1007_v7 = vmul.f32 0.1, %v817_v10 }
 0x39d   : > { %v1040_v4 = vsel %vm976_vm13, %v822_v36, %v1008_v15  ;;  %vm988_vm13 = vcmp.ge.f32.partialorder %v882_v58, 0.0 }
 0x39f   : > { %7642 = vmatmul.mubr.msk.f32.gmra.mrb[54].mxu1 %vm2783_vm2, %v2778_v16  ;;  %v1010_v16 = vmul.f32 0.1, %v832_v12 }
 0x3a0   : > { %7644 = vmatprep.mubr.msk.f32.mxu1 %vm2783_vm2, %v2779_v62  ;;  %v827_v62 = vadd.f32 %v9781_v11, %v826_v6  ;;  %v862_v6 = vadd.f32 %v7325_v17, %v9781_v11  ;;  %v867_v17 = vadd.f32 %v9781_v11, %v9728_v20 }
 0x3a1   : > { %v9803_v31 = vsel %vm978_vm15, %v832_v12, %v1010_v16  ;;  %v1019_v12 = vmul.f32 0.1, %v877_v59  ;;  %vm990_vm15 = vcmp.ge.f32.partialorder %v892_v61, 0.0 }
 0x3a2   : > { %v1009_v23 = vmul.f32 0.1, %v827_v62  ;;  %v1016_v28 = vmul.f32 0.1, %v862_v6  ;;  %vm984_vm9 = vcmp.ge.f32.partialorder %v862_v6, 0.0  ;;  %vm985_vm12 = vcmp.ge.f32.partialorder %v867_v17, 0.0 }
 0x3a3   : > { %7645 = vmatmul.mubr.msk.f32.gmra.mrb[56].mxu1 %vm2783_vm2, %v2780_v22  ;;  %v842_v22 = vadd.f32 %v7319_v18, %v9781_v11  ;;  %v1039_v18 = vsel %vm975_vm14, %v817_v10, %v1007_v7  ;;  %v1017_v36 = vmul.f32 0.1, %v867_v17  ;;  %v1021_v7 = vmul.f32 0.1, %v887_v3 }
 0x3a4   : > { %7647 = vmatprep.mubr.msk.f32.mxu1 %vm2783_vm2, %v2781_v24  ;;  %v837_v24 = vadd.f32 %v9781_v11, %v836_v32  ;;  %v9827_v10 = vsel %vm984_vm9, %v862_v6, %v1016_v28  ;;  %vm987_vm14 = vcmp.ge.f32.partialorder %v877_v59, 0.0  ;;  %v9840_v6 = vsel %vm983_vm10, %v857_v45, %v1015_v5 }
 0x3a5   : > { %v1012_v32 = vmul.f32 0.1, %v842_v22  ;;  %vm980_vm0 = vcmp.ge.f32.partialorder %v842_v22, 0.0  ;;  %v1024_v28 = vmul.f32 0.1, %v902_v33  ;;  %v9862_v37 = vsel %vm990_vm15, %v892_v61, %v1022_v30 }
 0x3a6   : > { %v1011_v39 = vmul.f32 0.1, %v837_v24  ;;  %vm979_vm3 = vcmp.ge.f32.partialorder %v837_v24, 0.0 }
 0x3a7   : > { %7648 = vmatmul.mubr.msk.f32.gmra.mrb[58].mxu1 %vm2783_vm2, %v2782_v34  ;;  %v852_v34 = vadd.f32 %v7322_v44, %v9781_v11  ;;  %vm977_vm2 = vcmp.ge.f32.partialorder %v827_v62, 0.0  ;;  %v1013_v44 = vmul.f32 0.1, %v847_v8 }
 0x3a8   : > { %7658 = vmatprep.mubr.msk.f32.mxu1 %vm1345_vm4, %v9704_v54  ;;  %v1041_v2 = vsel %vm977_vm2, %v827_v62, %v1009_v23  ;;  %v9817_v19 = vsel %vm979_vm3, %v837_v24, %v1011_v39  ;;  %vm989_vm2 = vcmp.ge.f32.partialorder %v887_v3, 0.0  ;;  %v3488_v24 = vld [vmem:[%s11298_s11 + $0x40] sm:$0xff]  ;;  %v9848_v23 = vsel %vm985_vm12, %v867_v17, %v1017_v36 }
 0x3a9   : > { %v1014_v41 = vmul.f32 0.1, %v852_v34  ;;  %vm982_vm5 = vcmp.ge.f32.partialorder %v852_v34, 0.0  ;;  %v9853_v39 = vsel %vm987_vm14, %v877_v59, %v1019_v12  ;;  %v9865_v17 = vsel %vm989_vm2, %v887_v3, %v1021_v7  ;;  %v3501_v7 = vld [vmem:[%s11298_s11 + $0xa8] sm:$0xff] }
 0x3ab   : > { %7659 = vmatmul.mubr.msk.f32.vlgmr.msra.gmra.mrb[60].mxu1 %vm1345_vm4, %v9711_v9  ;;  %v9823_v20 = vsel %vm982_vm5, %v852_v34, %v1014_v41  ;;  %v3489_v34 = vld [vmem:[%s11298_s11 + $0x48] sm:$0xff]  ;;  %v3499_v41 = vld [vmem:[%s11298_s11 + $0x98] sm:$0xff] }
 0x3ac   : > { %8273 = vmatpush3.bf16.msra.mxu1 %v8270_v60  ;;  %v9815_v60 = vsel %vm980_vm0, %v842_v22, %v1012_v32  ;;  %v897_v22 = vadd.f32 %v9781_v11, %v9740_v42  ;;  %v9851_v32 = vsel %vm988_vm13, %v882_v58, %v1020_v29  ;;  %vm992_vm0 = vcmp.ge.f32.partialorder %v902_v33, 0.0 }
 0x3ad   : > { %8275 = vmatprep.subr.bf16.mxu1 %v8274_v35 }
 0x3ae   : > { %v1023_v26 = vmul.f32 0.1, %v897_v22  ;;  %vm991_vm3 = vcmp.ge.f32.partialorder %v897_v22, 0.0 }
 0x3b0   : > { %8277 = vmatpush3.bf16.msra.mxu1 %v8274_v35  ;;  %v9825_v35 = vsel %vm981_vm8, %v847_v8, %v1013_v44 }
 0x43e   : > { %v7604_v15 = vpop.f32.mrb[28].mxu1 }
 0x43f   : > { %v3106_v16 = vadd.f32 %v7604_v15, %v1040_v4  ;;  %v2946_v62 = vpop.f32.mrb[29].mxu1  ;;  %v9845_v4 = vpack.c.bf16 %v3489_v34, %v3488_v24  ;;  %v907_v24 = vadd.f32 %v9781_v11, %v9744_v46  ;;  %v9896_v34 = vsel %vm992_vm0, %v902_v33, %v1024_v28 }
 0x440   : > { %v3105_v8 = vadd.f32 %v2946_v62, %v1039_v18  ;;  %v3498_v18 = vld [vmem:[%s11298_s11 + $0x90] sm:$0xff]  ;;  %vm1006_vm0 = vcmp.ge.f32.partialorder %v9788_v14, 0.0 }
 0x441   : > { %v3171_v42 = vrot.slane %v3106_v16, 7  ;;  %8279 = vmatprep.subr.bf16.mxu1 %v9845_v4  ;;  %v8298_v61 = vpack.c.bf16 %v3499_v41, %v3498_v18  ;;  %vm993_vm8 = vcmp.ge.f32.partialorder %v907_v24, 0.0 }
 0x442   : > { %v3170_v44 = vrot.slane %v3105_v8, 7  ;;  %v7607_v45 = vpop.f32.mrb[30].mxu1 }
 0x443   : > { %v9869_v58 = vsel %vm1520_vm6, %v3171_v42, 0.0  ;;  %v3108_v59 = vadd.f32 %v7607_v45, %v9803_v31  ;;  %v2956_v5 = vpop.f32.mrb[31].mxu1  ;;  %v3500_v31 = vld [vmem:[%s11298_s11 + $0xa0] sm:$0xff] }
 0x444   : > { %11410 = vst [vmem:[#allocation14_spill] sm:$0xff] %v9869_v58  ;;  %v9873_v36 = vsel %vm1520_vm6, %v3170_v44, %v3171_v42  ;;  %v9876_v29 = vsel %vm1520_vm6, 0.0, %v3170_v44  ;;  %v3318_v3 = vrot.slane %v9869_v58, 1  ;;  %v3107_v30 = vadd.f32 %v2956_v5, %v1041_v2 }
 0x445   : > { %v3315_v12 = vrot.slane %v9876_v29, 1  ;;  %v3174_v15 = vrot.slane %v3108_v59, 7  ;;  %7826 = vmatprep.mubr.msk.f32.mxu0 %vm1345_vm4, %v9876_v29  ;;  %v3316_v62 = vrot.slane %v9873_v36, 1  ;;  %v912_v2 = vadd.f32 %v9742_v38, %v9781_v11 }
 0x446   : > { %v7610_v16 = vpop.f32.mrb[32].mxu1  ;;  %7827 = vmatmul.mubr.msk.f32.vlgmr.msra.gmra.mrb[30].mxu0 %vm1345_vm4, %v9873_v36  ;;  %v3173_v42 = vrot.slane %v3107_v30, 7  ;;  %v9904_v44 = vsel %vm991_vm3, %v897_v22, %v1023_v26  ;;  %v9911_v33 = vpack.c.bf16 %v3501_v7, %v3500_v31  ;;  %v1025_v31 = vmul.f32 0.1, %v907_v24 }
 0x447   : > { %v9899_v8 = vsel %vm1520_vm6, %v3174_v15, 0.0  ;;  %v3110_v18 = vadd.f32 %v7610_v16, %v9815_v60  ;;  %v2966_v41 = vpop.f32.mrb[33].mxu1  ;;  %8297 = vmatpush3.bf16.msra.mxu0 %v9723_v25  ;;  %v9909_v46 = vsel %vm1555_vm7, %v3315_v12, %v3316_v62  ;;  %v9922_v22 = vsel %vm1555_vm7, %v3316_v62, %v3318_v3 }
 0x448   : > { %11411 = vst [vmem:[#allocation15_spill] sm:$0xff] %v9899_v8  ;;  %v3323_v38 = vrot.slane %v9899_v8, 1  ;;  %v3109_v45 = vadd.f32 %v2966_v41, %v9817_v19  ;;  %8299 = vmatprep.subr.bf16.mxu0 %v8298_v61  ;;  %v9914_v28 = vsel %vm1520_vm6, %v3173_v42, %v3174_v15  ;;  %v9917_v60 = vsel %vm1520_vm6, 0.0, %v3173_v42  ;;  %7661 = vmatprep.mubr.msk.f32.mxu1 %vm1345_vm4, %v9909_v46 }
 0x449   : > { %v3177_v25 = vrot.slane %v3110_v18, 7  ;;  %7662 = vmatmul.mubr.msk.f32.gmra.mrb[62].mxu1 %vm1345_vm4, %v9922_v22  ;;  %7829 = vmatprep.mubr.msk.f32.mxu0 %vm1345_vm4, %v9917_v60  ;;  %v3320_v5 = vrot.slane %v9917_v60, 1  ;;  %v3321_v26 = vrot.slane %v9914_v28, 1  ;;  %v1026_v12 = vmul.f32 0.1, %v912_v2 }
 0x44a   : > { %v3176_v19 = vrot.slane %v3109_v45, 7  ;;  %v7613_v59 = vpop.f32.mrb[34].mxu1  ;;  %7830 = vmatmul.mubr.msk.f32.gmra.mrb[32].mxu0 %vm1345_vm4, %v9914_v28  ;;  %vm994_vm5 = vcmp.ge.f32.partialorder %v912_v2, 0.0 }
 0x44b   : > { %v9931_v15 = vsel %vm1520_vm6, %v3177_v25, 0.0  ;;  %v3112_v30 = vadd.f32 %v7613_v59, %v9823_v20  ;;  %v2976_v3 = vpop.f32.mrb[35].mxu1  ;;  %8301 = vmatpush3.bf16.msra.mxu0 %v8298_v61  ;;  %v9945_v20 = vsel %vm1555_vm7, %v3320_v5, %v3321_v26  ;;  %v9948_v41 = vsel %vm1555_vm7, %v3321_v26, %v3323_v38 }
 0x44c   : > { %11412 = vst [vmem:[#allocation16_spill] sm:$0xff] %v9931_v15  ;;  %v3328_v7 = vrot.slane %v9931_v15, 1  ;;  %v9938_v16 = vsel %vm1520_vm6, %v3176_v19, %v3177_v25  ;;  %v9941_v62 = vsel %vm1520_vm6, 0.0, %v3176_v19  ;;  %v3111_v18 = vadd.f32 %v2976_v3, %v9825_v35  ;;  %8303 = vmatprep.subr.bf16.mxu0 %v9911_v33  ;;  %7664 = vmatprep.mubr.msk.f32.mxu1 %vm1345_vm4, %v9945_v20 }
 0x44d   : > { %v3180_v42 = vrot.slane %v3112_v30, 7  ;;  %7832 = vmatprep.mubr.msk.f32.mxu0 %vm1345_vm4, %v9941_v62  ;;  %v3325_v61 = vrot.slane %v9941_v62, 1  ;;  %v3326_v25 = vrot.slane %v9938_v16, 1  ;;  %v922_v35 = vadd.f32 %v9746_v43, %v9781_v11  ;;  %7665 = vmatmul.mubr.msk.f32.gmra.mrb[64].mxu1 %vm1345_vm4, %v9948_v41 }
 0x44e   : > { %v7616_v45 = vpop.f32.mrb[36].mxu1  ;;  %v917_v38 = vadd.f32 %v9781_v11, %v9748_v47  ;;  %v3179_v59 = vrot.slane %v3111_v18, 7  ;;  %7833 = vmatmul.mubr.msk.f32.gmra.mrb[34].mxu0 %vm1345_vm4, %v9938_v16  ;;  %v9970_v30 = vsel %vm994_vm5, %v912_v2, %v1026_v12  ;;  %v9978_v18 = vsel %vm993_vm8, %v907_v24, %v1025_v31 }
 0x44f   : > { %v9962_v19 = vsel %vm1520_vm6, %v3180_v42, 0.0  ;;  %v3114_v5 = vadd.f32 %v7616_v45, %v9827_v10  ;;  %v2986_v26 = vpop.f32.mrb[37].mxu1  ;;  %v9975_v3 = vsel %vm1555_vm7, %v3325_v61, %v3326_v25  ;;  %v9989_v2 = vsel %vm1555_vm7, %v3326_v25, %v3328_v7 }
 0x450   : > { %11413 = vst [vmem:[#allocation17_spill] sm:$0xff] %v9962_v19  ;;  %v3333_v43 = vrot.slane %v9962_v19, 1  ;;  %v3113_v47 = vadd.f32 %v2986_v26, %v9840_v6  ;;  %v9981_v53 = vsel %vm1520_vm6, %v3179_v59, %v3180_v42  ;;  %v9984_v10 = vsel %vm1520_vm6, 0.0, %v3179_v59  ;;  %7667 = vmatprep.mubr.msk.f32.mxu1 %vm1345_vm4, %v9975_v3 }
 0x451   : > { %v3183_v45 = vrot.slane %v3114_v5, 7  ;;  %7835 = vmatprep.mubr.msk.f32.mxu0 %vm1345_vm4, %v9984_v10  ;;  %v3330_v24 = vrot.slane %v9984_v10, 1  ;;  %v3331_v31 = vrot.slane %v9981_v53, 1  ;;  %v1028_v42 = vmul.f32 0.1, %v922_v35  ;;  %7668 = vmatmul.mubr.msk.f32.gmra.mrb[66].mxu1 %vm1345_vm4, %v9989_v2 }
 0x452   : > { %v3182_v6 = vrot.slane %v3113_v47, 7  ;;  %v7619_v12 = vpop.f32.mrb[38].mxu1  ;;  %7836 = vmatmul.mubr.msk.f32.gmra.mrb[36].mxu0 %vm1345_vm4, %v9981_v53  ;;  %v1027_v25 = vmul.f32 0.1, %v917_v38  ;;  %vm996_vm9 = vcmp.ge.f32.partialorder %v922_v35, 0.0  ;;  %vm995_vm10 = vcmp.ge.f32.partialorder %v917_v38, 0.0 }
 0x453   : > { %v9996_v61 = vsel %vm1520_vm6, %v3183_v45, 0.0  ;;  %v3116_v59 = vadd.f32 %v7619_v12, %v9843_v40  ;;  %v2996_v7 = vpop.f32.mrb[39].mxu1  ;;  %v10012_v40 = vsel %vm1555_vm7, %v3330_v24, %v3331_v31  ;;  %v10015_v12 = vsel %vm1555_vm7, %v3331_v31, %v3333_v43 }
 0x454   : > { %11414 = vst [vmem:[#allocation18_spill] sm:$0xff] %v9996_v61  ;;  %v3338_v5 = vrot.slane %v9996_v61, 1  ;;  %v10005_v26 = vsel %vm1520_vm6, %v3182_v6, %v3183_v45  ;;  %v10008_v47 = vsel %vm1520_vm6, 0.0, %v3182_v6  ;;  %v3115_v9 = vadd.f32 %v2996_v7, %v9848_v23  ;;  %7670 = vmatprep.mubr.msk.f32.mxu1 %vm1345_vm4, %v10012_v40 }
 0x455   : > { %v3186_v52 = vrot.slane %v3116_v59, 7  ;;  %7838 = vmatprep.mubr.msk.f32.mxu0 %vm1345_vm4, %v10008_v47  ;;  %v3335_v6 = vrot.slane %v10008_v47, 1  ;;  %v3336_v54 = vrot.slane %v10005_v26, 1  ;;  %v932_v23 = vadd.f32 %v9750_v48, %v9781_v11  ;;  %7671 = vmatmul.mubr.msk.f32.gmra.mrb[68].mxu1 %vm1345_vm4, %v10015_v12 }
 0x456   : > { %v7622_v45 = vpop.f32.mrb[40].mxu1  ;;  %v927_v24 = vadd.f32 %v9781_v11, %v9752_v49  ;;  %v3185_v31 = vrot.slane %v3115_v9, 7  ;;  %7839 = vmatmul.mubr.msk.f32.gmra.mrb[38].mxu0 %vm1345_vm4, %v10005_v26  ;;  %v10036_v61 = vsel %vm996_vm9, %v922_v35, %v1028_v42  ;;  %v10044_v9 = vsel %vm995_vm10, %v917_v38, %v1027_v25 }
 0x457   : > { %v10028_v43 = vsel %vm1520_vm6, %v3186_v52, 0.0  ;;  %v3118_v59 = vadd.f32 %v7622_v45, %v9851_v32  ;;  %v3006_v7 = vpop.f32.mrb[41].mxu1  ;;  %v10041_v19 = vsel %vm1555_vm7, %v3335_v6, %v3336_v54  ;;  %v10055_v35 = vsel %vm1555_vm7, %v3336_v54, %v3338_v5 }
 0x458   : > { %11415 = vst [vmem:[#allocation19_spill] sm:$0xff] %v10028_v43  ;;  %v3343_v48 = vrot.slane %v10028_v43, 1  ;;  %v3117_v49 = vadd.f32 %v3006_v7, %v9853_v39  ;;  %v10047_v15 = vsel %vm1520_vm6, %v3185_v31, %v3186_v52  ;;  %v10050_v32 = vsel %vm1520_vm6, 0.0, %v3185_v31  ;;  %7673 = vmatprep.mubr.msk.f32.mxu1 %vm1345_vm4, %v10041_v19 }
 0x459   : > { %v3189_v45 = vrot.slane %v3118_v59, 7  ;;  %7841 = vmatprep.mubr.msk.f32.mxu0 %vm1345_vm4, %v10050_v32  ;;  %v3340_v38 = vrot.slane %v10050_v32, 1  ;;  %v3341_v52 = vrot.slane %v10047_v15, 1  ;;  %v1030_v25 = vmul.f32 0.1, %v932_v23  ;;  %7674 = vmatmul.mubr.msk.f32.gmra.mrb[70].mxu1 %vm1345_vm4, %v10055_v35 }
 0x45a   : > { %v3188_v39 = vrot.slane %v3117_v49, 7  ;;  %v7625_v42 = vpop.f32.mrb[42].mxu1  ;;  %7842 = vmatmul.mubr.msk.f32.gmra.mrb[40].mxu0 %vm1345_vm4, %v10047_v15  ;;  %v1029_v5 = vmul.f32 0.1, %v927_v24  ;;  %vm998_vm11 = vcmp.ge.f32.partialorder %v932_v23, 0.0  ;;  %vm997_vm12 = vcmp.ge.f32.partialorder %v927_v24, 0.0 }
 0x45b   : > { %v10062_v6 = vsel %vm1520_vm6, %v3189_v45, 0.0  ;;  %v3120_v31 = vadd.f32 %v7625_v42, %v9862_v37  ;;  %v3016_v54 = vpop.f32.mrb[43].mxu1  ;;  %v10078_v37 = vsel %vm1555_vm7, %v3340_v38, %v3341_v52  ;;  %v10081_v42 = vsel %vm1555_vm7, %v3341_v52, %v3343_v48 }
 0x45c   : > { %11416 = vst [vmem:[#allocation20_spill] sm:$0xff] %v10062_v6  ;;  %v3348_v59 = vrot.slane %v10062_v6, 1  ;;  %v10071_v7 = vsel %vm1520_vm6, %v3188_v39, %v3189_v45  ;;  %v10074_v49 = vsel %vm1520_vm6, 0.0, %v3188_v39  ;;  %v3119_v8 = vadd.f32 %v3016_v54, %v9865_v17  ;;  %7676 = vmatprep.mubr.msk.f32.mxu1 %vm1345_vm4, %v10078_v37 }
 0x45d   : > { %11417 = vst [vmem:[#allocation21_spill] sm:$0xff] %v10071_v7  ;;  %11418 = vst [vmem:[#allocation22_spill] sm:$0xff] %v10074_v49  ;;  %v3192_v43 = vrot.slane %v3120_v31, 7  ;;  %7844 = vmatprep.mubr.msk.f32.mxu0 %vm1345_vm4, %v10074_v49  ;;  %v3345_v39 = vrot.slane %v10074_v49, 1  ;;  %v3346_v6 = vrot.slane %v10071_v7, 1  ;;  %v942_v17 = vadd.f32 %v9754_v21, %v9781_v11  ;;  %7677 = vmatmul.mubr.msk.f32.gmra.mrb[72].mxu1 %vm1345_vm4, %v10081_v42 }
 0x45e   : > { %v7628_v45 = vpop.f32.mrb[44].mxu1  ;;  %v937_v38 = vadd.f32 %v9781_v11, %v9756_v50  ;;  %v3191_v52 = vrot.slane %v3119_v8, 7  ;;  %7845 = vmatmul.mubr.msk.f32.gmra.mrb[42].mxu0 %vm1345_vm4, %v10071_v7  ;;  %v1062_v1 = vsel %vm998_vm11, %v932_v23, %v1030_v25  ;;  %v10108_v8 = vsel %vm997_vm12, %v927_v24, %v1029_v5 }
 0x45f   : > { %v10094_v48 = vsel %vm1520_vm6, %v3192_v43, 0.0  ;;  %v3122_v31 = vadd.f32 %v7628_v45, %v9896_v34  ;;  %v3026_v54 = vpop.f32.mrb[45].mxu1  ;;  %v10105_v50 = vsel %vm1555_vm7, %v3345_v39, %v3346_v6  ;;  %v10119_v23 = vsel %vm1555_vm7, %v3346_v6, %v3348_v59 }
 0x460   : > { %11419 = vst [vmem:[#allocation23_spill] sm:$0xff] %v10094_v48  ;;  %v3353_v21 = vrot.slane %v10094_v48, 1  ;;  %v3121_v58 = vadd.f32 %v3026_v54, %v9904_v44  ;;  %v10111_v49 = vsel %vm1520_vm6, %v3191_v52, %v3192_v43  ;;  %v10114_v34 = vsel %vm1520_vm6, 0.0, %v3191_v52  ;;  %7679 = vmatprep.mubr.msk.f32.mxu1 %vm1345_vm4, %v10105_v50 }
 0x461   : > { %11420 = vst [vmem:[#allocation24_spill] sm:$0xff] %v10111_v49  ;;  %11421 = vst [vmem:[#allocation25_spill] sm:$0xff] %v10114_v34  ;;  %v3195_v45 = vrot.slane %v3122_v31, 7  ;;  %7847 = vmatprep.mubr.msk.f32.mxu0 %vm1345_vm4, %v10114_v34  ;;  %v3350_v24 = vrot.slane %v10114_v34, 1  ;;  %v3351_v43 = vrot.slane %v10111_v49, 1  ;;  %7680 = vmatmul.mubr.msk.f32.gmra.mrb[74].mxu1 %vm1345_vm4, %v10119_v23  ;;  %vm1000_vm13 = vcmp.ge.f32.partialorder %v942_v17, 0.0 }
 0x462   : > { %v3194_v44 = vrot.slane %v3121_v58, 7  ;;  %v7631_v25 = vpop.f32.mrb[46].mxu1  ;;  %v1032_v5 = vmul.f32 0.1, %v942_v17  ;;  %7848 = vmatmul.mubr.msk.f32.gmra.mrb[44].mxu0 %vm1345_vm4, %v10111_v49  ;;  %v1031_v6 = vmul.f32 0.1, %v937_v38 }
 0x463   : > { %v10126_v39 = vsel %vm1520_vm6, %v3195_v45, 0.0  ;;  %v3124_v52 = vadd.f32 %v7631_v25, %v9970_v30  ;;  %v3036_v58 = vpop.f32.mrb[47].mxu1  ;;  %vm999_vm14 = vcmp.ge.f32.partialorder %v937_v38, 0.0  ;;  %v10142_v30 = vsel %vm1555_vm7, %v3350_v24, %v3351_v43 }
 0x464   : > { %11422 = vst [vmem:[#allocation26_spill] sm:$0xff] %v10126_v39  ;;  %v3358_v59 = vrot.slane %v10126_v39, 1  ;;  %v10135_v31 = vsel %vm1520_vm6, %v3194_v44, %v3195_v45  ;;  %v10138_v54 = vsel %vm1520_vm6, 0.0, %v3194_v44  ;;  %v3123_v34 = vadd.f32 %v3036_v58, %v9978_v18  ;;  %11424 = vst [vmem:[#allocation28_spill] sm:$0xff] %v10142_v30  ;;  %7682 = vmatprep.mubr.msk.f32.mxu1 %vm1345_vm4, %v10142_v30 }
 0x465   : > { %11423 = vst [vmem:[#allocation27_spill] sm:$0xff] %v10138_v54  ;;  %v3198_v48 = vrot.slane %v3124_v52, 7  ;;  %v10145_v25 = vsel %vm1555_vm7, %v3351_v43, %v3353_v21  ;;  %7850 = vmatprep.mubr.msk.f32.mxu0 %vm1345_vm4, %v10138_v54  ;;  %v3355_v44 = vrot.slane %v10138_v54, 1  ;;  %v3356_v39 = vrot.slane %v10135_v31, 1 }
 0x466   : > { %11425 = vst [vmem:[#allocation29_spill] sm:$0xff] %v10145_v25  ;;  %v7634_v45 = vpop.f32.mrb[48].mxu1  ;;  %v952_v18 = vadd.f32 %v9758_v51, %v9781_v11  ;;  %v947_v24 = vadd.f32 %v9781_v11, %v9760_v55  ;;  %v3197_v43 = vrot.slane %v3123_v34, 7  ;;  %7683 = vmatmul.mubr.msk.f32.gmra.mrb[76].mxu1 %vm1345_vm4, %v10145_v25  ;;  %7851 = vmatmul.mubr.msk.f32.gmra.mrb[46].mxu0 %vm1345_vm4, %v10135_v31  ;;  %vm1005_vm8 = vcmp.ge.f32.partialorder %v9800_v27, 0.0 }
 0x467   : > { %v10158_v21 = vsel %vm1520_vm6, %v3198_v48, 0.0  ;;  %v3126_v52 = vadd.f32 %v7634_v45, %v10036_v61  ;;  %v3046_v58 = vpop.f32.mrb[49].mxu1  ;;  %v1064_v54 = vsel %vm1000_vm13, %v942_v17, %v1032_v5  ;;  %v10169_v55 = vsel %vm1555_vm7, %v3355_v44, %v3356_v39 }
 0x468   : > { %11426 = vst [vmem:[#allocation30_spill] sm:$0xff] %v10158_v21  ;;  %v3363_v51 = vrot.slane %v10158_v21, 1  ;;  %v3125_v49 = vadd.f32 %v3046_v58, %v10044_v9  ;;  %11427 = vst [vmem:[#allocation31_spill] sm:$0xff] %v10169_v55  ;;  %v1063_v34 = vsel %vm999_vm14, %v937_v38, %v1031_v6  ;;  %v10173_v7 = vsel %vm1520_vm6, %v3197_v43, %v3198_v48 }
 0x469   : > { %11428 = vst [vmem:[#allocation32_spill] sm:$0xff] %v10173_v7  ;;  %v10176_v61 = vsel %vm1520_vm6, 0.0, %v3197_v43  ;;  %v3201_v45 = vrot.slane %v3126_v52, 7  ;;  %7685 = vmatprep.mubr.msk.f32.mxu1 %vm1345_vm4, %v10169_v55  ;;  %v10181_v17 = vsel %vm1555_vm7, %v3356_v39, %v3358_v59  ;;  %v1034_v44 = vmul.f32 0.1, %v952_v18 }
 0x46a   : > { %11429 = vst [vmem:[#allocation33_spill] sm:$0xff] %v10176_v61  ;;  %11430 = vst [vmem:[#allocation34_spill] sm:$0xff] %v10181_v17  ;;  %v3200_v5 = vrot.slane %v3125_v49, 7  ;;  %7853 = vmatprep.mubr.msk.f32.mxu0 %vm1345_vm4, %v10176_v61  ;;  %v7637_v9 = vpop.f32.mrb[50].mxu1  ;;  %v3360_v38 = vrot.slane %v10176_v61, 1  ;;  %v3361_v48 = vrot.slane %v10173_v7, 1  ;;  %7686 = vmatmul.mubr.msk.f32.gmra.mrb[78].mxu1 %vm1345_vm4, %v10181_v17 }
 0x46b   : > { %v10188_v6 = vsel %vm1520_vm6, %v3201_v45, 0.0  ;;  %v3128_v43 = vadd.f32 %v7637_v9, %v1062_v1  ;;  %7854 = vmatmul.mubr.msk.f32.gmra.mrb[48].mxu0 %vm1345_vm4, %v10173_v7  ;;  %v3056_v49 = vpop.f32.mrb[51].mxu1  ;;  %v1033_v39 = vmul.f32 0.1, %v947_v24  ;;  %vm1002_vm15 = vcmp.ge.f32.partialorder %v952_v18, 0.0 }
 0x46c   : > { %11431 = vst [vmem:[#allocation35_spill] sm:$0xff] %v10188_v6  ;;  %v3368_v59 = vrot.slane %v10188_v6, 1  ;;  %v10196_v52 = vsel %vm1520_vm6, %v3200_v5, %v3201_v45  ;;  %v10199_v58 = vsel %vm1520_vm6, 0.0, %v3200_v5  ;;  %vm1001_vm2 = vcmp.ge.f32.partialorder %v947_v24, 0.0 }
 0x46d   : > { %11432 = vst [vmem:[#allocation36_spill] sm:$0xff] %v10196_v52  ;;  %11433 = vst [vmem:[#allocation37_spill] sm:$0xff] %v10199_v58  ;;  %v3204_v21 = vrot.slane %v3128_v43, 7  ;;  %v3127_v61 = vadd.f32 %v3056_v49, %v10108_v8  ;;  %v10203_v1 = vsel %vm1555_vm7, %v3360_v38, %v3361_v48  ;;  %v10206_v9 = vsel %vm1555_vm7, %v3361_v48, %v3363_v51 }
 0x46e   : > { %11434 = vst [vmem:[#allocation38_spill] sm:$0xff] %v10203_v1  ;;  %11435 = vst [vmem:[#allocation39_spill] sm:$0xff] %v10206_v9  ;;  %7856 = vmatprep.mubr.msk.f32.mxu0 %vm1345_vm4, %v10199_v58  ;;  %7688 = vmatprep.mubr.msk.f32.mxu1 %vm1345_vm4, %v10203_v1  ;;  %v7640_v45 = vpop.f32.mrb[52].mxu1  ;;  %v962_v5 = vadd.f32 %v9762_v57, %v9781_v11  ;;  %v957_v43 = vadd.f32 %v9781_v11, %v9764_v56  ;;  %v3365_v8 = vrot.slane %v10199_v58, 1 }
 0x46f   : > { %v3366_v38 = vrot.slane %v10196_v52, 1  ;;  %v10219_v51 = vsel %vm1520_vm6, %v3204_v21, 0.0  ;;  %v3203_v48 = vrot.slane %v3127_v61, 7  ;;  %7689 = vmatmul.mubr.msk.f32.gmra.mrb[80].mxu1 %vm1345_vm4, %v10206_v9  ;;  %v3130_v49 = vadd.f32 %v7640_v45, %v1064_v54  ;;  %7857 = vmatmul.mubr.msk.f32.gmra.mrb[50].mxu0 %vm1345_vm4, %v10196_v52  ;;  %v3066_v6 = vpop.f32.mrb[53].mxu1 }
 0x470   : > { %11436 = vst [vmem:[#allocation40_spill] sm:$0xff] %v10219_v51  ;;  %v1066_v57 = vsel %vm1002_vm15, %v952_v18, %v1034_v44  ;;  %v3373_v56 = vrot.slane %v10219_v51, 1  ;;  %v3129_v11 = vadd.f32 %v3066_v6, %v1063_v34  ;;  %v1065_v61 = vsel %vm1001_vm2, %v947_v24, %v1033_v39 }
 0x471   : > { %v10229_v58 = vsel %vm1555_vm7, %v3365_v8, %v3366_v38  ;;  %v10233_v7 = vsel %vm1520_vm6, %v3203_v48, %v3204_v21  ;;  %v10236_v54 = vsel %vm1520_vm6, 0.0, %v3203_v48  ;;  %v3207_v45 = vrot.slane %v3130_v49, 7 }
 0x472   : > { %11437 = vst [vmem:[#allocation41_spill] sm:$0xff] %v10229_v58  ;;  %11438 = vst [vmem:[#allocation42_spill] sm:$0xff] %v10233_v7  ;;  %7691 = vmatprep.mubr.msk.f32.mxu1 %vm1345_vm4, %v10229_v58  ;;  %v10241_v18 = vsel %vm1555_vm7, %v3366_v38, %v3368_v59  ;;  %v1036_v44 = vmul.f32 0.1, %v962_v5  ;;  %v3206_v34 = vrot.slane %v3129_v11, 7  ;;  %7859 = vmatprep.mubr.msk.f32.mxu0 %vm1345_vm4, %v10236_v54  ;;  %v7643_v6 = vpop.f32.mrb[54].mxu1 }
 0x473   : > { %11439 = vst [vmem:[#allocation43_spill] sm:$0xff] %v10236_v54  ;;  %11440 = vst [vmem:[#allocation44_spill] sm:$0xff] %v10241_v18  ;;  %v3370_v24 = vrot.slane %v10236_v54, 1  ;;  %v3371_v21 = vrot.slane %v10233_v7, 1  ;;  %v10248_v39 = vsel %vm1520_vm6, %v3207_v45, 0.0  ;;  %7692 = vmatmul.mubr.msk.f32.gmra.mrb[82].mxu1 %vm1345_vm4, %v10241_v18  ;;  %v3132_v48 = vadd.f32 %v7643_v6, %v1066_v57  ;;  %7860 = vmatmul.mubr.msk.f32.gmra.mrb[52].mxu0 %vm1345_vm4, %v10233_v7  ;;  %v3076_v59 = vpop.f32.mrb[55].mxu1 }
 0x474   : > { %11441 = vst [vmem:[#allocation45_spill] sm:$0xff] %v10248_v39  ;;  %v1035_v8 = vmul.f32 0.1, %v957_v43  ;;  %vm1004_vm3 = vcmp.ge.f32.partialorder %v962_v5, 0.0  ;;  %v3378_v38 = vrot.slane %v10248_v39, 1  ;;  %v10256_v49 = vsel %vm1520_vm6, %v3206_v34, %v3207_v45 }
 0x475   : > { %v10259_v11 = vsel %vm1520_vm6, 0.0, %v3206_v34  ;;  %vm1003_vm5 = vcmp.ge.f32.partialorder %v957_v43, 0.0  ;;  %v3210_v51 = vrot.slane %v3132_v48, 7  ;;  %v3131_v54 = vadd.f32 %v3076_v59, %v1065_v61 }
 0x476   : > { %11442 = vst [vmem:[#allocation46_spill] sm:$0xff] %v10259_v11  ;;  %v10262_v52 = vsel %vm1555_vm7, %v3370_v24, %v3371_v21  ;;  %v10265_v57 = vsel %vm1555_vm7, %v3371_v21, %v3373_v56  ;;  %7862 = vmatprep.mubr.msk.f32.mxu0 %vm1345_vm4, %v10259_v11  ;;  %v1037_v6 = vmul.f32 0.1, %v9800_v27  ;;  %v1068_v45 = vsel %vm1004_vm3, %v962_v5, %v1036_v44  ;;  %v7646_v34 = vpop.f32.mrb[56].mxu1 }
 0x477   : > { %11443 = vst [vmem:[#allocation47_spill] sm:$0xff] %v10262_v52  ;;  %11444 = vst [vmem:[#allocation48_spill] sm:$0xff] %v10265_v57  ;;  %7694 = vmatprep.mubr.msk.f32.mxu1 %vm1345_vm4, %v10262_v52  ;;  %v3375_v39 = vrot.slane %v10259_v11, 1  ;;  %v3376_v61 = vrot.slane %v10256_v49, 1  ;;  %v10275_v24 = vsel %vm1520_vm6, %v3210_v51, 0.0  ;;  %v3209_v48 = vrot.slane %v3131_v54, 7  ;;  %7863 = vmatmul.mubr.msk.f32.gmra.mrb[54].mxu0 %vm1345_vm4, %v10256_v49 }
 0x478   : > { %11445 = vst [vmem:[#allocation49_spill] sm:$0xff] %v10275_v24  ;;  %7695 = vmatmul.mubr.msk.f32.gmra.mrb[84].mxu1 %vm1345_vm4, %v10265_v57  ;;  %v3134_v56 = vadd.f32 %v7646_v34, %v1068_v45  ;;  %v1067_v21 = vsel %vm1003_vm5, %v957_v43, %v1035_v8  ;;  %v3086_v59 = vpop.f32.mrb[57].mxu1  ;;  %v3383_v5 = vrot.slane %v10275_v24, 1 }
 0x479   : > { %v3133_v44 = vadd.f32 %v3086_v59, %v1067_v21  ;;  %v10284_v11 = vsel %vm1555_vm7, %v3375_v39, %v3376_v61  ;;  %v10288_v54 = vsel %vm1520_vm6, %v3209_v48, %v3210_v51  ;;  %v10291_v7 = vsel %vm1520_vm6, 0.0, %v3209_v48 }
 0x47a   : > { %11446 = vst [vmem:[#allocation50_spill] sm:$0xff] %v10284_v11  ;;  %v3213_v45 = vrot.slane %v3134_v56, 7  ;;  %7697 = vmatprep.mubr.msk.f32.mxu1 %vm1345_vm4, %v10284_v11  ;;  %v10296_v43 = vsel %vm1555_vm7, %v3376_v61, %v3378_v38  ;;  %7865 = vmatprep.mubr.msk.f32.mxu0 %vm1345_vm4, %v10291_v7  ;;  %v1070_v51 = vsel %vm1006_vm0, %v9788_v14, %v9796_v13  ;;  %v7649_v39 = vpop.f32.mrb[58].mxu1  ;;  %v3380_v34 = vrot.slane %v10291_v7, 1 }
 0x47b   : > { %11447 = vst [vmem:[#allocation51_spill] sm:$0xff] %v10296_v43  ;;  %v3212_v8 = vrot.slane %v3133_v44, 7  ;;  %v3381_v48 = vrot.slane %v10288_v54, 1  ;;  %v10311_v38 = vadd.f32 %v7649_v39, %v1070_v51  ;;  %7866 = vmatmul.mubr.msk.f32.gmra.mrb[56].mxu0 %vm1345_vm4, %v10288_v54  ;;  %v3096_v61 = vpop.f32.mrb[59].mxu1  ;;  %v1069_v59 = vsel %vm1005_vm8, %v9800_v27, %v1037_v6 }
 0x47c   : > { %v10307_v56 = vsel %vm1520_vm6, %v3213_v45, 0.0  ;;  %7698 = vmatmul.mubr.msk.f32.gmra.mrb[86].mxu1 %vm1345_vm4, %v10296_v43  ;;  %v3135_v51 = vadd.f32 %v3096_v61, %v1069_v59  ;;  %v3502_v61 = vld [vmem:[%s11298_s11 + $0xb0] sm:$0xff] }
 0x47d   : > { %v3388_v21 = vrot.slane %v10307_v56, 1  ;;  %v10317_v14 = vsel %vm1520_vm6, %v3212_v8, %v3213_v45  ;;  %v10320_v13 = vsel %vm1520_vm6, 0.0, %v3212_v8  ;;  %v11355_v44 = vrot.slane %v10311_v38, 7  ;;  %v3490_v59 = vld [vmem:[%s11298_s11 + $0x50] sm:$0xff] }
 0x47e   : > { %v10327_v39 = vsel %vm1555_vm7, %v3380_v34, %v3381_v48  ;;  %v10330_v24 = vsel %vm1555_vm7, %v3381_v48, %v3383_v5  ;;  %7868 = vmatprep.mubr.msk.f32.mxu0 %vm1345_vm4, %v10320_v13  ;;  %v3385_v45 = vrot.slane %v10320_v13, 1  ;;  %v3386_v8 = vrot.slane %v10317_v14, 1 }
 0x47f   : > { %11448 = vst [vmem:[#allocation52_spill] sm:$0xff] %v10327_v39  ;;  %11449 = vst [vmem:[#allocation53_spill] sm:$0xff] %v10330_v24  ;;  %7700 = vmatprep.mubr.msk.f32.mxu1 %vm1345_vm4, %v10327_v39  ;;  %v3215_v27 = vrot.slane %v3135_v51, 7  ;;  %7869 = vmatmul.mubr.msk.f32.gmra.mrb[58].mxu0 %vm1345_vm4, %v10317_v14  ;;  %v3491_v51 = vld [vmem:[%s11298_s11 + $0x58] sm:$0xff] }
 0x480   : > { %7701 = vmatmul.mubr.msk.f32.gmra.mrb[88].mxu1 %vm1345_vm4, %v10330_v24  ;;  %v10343_v6 = vsel %vm1555_vm7, %v3385_v45, %v3386_v8  ;;  %v10346_v5 = vsel %vm1555_vm7, %v3386_v8, %v3388_v21  ;;  %v3503_v21 = vld [vmem:[%s11298_s11 + $0xb8] sm:$0xff]  ;;  %v8282_v8 = vpack.c.bf16 %v3491_v51, %v3490_v59  ;;  %v11458_v59 = vld [vmem:[#allocation32_spill] sm:$0xff]  ;;  %v11459_v51 = vld [vmem:[#allocation37_spill] sm:$0xff] }
 0x481   : > { %11450 = vst [vmem:[#allocation54_spill] sm:$0xff] %v10343_v6  ;;  %11451 = vst [vmem:[#allocation55_spill] sm:$0xff] %v10346_v5  ;;  %v10349_v34 = vsel %vm1520_vm6, 0.0, %v3215_v27  ;;  %7703 = vmatprep.mubr.msk.f32.mxu1 %vm1345_vm4, %v10343_v6  ;;  %v10356_v48 = vsel %vm1520_vm6, %v3215_v27, %v11355_v44  ;;  %v8306_v45 = vpack.c.bf16 %v3503_v21, %v3502_v61  ;;  %v3504_v27 = vld [vmem:[%s11298_s11 + $0xc0] sm:$0xff]  ;;  %v3505_v44 = vld [vmem:[%s11298_s11 + $0xc8] sm:$0xff] }
 0x482   : > { %7871 = vmatprep.mubr.msk.f32.mxu0 %vm1345_vm4, %v10349_v34  ;;  %v11456_v61 = vld [vmem:[#allocation27_spill] sm:$0xff]  ;;  %v11457_v21 = vld [vmem:[#allocation33_spill] sm:$0xff] }
 0x483   : > { %7872 = vmatmul.mubr.msk.f32.gmra.mrb[60].mxu0 %vm1345_vm4, %v10356_v48 }
 0x484   : > { %7704 = vmatmul.mubr.msk.f32.gmra.mrb[90].mxu1 %vm1345_vm4, %v10346_v5  ;;  %7882 = vmatprep.mubr.msk.f32.mxu0 %vm1345_vm4, %v9909_v46  ;;  %v10396_v46 = vpack.c.bf16 %v3505_v44, %v3504_v27  ;;  %v11455_v44 = vld [vmem:[#allocation24_spill] sm:$0xff]  ;;  %v11462_v27 = vld [vmem:[#allocation42_spill] sm:$0xff] }
 0x485   : > { %7714 = vmatprep.mubr.msk.f32.mxu1 %vm1345_vm4, %v9064_v0 }
 0x487   : > { %7883 = vmatmul.mubr.msk.f32.vlgmr.msra.gmra.mrb[30].mxu0 %vm1345_vm4, %v9922_v22  ;;  %v11454_v22 = vld [vmem:[#allocation25_spill] sm:$0xff] }
 0x488   : > { %7715 = vmatmul.mubr.msk.f32.vlgmr.msra.gmra.mrb[60].mxu1 %vm1345_vm4, %v9060_v63  ;;  %7885 = vmatprep.mubr.msk.f32.mxu0 %vm1345_vm4, %v9945_v20 }
 0x489   : > { %7717 = vmatprep.mubr.msk.f32.mxu1 %vm1345_vm4, %v9876_v29  ;;  %8305 = vmatpush3.bf16.msra.mxu0 %v9911_v33  ;;  %v11453_v33 = vld [vmem:[#allocation21_spill] sm:$0xff] }
 0x48a   : > { %8281 = vmatpush3.bf16.msra.mxu1 %v9845_v4  ;;  %8307 = vmatprep.subr.bf16.mxu0 %v8306_v45  ;;  %v11452_v4 = vld [vmem:[#allocation22_spill] sm:$0xff] }
 0x48b   : > { %8283 = vmatprep.subr.bf16.mxu1 %v8282_v8  ;;  %7886 = vmatmul.mubr.msk.f32.gmra.mrb[32].mxu0 %vm1345_vm4, %v9948_v41 }
 0x48c   : > { %7718 = vmatmul.mubr.msk.f32.gmra.mrb[62].mxu1 %vm1345_vm4, %v9873_v36  ;;  %7888 = vmatprep.mubr.msk.f32.mxu0 %vm1345_vm4, %v9975_v3 }
 0x48d   : > { %7720 = vmatprep.mubr.msk.f32.mxu1 %vm1345_vm4, %v9917_v60  ;;  %8309 = vmatpush3.bf16.msra.mxu0 %v8306_v45  ;;  %v11460_v45 = vld [vmem:[#allocation36_spill] sm:$0xff] }
 0x48e   : > { %8285 = vmatpush3.bf16.msra.mxu1 %v8282_v8  ;;  %8311 = vmatprep.subr.bf16.mxu0 %v10396_v46  ;;  %v11461_v8 = vld [vmem:[#allocation43_spill] sm:$0xff] }
 0x48f   : > { %7889 = vmatmul.mubr.msk.f32.gmra.mrb[34].mxu0 %vm1345_vm4, %v9989_v2 }
 0x490   : > { %7721 = vmatmul.mubr.msk.f32.gmra.mrb[64].mxu1 %vm1345_vm4, %v9914_v28  ;;  %7891 = vmatprep.mubr.msk.f32.mxu0 %vm1345_vm4, %v10012_v40 }
 0x491   : > { %7723 = vmatprep.mubr.msk.f32.mxu1 %vm1345_vm4, %v9941_v62 }
 0x493   : > { %7892 = vmatmul.mubr.msk.f32.gmra.mrb[36].mxu0 %vm1345_vm4, %v10015_v12 }
 0x494   : > { %7724 = vmatmul.mubr.msk.f32.gmra.mrb[66].mxu1 %vm1345_vm4, %v9938_v16  ;;  %7894 = vmatprep.mubr.msk.f32.mxu0 %vm1345_vm4, %v10041_v19 }
 0x495   : > { %7726 = vmatprep.mubr.msk.f32.mxu1 %vm1345_vm4, %v9984_v10 }
 0x497   : > { %7895 = vmatmul.mubr.msk.f32.gmra.mrb[38].mxu0 %vm1345_vm4, %v10055_v35 }
 0x498   : > { %7727 = vmatmul.mubr.msk.f32.gmra.mrb[68].mxu1 %vm1345_vm4, %v9981_v53  ;;  %7897 = vmatprep.mubr.msk.f32.mxu0 %vm1345_vm4, %v10078_v37 }
 0x499   : > { %7729 = vmatprep.mubr.msk.f32.mxu1 %vm1345_vm4, %v10008_v47 }
 0x49b   : > { %7898 = vmatmul.mubr.msk.f32.gmra.mrb[40].mxu0 %vm1345_vm4, %v10081_v42 }
 0x49c   : > { %7730 = vmatmul.mubr.msk.f32.gmra.mrb[70].mxu1 %vm1345_vm4, %v10005_v26  ;;  %7900 = vmatprep.mubr.msk.f32.mxu0 %vm1345_vm4, %v10105_v50 }
 0x49d   : > { %7732 = vmatprep.mubr.msk.f32.mxu1 %vm1345_vm4, %v10050_v32 }
 0x49f   : > { %7901 = vmatmul.mubr.msk.f32.gmra.mrb[42].mxu0 %vm1345_vm4, %v10119_v23 }
 0x4a0   : > { %7733 = vmatmul.mubr.msk.f32.gmra.mrb[72].mxu1 %vm1345_vm4, %v10047_v15  ;;  %7903 = vmatprep.mubr.msk.f32.mxu0 %vm1345_vm4, %v10142_v30 }
 0x4a1   : > { %7735 = vmatprep.mubr.msk.f32.mxu1 %vm1345_vm4, %v11452_v4 }
 0x4a3   : > { %7904 = vmatmul.mubr.msk.f32.gmra.mrb[44].mxu0 %vm1345_vm4, %v10145_v25 }
 0x4a4   : > { %7736 = vmatmul.mubr.msk.f32.gmra.mrb[74].mxu1 %vm1345_vm4, %v11453_v33  ;;  %7906 = vmatprep.mubr.msk.f32.mxu0 %vm1345_vm4, %v10169_v55 }
 0x4a5   : > { %7738 = vmatprep.mubr.msk.f32.mxu1 %vm1345_vm4, %v11454_v22 }
 0x4a7   : > { %7907 = vmatmul.mubr.msk.f32.gmra.mrb[46].mxu0 %vm1345_vm4, %v10181_v17 }
 0x4a8   : > { %7739 = vmatmul.mubr.msk.f32.gmra.mrb[76].mxu1 %vm1345_vm4, %v11455_v44  ;;  %7909 = vmatprep.mubr.msk.f32.mxu0 %vm1345_vm4, %v10203_v1 }
 0x4a9   : > { %7741 = vmatprep.mubr.msk.f32.mxu1 %vm1345_vm4, %v11456_v61 }
 0x4ab   : > { %7910 = vmatmul.mubr.msk.f32.gmra.mrb[48].mxu0 %vm1345_vm4, %v10206_v9  ;;  %v11468_v9 = vld [vmem:[#allocation14_spill] sm:$0xff] }
 0x4ac   : > { %7742 = vmatmul.mubr.msk.f32.gmra.mrb[78].mxu1 %vm1345_vm4, %v10135_v31  ;;  %7912 = vmatprep.mubr.msk.f32.mxu0 %vm1345_vm4, %v10229_v58  ;;  %v3470_v58 = vrot.slane %v10349_v34, 1  ;;  %v3396_v1 = vrot.slane %v11468_v9, 2  ;;  %v3507_v9 = vld [vmem:[%s11298_s11 + $0xd8] sm:$0xff] }
 0x4ad   : > { %7744 = vmatprep.mubr.msk.f32.mxu1 %vm1345_vm4, %v11457_v21 }
 0x4af   : > { %7913 = vmatmul.mubr.msk.f32.gmra.mrb[50].mxu0 %vm1345_vm4, %v10241_v18  ;;  %v11463_v18 = vld [vmem:[#allocation46_spill] sm:$0xff] }
 0x4b0   : > { %7745 = vmatmul.mubr.msk.f32.gmra.mrb[80].mxu1 %vm1345_vm4, %v11458_v59  ;;  %7915 = vmatprep.mubr.msk.f32.mxu0 %vm1345_vm4, %v10262_v52 }
 0x4b1   : > { %7747 = vmatprep.mubr.msk.f32.mxu1 %vm1345_vm4, %v11459_v51 }
 0x4b3   : > { %7916 = vmatmul.mubr.msk.f32.gmra.mrb[52].mxu0 %vm1345_vm4, %v10265_v57  ;;  %v11464_v57 = vrot.slane %v10311_v38, 7  ;;  %v3390_v38 = vrot.slane %v9060_v63, 2 }
 0x4b4   : > { %7748 = vmatmul.mubr.msk.f32.gmra.mrb[82].mxu1 %vm1345_vm4, %v11460_v45  ;;  %7918 = vmatprep.mubr.msk.f32.mxu0 %vm1345_vm4, %v10284_v11  ;;  %v3471_v11 = vrot.slane %v10356_v48, 1 }
 0x4b5   : > { %7750 = vmatprep.mubr.msk.f32.mxu1 %vm1345_vm4, %v11461_v8  ;;  %v10498_v52 = vsel %vm1520_vm6, %v11464_v57, 0.0 }
 0x4b6   : > { %v3473_v57 = vrot.slane %v10498_v52, 1 }
 0x4b7   : > { %7919 = vmatmul.mubr.msk.f32.gmra.mrb[54].mxu0 %vm1345_vm4, %v10296_v43  ;;  %v3394_v43 = vrot.slane %v9873_v36, 2 }
 0x4b8   : > { %7751 = vmatmul.mubr.msk.f32.gmra.mrb[84].mxu1 %vm1345_vm4, %v11462_v27  ;;  %7921 = vmatprep.mubr.msk.f32.mxu0 %vm1345_vm4, %v10327_v39  ;;  %v3393_v39 = vrot.slane %v9876_v29, 2 }
 0x4b9   : > { %7753 = vmatprep.mubr.msk.f32.mxu1 %vm1345_vm4, %v11463_v18  ;;  %v3397_v55 = vsel %vm1580_vm1, %v3394_v43, %v3396_v1  ;;  %v3509_v1 = vld [vmem:[%s11298_s11 + $0xe8] sm:$0xff] }
 0x4ba   : > { %v3395_v36 = vsel %vm1580_vm1, %v3393_v39, %v3394_v43  ;;  %v11474_v43 = vld [vmem:[#allocation16_spill] sm:$0xff] }
 0x4bb   : > { %7922 = vmatmul.mubr.msk.f32.gmra.mrb[56].mxu0 %vm1345_vm4, %v10330_v24  ;;  %v10518_v24 = vsel %vm1555_vm7, %v3470_v58, %v3471_v11  ;;  %v3398_v58 = vrot.slane %v9917_v60, 2 }
 0x4bc   : > { %7754 = vmatmul.mubr.msk.f32.gmra.mrb[86].mxu1 %vm1345_vm4, %v10256_v49  ;;  %7924 = vmatprep.mubr.msk.f32.mxu0 %vm1345_vm4, %v10343_v6  ;;  %11465 = vst [vmem:[#allocation22_spill] sm:$0xff] %v10518_v24  ;;  %v11466_v6 = vrot.slane %v9064_v0, 2 }
 0x4bd   : > { %7756 = vmatprep.mubr.msk.f32.mxu1 %vm1345_vm4, %v10291_v7 }
 0x4be   : > { %v10528_v29 = vsel %vm1580_vm1, %v11466_v6, %v3390_v38  ;;  %v3506_v6 = vld [vmem:[%s11298_s11 + $0xd0] sm:$0xff] }
 0x4bf   : > { %7925 = vmatmul.mubr.msk.f32.gmra.mrb[58].mxu0 %vm1345_vm4, %v10346_v5  ;;  %11467 = vst [vmem:[#allocation21_spill] sm:$0xff] %v10528_v29  ;;  %v10532_v5 = vsel %vm1555_vm7, %v3471_v11, %v3473_v57  ;;  %v11470_v11 = vld [vmem:[#allocation11_spill] sm:$0xff]  ;;  %v8314_v25 = vpack.c.bf16 %v3507_v9, %v3506_v6  ;;  %v3408_v9 = vrot.slane %v9984_v10, 2 }
 0x4c0   : > { %7757 = vmatmul.mubr.msk.f32.gmra.mrb[88].mxu1 %vm1345_vm4, %v10288_v54  ;;  %7927 = vmatprep.mubr.msk.f32.mxu0 %vm1345_vm4, %v10518_v24  ;;  %11469 = vst [vmem:[#allocation25_spill] sm:$0xff] %v10532_v5  ;;  %v3399_v24 = vrot.slane %v9914_v28, 2  ;;  %v11471_v57 = vrot.slane %v11470_v11, 2  ;;  %v3404_v11 = vrot.slane %v9938_v16, 2 }
 0x4c1   : > { %7759 = vmatprep.mubr.msk.f32.mxu1 %vm1345_vm4, %v10320_v13 }
 0x4c2   : > { %v10553_v39 = vsel %vm1580_vm1, %v3390_v38, %v11471_v57  ;;  %v10561_v30 = vsel %vm1580_vm1, %v3398_v58, %v3399_v24  ;;  %v3508_v38 = vld [vmem:[%s11298_s11 + $0xe0] sm:$0xff]  ;;  %v3413_v57 = vrot.slane %v10008_v47, 2 }
 0x4c3   : > { %7928 = vmatmul.mubr.msk.f32.gmra.mrb[60].mxu0 %vm1345_vm4, %v10532_v5  ;;  %11472 = vst [vmem:[#allocation24_spill] sm:$0xff] %v10553_v39  ;;  %v11473_v5 = vld [vmem:[#allocation15_spill] sm:$0xff]  ;;  %v10579_v6 = vpack.c.bf16 %v3509_v1, %v3508_v38 }
 0x4c4   : > { %7760 = vmatmul.mubr.msk.f32.gmra.mrb[90].mxu1 %vm1345_vm4, %v10317_v14  ;;  %7938 = vmatprep.mubr.msk.f32.mxu0 %vm1345_vm4, %v3395_v36  ;;  %v3401_v17 = vrot.slane %v11473_v5, 2  ;;  %v3406_v5 = vrot.slane %v11474_v43, 2 }
 0x4c5   : > { %7770 = vmatprep.mubr.msk.f32.mxu1 %vm1345_vm4, %v10528_v29  ;;  %v3403_v29 = vrot.slane %v9941_v62, 2 }
 0x4c6   : > { %v10577_v58 = vsel %vm1580_vm1, %v3399_v24, %v3401_v17  ;;  %v11475_v17 = vld [vmem:[#allocation17_spill] sm:$0xff] }
 0x4c7   : > { %7939 = vmatmul.mubr.msk.f32.vlgmr.msra.gmra.mrb[30].mxu0 %vm1345_vm4, %v3397_v55  ;;  %v3411_v24 = vrot.slane %v11475_v17, 2 }
 0x4c8   : > { %7771 = vmatmul.mubr.msk.f32.vlgmr.msra.gmra.mrb[60].mxu1 %vm1345_vm4, %v10553_v39  ;;  %7941 = vmatprep.mubr.msk.f32.mxu0 %vm1345_vm4, %v10561_v30  ;;  %v3424_v39 = vrot.slane %v11453_v33, 2 }
 0x4c9   : > { %7773 = vmatprep.mubr.msk.f32.mxu1 %vm1345_vm4, %v3395_v36  ;;  %8313 = vmatpush3.bf16.msra.mxu0 %v10396_v46  ;;  %v10585_v36 = vsel %vm1580_vm1, %v3403_v29, %v3404_v11  ;;  %v3409_v46 = vrot.slane %v9981_v53, 2 }
 0x4ca   : > { %8315 = vmatprep.subr.bf16.mxu0 %v8314_v25 }
 0x4cb   : > { %7942 = vmatmul.mubr.msk.f32.gmra.mrb[32].mxu0 %vm1345_vm4, %v10577_v58  ;;  %v10603_v29 = vsel %vm1580_vm1, %v3408_v9, %v3409_v46  ;;  %v10613_v1 = vsel %vm1580_vm1, %v3409_v46, %v3411_v24  ;;  %v3419_v9 = vrot.slane %v10047_v15, 2  ;;  %v11479_v46 = vld [vmem:[#allocation19_spill] sm:$0xff] }
 0x4cc   : > { %7774 = vmatmul.mubr.msk.f32.gmra.mrb[62].mxu1 %vm1345_vm4, %v3397_v55  ;;  %7944 = vmatprep.mubr.msk.f32.mxu0 %vm1345_vm4, %v10585_v36  ;;  %v10595_v55 = vsel %vm1580_vm1, %v3404_v11, %v3406_v5  ;;  %v11476_v11 = vld [vmem:[#allocation18_spill] sm:$0xff]  ;;  %11477 = vst [vmem:[#allocation27_spill] sm:$0xff] %v10613_v1  ;;  %v3418_v5 = vrot.slane %v10050_v32, 2  ;;  %v3421_v17 = vrot.slane %v11479_v46, 2 }
 0x4cd   : > { %7776 = vmatprep.mubr.msk.f32.mxu1 %vm1345_vm4, %v10561_v30  ;;  %8317 = vmatpush3.bf16.msra.mxu0 %v8314_v25  ;;  %v3414_v25 = vrot.slane %v10005_v26, 2  ;;  %v3416_v38 = vrot.slane %v11476_v11, 2  ;;  %v3423_v11 = vrot.slane %v11452_v4, 2 }
 0x4ce   : > { %8319 = vmatprep.subr.bf16.mxu0 %v10579_v6  ;;  %v10647_v46 = vsel %vm1580_vm1, %v3419_v9, %v3421_v17 }
 0x4cf   : > { %7945 = vmatmul.mubr.msk.f32.gmra.mrb[34].mxu0 %vm1345_vm4, %v10595_v55  ;;  %v10620_v43 = vsel %vm1580_vm1, %v3413_v57, %v3414_v25  ;;  %v10630_v24 = vsel %vm1580_vm1, %v3414_v25, %v3416_v38  ;;  %v10637_v57 = vsel %vm1580_vm1, %v3418_v5, %v3419_v9  ;;  %v11482_v25 = vld [vmem:[#allocation20_spill] sm:$0xff]  ;;  %11483 = vst [vmem:[#allocation36_spill] sm:$0xff] %v10647_v46  ;;  %v11485_v9 = vld [vmem:[#allocation23_spill] sm:$0xff] }
 0x4d0   : > { %7777 = vmatmul.mubr.msk.f32.gmra.mrb[64].mxu1 %vm1345_vm4, %v10577_v58  ;;  %7947 = vmatprep.mubr.msk.f32.mxu0 %vm1345_vm4, %v10603_v29  ;;  %11478 = vst [vmem:[#allocation33_spill] sm:$0xff] %v10620_v43  ;;  %11480 = vst [vmem:[#allocation32_spill] sm:$0xff] %v10630_v24  ;;  %v3426_v38 = vrot.slane %v11482_v25, 2  ;;  %v10654_v5 = vsel %vm1580_vm1, %v3423_v11, %v3424_v39  ;;  %v3431_v17 = vrot.slane %v11485_v9, 2 }
 0x4d1   : > { %7779 = vmatprep.mubr.msk.f32.mxu1 %vm1345_vm4, %v10585_v36  ;;  %11481 = vst [vmem:[#allocation37_spill] sm:$0xff] %v10637_v57  ;;  %11484 = vst [vmem:[#allocation43_spill] sm:$0xff] %v10654_v5 }
 0x4d2   : > { %v10664_v25 = vsel %vm1580_vm1, %v3424_v39, %v3426_v38  ;;  %v11488_v39 = vld [vmem:[#allocation26_spill] sm:$0xff] }
 0x4d3   : > { %7948 = vmatmul.mubr.msk.f32.gmra.mrb[36].mxu0 %vm1345_vm4, %v10613_v1  ;;  %11486 = vst [vmem:[#allocation42_spill] sm:$0xff] %v10664_v25  ;;  %v3436_v38 = vrot.slane %v11488_v39, 2 }
 0x4d4   : > { %7780 = vmatmul.mubr.msk.f32.gmra.mrb[66].mxu1 %vm1345_vm4, %v10595_v55  ;;  %7950 = vmatprep.mubr.msk.f32.mxu0 %vm1345_vm4, %v10620_v43 }
 0x4d5   : > { %7782 = vmatprep.mubr.msk.f32.mxu1 %vm1345_vm4, %v10603_v29 }
 0x4d7   : > { %7951 = vmatmul.mubr.msk.f32.gmra.mrb[38].mxu0 %vm1345_vm4, %v10630_v24 }
 0x4d8   : > { %7783 = vmatmul.mubr.msk.f32.gmra.mrb[68].mxu1 %vm1345_vm4, %v10613_v1  ;;  %7953 = vmatprep.mubr.msk.f32.mxu0 %vm1345_vm4, %v10637_v57  ;;  %v3428_v1 = vrot.slane %v11454_v22, 2 }
 0x4d9   : > { %7785 = vmatprep.mubr.msk.f32.mxu1 %vm1345_vm4, %v10620_v43  ;;  %v3429_v43 = vrot.slane %v11455_v44, 2 }
 0x4db   : > { %7954 = vmatmul.mubr.msk.f32.gmra.mrb[40].mxu0 %vm1345_vm4, %v10647_v46  ;;  %v10671_v11 = vsel %vm1580_vm1, %v3428_v1, %v3429_v43  ;;  %v10681_v9 = vsel %vm1580_vm1, %v3429_v43, %v3431_v17  ;;  %v11491_v43 = vld [vmem:[#allocation30_spill] sm:$0xff] }
 0x4dc   : > { %7786 = vmatmul.mubr.msk.f32.gmra.mrb[70].mxu1 %vm1345_vm4, %v10630_v24  ;;  %7956 = vmatprep.mubr.msk.f32.mxu0 %vm1345_vm4, %v10654_v5  ;;  %11487 = vst [vmem:[#allocation46_spill] sm:$0xff] %v10671_v11  ;;  %v3433_v24 = vrot.slane %v11456_v61, 2  ;;  %11489 = vst [vmem:[#allocation14_spill] sm:$0xff] %v10681_v9  ;;  %v3441_v17 = vrot.slane %v11491_v43, 2 }
 0x4dd   : > { %7788 = vmatprep.mubr.msk.f32.mxu1 %vm1345_vm4, %v10637_v57  ;;  %v3434_v57 = vrot.slane %v10135_v31, 2 }
 0x4df   : > { %7957 = vmatmul.mubr.msk.f32.gmra.mrb[42].mxu0 %vm1345_vm4, %v10664_v25  ;;  %v10688_v1 = vsel %vm1580_vm1, %v3433_v24, %v3434_v57  ;;  %v10698_v39 = vsel %vm1580_vm1, %v3434_v57, %v3436_v38  ;;  %v11494_v57 = vld [vmem:[#allocation35_spill] sm:$0xff] }
 0x4e0   : > { %7789 = vmatmul.mubr.msk.f32.gmra.mrb[72].mxu1 %vm1345_vm4, %v10647_v46  ;;  %7959 = vmatprep.mubr.msk.f32.mxu0 %vm1345_vm4, %v10671_v11  ;;  %11490 = vst [vmem:[#allocation11_spill] sm:$0xff] %v10688_v1  ;;  %v3438_v46 = vrot.slane %v11457_v21, 2  ;;  %11492 = vst [vmem:[#allocation15_spill] sm:$0xff] %v10698_v39  ;;  %v3446_v38 = vrot.slane %v11494_v57, 2 }
 0x4e1   : > { %7791 = vmatprep.mubr.msk.f32.mxu1 %vm1345_vm4, %v10654_v5  ;;  %v3439_v5 = vrot.slane %v11458_v59, 2 }
 0x4e3   : > { %7960 = vmatmul.mubr.msk.f32.gmra.mrb[44].mxu0 %vm1345_vm4, %v10681_v9  ;;  %v10705_v24 = vsel %vm1580_vm1, %v3438_v46, %v3439_v5  ;;  %v10715_v43 = vsel %vm1580_vm1, %v3439_v5, %v3441_v17  ;;  %v11497_v5 = vld [vmem:[#allocation40_spill] sm:$0xff] }
 0x4e4   : > { %7792 = vmatmul.mubr.msk.f32.gmra.mrb[74].mxu1 %vm1345_vm4, %v10664_v25  ;;  %7962 = vmatprep.mubr.msk.f32.mxu0 %vm1345_vm4, %v10688_v1  ;;  %11493 = vst [vmem:[#allocation16_spill] sm:$0xff] %v10705_v24  ;;  %v3443_v25 = vrot.slane %v11459_v51, 2  ;;  %11495 = vst [vmem:[#allocation17_spill] sm:$0xff] %v10715_v43  ;;  %v3451_v17 = vrot.slane %v11497_v5, 2 }
 0x4e5   : > { %7794 = vmatprep.mubr.msk.f32.mxu1 %vm1345_vm4, %v10671_v11  ;;  %v3444_v11 = vrot.slane %v11460_v45, 2 }
 0x4e7   : > { %7963 = vmatmul.mubr.msk.f32.gmra.mrb[46].mxu0 %vm1345_vm4, %v10698_v39  ;;  %v10722_v46 = vsel %vm1580_vm1, %v3443_v25, %v3444_v11  ;;  %v10732_v57 = vsel %vm1580_vm1, %v3444_v11, %v3446_v38  ;;  %v11500_v11 = vld [vmem:[#allocation45_spill] sm:$0xff] }
 0x4e8   : > { %7795 = vmatmul.mubr.msk.f32.gmra.mrb[76].mxu1 %vm1345_vm4, %v10681_v9  ;;  %7965 = vmatprep.mubr.msk.f32.mxu0 %vm1345_vm4, %v10705_v24  ;;  %11496 = vst [vmem:[#allocation18_spill] sm:$0xff] %v10722_v46  ;;  %v3448_v9 = vrot.slane %v11461_v8, 2  ;;  %11498 = vst [vmem:[#allocation19_spill] sm:$0xff] %v10732_v57  ;;  %v3456_v38 = vrot.slane %v11500_v11, 2 }
 0x4e9   : > { %7797 = vmatprep.mubr.msk.f32.mxu1 %vm1345_vm4, %v10688_v1  ;;  %v3449_v1 = vrot.slane %v11462_v27, 2 }
 0x4eb   : > { %7966 = vmatmul.mubr.msk.f32.gmra.mrb[48].mxu0 %vm1345_vm4, %v10715_v43  ;;  %v10739_v25 = vsel %vm1580_vm1, %v3448_v9, %v3449_v1  ;;  %v10749_v5 = vsel %vm1580_vm1, %v3449_v1, %v3451_v17  ;;  %v11502_v1 = vld [vmem:[#allocation49_spill] sm:$0xff] }
 0x4ec   : > { %7798 = vmatmul.mubr.msk.f32.gmra.mrb[78].mxu1 %vm1345_vm4, %v10698_v39  ;;  %7968 = vmatprep.mubr.msk.f32.mxu0 %vm1345_vm4, %v10722_v46  ;;  %11499 = vst [vmem:[#allocation20_spill] sm:$0xff] %v10739_v25  ;;  %v3453_v39 = vrot.slane %v11463_v18, 2  ;;  %v3461_v17 = vrot.slane %v11502_v1, 2  ;;  %v3475_v1 = vrot.slane %v10349_v34, 2 }
 0x4ed   : > { %7800 = vmatprep.mubr.msk.f32.mxu1 %vm1345_vm4, %v10705_v24  ;;  %v3454_v24 = vrot.slane %v10256_v49, 2 }
 0x4ef   : > { %7969 = vmatmul.mubr.msk.f32.gmra.mrb[50].mxu0 %vm1345_vm4, %v10732_v57  ;;  %v10756_v9 = vsel %vm1580_vm1, %v3453_v39, %v3454_v24  ;;  %v10766_v11 = vsel %vm1580_vm1, %v3454_v24, %v3456_v38  ;;  %v3466_v24 = vrot.slane %v10307_v56, 2  ;;  %v3478_v56 = vrot.slane %v10498_v52, 2 }
 0x4f0   : > { %7801 = vmatmul.mubr.msk.f32.gmra.mrb[80].mxu1 %vm1345_vm4, %v10715_v43  ;;  %7971 = vmatprep.mubr.msk.f32.mxu0 %vm1345_vm4, %v10739_v25  ;;  %11501 = vst [vmem:[#allocation23_spill] sm:$0xff] %v10756_v9  ;;  %v3458_v43 = vrot.slane %v10291_v7, 2 }
 0x4f1   : > { %7803 = vmatprep.mubr.msk.f32.mxu1 %vm1345_vm4, %v10722_v46  ;;  %v3459_v46 = vrot.slane %v10288_v54, 2 }
 0x4f3   : > { %7972 = vmatmul.mubr.msk.f32.gmra.mrb[52].mxu0 %vm1345_vm4, %v10749_v5  ;;  %v10773_v39 = vsel %vm1580_vm1, %v3458_v43, %v3459_v46  ;;  %v10783_v38 = vsel %vm1580_vm1, %v3459_v46, %v3461_v17  ;;  %v3476_v43 = vrot.slane %v10356_v48, 2  ;;  %v3511_v17 = vld [vmem:[%s11298_s11 + $0xf8] sm:$0xff] }
 0x4f4   : > { %7804 = vmatmul.mubr.msk.f32.gmra.mrb[82].mxu1 %vm1345_vm4, %v10732_v57  ;;  %7974 = vmatprep.mubr.msk.f32.mxu0 %vm1345_vm4, %v10756_v9  ;;  %v3463_v57 = vrot.slane %v10320_v13, 2 }
 0x4f5   : > { %7806 = vmatprep.mubr.msk.f32.mxu1 %vm1345_vm4, %v10739_v25  ;;  %v3464_v25 = vrot.slane %v10317_v14, 2  ;;  %v10814_v52 = vsel %vm1580_vm1, %v3476_v43, %v3478_v56 }
 0x4f7   : > { %7975 = vmatmul.mubr.msk.f32.gmra.mrb[54].mxu0 %vm1345_vm4, %v10766_v11  ;;  %v10800_v46 = vsel %vm1580_vm1, %v3464_v25, %v3466_v24 }
 0x4f8   : > { %7807 = vmatmul.mubr.msk.f32.gmra.mrb[84].mxu1 %vm1345_vm4, %v10749_v5  ;;  %7977 = vmatprep.mubr.msk.f32.mxu0 %vm1345_vm4, %v10773_v39 }
 0x4f9   : > { %7809 = vmatprep.mubr.msk.f32.mxu1 %vm1345_vm4, %v10756_v9  ;;  %v10792_v9 = vsel %vm1580_vm1, %v3463_v57, %v3464_v25  ;;  %v10807_v57 = vsel %vm1580_vm1, %v3475_v1, %v3476_v43  ;;  %v3510_v25 = vld [vmem:[%s11298_s11 + $0xf0] sm:$0xff]  ;;  %v3512_v1 = vld [vmem:[%s11298_s11 + $0x100] sm:$0xff]  ;;  %v3513_v43 = vld [vmem:[%s11298_s11 + $0x108] sm:$0xff] }
 0x4fa   : > { %v8322_v24 = vpack.c.bf16 %v3511_v17, %v3510_v25  ;;  %v8326_v56 = vpack.c.bf16 %v3513_v43, %v3512_v1  ;;  %v11539_v17 = vld [vmem:[#allocation23_spill] sm:$0xff] }
 0x4fb   : > { %7978 = vmatmul.mubr.msk.f32.gmra.mrb[56].mxu0 %vm1345_vm4, %v10783_v38 }
 0x4fc   : > { %7810 = vmatmul.mubr.msk.f32.gmra.mrb[86].mxu1 %vm1345_vm4, %v10766_v11  ;;  %7980 = vmatprep.mubr.msk.f32.mxu0 %vm1345_vm4, %v10792_v9 }
 0x4fd   : > { %7812 = vmatprep.mubr.msk.f32.mxu1 %vm1345_vm4, %v10773_v39 }
 0x4ff   : > { %7981 = vmatmul.mubr.msk.f32.gmra.mrb[58].mxu0 %vm1345_vm4, %v10800_v46 }
 0x500   : > { %7813 = vmatmul.mubr.msk.f32.gmra.mrb[88].mxu1 %vm1345_vm4, %v10783_v38  ;;  %7983 = vmatprep.mubr.msk.f32.mxu0 %vm1345_vm4, %v10807_v57 }
 0x501   : > { %7815 = vmatprep.mubr.msk.f32.mxu1 %vm1345_vm4, %v10792_v9 }
 0x503   : > { %7984 = vmatmul.mubr.msk.f32.gmra.mrb[60].mxu0 %vm1345_vm4, %v10814_v52 }
 0x504   : > { %7816 = vmatmul.mubr.msk.f32.gmra.mrb[90].mxu1 %vm1345_vm4, %v10800_v46  ;;  %7994 = vmatprep.mubr.msk.f32.mxu0 %vm1345_vm4, %v9917_v60 }
 0x507   : > { %7995 = vmatmul.mubr.msk.f32.vlgmr.msra.gmra.mrb[30].mxu0 %vm1345_vm4, %v9914_v28  ;;  %v3515_v28 = vld [vmem:[%s11298_s11 + $0x118] sm:$0xff] }
 0x508   : > { %7997 = vmatprep.mubr.msk.f32.mxu0 %vm1345_vm4, %v9941_v62  ;;  %8321 = vmatpush3.bf16.msra.mxu0 %v10579_v6  ;;  %v11507_v62 = vld [vmem:[#allocation38_spill] sm:$0xff] }
 0x509   : > { %8323 = vmatprep.subr.bf16.mxu0 %v8322_v24 }
 0x50b   : > { %7998 = vmatmul.mubr.msk.f32.gmra.mrb[32].mxu0 %vm1345_vm4, %v9938_v16  ;;  %v11506_v16 = vld [vmem:[#allocation34_spill] sm:$0xff] }
 0x50c   : > { %8000 = vmatprep.mubr.msk.f32.mxu0 %vm1345_vm4, %v9984_v10  ;;  %8325 = vmatpush3.bf16.msra.mxu0 %v8322_v24  ;;  %v11512_v10 = vld [vmem:[#allocation48_spill] sm:$0xff] }
 0x50d   : > { %8327 = vmatprep.subr.bf16.mxu0 %v8326_v56 }
 0x50f   : > { %8001 = vmatmul.mubr.msk.f32.gmra.mrb[34].mxu0 %vm1345_vm4, %v9981_v53  ;;  %v3514_v53 = vld [vmem:[%s11298_s11 + $0x110] sm:$0xff] }
 0x510   : > { %8003 = vmatprep.mubr.msk.f32.mxu0 %vm1345_vm4, %v10008_v47  ;;  %v8330_v60 = vpack.c.bf16 %v3515_v28, %v3514_v53  ;;  %v11515_v47 = vld [vmem:[#allocation52_spill] sm:$0xff] }
 0x513   : > { %8004 = vmatmul.mubr.msk.f32.gmra.mrb[36].mxu0 %vm1345_vm4, %v10005_v26  ;;  %v11514_v26 = vld [vmem:[#allocation51_spill] sm:$0xff] }
 0x514   : > { %8006 = vmatprep.mubr.msk.f32.mxu0 %vm1345_vm4, %v10050_v32  ;;  %v11518_v32 = vld [vmem:[#allocation55_spill] sm:$0xff] }
 0x517   : > { %8007 = vmatmul.mubr.msk.f32.gmra.mrb[38].mxu0 %vm1345_vm4, %v10047_v15  ;;  %v11505_v15 = vld [vmem:[#allocation31_spill] sm:$0xff] }
 0x518   : > { %8009 = vmatprep.mubr.msk.f32.mxu0 %vm1345_vm4, %v11452_v4 }
 0x51b   : > { %8010 = vmatmul.mubr.msk.f32.gmra.mrb[40].mxu0 %vm1345_vm4, %v11453_v33  ;;  %v11531_v33 = vld [vmem:[#allocation14_spill] sm:$0xff] }
 0x51c   : > { %8012 = vmatprep.mubr.msk.f32.mxu0 %vm1345_vm4, %v11454_v22  ;;  %v11532_v22 = vld [vmem:[#allocation11_spill] sm:$0xff] }
 0x51f   : > { %8013 = vmatmul.mubr.msk.f32.gmra.mrb[42].mxu0 %vm1345_vm4, %v11455_v44 }
 0x520   : > { %8015 = vmatprep.mubr.msk.f32.mxu0 %vm1345_vm4, %v11456_v61 }
 0x523   : > { %8016 = vmatmul.mubr.msk.f32.gmra.mrb[44].mxu0 %vm1345_vm4, %v10135_v31  ;;  %v11525_v31 = vld [vmem:[#allocation32_spill] sm:$0xff] }
 0x524   : > { %8018 = vmatprep.mubr.msk.f32.mxu0 %vm1345_vm4, %v11457_v21  ;;  %v11533_v21 = vld [vmem:[#allocation15_spill] sm:$0xff] }
 0x527   : > { %8019 = vmatmul.mubr.msk.f32.gmra.mrb[46].mxu0 %vm1345_vm4, %v11458_v59  ;;  %v11534_v59 = vld [vmem:[#allocation16_spill] sm:$0xff] }
 0x528   : > { %8021 = vmatprep.mubr.msk.f32.mxu0 %vm1345_vm4, %v11459_v51 }
 0x52b   : > { %8022 = vmatmul.mubr.msk.f32.gmra.mrb[48].mxu0 %vm1345_vm4, %v11460_v45 }
 0x52c   : > { %8024 = vmatprep.mubr.msk.f32.mxu0 %vm1345_vm4, %v11461_v8  ;;  %v11535_v8 = vld [vmem:[#allocation17_spill] sm:$0xff] }
 0x52f   : > { %8025 = vmatmul.mubr.msk.f32.gmra.mrb[50].mxu0 %vm1345_vm4, %v11462_v27  ;;  %v11536_v27 = vld [vmem:[#allocation18_spill] sm:$0xff] }
 0x530   : > { %8027 = vmatprep.mubr.msk.f32.mxu0 %vm1345_vm4, %v11463_v18  ;;  %v11527_v18 = vld [vmem:[#allocation36_spill] sm:$0xff] }
 0x533   : > { %8028 = vmatmul.mubr.msk.f32.gmra.mrb[52].mxu0 %vm1345_vm4, %v10256_v49  ;;  %v11528_v49 = vld [vmem:[#allocation43_spill] sm:$0xff] }
 0x534   : > { %8030 = vmatprep.mubr.msk.f32.mxu0 %vm1345_vm4, %v10291_v7  ;;  %v11520_v7 = vld [vmem:[#allocation25_spill] sm:$0xff] }
 0x537   : > { %8031 = vmatmul.mubr.msk.f32.gmra.mrb[54].mxu0 %vm1345_vm4, %v10288_v54 }
 0x538   : > { %8033 = vmatprep.mubr.msk.f32.mxu0 %vm1345_vm4, %v10320_v13 }
 0x53b   : > { %8034 = vmatmul.mubr.msk.f32.gmra.mrb[56].mxu0 %vm1345_vm4, %v10317_v14  ;;  %v11529_v14 = vld [vmem:[#allocation42_spill] sm:$0xff] }
 0x53c   : > { %8036 = vmatprep.mubr.msk.f32.mxu0 %vm1345_vm4, %v10349_v34  ;;  %v11530_v34 = vld [vmem:[#allocation46_spill] sm:$0xff] }
 0x53f   : > { %8037 = vmatmul.mubr.msk.f32.gmra.mrb[58].mxu0 %vm1345_vm4, %v10356_v48 }
 0x540   : > { %8039 = vmatprep.mubr.msk.f32.mxu0 %vm1345_vm4, %v9064_v0  ;;  %v11504_v0 = vld [vmem:[#allocation29_spill] sm:$0xff] }
 0x543   : > { %8040 = vmatmul.mubr.msk.f32.gmra.mrb[60].mxu0 %vm1345_vm4, %v9060_v63  ;;  %v11503_v63 = vld [vmem:[#allocation28_spill] sm:$0xff] }
 0x544   : > { %8050 = vmatprep.mubr.msk.f32.mxu0 %vm1345_vm4, %v9945_v20  ;;  %v11508_v20 = vld [vmem:[#allocation39_spill] sm:$0xff] }
 0x547   : > { %8051 = vmatmul.mubr.msk.f32.vlgmr.msra.gmra.mrb[30].mxu0 %vm1345_vm4, %v9948_v41  ;;  %v11509_v41 = vld [vmem:[#allocation41_spill] sm:$0xff] }
 0x548   : > { %8053 = vmatprep.mubr.msk.f32.mxu0 %vm1345_vm4, %v9975_v3  ;;  %8329 = vmatpush3.bf16.msra.mxu0 %v8326_v56  ;;  %v11511_v3 = vld [vmem:[#allocation47_spill] sm:$0xff] }
 0x549   : > { %8331 = vmatprep.subr.bf16.mxu0 %v8330_v60 }
 0x54b   : > { %8054 = vmatmul.mubr.msk.f32.gmra.mrb[32].mxu0 %vm1345_vm4, %v9989_v2  ;;  %v11513_v2 = vld [vmem:[#allocation50_spill] sm:$0xff] }
 0x54c   : > { %8056 = vmatprep.mubr.msk.f32.mxu0 %vm1345_vm4, %v10012_v40  ;;  %8333 = vmatpush3.bf16.msra.mxu0 %v8330_v60  ;;  %v11516_v40 = vld [vmem:[#allocation53_spill] sm:$0xff] }
 0x54f   : > { %8057 = vmatmul.mubr.msk.f32.gmra.mrb[34].mxu0 %vm1345_vm4, %v10015_v12  ;;  %v11517_v12 = vld [vmem:[#allocation54_spill] sm:$0xff] }
 0x550   : > { %8059 = vmatprep.mubr.msk.f32.mxu0 %vm1345_vm4, %v10041_v19  ;;  %v11510_v19 = vld [vmem:[#allocation44_spill] sm:$0xff] }
 0x553   : > { %8060 = vmatmul.mubr.msk.f32.gmra.mrb[36].mxu0 %vm1345_vm4, %v10055_v35  ;;  %v11519_v35 = vld [vmem:[#allocation22_spill] sm:$0xff] }
 0x554   : > { %8062 = vmatprep.mubr.msk.f32.mxu0 %vm1345_vm4, %v10078_v37  ;;  %v11521_v37 = vld [vmem:[#allocation12_spill] sm:$0xff] }
 0x557   : > { %8063 = vmatmul.mubr.msk.f32.gmra.mrb[38].mxu0 %vm1345_vm4, %v10081_v42  ;;  %v11522_v42 = vld [vmem:[#allocation13_spill] sm:$0xff] }
 0x558   : > { %8065 = vmatprep.mubr.msk.f32.mxu0 %vm1345_vm4, %v10105_v50  ;;  %v11523_v50 = vld [vmem:[#allocation27_spill] sm:$0xff] }
 0x55b   : > { %8066 = vmatmul.mubr.msk.f32.gmra.mrb[40].mxu0 %vm1345_vm4, %v10119_v23  ;;  %v11524_v23 = vld [vmem:[#allocation33_spill] sm:$0xff] }
 0x55c   : > { %8068 = vmatprep.mubr.msk.f32.mxu0 %vm1345_vm4, %v11503_v63 }
 0x55f   : > { %8069 = vmatmul.mubr.msk.f32.gmra.mrb[42].mxu0 %vm1345_vm4, %v11504_v0 }
 0x560   : > { %8071 = vmatprep.mubr.msk.f32.mxu0 %vm1345_vm4, %v11505_v15 }
 0x563   : > { %8072 = vmatmul.mubr.msk.f32.gmra.mrb[44].mxu0 %vm1345_vm4, %v11506_v16 }
 0x564   : > { %8074 = vmatprep.mubr.msk.f32.mxu0 %vm1345_vm4, %v11507_v62 }
 0x567   : > { %8075 = vmatmul.mubr.msk.f32.gmra.mrb[46].mxu0 %vm1345_vm4, %v11508_v20 }
 0x568   : > { %8077 = vmatprep.mubr.msk.f32.mxu0 %vm1345_vm4, %v11509_v41 }
 0x56b   : > { %8078 = vmatmul.mubr.msk.f32.gmra.mrb[48].mxu0 %vm1345_vm4, %v11510_v19 }
 0x56c   : > { %8080 = vmatprep.mubr.msk.f32.mxu0 %vm1345_vm4, %v11511_v3 }
 0x56f   : > { %8081 = vmatmul.mubr.msk.f32.gmra.mrb[50].mxu0 %vm1345_vm4, %v11512_v10 }
 0x570   : > { %8083 = vmatprep.mubr.msk.f32.mxu0 %vm1345_vm4, %v11513_v2 }
 0x573   : > { %8084 = vmatmul.mubr.msk.f32.gmra.mrb[52].mxu0 %vm1345_vm4, %v11514_v26 }
 0x574   : > { %8086 = vmatprep.mubr.msk.f32.mxu0 %vm1345_vm4, %v11515_v47 }
 0x577   : > { %8087 = vmatmul.mubr.msk.f32.gmra.mrb[54].mxu0 %vm1345_vm4, %v11516_v40 }
 0x578   : > { %8089 = vmatprep.mubr.msk.f32.mxu0 %vm1345_vm4, %v11517_v12 }
 0x57b   : > { %8090 = vmatmul.mubr.msk.f32.gmra.mrb[56].mxu0 %vm1345_vm4, %v11518_v32 }
 0x57c   : > { %8092 = vmatprep.mubr.msk.f32.mxu0 %vm1345_vm4, %v11519_v35 }
 0x57f   : > { %8093 = vmatmul.mubr.msk.f32.gmra.mrb[58].mxu0 %vm1345_vm4, %v11520_v7 }
 0x580   : > { %8095 = vmatprep.mubr.msk.f32.mxu0 %vm1345_vm4, %v11521_v37 }
 0x583   : > { %8096 = vmatmul.mubr.msk.f32.gmra.mrb[60].mxu0 %vm1345_vm4, %v11522_v42 }
 0x584   : > { %8106 = vmatprep.mubr.msk.f32.mxu0 %vm1345_vm4, %v10561_v30  ;;  %v11526_v30 = vld [vmem:[#allocation37_spill] sm:$0xff] }
 0x587   : > { %8107 = vmatmul.mubr.msk.f32.vlgmr.msra.gmra.mrb[30].mxu0 %vm1345_vm4, %v10577_v58 }
 0x588   : > { %8109 = vmatprep.mubr.msk.f32.mxu0 %vm1345_vm4, %v10585_v36  ;;  %v11537_v36 = vld [vmem:[#allocation19_spill] sm:$0xff] }
 0x58b   : > { %8110 = vmatmul.mubr.msk.f32.gmra.mrb[32].mxu0 %vm1345_vm4, %v10595_v55  ;;  %v11538_v55 = vld [vmem:[#allocation20_spill] sm:$0xff] }
 0x58c   : > { %8112 = vmatprep.mubr.msk.f32.mxu0 %vm1345_vm4, %v10603_v29 }
 0x58f   : > { %8113 = vmatmul.mubr.msk.f32.gmra.mrb[34].mxu0 %vm1345_vm4, %v11523_v50 }
 0x590   : > { %8115 = vmatprep.mubr.msk.f32.mxu0 %vm1345_vm4, %v11524_v23 }
 0x593   : > { %8116 = vmatmul.mubr.msk.f32.gmra.mrb[36].mxu0 %vm1345_vm4, %v11525_v31 }
 0x594   : > { %8118 = vmatprep.mubr.msk.f32.mxu0 %vm1345_vm4, %v11526_v30 }
 0x597   : > { %8119 = vmatmul.mubr.msk.f32.gmra.mrb[38].mxu0 %vm1345_vm4, %v11527_v18 }
 0x598   : > { %8121 = vmatprep.mubr.msk.f32.mxu0 %vm1345_vm4, %v11528_v49 }
 0x59b   : > { %v10989_v54 = vpop.f32.mrb[60].mxu1  ;;  %8122 = vmatmul.mubr.msk.f32.gmra.mrb[40].mxu0 %vm1345_vm4, %v11529_v14 }
 0x59c   : > { %v10993_v13 = vpop.f32.mrb[61].mxu1  ;;  %8124 = vmatprep.mubr.msk.f32.mxu0 %vm1345_vm4, %v11530_v34 }
 0x59f   : > { %v10997_v48 = vpop.f32.mrb[62].mxu1  ;;  %8125 = vmatmul.mubr.msk.f32.gmra.mrb[42].mxu0 %vm1345_vm4, %v11531_v33 }
 0x5a0   : > { %v10999_v4 = vpop.f32.mrb[63].mxu1  ;;  %8127 = vmatprep.mubr.msk.f32.mxu0 %vm1345_vm4, %v11532_v22 }
 0x5a3   : > { %v11005_v44 = vpop.f32.mrb[64].mxu1  ;;  %8128 = vmatmul.mubr.msk.f32.gmra.mrb[44].mxu0 %vm1345_vm4, %v11533_v21 }
 0x5a4   : > { %v11007_v61 = vpop.f32.mrb[65].mxu1  ;;  %8130 = vmatprep.mubr.msk.f32.mxu0 %vm1345_vm4, %v11534_v59 }
 0x5a7   : > { %v11013_v51 = vpop.f32.mrb[66].mxu1  ;;  %8131 = vmatmul.mubr.msk.f32.gmra.mrb[46].mxu0 %vm1345_vm4, %v11535_v8 }
 0x5a8   : > { %v11015_v45 = vpop.f32.mrb[67].mxu1  ;;  %8133 = vmatprep.mubr.msk.f32.mxu0 %vm1345_vm4, %v11536_v27 }
 0x5ab   : > { %v11021_v58 = vpop.f32.mrb[68].mxu1  ;;  %8134 = vmatmul.mubr.msk.f32.gmra.mrb[48].mxu0 %vm1345_vm4, %v11537_v36 }
 0x5ac   : > { %v11023_v6 = vpop.f32.mrb[69].mxu1  ;;  %8136 = vmatprep.mubr.msk.f32.mxu0 %vm1345_vm4, %v11538_v55 }
 0x5af   : > { %v11029_v29 = vpop.f32.mrb[70].mxu1  ;;  %8137 = vmatmul.mubr.msk.f32.gmra.mrb[50].mxu0 %vm1345_vm4, %v10749_v5 }
 0x5b0   : > { %v11031_v25 = vpop.f32.mrb[71].mxu1  ;;  %8139 = vmatprep.mubr.msk.f32.mxu0 %vm1345_vm4, %v11539_v17 }
 0x5b3   : > { %v11037_v24 = vpop.f32.mrb[72].mxu1  ;;  %8140 = vmatmul.mubr.msk.f32.gmra.mrb[52].mxu0 %vm1345_vm4, %v10766_v11 }
 0x5b4   : > { %v11039_v1 = vpop.f32.mrb[73].mxu1  ;;  %8142 = vmatprep.mubr.msk.f32.mxu0 %vm1345_vm4, %v10773_v39 }
 0x5b7   : > { %v11045_v43 = vpop.f32.mrb[74].mxu1  ;;  %8143 = vmatmul.mubr.msk.f32.gmra.mrb[54].mxu0 %vm1345_vm4, %v10783_v38  ;;  %v11540_v38 = vld [vmem:[#allocation21_spill] sm:$0xff] }
 0x5b8   : > { %v11047_v56 = vpop.f32.mrb[75].mxu1  ;;  %8145 = vmatprep.mubr.msk.f32.mxu0 %vm1345_vm4, %v10792_v9 }
 0x5bb   : > { %v11053_v5 = vpop.f32.mrb[76].mxu1  ;;  %8146 = vmatmul.mubr.msk.f32.gmra.mrb[56].mxu0 %vm1345_vm4, %v10800_v46  ;;  %v11541_v46 = vld [vmem:[#allocation24_spill] sm:$0xff] }
 0x5bc   : > { %v11055_v53 = vpop.f32.mrb[77].mxu1  ;;  %8148 = vmatprep.mubr.msk.f32.mxu0 %vm1345_vm4, %v10807_v57 }
 0x5bf   : > { %v11061_v11 = vpop.f32.mrb[78].mxu1  ;;  %8149 = vmatmul.mubr.msk.f32.gmra.mrb[58].mxu0 %vm1345_vm4, %v10814_v52 }
 0x5c0   : > { %v11063_v39 = vpop.f32.mrb[79].mxu1  ;;  %8151 = vmatprep.mubr.msk.f32.mxu0 %vm1345_vm4, %v11540_v38 }
 0x5c3   : > { %v11069_v9 = vpop.f32.mrb[80].mxu1  ;;  %8152 = vmatmul.mubr.msk.f32.gmra.mrb[60].mxu0 %vm1345_vm4, %v11541_v46 }
 0x5c4   : > { %v11071_v28 = vpop.f32.mrb[81].mxu1 }
 0x5c7   : > { %v11075_v57 = vpop.f32.mrb[82].mxu1 }
 0x5c8   : > { %v11077_v60 = vpop.f32.mrb[83].mxu1 }
 0x5cb   : > { %v11079_v63 = vpop.f32.mrb[84].mxu1 }
 0x5cc   : > { %v11081_v52 = vpop.f32.mrb[85].mxu1 }
 0x5cf   : > { %v11083_v0 = vpop.f32.mrb[86].mxu1 }
 0x5d0   : > { %v11085_v15 = vpop.f32.mrb[87].mxu1 }
 0x5d3   : > { %v11087_v16 = vpop.f32.mrb[88].mxu1 }
 0x5d4   : > { %v11089_v62 = vpop.f32.mrb[89].mxu1 }
 0x5d7   : > { %v11091_v20 = vpop.f32.mrb[90].mxu1 }
 0x5d8   : > { %v11093_v41 = vpop.f32.mrb[91].mxu1 }
 0x5d9   : > { %8711 = shalt.err (!%p8708_p3)
}
 0x5da   : > { %s8712_s29 = scalar_lea.hbm %s11100_s19, 256  ;;  %s8716_s22 = scalar_lea.hbm %s11304_s17, 512 }
 0x5db   : > { %p8713_p4 = scmp.ne.s32.totalorder %s11100_s19, %s8712_s29  ;;  %p8717_p9 = scmp.lt.u32.totalorder %s11100_s19, %s11304_s17 }
 0x5dc   : > { %p8718_p10 = scmp.lt.u32.totalorder %s8716_s22, %s8712_s29  ;;  %p8720_p12 = scmp.lt.u32.totalorder %s8712_s29, %s11100_s19 }
 0x5dd   : > { %p8714_p7 = pnand %p8713_p4, %p8894_p5 }
 0x5de   : > { %p8719_p11 = por %p8718_p10, %p8717_p9 }
 0x5df   : > { %p8715_p8 = pneg %p8714_p7 }
 0x5e0   : > { %p8721_p13 = por %p8720_p12, %p8719_p11 }
 0x5e2   : > { %p8722_p0 = pnand %p8721_p13, %p8715_p8 }
 0x5e4   : > { %8725 = shalt.err (!%p8722_p0)
}
 0x5e5   : > { %s8764_s20 = smov 128   ;;  %s8765_s23 = smov 8   ;;  %v11133_v3 = vld [vmem:[%s11299_s12] ss:$0 sm:$0xff] }
 0x5e6   : > { %8656 = dma.vmem_to_hbm [thread:$0]  (%p8894_p5), %s11102_s21, 256, %s11100_s19, %s11106_s24, %s8764_s20, %s8764_s20, %s8765_s23  }
 0x5e7   : > { %s11542_s29 = sshll.u32 %s8918_s0, 8 }
 0x5e8   : > { %s11144_s21 = scalar_lea.vmem %s11302_s15, %s11542_s29 }
 0x65a   : > { %v8108_v19 = vpop.f32.mrb[30].mxu0 }
 0x65b   : > { %v8336_v10 = vadd.f32 %v8108_v19, %v10989_v54  ;;  %v5776_v2 = vpop.f32.mrb[31].mxu0 }
 0x65c   : > { %v8337_v26 = vadd.f32 %v5776_v2, %v10993_v13 }
 0x65d   : > { %v5975_v47 = vadd.f32 %v8336_v10, %v11133_v3 }
 0x65e   : > { %v5974_v40 = vadd.f32 %v8337_v26, %v11133_v3  ;;  %v8111_v12 = vpop.f32.mrb[32].mxu0 }
 0x65f   : > { %vm6007_vm6 = vcmp.ge.f32.partialorder %v5975_v47, 0.0  ;;  %v6039_v32 = vmul.f32 0.1, %v5975_v47  ;;  %v8338_v35 = vadd.f32 %v8111_v12, %v10997_v48  ;;  %v5786_v7 = vpop.f32.mrb[33].mxu0 }
 0x660   : > { %vm6006_vm7 = vcmp.ge.f32.partialorder %v5974_v40, 0.0  ;;  %v6038_v37 = vmul.f32 0.1, %v5974_v40  ;;  %v8339_v42 = vadd.f32 %v5786_v7, %v10999_v4 }
 0x661   : > { %v6071_v50 = vsel %vm6007_vm6, %v5975_v47, %v6039_v32  ;;  %v5977_v23 = vadd.f32 %v8338_v35, %v11133_v3 }
 0x662   : > { %6103 = vst.msk [vmem:[%s11144_s21 + $0x8] sm:$0xff] %vm1345_vm4, %v6071_v50  ;;  %v6070_v31 = vsel %vm6006_vm7, %v5974_v40, %v6038_v37  ;;  %v5976_v30 = vadd.f32 %v8339_v42, %v11133_v3  ;;  %v8114_v18 = vpop.f32.mrb[34].mxu0 }
 0x663   : > { %6102 = vst.msk [vmem:[%s11144_s21] sm:$0xff] %vm1345_vm4, %v6070_v31  ;;  %vm6009_vm1 = vcmp.ge.f32.partialorder %v5977_v23, 0.0  ;;  %v6041_v49 = vmul.f32 0.1, %v5977_v23  ;;  %v8340_v54 = vadd.f32 %v8114_v18, %v11005_v44  ;;  %v5796_v14 = vpop.f32.mrb[35].mxu0 }
 0x664   : > { %vm6008_vm9 = vcmp.ge.f32.partialorder %v5976_v30, 0.0  ;;  %v6040_v13 = vmul.f32 0.1, %v5976_v30  ;;  %v8341_v34 = vadd.f32 %v5796_v14, %v11007_v61 }
 0x665   : > { %v6073_v48 = vsel %vm6009_vm1, %v5977_v23, %v6041_v49  ;;  %v5979_v4 = vadd.f32 %v8340_v54, %v11133_v3 }
 0x666   : > { %6105 = vst.msk [vmem:[%s11144_s21 + $0x18] sm:$0xff] %vm1345_vm4, %v6073_v48  ;;  %v6072_v33 = vsel %vm6008_vm9, %v5976_v30, %v6040_v13  ;;  %v5978_v22 = vadd.f32 %v8341_v34, %v11133_v3  ;;  %v8117_v21 = vpop.f32.mrb[36].mxu0 }
 0x667   : > { %6104 = vst.msk [vmem:[%s11144_s21 + $0x10] sm:$0xff] %vm1345_vm4, %v6072_v33  ;;  %vm6011_vm10 = vcmp.ge.f32.partialorder %v5979_v4, 0.0  ;;  %v6043_v44 = vmul.f32 0.1, %v5979_v4  ;;  %v8342_v59 = vadd.f32 %v8117_v21, %v11013_v51  ;;  %v5806_v8 = vpop.f32.mrb[37].mxu0 }
 0x668   : > { %vm6010_vm11 = vcmp.ge.f32.partialorder %v5978_v22, 0.0  ;;  %v6042_v61 = vmul.f32 0.1, %v5978_v22  ;;  %v8343_v27 = vadd.f32 %v5806_v8, %v11015_v45 }
 0x669   : > { %v6075_v36 = vsel %vm6011_vm10, %v5979_v4, %v6043_v44  ;;  %v5981_v55 = vadd.f32 %v8342_v59, %v11133_v3 }
 0x66a   : > { %6107 = vst.msk [vmem:[%s11144_s21 + $0x28] sm:$0xff] %vm1345_vm4, %v6075_v36  ;;  %v6074_v17 = vsel %vm6010_vm11, %v5978_v22, %v6042_v61  ;;  %v5980_v38 = vadd.f32 %v8343_v27, %v11133_v3  ;;  %v8120_v46 = vpop.f32.mrb[38].mxu0 }
 0x66b   : > { %6106 = vst.msk [vmem:[%s11144_s21 + $0x20] sm:$0xff] %vm1345_vm4, %v6074_v17  ;;  %vm6013_vm12 = vcmp.ge.f32.partialorder %v5981_v55, 0.0  ;;  %v6045_v51 = vmul.f32 0.1, %v5981_v55  ;;  %v8344_v19 = vadd.f32 %v8120_v46, %v11021_v58  ;;  %v5816_v10 = vpop.f32.mrb[39].mxu0 }
 0x66c   : > { %vm6012_vm13 = vcmp.ge.f32.partialorder %v5980_v38, 0.0  ;;  %v6044_v45 = vmul.f32 0.1, %v5980_v38  ;;  %v8345_v2 = vadd.f32 %v5816_v10, %v11023_v6 }
 0x66d   : > { %v6077_v26 = vsel %vm6013_vm12, %v5981_v55, %v6045_v51  ;;  %v5983_v47 = vadd.f32 %v8344_v19, %v11133_v3 }
 0x66e   : > { %6109 = vst.msk [vmem:[%s11144_s21 + $0x38] sm:$0xff] %vm1345_vm4, %v6077_v26  ;;  %v6076_v40 = vsel %vm6012_vm13, %v5980_v38, %v6044_v45  ;;  %v5982_v12 = vadd.f32 %v8345_v2, %v11133_v3  ;;  %v8123_v32 = vpop.f32.mrb[40].mxu0 }
 0x66f   : > { %6108 = vst.msk [vmem:[%s11144_s21 + $0x30] sm:$0xff] %vm1345_vm4, %v6076_v40  ;;  %vm6015_vm14 = vcmp.ge.f32.partialorder %v5983_v47, 0.0  ;;  %v6047_v58 = vmul.f32 0.1, %v5983_v47  ;;  %v8346_v35 = vadd.f32 %v8123_v32, %v11029_v29  ;;  %v5826_v7 = vpop.f32.mrb[41].mxu0 }
 0x670   : > { %vm6014_vm15 = vcmp.ge.f32.partialorder %v5982_v12, 0.0  ;;  %v6046_v6 = vmul.f32 0.1, %v5982_v12  ;;  %v8347_v37 = vadd.f32 %v5826_v7, %v11031_v25 }
 0x671   : > { %v6079_v42 = vsel %vm6015_vm14, %v5983_v47, %v6047_v58  ;;  %v5985_v50 = vadd.f32 %v8346_v35, %v11133_v3 }
 0x672   : > { %6111 = vst.msk [vmem:[%s11144_s21 + $0x48] sm:$0xff] %vm1345_vm4, %v6079_v42  ;;  %v6078_v23 = vsel %vm6014_vm15, %v5982_v12, %v6046_v6  ;;  %v5984_v31 = vadd.f32 %v8347_v37, %v11133_v3  ;;  %v8126_v30 = vpop.f32.mrb[42].mxu0 }
 0x673   : > { %6110 = vst.msk [vmem:[%s11144_s21 + $0x40] sm:$0xff] %vm1345_vm4, %v6078_v23  ;;  %vm6017_vm2 = vcmp.ge.f32.partialorder %v5985_v50, 0.0  ;;  %v6049_v29 = vmul.f32 0.1, %v5985_v50  ;;  %v8348_v18 = vadd.f32 %v8126_v30, %v11037_v24  ;;  %v5836_v49 = vpop.f32.mrb[43].mxu0 }
 0x674   : > { %vm6016_vm0 = vcmp.ge.f32.partialorder %v5984_v31, 0.0  ;;  %v6048_v25 = vmul.f32 0.1, %v5984_v31  ;;  %v8349_v54 = vadd.f32 %v5836_v49, %v11039_v1 }
 0x675   : > { %v6081_v14 = vsel %vm6017_vm2, %v5985_v50, %v6049_v29  ;;  %v5987_v13 = vadd.f32 %v8348_v18, %v11133_v3 }
 0x676   : > { %6113 = vst.msk [vmem:[%s11144_s21 + $0x58] sm:$0xff] %vm1345_vm4, %v6081_v14  ;;  %v6080_v34 = vsel %vm6016_vm0, %v5984_v31, %v6048_v25  ;;  %v5986_v48 = vadd.f32 %v8349_v54, %v11133_v3  ;;  %v8129_v4 = vpop.f32.mrb[44].mxu0 }
 0x677   : > { %6112 = vst.msk [vmem:[%s11144_s21 + $0x50] sm:$0xff] %vm1345_vm4, %v6080_v34  ;;  %vm6019_vm3 = vcmp.ge.f32.partialorder %v5987_v13, 0.0  ;;  %v6051_v24 = vmul.f32 0.1, %v5987_v13  ;;  %v8350_v33 = vadd.f32 %v8129_v4, %v11045_v43  ;;  %v5846_v22 = vpop.f32.mrb[45].mxu0 }
 0x678   : > { %vm6018_vm5 = vcmp.ge.f32.partialorder %v5986_v48, 0.0  ;;  %v6050_v1 = vmul.f32 0.1, %v5986_v48  ;;  %v8351_v21 = vadd.f32 %v5846_v22, %v11047_v56 }
 0x679   : > { %v6083_v44 = vsel %vm6019_vm3, %v5987_v13, %v6051_v24  ;;  %v5989_v59 = vadd.f32 %v8350_v33, %v11133_v3 }
 0x67a   : > { %6115 = vst.msk [vmem:[%s11144_s21 + $0x68] sm:$0xff] %vm1345_vm4, %v6083_v44  ;;  %v6082_v8 = vsel %vm6018_vm5, %v5986_v48, %v6050_v1  ;;  %v5988_v61 = vadd.f32 %v8351_v21, %v11133_v3  ;;  %v8132_v27 = vpop.f32.mrb[46].mxu0 }
 0x67b   : > { %6114 = vst.msk [vmem:[%s11144_s21 + $0x60] sm:$0xff] %vm1345_vm4, %v6082_v8  ;;  %vm6021_vm8 = vcmp.ge.f32.partialorder %v5989_v59, 0.0  ;;  %v6053_v43 = vmul.f32 0.1, %v5989_v59  ;;  %v8352_v36 = vadd.f32 %v8132_v27, %v11053_v5  ;;  %v5856_v55 = vpop.f32.mrb[47].mxu0 }
 0x67c   : > { %vm6020_vm6 = vcmp.ge.f32.partialorder %v5988_v61, 0.0  ;;  %v6052_v56 = vmul.f32 0.1, %v5988_v61  ;;  %v8353_v17 = vadd.f32 %v5856_v55, %v11055_v53 }
 0x67d   : > { %v6085_v38 = vsel %vm6021_vm8, %v5989_v59, %v6053_v43  ;;  %v5991_v46 = vadd.f32 %v8352_v36, %v11133_v3 }
 0x67e   : > { %6117 = vst.msk [vmem:[%s11144_s21 + $0x78] sm:$0xff] %vm1345_vm4, %v6085_v38  ;;  %v6084_v51 = vsel %vm6020_vm6, %v5988_v61, %v6052_v56  ;;  %v5990_v19 = vadd.f32 %v8353_v17, %v11133_v3  ;;  %v8135_v10 = vpop.f32.mrb[48].mxu0 }
 0x67f   : > { %6116 = vst.msk [vmem:[%s11144_s21 + $0x70] sm:$0xff] %vm1345_vm4, %v6084_v51  ;;  %vm6023_vm7 = vcmp.ge.f32.partialorder %v5991_v46, 0.0  ;;  %v6055_v5 = vmul.f32 0.1, %v5991_v46  ;;  %v8354_v45 = vadd.f32 %v8135_v10, %v11061_v11  ;;  %v5866_v2 = vpop.f32.mrb[49].mxu0 }
 0x680   : > { %vm6022_vm1 = vcmp.ge.f32.partialorder %v5990_v19, 0.0  ;;  %v6054_v53 = vmul.f32 0.1, %v5990_v19  ;;  %v8355_v26 = vadd.f32 %v5866_v2, %v11063_v39 }
 0x681   : > { %v6087_v47 = vsel %vm6023_vm7, %v5991_v46, %v6055_v5  ;;  %v5993_v40 = vadd.f32 %v8354_v45, %v11133_v3 }
 0x682   : > { %6119 = vst.msk [vmem:[%s11144_s21 + $0x88] sm:$0xff] %vm1345_vm4, %v6087_v47  ;;  %v6086_v12 = vsel %vm6022_vm1, %v5990_v19, %v6054_v53  ;;  %v5992_v32 = vadd.f32 %v8355_v26, %v11133_v3  ;;  %v8138_v58 = vpop.f32.mrb[50].mxu0 }
 0x683   : > { %6118 = vst.msk [vmem:[%s11144_s21 + $0x80] sm:$0xff] %vm1345_vm4, %v6086_v12  ;;  %vm6025_vm9 = vcmp.ge.f32.partialorder %v5993_v40, 0.0  ;;  %v6057_v11 = vmul.f32 0.1, %v5993_v40  ;;  %v8356_v35 = vadd.f32 %v8138_v58, %v11069_v9  ;;  %v5876_v7 = vpop.f32.mrb[51].mxu0 }
 0x684   : > { %vm6024_vm10 = vcmp.ge.f32.partialorder %v5992_v32, 0.0  ;;  %v6056_v39 = vmul.f32 0.1, %v5992_v32  ;;  %v8357_v6 = vadd.f32 %v5876_v7, %v11071_v28 }
 0x685   : > { %v6089_v37 = vsel %vm6025_vm9, %v5993_v40, %v6057_v11  ;;  %v5995_v42 = vadd.f32 %v8356_v35, %v11133_v3 }
 0x686   : > { %6121 = vst.msk [vmem:[%s11144_s21 + $0x98] sm:$0xff] %vm1345_vm4, %v6089_v37  ;;  %v6088_v50 = vsel %vm6024_vm10, %v5992_v32, %v6056_v39  ;;  %v5994_v23 = vadd.f32 %v8357_v6, %v11133_v3  ;;  %v8141_v31 = vpop.f32.mrb[52].mxu0 }
 0x687   : > { %6120 = vst.msk [vmem:[%s11144_s21 + $0x90] sm:$0xff] %vm1345_vm4, %v6088_v50  ;;  %vm6027_vm11 = vcmp.ge.f32.partialorder %v5995_v42, 0.0  ;;  %v6059_v9 = vmul.f32 0.1, %v5995_v42  ;;  %v8358_v30 = vadd.f32 %v8141_v31, %v11075_v57  ;;  %v5886_v29 = vpop.f32.mrb[53].mxu0 }
 0x688   : > { %vm6026_vm12 = vcmp.ge.f32.partialorder %v5994_v23, 0.0  ;;  %v6058_v28 = vmul.f32 0.1, %v5994_v23  ;;  %v8359_v18 = vadd.f32 %v5886_v29, %v11077_v60 }
 0x689   : > { %v6091_v49 = vsel %vm6027_vm11, %v5995_v42, %v6059_v9  ;;  %v5997_v25 = vadd.f32 %v8358_v30, %v11133_v3 }
 0x68a   : > { %6123 = vst.msk [vmem:[%s11144_s21 + $0xa8] sm:$0xff] %vm1345_vm4, %v6091_v49  ;;  %v6090_v54 = vsel %vm6026_vm12, %v5994_v23, %v6058_v28  ;;  %v5996_v14 = vadd.f32 %v8359_v18, %v11133_v3  ;;  %v8144_v13 = vpop.f32.mrb[54].mxu0 }
 0x68b   : > { %6122 = vst.msk [vmem:[%s11144_s21 + $0xa0] sm:$0xff] %vm1345_vm4, %v6090_v54  ;;  %vm6029_vm13 = vcmp.ge.f32.partialorder %v5997_v25, 0.0  ;;  %v6061_v57 = vmul.f32 0.1, %v5997_v25  ;;  %v8360_v34 = vadd.f32 %v8144_v13, %v11079_v63  ;;  %v5896_v48 = vpop.f32.mrb[55].mxu0 }
 0x68c   : > { %vm6028_vm14 = vcmp.ge.f32.partialorder %v5996_v14, 0.0  ;;  %v6060_v60 = vmul.f32 0.1, %v5996_v14  ;;  %v8361_v4 = vadd.f32 %v5896_v48, %v11081_v52 }
 0x68d   : > { %v6093_v24 = vsel %vm6029_vm13, %v5997_v25, %v6061_v57  ;;  %v5999_v33 = vadd.f32 %v8360_v34, %v11133_v3 }
 0x68e   : > { %6125 = vst.msk [vmem:[%s11144_s21 + $0xb8] sm:$0xff] %vm1345_vm4, %v6093_v24  ;;  %v6092_v22 = vsel %vm6028_vm14, %v5996_v14, %v6060_v60  ;;  %v5998_v1 = vadd.f32 %v8361_v4, %v11133_v3  ;;  %v8147_v21 = vpop.f32.mrb[56].mxu0 }
 0x68f   : > { %6124 = vst.msk [vmem:[%s11144_s21 + $0xb0] sm:$0xff] %vm1345_vm4, %v6092_v22  ;;  %vm6031_vm15 = vcmp.ge.f32.partialorder %v5999_v33, 0.0  ;;  %v6063_v63 = vmul.f32 0.1, %v5999_v33  ;;  %v8362_v44 = vadd.f32 %v8147_v21, %v11083_v0  ;;  %v5906_v59 = vpop.f32.mrb[57].mxu0 }
 0x690   : > { %vm6030_vm2 = vcmp.ge.f32.partialorder %v5998_v1, 0.0  ;;  %v6062_v52 = vmul.f32 0.1, %v5998_v1  ;;  %v8363_v8 = vadd.f32 %v5906_v59, %v11085_v15 }
 0x691   : > { %v6095_v61 = vsel %vm6031_vm15, %v5999_v33, %v6063_v63  ;;  %v6001_v27 = vadd.f32 %v8362_v44, %v11133_v3 }
 0x692   : > { %6127 = vst.msk [vmem:[%s11144_s21 + $0xc8] sm:$0xff] %vm1345_vm4, %v6095_v61  ;;  %v6094_v43 = vsel %vm6030_vm2, %v5998_v1, %v6062_v52  ;;  %v6000_v36 = vadd.f32 %v8363_v8, %v11133_v3  ;;  %v8150_v55 = vpop.f32.mrb[58].mxu0 }
 0x693   : > { %6126 = vst.msk [vmem:[%s11144_s21 + $0xc0] sm:$0xff] %vm1345_vm4, %v6094_v43  ;;  %vm6033_vm0 = vcmp.ge.f32.partialorder %v6001_v27, 0.0  ;;  %v6065_v0 = vmul.f32 0.1, %v6001_v27  ;;  %v8364_v56 = vadd.f32 %v8150_v55, %v11087_v16  ;;  %v5916_v17 = vpop.f32.mrb[59].mxu0 }
 0x694   : > { %vm6032_vm3 = vcmp.ge.f32.partialorder %v6000_v36, 0.0  ;;  %v6064_v15 = vmul.f32 0.1, %v6000_v36  ;;  %v8365_v38 = vadd.f32 %v5916_v17, %v11089_v62 }
 0x695   : > { %v6097_v46 = vsel %vm6033_vm0, %v6001_v27, %v6065_v0  ;;  %v6003_v51 = vadd.f32 %v8364_v56, %v11133_v3 }
 0x696   : > { %6129 = vst.msk [vmem:[%s11144_s21 + $0xd8] sm:$0xff] %vm1345_vm4, %v6097_v46  ;;  %v6096_v19 = vsel %vm6032_vm3, %v6000_v36, %v6064_v15  ;;  %v6002_v10 = vadd.f32 %v8365_v38, %v11133_v3  ;;  %v8153_v5 = vpop.f32.mrb[60].mxu0 }
 0x697   : > { %6128 = vst.msk [vmem:[%s11144_s21 + $0xd0] sm:$0xff] %vm1345_vm4, %v6096_v19  ;;  %vm6035_vm5 = vcmp.ge.f32.partialorder %v6003_v51, 0.0  ;;  %v6067_v16 = vmul.f32 0.1, %v6003_v51  ;;  %v8366_v45 = vadd.f32 %v8153_v5, %v11091_v20  ;;  %v5926_v2 = vpop.f32.mrb[61].mxu0 }
 0x698   : > { %vm6034_vm8 = vcmp.ge.f32.partialorder %v6002_v10, 0.0  ;;  %v6066_v62 = vmul.f32 0.1, %v6002_v10  ;;  %v8367_v53 = vadd.f32 %v5926_v2, %v11093_v41 }
 0x699   : > { %v6099_v26 = vsel %vm6035_vm5, %v6003_v51, %v6067_v16  ;;  %v6005_v47 = vadd.f32 %v8366_v45, %v11133_v3 }
 0x69a   : > { %6131 = vst.msk [vmem:[%s11144_s21 + $0xe8] sm:$0xff] %vm1345_vm4, %v6099_v26  ;;  %v6098_v40 = vsel %vm6034_vm8, %v6002_v10, %v6066_v62  ;;  %v6004_v12 = vadd.f32 %v8367_v53, %v11133_v3 }
 0x69b   : > { %6130 = vst.msk [vmem:[%s11144_s21 + $0xe0] sm:$0xff] %vm1345_vm4, %v6098_v40  ;;  %vm6037_vm6 = vcmp.ge.f32.partialorder %v6005_v47, 0.0  ;;  %v6069_v32 = vmul.f32 0.1, %v6005_v47 }
 0x69c   : > { %vm6036_vm7 = vcmp.ge.f32.partialorder %v6004_v12, 0.0  ;;  %v6068_v20 = vmul.f32 0.1, %v6004_v12 }
 0x69d   : > { %v6101_v58 = vsel %vm6037_vm6, %v6005_v47, %v6069_v32 }
 0x69e   : > { %6133 = vst.msk [vmem:[%s11144_s21 + $0xf8] sm:$0xff] %vm1345_vm4, %v6101_v58  ;;  %v6100_v11 = vsel %vm6036_vm7, %v6004_v12, %v6068_v20 }
 0x69f   : > { %6132 = vst.msk [vmem:[%s11144_s21 + $0xf0] sm:$0xff] %vm1345_vm4, %v6100_v11 }
 0x6a0 PF: > { %s11543_s0 = sld [smem:[#allocation7_spill]]  ;;  %s11544_s19 = sld [smem:[#allocation5_spill]] }
 0x6a6   : > { %p8662_p5 = scmp.ge.s32.totalorder %s11543_s0, 2  ;;  %s6195_s18 = sand.u32 1, %s11544_s19  }
 0x6a7   : > { %s6196_s22 = scalar_lea.sflag [#allocation3], %s6195_s18 }
 0x6a8   : > { %p8659_p1 = pnand %p8662_p5, %p8898_p6 }
 0x6aa   : > { %8743 = dma.done.wait (!%p8659_p1), %s6196_s22, 256  }
 0x6ab   : > { %8745 = vsyncadd (!%p8659_p1), %s6196_s22, 4294967040  ;;  %s11546_s27 = sld [smem:[#allocation8_spill]]  ;;  %s11547_s30 = sld [smem:[#allocation6_spill]] }
 0x6ac   : > { %s11548_s26 = sld [smem:[#allocation9_spill]]  ;;  %s11549_s24 = smov %s8752_s25 }
 0x6b1   : > { %p28_p2 = scmp.ge.s32.totalorder %s11546_s27, 4   ;;  %s11550_s25 = smov %s11547_s30 }
 0x6b3   :  { %30 = sbr.rel (!%p28_p2) target bundleno = 7 (0x7), region = 145 }
 0x6ba   :  { %6201 = vsyncpa [#allocation3], 1 }
 0x6bb   :  { %6203 = vsyncpa [#allocation3 + $0x1], 1 }

</bundles_post_ra>
